<compile_context>
chip_gen: v7x
topology: tpu7x:2x2x1
jax: 0.10.0
libtpu: 0.0.40
codegen_flags: <defaults>
</compile_context>

<pallas_src>
import functools

import jax
import jax.numpy as jnp
from jax.experimental import pallas as pl
from jax.experimental.pallas import tpu as pltpu


def _round_up(x, m):
    return (x + m - 1) // m * m


def _pick_tile(total, max_tile):
    """Largest multiple-of-8 divisor of `total` that is <= max_tile (fallback: total)."""
    best = 0
    cap = min(total, max(8, max_tile))
    t = 8
    while t <= cap:
        if total % t == 0:
            best = t
        t += 8
    return best if best > 0 else total


def _vmem_limit_bytes():
    """Generation-aware scoped-VMEM budget (v5e/v6e: 128 MiB, v7x: 64 MiB per core)."""
    try:
        cap = int(pltpu.get_tpu_info().vmem_capacity_bytes)
    except Exception:
        cap = 64 * 1024 * 1024
    return int(min(max(cap - 16 * 1024 * 1024, (3 * cap) // 4), 100 * 1024 * 1024))


_VMEM_LIMIT = _vmem_limit_bytes()


# ----------------------------------------------------------------------------
# Kernel 1: fused [affine+PReLU prologue] -> 3x3 conv -> partial BN statistics
# ----------------------------------------------------------------------------
def _conv3x3_kernel(src_ref, scale_ref, shift_ref, alpha_ref, w_ref,
                    out_ref, stats_ref, xpad_ref, tap_ref,
                    *, H, W, W8, C, TH):
    """Grid = (N, H//TH).  src_ref: (1, H, W8, C) image; w_ref: (3, 3C, C) per-ky taps.

    Once per image (r == 0): y = prelu(src*scale + shift) is written into a persistent
    zero-padded VMEM scratch (in-kernel halo).  Per row tile: 3 MXU dots with K=3*C
    produce (TH*W8, C) conv output plus f32 partial sum / sum-of-squares for BatchNorm.
    """
    r = pl.program_id(1)

    @pl.when(r == 0)
    def _():
        xpad_ref[...] = jnp.zeros_like(xpad_ref)
        y = src_ref[0].astype(jnp.float32)                    # (H, W8, C)
        y = y * scale_ref[...] + shift_ref[...]               # (1, C) broadcast
        y = jnp.where(y >= 0.0, y, alpha_ref[...] * y)
        if W8 > W:
            # Zero the width-alignment columns so the 3x3 taps stay exact.
            col = jax.lax.broadcasted_iota(jnp.int32, (H, W8, C), 1)
            y = jnp.where(col < W, y, 0.0)
        xpad_ref[1:H + 1, 1:W8 + 1, :] = y.astype(xpad_ref.dtype)

    row0 = r * TH
    acc = jnp.zeros((TH * W8, C), jnp.float32)
    for ky in range(3):
        # Pack the three kx-shifted windows along channels -> contraction depth 3*C.
        for kx in range(3):
            win = xpad_ref[pl.ds(row0 + ky, TH), kx:kx + W8, :]     # (TH, W8, C)
            tap_ref[:, kx * C:(kx + 1) * C] = win.reshape(TH * W8, C)
        acc = acc + jnp.dot(tap_ref[...], w_ref[ky],
                            preferred_element_type=jnp.float32)

    out_ref[0] = acc.astype(out_ref.dtype)

    # Per-tile BatchNorm partial statistics (f32); alignment columns masked in-kernel.
    if W8 > W:
        col = jax.lax.broadcasted_iota(jnp.int32, (TH * W8, C), 0) % W8
        acc = jnp.where(col < W, acc, 0.0)
    stats_ref[0, 0, 0:1, :] = jnp.sum(acc, axis=0, keepdims=True)
    stats_ref[0, 0, 1:2, :] = jnp.sum(acc * acc, axis=0, keepdims=True)


def _conv3x3(src, scale, shift, alpha, w_mat, *, H, W, W8, C, mxu_dtype):
    """src: (N, H, W8, C); scale/shift/alpha: (1, C) f32; w_mat: (3, 3C, C).

    Returns conv output (N, H*W8, C) in mxu_dtype and stats (N, nR, 2, C) f32 where
    stats[..., 0, :] / [..., 1, :] are per-tile sum / sum-of-squares of the f32 conv acc.
    """
    N = src.shape[0]
    max_rows = max(8, min(512, (4 * 1024 * 1024) // max(14 * W8 * C, 1)))
    TH = _pick_tile(H, max_rows)
    nR = H // TH
    kern = functools.partial(_conv3x3_kernel, H=H, W=W, W8=W8, C=C, TH=TH)
    return pl.pallas_call(
        kern,
        out_shape=(
            jax.ShapeDtypeStruct((N, H * W8, C), mxu_dtype),
            jax.ShapeDtypeStruct((N, nR, 2, C), jnp.float32),
        ),
        grid_spec=pltpu.PrefetchScalarGridSpec(
            num_scalar_prefetch=0,
            grid=(N, nR),
            in_specs=[
                pl.BlockSpec((1, H, W8, C), lambda n, r: (n, 0, 0, 0)),
                pl.BlockSpec((1, C), lambda n, r: (0, 0)),
                pl.BlockSpec((1, C), lambda n, r: (0, 0)),
                pl.BlockSpec((1, C), lambda n, r: (0, 0)),
                pl.BlockSpec((3, 3 * C, C), lambda n, r: (0, 0, 0)),
            ],
            out_specs=[
                pl.BlockSpec((1, TH * W8, C), lambda n, r: (n, r, 0)),
                pl.BlockSpec((1, 1, 2, C), lambda n, r: (n, r, 0, 0)),
            ],
            scratch_shapes=[
                pltpu.VMEM((H + 2, W8 + 2, C), mxu_dtype),     # zero-padded image
                pltpu.VMEM((TH * W8, 3 * C), mxu_dtype),       # per-ky tap operand
            ],
        ),
        compiler_params=pltpu.CompilerParams(
            dimension_semantics=("parallel", "arbitrary"),
            vmem_limit_bytes=_VMEM_LIMIT),
    )(src, scale, shift, alpha, w_mat)


# ----------------------------------------------------------------------------
# Kernel 2: BN2 + residual add, lane-dense (rows, W*C) streamed elementwise pass
# ----------------------------------------------------------------------------
def _bn_residual_kernel(c_ref, x_ref, scale_ref, shift_ref, o_ref):
    y = c_ref[...].astype(jnp.float32) * scale_ref[...] + shift_ref[...]
    o_ref[...] = y + x_ref[...].astype(jnp.float32)


def _bn_residual(c2d, x2d, scale_row, shift_row):
    M, WC = x2d.shape
    Mp = _round_up(M, 8)
    if Mp != M:
        c2d = jnp.pad(c2d, ((0, Mp - M), (0, 0)))
        x2d = jnp.pad(x2d, ((0, Mp - M), (0, 0)))
    max_m = max(8, min(2048, (8 * 1024 * 1024) // max(20 * WC, 1)))
    tm = _pick_tile(Mp, max_m)
    out = pl.pallas_call(
        _bn_residual_kernel,
        out_shape=jax.ShapeDtypeStruct((Mp, WC), jnp.float32),
        grid_spec=pltpu.PrefetchScalarGridSpec(
            num_scalar_prefetch=0,
            grid=(Mp // tm,),
            in_specs=[
                pl.BlockSpec((tm, WC), lambda i: (i, 0)),
                pl.BlockSpec((tm, WC), lambda i: (i, 0)),
                pl.BlockSpec((1, WC), lambda i: (0, 0)),
                pl.BlockSpec((1, WC), lambda i: (0, 0)),
            ],
            out_specs=pl.BlockSpec((tm, WC), lambda i: (i, 0)),
        ),
        compiler_params=pltpu.CompilerParams(
            dimension_semantics=("parallel",),
            vmem_limit_bytes=_VMEM_LIMIT),
    )(c2d, x2d, scale_row, shift_row)
    return out[:M]


# ----------------------------------------------------------------------------
# Wrapper glue
# ----------------------------------------------------------------------------
def _fold_bn(stats, gamma, beta, count, eps):
    """Reduce per-tile partial sums to global batch stats and fold with gamma/beta."""
    s = jnp.sum(stats[:, :, 0, :], axis=(0, 1))
    q = jnp.sum(stats[:, :, 1, :], axis=(0, 1))
    mean = s / count
    var = jnp.maximum(q / count - mean * mean, 0.0)       # biased (training) variance
    scale = gamma.astype(jnp.float32) * jax.lax.rsqrt(var + eps)
    shift = beta.astype(jnp.float32) - mean * scale
    return scale, shift


def residual_block_forward(x, w1, gamma1, beta1, alpha1, w2, gamma2, beta2,
                           *, eps=1e-5, mxu_dtype=jnp.bfloat16):
    """x: (N, C, H, W) NCHW f32; w1/w2: (C, C, 3, 3) OIHW; gamma/beta/alpha: (C,)."""
    N, C, H, W = x.shape
    W8 = _round_up(W, 8)                 # width alignment for in-kernel layouts only
    WC = W8 * C

    # NCHW -> NHWC (interface layout plumbing; only wrapper-side copies kept).
    x_nhwc = jnp.transpose(x, (0, 2, 3, 1)).astype(jnp.float32)      # (N, H, W, C)
    if W8 != W:
        x_nhwc = jnp.pad(x_nhwc, ((0, 0), (0, 0), (0, W8 - W), (0, 0)))

    def prep_weight(w):                  # OIHW -> (3, 3*C_in, C_out), column = kx*C + ci
        return jnp.transpose(w, (2, 3, 1, 0)).reshape(3, 3 * C, C).astype(mxu_dtype)

    ones_c = jnp.ones((1, C), jnp.float32)
    zeros_c = jnp.zeros((1, C), jnp.float32)
    cnt = float(N * H * W)

    # ---- block1: conv3x3 (identity prologue) + BN1 batch statistics ----
    c1, st1 = _conv3x3(x_nhwc, ones_c, zeros_c, ones_c, prep_weight(w1),
                       H=H, W=W, W8=W8, C=C, mxu_dtype=mxu_dtype)
    scale1, shift1 = _fold_bn(st1, gamma1, beta1, cnt, eps)

    # ---- block2: conv3x3 with BN1 + PReLU fused into its prologue ----
    c2, st2 = _conv3x3(c1.reshape(N, H, W8, C),
                       scale1.reshape(1, C), shift1.reshape(1, C),
                       alpha1.astype(jnp.float32).reshape(1, C), prep_weight(w2),
                       H=H, W=W, W8=W8, C=C, mxu_dtype=mxu_dtype)
    scale2, shift2 = _fold_bn(st2, gamma2, beta2, cnt, eps)

    # ---- BN2 + residual add (lane-dense elementwise stream) ----
    s2 = jnp.tile(scale2, W8).reshape(1, WC)
    b2 = jnp.tile(shift2, W8).reshape(1, WC)
    out = _bn_residual(c2.reshape(N * H, WC), x_nhwc.reshape(N * H, WC), s2, b2)

    out = out.reshape(N, H, W8, C)[:, :, :W, :]
    return jnp.transpose(out, (0, 3, 1, 2))                           # back to NCHW


# ----------------------------------------------------------------------------
# Plain-JAX reference (f32)
# ----------------------------------------------------------------------------
def residual_block_reference(x, w1, gamma1, beta1, alpha1, w2, gamma2, beta2, *, eps=1e-5):
    def genblock(h, w, gamma, beta, alpha, use_act):
        y = jax.lax.conv_general_dilated(
            h, w, window_strides=(1, 1), padding=[(1, 1), (1, 1)],
            dimension_numbers=("NCHW", "OIHW", "NCHW"))
        mean = jnp.mean(y, axis=(0, 2, 3), keepdims=True)
        var = jnp.mean(jnp.square(y - mean), axis=(0, 2, 3), keepdims=True)
        y = (y - mean) * jax.lax.rsqrt(var + eps)
        y = y * gamma.reshape(1, -1, 1, 1) + beta.reshape(1, -1, 1, 1)
        if use_act:
            y = jnp.where(y >= 0.0, y, alpha.reshape(1, -1, 1, 1) * y)
        return y

    out = genblock(x, w1, gamma1, beta1, alpha1, True)
    out = genblock(out, w2, gamma2, beta2, None, False)
    return out + x


if __name__ == "__main__":
    # ResidualBlock(in_channels=4) on a (2, 4, 16, 16) input.
    N, C, H, W = 2, 4, 16, 16
    key = jax.random.PRNGKey(0)
    ks = jax.random.split(key, 7)

    x = jax.random.normal(ks[0], (N, C, H, W), jnp.float32)
    w1 = 0.1 * jax.random.normal(ks[1], (C, C, 3, 3), jnp.float32)
    w2 = 0.1 * jax.random.normal(ks[2], (C, C, 3, 3), jnp.float32)
    gamma1 = 1.0 + 0.1 * jax.random.normal(ks[3], (C,), jnp.float32)
    beta1 = 0.1 * jax.random.normal(ks[4], (C,), jnp.float32)
    gamma2 = 1.0 + 0.1 * jax.random.normal(ks[5], (C,), jnp.float32)
    beta2 = 0.1 * jax.random.normal(ks[6], (C,), jnp.float32)
    alpha1 = jnp.full((C,), 0.25, jnp.float32)   # PReLU default init

    fwd = jax.jit(residual_block_forward)
    out = jax.block_until_ready(fwd(x, w1, gamma1, beta1, alpha1, w2, gamma2, beta2))

    ref = residual_block_reference(x, w1, gamma1, beta1, alpha1, w2, gamma2, beta2)
    assert out.shape == (N, C, H, W), out.shape
    max_err = float(jnp.max(jnp.abs(out - ref)))
    # bf16 MXU operands + bf16-stored intermediates vs f32 reference.
    assert jnp.allclose(out, ref, rtol=5e-2, atol=5e-2), max_err
    print("KERNEL_OK")
</pallas_src>

<mosaic_0001>
module attributes {stable_mosaic.version = 11 : i64} {
  func.func @_conv3x3_kernel(%arg0: i32, %arg1: i32, %arg2: memref<1x16x16x4xf32, #tpu.memory_space<vmem>>, %arg3: memref<1x4xf32, #tpu.memory_space<vmem>>, %arg4: memref<1x4xf32, #tpu.memory_space<vmem>>, %arg5: memref<1x4xf32, #tpu.memory_space<vmem>>, %arg6: memref<3x12x4xbf16, #tpu.memory_space<vmem>>, %arg7: memref<1x256x4xbf16, #tpu.memory_space<vmem>>, %arg8: memref<1x1x2x4xf32, #tpu.memory_space<vmem>>, %arg9: memref<18x18x4xbf16, #tpu.memory_space<vmem>>, %arg10: memref<256x12xbf16, #tpu.memory_space<vmem>>) attributes {dimension_semantics = [#tpu.dimension_semantics<parallel>, #tpu.dimension_semantics<arbitrary>], iteration_bounds = array<i64: 2, 1>, scalar_prefetch = 0 : i64, scratch_operands = 2 : i64, tpu.core_type = #tpu.core_type<tc>, window_params = [{transform_indices = @transform_0, window_bounds = array<i64: 1, 16, 16, 4>}, {pipeline_mode = #tpu.pipeline_mode<synchronous>, transform_indices = @transform_1, window_bounds = array<i64: 1, 4>}, {pipeline_mode = #tpu.pipeline_mode<synchronous>, transform_indices = @transform_2, window_bounds = array<i64: 1, 4>}, {pipeline_mode = #tpu.pipeline_mode<synchronous>, transform_indices = @transform_3, window_bounds = array<i64: 1, 4>}, {pipeline_mode = #tpu.pipeline_mode<synchronous>, transform_indices = @transform_4, window_bounds = array<i64: 3, 12, 4>}, {transform_indices = @transform_5, window_bounds = array<i64: 1, 256, 4>}, {transform_indices = @transform_6, window_bounds = array<i64: 1, 1, 2, 4>}]} {
    %c0_i32 = arith.constant 0 : i32
    %0 = arith.cmpi eq, %arg1, %c0_i32 : i32
    %1 = arith.extui %0 : i1 to i32
    %c0_i32_0 = arith.constant 0 : i32
    %2 = arith.cmpi ne, %1, %c0_i32_0 : i32
    scf.if %2 {
      %cst_70 = arith.constant 0.000000e+00 : bf16
      %80 = vector.broadcast %cst_70 : bf16 to vector<18x18x4xbf16>
      %c0_71 = arith.constant 0 : index
      %c0_72 = arith.constant 0 : index
      %c0_73 = arith.constant 0 : index
      %81 = vector.load %arg9[%c0_71, %c0_72, %c0_73] : memref<18x18x4xbf16, #tpu.memory_space<vmem>>, vector<18x18x4xbf16>
      tpu.vector_store %arg9[%c0_71, %c0_72, %c0_73], %80 {strides = array<i32>} : memref<18x18x4xbf16, #tpu.memory_space<vmem>>, vector<18x18x4xbf16>,
      %c0_74 = arith.constant 0 : index
      %c0_75 = arith.constant 0 : index
      %c0_76 = arith.constant 0 : index
      %c0_77 = arith.constant 0 : index
      %82 = vector.load %arg2[%c0_74, %c0_75, %c0_76, %c0_77] : memref<1x16x16x4xf32, #tpu.memory_space<vmem>>, vector<1x16x16x4xf32>
      %83 = vector.shape_cast %82 : vector<1x16x16x4xf32> to vector<16x16x4xf32>
      %c0_78 = arith.constant 0 : index
      %c0_79 = arith.constant 0 : index
      %84 = vector.load %arg3[%c0_78, %c0_79] : memref<1x4xf32, #tpu.memory_space<vmem>>, vector<1x4xf32>
      %85 = vector.shape_cast %84 : vector<1x4xf32> to vector<1x1x4xf32>
      %86 = vector.broadcast %85 : vector<1x1x4xf32> to vector<16x16x4xf32>
      %87 = arith.mulf %83, %86 : vector<16x16x4xf32>
      %c0_80 = arith.constant 0 : index
      %c0_81 = arith.constant 0 : index
      %88 = vector.load %arg4[%c0_80, %c0_81] : memref<1x4xf32, #tpu.memory_space<vmem>>, vector<1x4xf32>
      %89 = vector.shape_cast %88 : vector<1x4xf32> to vector<1x1x4xf32>
      %90 = vector.broadcast %89 : vector<1x1x4xf32> to vector<16x16x4xf32>
      %91 = arith.addf %87, %90 : vector<16x16x4xf32>
      %cst_82 = arith.constant 0.000000e+00 : f32
      %92 = vector.broadcast %cst_82 : f32 to vector<16x16x4xf32>
      %93 = arith.cmpf oge, %91, %92 : vector<16x16x4xf32>
      %c0_83 = arith.constant 0 : index
      %c0_84 = arith.constant 0 : index
      %94 = vector.load %arg5[%c0_83, %c0_84] : memref<1x4xf32, #tpu.memory_space<vmem>>, vector<1x4xf32>
      %95 = vector.shape_cast %94 : vector<1x4xf32> to vector<1x1x4xf32>
      %96 = vector.broadcast %95 : vector<1x1x4xf32> to vector<16x16x4xf32>
      %97 = arith.mulf %96, %91 : vector<16x16x4xf32>
      %98 = arith.select %93, %91, %97 : vector<16x16x4xi1>, vector<16x16x4xf32>
      %99 = arith.truncf %98 : vector<16x16x4xf32> to vector<16x16x4xbf16>
      %c1_85 = arith.constant 1 : index
      %c1_86 = arith.constant 1 : index
      %c0_87 = arith.constant 0 : index
      %100 = vector.load %arg9[%c1_85, %c1_86, %c0_87] : memref<18x18x4xbf16, #tpu.memory_space<vmem>>, vector<16x16x4xbf16>
      tpu.vector_store %arg9[%c1_85, %c1_86, %c0_87], %99 {strides = array<i32>} : memref<18x18x4xbf16, #tpu.memory_space<vmem>>, vector<16x16x4xbf16>,
    } else {
    }
    %c16_i32 = arith.constant 16 : i32
    %3 = arith.muli %arg1, %c16_i32 : i32
    %cst = arith.constant 0.000000e+00 : f32
    %4 = vector.broadcast %cst : f32 to vector<256x4xf32>
    %c0_i32_1 = arith.constant 0 : i32
    %5 = arith.addi %3, %c0_i32_1 : i32
    %6 = arith.index_cast %5 : i32 to index
    %c0 = arith.constant 0 : index
    %c0_2 = arith.constant 0 : index
    %7 = vector.load %arg9[%6, %c0, %c0_2] : memref<18x18x4xbf16, #tpu.memory_space<vmem>>, vector<16x16x4xbf16>
    %8 = vector.shape_cast %7 : vector<16x16x4xbf16> to vector<256x4xbf16>
    %c0_3 = arith.constant 0 : index
    %c0_4 = arith.constant 0 : index
    %9 = vector.load %arg10[%c0_3, %c0_4] : memref<256x12xbf16, #tpu.memory_space<vmem>>, vector<256x4xbf16>
    tpu.vector_store %arg10[%c0_3, %c0_4], %8 {strides = array<i32>} : memref<256x12xbf16, #tpu.memory_space<vmem>>, vector<256x4xbf16>,
    %c0_i32_5 = arith.constant 0 : i32
    %10 = arith.addi %3, %c0_i32_5 : i32
    %11 = arith.index_cast %10 : i32 to index
    %c1 = arith.constant 1 : index
    %c0_6 = arith.constant 0 : index
    %12 = vector.load %arg9[%11, %c1, %c0_6] : memref<18x18x4xbf16, #tpu.memory_space<vmem>>, vector<16x16x4xbf16>
    %13 = vector.shape_cast %12 : vector<16x16x4xbf16> to vector<256x4xbf16>
    %c0_7 = arith.constant 0 : index
    %c4 = arith.constant 4 : index
    %14 = vector.load %arg10[%c0_7, %c4] : memref<256x12xbf16, #tpu.memory_space<vmem>>, vector<256x4xbf16>
    tpu.vector_store %arg10[%c0_7, %c4], %13 {strides = array<i32>} : memref<256x12xbf16, #tpu.memory_space<vmem>>, vector<256x4xbf16>,
    %c0_i32_8 = arith.constant 0 : i32
    %15 = arith.addi %3, %c0_i32_8 : i32
    %16 = arith.index_cast %15 : i32 to index
    %c2 = arith.constant 2 : index
    %c0_9 = arith.constant 0 : index
    %17 = vector.load %arg9[%16, %c2, %c0_9] : memref<18x18x4xbf16, #tpu.memory_space<vmem>>, vector<16x16x4xbf16>
    %18 = vector.shape_cast %17 : vector<16x16x4xbf16> to vector<256x4xbf16>
    %c0_10 = arith.constant 0 : index
    %c8 = arith.constant 8 : index
    %19 = vector.load %arg10[%c0_10, %c8] : memref<256x12xbf16, #tpu.memory_space<vmem>>, vector<256x4xbf16>
    tpu.vector_store %arg10[%c0_10, %c8], %18 {strides = array<i32>} : memref<256x12xbf16, #tpu.memory_space<vmem>>, vector<256x4xbf16>,
    %c0_11 = arith.constant 0 : index
    %c0_12 = arith.constant 0 : index
    %20 = vector.load %arg10[%c0_11, %c0_12] : memref<256x12xbf16, #tpu.memory_space<vmem>>, vector<256x12xbf16>
    %c0_13 = arith.constant 0 : index
    %c0_14 = arith.constant 0 : index
    %c0_15 = arith.constant 0 : index
    %21 = vector.load %arg6[%c0_13, %c0_14, %c0_15] : memref<3x12x4xbf16, #tpu.memory_space<vmem>>, vector<1x12x4xbf16>
    %22 = vector.shape_cast %21 : vector<1x12x4xbf16> to vector<12x4xbf16>
    %cst_16 = arith.constant dense<0.000000e+00> : vector<256x4xf32>
    %23 = tpu.matmul %20, %22, %cst_16 {dimension_numbers = #tpu.dot_dimension_numbers<[1], [0], [0], [1], [0, 0, 1, 1], [], []>} : vector<256x12xbf16>, vector<12x4xbf16>, vector<256x4xf32> -> vector<256x4xf32>
    %24 = arith.addf %4, %23 : vector<256x4xf32>
    %c1_i32 = arith.constant 1 : i32
    %25 = arith.addi %3, %c1_i32 : i32
    %26 = arith.index_cast %25 : i32 to index
    %c0_17 = arith.constant 0 : index
    %c0_18 = arith.constant 0 : index
    %27 = vector.load %arg9[%26, %c0_17, %c0_18] : memref<18x18x4xbf16, #tpu.memory_space<vmem>>, vector<16x16x4xbf16>
    %28 = vector.shape_cast %27 : vector<16x16x4xbf16> to vector<256x4xbf16>
    %c0_19 = arith.constant 0 : index
    %c0_20 = arith.constant 0 : index
    %29 = vector.load %arg10[%c0_19, %c0_20] : memref<256x12xbf16, #tpu.memory_space<vmem>>, vector<256x4xbf16>
    tpu.vector_store %arg10[%c0_19, %c0_20], %28 {strides = array<i32>} : memref<256x12xbf16, #tpu.memory_space<vmem>>, vector<256x4xbf16>,
    %c1_i32_21 = arith.constant 1 : i32
    %30 = arith.addi %3, %c1_i32_21 : i32
    %31 = arith.index_cast %30 : i32 to index
    %c1_22 = arith.constant 1 : index
    %c0_23 = arith.constant 0 : index
    %32 = vector.load %arg9[%31, %c1_22, %c0_23] : memref<18x18x4xbf16, #tpu.memory_space<vmem>>, vector<16x16x4xbf16>
    %33 = vector.shape_cast %32 : vector<16x16x4xbf16> to vector<256x4xbf16>
    %c0_24 = arith.constant 0 : index
    %c4_25 = arith.constant 4 : index
    %34 = vector.load %arg10[%c0_24, %c4_25] : memref<256x12xbf16, #tpu.memory_space<vmem>>, vector<256x4xbf16>
    tpu.vector_store %arg10[%c0_24, %c4_25], %33 {strides = array<i32>} : memref<256x12xbf16, #tpu.memory_space<vmem>>, vector<256x4xbf16>,
    %c1_i32_26 = arith.constant 1 : i32
    %35 = arith.addi %3, %c1_i32_26 : i32
    %36 = arith.index_cast %35 : i32 to index
    %c2_27 = arith.constant 2 : index
    %c0_28 = arith.constant 0 : index
    %37 = vector.load %arg9[%36, %c2_27, %c0_28] : memref<18x18x4xbf16, #tpu.memory_space<vmem>>, vector<16x16x4xbf16>
    %38 = vector.shape_cast %37 : vector<16x16x4xbf16> to vector<256x4xbf16>
    %c0_29 = arith.constant 0 : index
    %c8_30 = arith.constant 8 : index
    %39 = vector.load %arg10[%c0_29, %c8_30] : memref<256x12xbf16, #tpu.memory_space<vmem>>, vector<256x4xbf16>
    tpu.vector_store %arg10[%c0_29, %c8_30], %38 {strides = array<i32>} : memref<256x12xbf16, #tpu.memory_space<vmem>>, vector<256x4xbf16>,
    %c0_31 = arith.constant 0 : index
    %c0_32 = arith.constant 0 : index
    %40 = vector.load %arg10[%c0_31, %c0_32] : memref<256x12xbf16, #tpu.memory_space<vmem>>, vector<256x12xbf16>
    %c1_33 = arith.constant 1 : index
    %c0_34 = arith.constant 0 : index
    %c0_35 = arith.constant 0 : index
    %41 = vector.load %arg6[%c1_33, %c0_34, %c0_35] : memref<3x12x4xbf16, #tpu.memory_space<vmem>>, vector<1x12x4xbf16>
    %42 = vector.shape_cast %41 : vector<1x12x4xbf16> to vector<12x4xbf16>
    %cst_36 = arith.constant dense<0.000000e+00> : vector<256x4xf32>
    %43 = tpu.matmul %40, %42, %cst_36 {dimension_numbers = #tpu.dot_dimension_numbers<[1], [0], [0], [1], [0, 0, 1, 1], [], []>} : vector<256x12xbf16>, vector<12x4xbf16>, vector<256x4xf32> -> vector<256x4xf32>
    %44 = arith.addf %24, %43 : vector<256x4xf32>
    %c2_i32 = arith.constant 2 : i32
    %45 = arith.addi %3, %c2_i32 : i32
    %46 = arith.index_cast %45 : i32 to index
    %c0_37 = arith.constant 0 : index
    %c0_38 = arith.constant 0 : index
    %47 = vector.load %arg9[%46, %c0_37, %c0_38] : memref<18x18x4xbf16, #tpu.memory_space<vmem>>, vector<16x16x4xbf16>
    %48 = vector.shape_cast %47 : vector<16x16x4xbf16> to vector<256x4xbf16>
    %c0_39 = arith.constant 0 : index
    %c0_40 = arith.constant 0 : index
    %49 = vector.load %arg10[%c0_39, %c0_40] : memref<256x12xbf16, #tpu.memory_space<vmem>>, vector<256x4xbf16>
    tpu.vector_store %arg10[%c0_39, %c0_40], %48 {strides = array<i32>} : memref<256x12xbf16, #tpu.memory_space<vmem>>, vector<256x4xbf16>,
    %c2_i32_41 = arith.constant 2 : i32
    %50 = arith.addi %3, %c2_i32_41 : i32
    %51 = arith.index_cast %50 : i32 to index
    %c1_42 = arith.constant 1 : index
    %c0_43 = arith.constant 0 : index
    %52 = vector.load %arg9[%51, %c1_42, %c0_43] : memref<18x18x4xbf16, #tpu.memory_space<vmem>>, vector<16x16x4xbf16>
    %53 = vector.shape_cast %52 : vector<16x16x4xbf16> to vector<256x4xbf16>
    %c0_44 = arith.constant 0 : index
    %c4_45 = arith.constant 4 : index
    %54 = vector.load %arg10[%c0_44, %c4_45] : memref<256x12xbf16, #tpu.memory_space<vmem>>, vector<256x4xbf16>
    tpu.vector_store %arg10[%c0_44, %c4_45], %53 {strides = array<i32>} : memref<256x12xbf16, #tpu.memory_space<vmem>>, vector<256x4xbf16>,
    %c2_i32_46 = arith.constant 2 : i32
    %55 = arith.addi %3, %c2_i32_46 : i32
    %56 = arith.index_cast %55 : i32 to index
    %c2_47 = arith.constant 2 : index
    %c0_48 = arith.constant 0 : index
    %57 = vector.load %arg9[%56, %c2_47, %c0_48] : memref<18x18x4xbf16, #tpu.memory_space<vmem>>, vector<16x16x4xbf16>
    %58 = vector.shape_cast %57 : vector<16x16x4xbf16> to vector<256x4xbf16>
    %c0_49 = arith.constant 0 : index
    %c8_50 = arith.constant 8 : index
    %59 = vector.load %arg10[%c0_49, %c8_50] : memref<256x12xbf16, #tpu.memory_space<vmem>>, vector<256x4xbf16>
    tpu.vector_store %arg10[%c0_49, %c8_50], %58 {strides = array<i32>} : memref<256x12xbf16, #tpu.memory_space<vmem>>, vector<256x4xbf16>,
    %c0_51 = arith.constant 0 : index
    %c0_52 = arith.constant 0 : index
    %60 = vector.load %arg10[%c0_51, %c0_52] : memref<256x12xbf16, #tpu.memory_space<vmem>>, vector<256x12xbf16>
    %c2_53 = arith.constant 2 : index
    %c0_54 = arith.constant 0 : index
    %c0_55 = arith.constant 0 : index
    %61 = vector.load %arg6[%c2_53, %c0_54, %c0_55] : memref<3x12x4xbf16, #tpu.memory_space<vmem>>, vector<1x12x4xbf16>
    %62 = vector.shape_cast %61 : vector<1x12x4xbf16> to vector<12x4xbf16>
    %cst_56 = arith.constant dense<0.000000e+00> : vector<256x4xf32>
    %63 = tpu.matmul %60, %62, %cst_56 {dimension_numbers = #tpu.dot_dimension_numbers<[1], [0], [0], [1], [0, 0, 1, 1], [], []>} : vector<256x12xbf16>, vector<12x4xbf16>, vector<256x4xf32> -> vector<256x4xf32>
    %64 = arith.addf %44, %63 : vector<256x4xf32>
    %65 = arith.truncf %64 : vector<256x4xf32> to vector<256x4xbf16>
    %c0_57 = arith.constant 0 : index
    %c0_58 = arith.constant 0 : index
    %c0_59 = arith.constant 0 : index
    %66 = vector.load %arg7[%c0_57, %c0_58, %c0_59] : memref<1x256x4xbf16, #tpu.memory_space<vmem>>, vector<1x256x4xbf16>
    %67 = vector.shape_cast %66 : vector<1x256x4xbf16> to vector<256x4xbf16>
    %68 = vector.shape_cast %65 : vector<256x4xbf16> to vector<1x256x4xbf16>
    tpu.vector_store %arg7[%c0_57, %c0_58, %c0_59], %68 {strides = array<i32>} : memref<1x256x4xbf16, #tpu.memory_space<vmem>>, vector<1x256x4xbf16>,
    %cst_60 = arith.constant dense<0.000000e+00> : vector<4xf32>
    %69 = vector.multi_reduction <add>, %64, %cst_60 [0] : vector<256x4xf32> to vector<4xf32>
    %70 = vector.shape_cast %69 : vector<4xf32> to vector<1x4xf32>
    %c0_61 = arith.constant 0 : index
    %c0_62 = arith.constant 0 : index
    %c0_63 = arith.constant 0 : index
    %c0_64 = arith.constant 0 : index
    %71 = vector.load %arg8[%c0_61, %c0_62, %c0_63, %c0_64] : memref<1x1x2x4xf32, #tpu.memory_space<vmem>>, vector<1x1x1x4xf32>
    %72 = vector.shape_cast %71 : vector<1x1x1x4xf32> to vector<1x4xf32>
    %73 = vector.shape_cast %70 : vector<1x4xf32> to vector<1x1x1x4xf32>
    tpu.vector_store %arg8[%c0_61, %c0_62, %c0_63, %c0_64], %73 {strides = array<i32>} : memref<1x1x2x4xf32, #tpu.memory_space<vmem>>, vector<1x1x1x4xf32>,
    %74 = arith.mulf %64, %64 : vector<256x4xf32>
    %cst_65 = arith.constant dense<0.000000e+00> : vector<4xf32>
    %75 = vector.multi_reduction <add>, %74, %cst_65 [0] : vector<256x4xf32> to vector<4xf32>
    %76 = vector.shape_cast %75 : vector<4xf32> to vector<1x4xf32>
    %c0_66 = arith.constant 0 : index
    %c0_67 = arith.constant 0 : index
    %c1_68 = arith.constant 1 : index
    %c0_69 = arith.constant 0 : index
    %77 = vector.load %arg8[%c0_66, %c0_67, %c1_68, %c0_69] : memref<1x1x2x4xf32, #tpu.memory_space<vmem>>, vector<1x1x1x4xf32>
    %78 = vector.shape_cast %77 : vector<1x1x1x4xf32> to vector<1x4xf32>
    %79 = vector.shape_cast %76 : vector<1x4xf32> to vector<1x1x1x4xf32>
    tpu.vector_store %arg8[%c0_66, %c0_67, %c1_68, %c0_69], %79 {strides = array<i32>} : memref<1x1x2x4xf32, #tpu.memory_space<vmem>>, vector<1x1x1x4xf32>,
    return
  }
  func.func @transform_0(%arg0: i32, %arg1: i32) -> (i32, i32, i32, i32) {
    %c0_i32 = arith.constant 0 : i32
    %c0_i32_0 = arith.constant 0 : i32
    %c0_i32_1 = arith.constant 0 : i32
    %c0_i32_2 = arith.constant 0 : i32
    return %arg0, %c0_i32, %c0_i32_0, %c0_i32_1 : i32, i32, i32, i32
  }
  func.func @transform_1(%arg0: i32, %arg1: i32) -> (i32, i32) {
    %c0_i32 = arith.constant 0 : i32
    %c0_i32_0 = arith.constant 0 : i32
    %c0_i32_1 = arith.constant 0 : i32
    return %c0_i32, %c0_i32_0 : i32, i32
  }
  func.func @transform_2(%arg0: i32, %arg1: i32) -> (i32, i32) {
    %c0_i32 = arith.constant 0 : i32
    %c0_i32_0 = arith.constant 0 : i32
    %c0_i32_1 = arith.constant 0 : i32
    return %c0_i32, %c0_i32_0 : i32, i32
  }
  func.func @transform_3(%arg0: i32, %arg1: i32) -> (i32, i32) {
    %c0_i32 = arith.constant 0 : i32
    %c0_i32_0 = arith.constant 0 : i32
    %c0_i32_1 = arith.constant 0 : i32
    return %c0_i32, %c0_i32_0 : i32, i32
  }
  func.func @transform_4(%arg0: i32, %arg1: i32) -> (i32, i32, i32) {
    %c0_i32 = arith.constant 0 : i32
    %c0_i32_0 = arith.constant 0 : i32
    %c0_i32_1 = arith.constant 0 : i32
    %c0_i32_2 = arith.constant 0 : i32
    return %c0_i32, %c0_i32_0, %c0_i32_1 : i32, i32, i32
  }
  func.func @transform_5(%arg0: i32, %arg1: i32) -> (i32, i32, i32) {
    %c0_i32 = arith.constant 0 : i32
    %c0_i32_0 = arith.constant 0 : i32
    return %arg0, %arg1, %c0_i32 : i32, i32, i32
  }
  func.func @transform_6(%arg0: i32, %arg1: i32) -> (i32, i32, i32, i32) {
    %c0_i32 = arith.constant 0 : i32
    %c0_i32_0 = arith.constant 0 : i32
    %c0_i32_1 = arith.constant 0 : i32
    return %arg0, %arg1, %c0_i32, %c0_i32_0 : i32, i32, i32, i32
  }
}

module attributes {stable_mosaic.version = 11 : i64} {
  func.func @_conv3x3_kernel(%arg0: i32, %arg1: i32, %arg2: memref<1x16x16x4xbf16, #tpu.memory_space<vmem>>, %arg3: memref<1x4xf32, #tpu.memory_space<vmem>>, %arg4: memref<1x4xf32, #tpu.memory_space<vmem>>, %arg5: memref<1x4xf32, #tpu.memory_space<vmem>>, %arg6: memref<3x12x4xbf16, #tpu.memory_space<vmem>>, %arg7: memref<1x256x4xbf16, #tpu.memory_space<vmem>>, %arg8: memref<1x1x2x4xf32, #tpu.memory_space<vmem>>, %arg9: memref<18x18x4xbf16, #tpu.memory_space<vmem>>, %arg10: memref<256x12xbf16, #tpu.memory_space<vmem>>) attributes {dimension_semantics = [#tpu.dimension_semantics<parallel>, #tpu.dimension_semantics<arbitrary>], iteration_bounds = array<i64: 2, 1>, scalar_prefetch = 0 : i64, scratch_operands = 2 : i64, tpu.core_type = #tpu.core_type<tc>, window_params = [{transform_indices = @transform_0, window_bounds = array<i64: 1, 16, 16, 4>}, {pipeline_mode = #tpu.pipeline_mode<synchronous>, transform_indices = @transform_1, window_bounds = array<i64: 1, 4>}, {pipeline_mode = #tpu.pipeline_mode<synchronous>, transform_indices = @transform_2, window_bounds = array<i64: 1, 4>}, {pipeline_mode = #tpu.pipeline_mode<synchronous>, transform_indices = @transform_3, window_bounds = array<i64: 1, 4>}, {pipeline_mode = #tpu.pipeline_mode<synchronous>, transform_indices = @transform_4, window_bounds = array<i64: 3, 12, 4>}, {transform_indices = @transform_5, window_bounds = array<i64: 1, 256, 4>}, {transform_indices = @transform_6, window_bounds = array<i64: 1, 1, 2, 4>}]} {
    %c0_i32 = arith.constant 0 : i32
    %0 = arith.cmpi eq, %arg1, %c0_i32 : i32
    %1 = arith.extui %0 : i1 to i32
    %c0_i32_0 = arith.constant 0 : i32
    %2 = arith.cmpi ne, %1, %c0_i32_0 : i32
    scf.if %2 {
      %cst_70 = arith.constant 0.000000e+00 : bf16
      %80 = vector.broadcast %cst_70 : bf16 to vector<18x18x4xbf16>
      %c0_71 = arith.constant 0 : index
      %c0_72 = arith.constant 0 : index
      %c0_73 = arith.constant 0 : index
      %81 = vector.load %arg9[%c0_71, %c0_72, %c0_73] : memref<18x18x4xbf16, #tpu.memory_space<vmem>>, vector<18x18x4xbf16>
      tpu.vector_store %arg9[%c0_71, %c0_72, %c0_73], %80 {strides = array<i32>} : memref<18x18x4xbf16, #tpu.memory_space<vmem>>, vector<18x18x4xbf16>,
      %c0_74 = arith.constant 0 : index
      %c0_75 = arith.constant 0 : index
      %c0_76 = arith.constant 0 : index
      %c0_77 = arith.constant 0 : index
      %82 = vector.load %arg2[%c0_74, %c0_75, %c0_76, %c0_77] : memref<1x16x16x4xbf16, #tpu.memory_space<vmem>>, vector<1x16x16x4xbf16>
      %83 = vector.shape_cast %82 : vector<1x16x16x4xbf16> to vector<16x16x4xbf16>
      %84 = arith.extf %83 : vector<16x16x4xbf16> to vector<16x16x4xf32>
      %c0_78 = arith.constant 0 : index
      %c0_79 = arith.constant 0 : index
      %85 = vector.load %arg3[%c0_78, %c0_79] : memref<1x4xf32, #tpu.memory_space<vmem>>, vector<1x4xf32>
      %86 = vector.shape_cast %85 : vector<1x4xf32> to vector<1x1x4xf32>
      %87 = vector.broadcast %86 : vector<1x1x4xf32> to vector<16x16x4xf32>
      %88 = arith.mulf %84, %87 : vector<16x16x4xf32>
      %c0_80 = arith.constant 0 : index
      %c0_81 = arith.constant 0 : index
      %89 = vector.load %arg4[%c0_80, %c0_81] : memref<1x4xf32, #tpu.memory_space<vmem>>, vector<1x4xf32>
      %90 = vector.shape_cast %89 : vector<1x4xf32> to vector<1x1x4xf32>
      %91 = vector.broadcast %90 : vector<1x1x4xf32> to vector<16x16x4xf32>
      %92 = arith.addf %88, %91 : vector<16x16x4xf32>
      %cst_82 = arith.constant 0.000000e+00 : f32
      %93 = vector.broadcast %cst_82 : f32 to vector<16x16x4xf32>
      %94 = arith.cmpf oge, %92, %93 : vector<16x16x4xf32>
      %c0_83 = arith.constant 0 : index
      %c0_84 = arith.constant 0 : index
      %95 = vector.load %arg5[%c0_83, %c0_84] : memref<1x4xf32, #tpu.memory_space<vmem>>, vector<1x4xf32>
      %96 = vector.shape_cast %95 : vector<1x4xf32> to vector<1x1x4xf32>
      %97 = vector.broadcast %96 : vector<1x1x4xf32> to vector<16x16x4xf32>
      %98 = arith.mulf %97, %92 : vector<16x16x4xf32>
      %99 = arith.select %94, %92, %98 : vector<16x16x4xi1>, vector<16x16x4xf32>
      %100 = arith.truncf %99 : vector<16x16x4xf32> to vector<16x16x4xbf16>
      %c1_85 = arith.constant 1 : index
      %c1_86 = arith.constant 1 : index
      %c0_87 = arith.constant 0 : index
      %101 = vector.load %arg9[%c1_85, %c1_86, %c0_87] : memref<18x18x4xbf16, #tpu.memory_space<vmem>>, vector<16x16x4xbf16>
      tpu.vector_store %arg9[%c1_85, %c1_86, %c0_87], %100 {strides = array<i32>} : memref<18x18x4xbf16, #tpu.memory_space<vmem>>, vector<16x16x4xbf16>,
    } else {
    }
    %c16_i32 = arith.constant 16 : i32
    %3 = arith.muli %arg1, %c16_i32 : i32
    %cst = arith.constant 0.000000e+00 : f32
    %4 = vector.broadcast %cst : f32 to vector<256x4xf32>
    %c0_i32_1 = arith.constant 0 : i32
    %5 = arith.addi %3, %c0_i32_1 : i32
    %6 = arith.index_cast %5 : i32 to index
    %c0 = arith.constant 0 : index
    %c0_2 = arith.constant 0 : index
    %7 = vector.load %arg9[%6, %c0, %c0_2] : memref<18x18x4xbf16, #tpu.memory_space<vmem>>, vector<16x16x4xbf16>
    %8 = vector.shape_cast %7 : vector<16x16x4xbf16> to vector<256x4xbf16>
    %c0_3 = arith.constant 0 : index
    %c0_4 = arith.constant 0 : index
    %9 = vector.load %arg10[%c0_3, %c0_4] : memref<256x12xbf16, #tpu.memory_space<vmem>>, vector<256x4xbf16>
    tpu.vector_store %arg10[%c0_3, %c0_4], %8 {strides = array<i32>} : memref<256x12xbf16, #tpu.memory_space<vmem>>, vector<256x4xbf16>,
    %c0_i32_5 = arith.constant 0 : i32
    %10 = arith.addi %3, %c0_i32_5 : i32
    %11 = arith.index_cast %10 : i32 to index
    %c1 = arith.constant 1 : index
    %c0_6 = arith.constant 0 : index
    %12 = vector.load %arg9[%11, %c1, %c0_6] : memref<18x18x4xbf16, #tpu.memory_space<vmem>>, vector<16x16x4xbf16>
    %13 = vector.shape_cast %12 : vector<16x16x4xbf16> to vector<256x4xbf16>
    %c0_7 = arith.constant 0 : index
    %c4 = arith.constant 4 : index
    %14 = vector.load %arg10[%c0_7, %c4] : memref<256x12xbf16, #tpu.memory_space<vmem>>, vector<256x4xbf16>
    tpu.vector_store %arg10[%c0_7, %c4], %13 {strides = array<i32>} : memref<256x12xbf16, #tpu.memory_space<vmem>>, vector<256x4xbf16>,
    %c0_i32_8 = arith.constant 0 : i32
    %15 = arith.addi %3, %c0_i32_8 : i32
    %16 = arith.index_cast %15 : i32 to index
    %c2 = arith.constant 2 : index
    %c0_9 = arith.constant 0 : index
    %17 = vector.load %arg9[%16, %c2, %c0_9] : memref<18x18x4xbf16, #tpu.memory_space<vmem>>, vector<16x16x4xbf16>
    %18 = vector.shape_cast %17 : vector<16x16x4xbf16> to vector<256x4xbf16>
    %c0_10 = arith.constant 0 : index
    %c8 = arith.constant 8 : index
    %19 = vector.load %arg10[%c0_10, %c8] : memref<256x12xbf16, #tpu.memory_space<vmem>>, vector<256x4xbf16>
    tpu.vector_store %arg10[%c0_10, %c8], %18 {strides = array<i32>} : memref<256x12xbf16, #tpu.memory_space<vmem>>, vector<256x4xbf16>,
    %c0_11 = arith.constant 0 : index
    %c0_12 = arith.constant 0 : index
    %20 = vector.load %arg10[%c0_11, %c0_12] : memref<256x12xbf16, #tpu.memory_space<vmem>>, vector<256x12xbf16>
    %c0_13 = arith.constant 0 : index
    %c0_14 = arith.constant 0 : index
    %c0_15 = arith.constant 0 : index
    %21 = vector.load %arg6[%c0_13, %c0_14, %c0_15] : memref<3x12x4xbf16, #tpu.memory_space<vmem>>, vector<1x12x4xbf16>
    %22 = vector.shape_cast %21 : vector<1x12x4xbf16> to vector<12x4xbf16>
    %cst_16 = arith.constant dense<0.000000e+00> : vector<256x4xf32>
    %23 = tpu.matmul %20, %22, %cst_16 {dimension_numbers = #tpu.dot_dimension_numbers<[1], [0], [0], [1], [0, 0, 1, 1], [], []>} : vector<256x12xbf16>, vector<12x4xbf16>, vector<256x4xf32> -> vector<256x4xf32>
    %24 = arith.addf %4, %23 : vector<256x4xf32>
    %c1_i32 = arith.constant 1 : i32
    %25 = arith.addi %3, %c1_i32 : i32
    %26 = arith.index_cast %25 : i32 to index
    %c0_17 = arith.constant 0 : index
    %c0_18 = arith.constant 0 : index
    %27 = vector.load %arg9[%26, %c0_17, %c0_18] : memref<18x18x4xbf16, #tpu.memory_space<vmem>>, vector<16x16x4xbf16>
    %28 = vector.shape_cast %27 : vector<16x16x4xbf16> to vector<256x4xbf16>
    %c0_19 = arith.constant 0 : index
    %c0_20 = arith.constant 0 : index
    %29 = vector.load %arg10[%c0_19, %c0_20] : memref<256x12xbf16, #tpu.memory_space<vmem>>, vector<256x4xbf16>
    tpu.vector_store %arg10[%c0_19, %c0_20], %28 {strides = array<i32>} : memref<256x12xbf16, #tpu.memory_space<vmem>>, vector<256x4xbf16>,
    %c1_i32_21 = arith.constant 1 : i32
    %30 = arith.addi %3, %c1_i32_21 : i32
    %31 = arith.index_cast %30 : i32 to index
    %c1_22 = arith.constant 1 : index
    %c0_23 = arith.constant 0 : index
    %32 = vector.load %arg9[%31, %c1_22, %c0_23] : memref<18x18x4xbf16, #tpu.memory_space<vmem>>, vector<16x16x4xbf16>
    %33 = vector.shape_cast %32 : vector<16x16x4xbf16> to vector<256x4xbf16>
    %c0_24 = arith.constant 0 : index
    %c4_25 = arith.constant 4 : index
    %34 = vector.load %arg10[%c0_24, %c4_25] : memref<256x12xbf16, #tpu.memory_space<vmem>>, vector<256x4xbf16>
    tpu.vector_store %arg10[%c0_24, %c4_25], %33 {strides = array<i32>} : memref<256x12xbf16, #tpu.memory_space<vmem>>, vector<256x4xbf16>,
    %c1_i32_26 = arith.constant 1 : i32
    %35 = arith.addi %3, %c1_i32_26 : i32
    %36 = arith.index_cast %35 : i32 to index
    %c2_27 = arith.constant 2 : index
    %c0_28 = arith.constant 0 : index
    %37 = vector.load %arg9[%36, %c2_27, %c0_28] : memref<18x18x4xbf16, #tpu.memory_space<vmem>>, vector<16x16x4xbf16>
    %38 = vector.shape_cast %37 : vector<16x16x4xbf16> to vector<256x4xbf16>
    %c0_29 = arith.constant 0 : index
    %c8_30 = arith.constant 8 : index
    %39 = vector.load %arg10[%c0_29, %c8_30] : memref<256x12xbf16, #tpu.memory_space<vmem>>, vector<256x4xbf16>
    tpu.vector_store %arg10[%c0_29, %c8_30], %38 {strides = array<i32>} : memref<256x12xbf16, #tpu.memory_space<vmem>>, vector<256x4xbf16>,
    %c0_31 = arith.constant 0 : index
    %c0_32 = arith.constant 0 : index
    %40 = vector.load %arg10[%c0_31, %c0_32] : memref<256x12xbf16, #tpu.memory_space<vmem>>, vector<256x12xbf16>
    %c1_33 = arith.constant 1 : index
    %c0_34 = arith.constant 0 : index
    %c0_35 = arith.constant 0 : index
    %41 = vector.load %arg6[%c1_33, %c0_34, %c0_35] : memref<3x12x4xbf16, #tpu.memory_space<vmem>>, vector<1x12x4xbf16>
    %42 = vector.shape_cast %41 : vector<1x12x4xbf16> to vector<12x4xbf16>
    %cst_36 = arith.constant dense<0.000000e+00> : vector<256x4xf32>
    %43 = tpu.matmul %40, %42, %cst_36 {dimension_numbers = #tpu.dot_dimension_numbers<[1], [0], [0], [1], [0, 0, 1, 1], [], []>} : vector<256x12xbf16>, vector<12x4xbf16>, vector<256x4xf32> -> vector<256x4xf32>
    %44 = arith.addf %24, %43 : vector<256x4xf32>
    %c2_i32 = arith.constant 2 : i32
    %45 = arith.addi %3, %c2_i32 : i32
    %46 = arith.index_cast %45 : i32 to index
    %c0_37 = arith.constant 0 : index
    %c0_38 = arith.constant 0 : index
    %47 = vector.load %arg9[%46, %c0_37, %c0_38] : memref<18x18x4xbf16, #tpu.memory_space<vmem>>, vector<16x16x4xbf16>
    %48 = vector.shape_cast %47 : vector<16x16x4xbf16> to vector<256x4xbf16>
    %c0_39 = arith.constant 0 : index
    %c0_40 = arith.constant 0 : index
    %49 = vector.load %arg10[%c0_39, %c0_40] : memref<256x12xbf16, #tpu.memory_space<vmem>>, vector<256x4xbf16>
    tpu.vector_store %arg10[%c0_39, %c0_40], %48 {strides = array<i32>} : memref<256x12xbf16, #tpu.memory_space<vmem>>, vector<256x4xbf16>,
    %c2_i32_41 = arith.constant 2 : i32
    %50 = arith.addi %3, %c2_i32_41 : i32
    %51 = arith.index_cast %50 : i32 to index
    %c1_42 = arith.constant 1 : index
    %c0_43 = arith.constant 0 : index
    %52 = vector.load %arg9[%51, %c1_42, %c0_43] : memref<18x18x4xbf16, #tpu.memory_space<vmem>>, vector<16x16x4xbf16>
    %53 = vector.shape_cast %52 : vector<16x16x4xbf16> to vector<256x4xbf16>
    %c0_44 = arith.constant 0 : index
    %c4_45 = arith.constant 4 : index
    %54 = vector.load %arg10[%c0_44, %c4_45] : memref<256x12xbf16, #tpu.memory_space<vmem>>, vector<256x4xbf16>
    tpu.vector_store %arg10[%c0_44, %c4_45], %53 {strides = array<i32>} : memref<256x12xbf16, #tpu.memory_space<vmem>>, vector<256x4xbf16>,
    %c2_i32_46 = arith.constant 2 : i32
    %55 = arith.addi %3, %c2_i32_46 : i32
    %56 = arith.index_cast %55 : i32 to index
    %c2_47 = arith.constant 2 : index
    %c0_48 = arith.constant 0 : index
    %57 = vector.load %arg9[%56, %c2_47, %c0_48] : memref<18x18x4xbf16, #tpu.memory_space<vmem>>, vector<16x16x4xbf16>
    %58 = vector.shape_cast %57 : vector<16x16x4xbf16> to vector<256x4xbf16>
    %c0_49 = arith.constant 0 : index
    %c8_50 = arith.constant 8 : index
    %59 = vector.load %arg10[%c0_49, %c8_50] : memref<256x12xbf16, #tpu.memory_space<vmem>>, vector<256x4xbf16>
    tpu.vector_store %arg10[%c0_49, %c8_50], %58 {strides = array<i32>} : memref<256x12xbf16, #tpu.memory_space<vmem>>, vector<256x4xbf16>,
    %c0_51 = arith.constant 0 : index
    %c0_52 = arith.constant 0 : index
    %60 = vector.load %arg10[%c0_51, %c0_52] : memref<256x12xbf16, #tpu.memory_space<vmem>>, vector<256x12xbf16>
    %c2_53 = arith.constant 2 : index
    %c0_54 = arith.constant 0 : index
    %c0_55 = arith.constant 0 : index
    %61 = vector.load %arg6[%c2_53, %c0_54, %c0_55] : memref<3x12x4xbf16, #tpu.memory_space<vmem>>, vector<1x12x4xbf16>
    %62 = vector.shape_cast %61 : vector<1x12x4xbf16> to vector<12x4xbf16>
    %cst_56 = arith.constant dense<0.000000e+00> : vector<256x4xf32>
    %63 = tpu.matmul %60, %62, %cst_56 {dimension_numbers = #tpu.dot_dimension_numbers<[1], [0], [0], [1], [0, 0, 1, 1], [], []>} : vector<256x12xbf16>, vector<12x4xbf16>, vector<256x4xf32> -> vector<256x4xf32>
    %64 = arith.addf %44, %63 : vector<256x4xf32>
    %65 = arith.truncf %64 : vector<256x4xf32> to vector<256x4xbf16>
    %c0_57 = arith.constant 0 : index
    %c0_58 = arith.constant 0 : index
    %c0_59 = arith.constant 0 : index
    %66 = vector.load %arg7[%c0_57, %c0_58, %c0_59] : memref<1x256x4xbf16, #tpu.memory_space<vmem>>, vector<1x256x4xbf16>
    %67 = vector.shape_cast %66 : vector<1x256x4xbf16> to vector<256x4xbf16>
    %68 = vector.shape_cast %65 : vector<256x4xbf16> to vector<1x256x4xbf16>
    tpu.vector_store %arg7[%c0_57, %c0_58, %c0_59], %68 {strides = array<i32>} : memref<1x256x4xbf16, #tpu.memory_space<vmem>>, vector<1x256x4xbf16>,
    %cst_60 = arith.constant dense<0.000000e+00> : vector<4xf32>
    %69 = vector.multi_reduction <add>, %64, %cst_60 [0] : vector<256x4xf32> to vector<4xf32>
    %70 = vector.shape_cast %69 : vector<4xf32> to vector<1x4xf32>
    %c0_61 = arith.constant 0 : index
    %c0_62 = arith.constant 0 : index
    %c0_63 = arith.constant 0 : index
    %c0_64 = arith.constant 0 : index
    %71 = vector.load %arg8[%c0_61, %c0_62, %c0_63, %c0_64] : memref<1x1x2x4xf32, #tpu.memory_space<vmem>>, vector<1x1x1x4xf32>
    %72 = vector.shape_cast %71 : vector<1x1x1x4xf32> to vector<1x4xf32>
    %73 = vector.shape_cast %70 : vector<1x4xf32> to vector<1x1x1x4xf32>
    tpu.vector_store %arg8[%c0_61, %c0_62, %c0_63, %c0_64], %73 {strides = array<i32>} : memref<1x1x2x4xf32, #tpu.memory_space<vmem>>, vector<1x1x1x4xf32>,
    %74 = arith.mulf %64, %64 : vector<256x4xf32>
    %cst_65 = arith.constant dense<0.000000e+00> : vector<4xf32>
    %75 = vector.multi_reduction <add>, %74, %cst_65 [0] : vector<256x4xf32> to vector<4xf32>
    %76 = vector.shape_cast %75 : vector<4xf32> to vector<1x4xf32>
    %c0_66 = arith.constant 0 : index
    %c0_67 = arith.constant 0 : index
    %c1_68 = arith.constant 1 : index
    %c0_69 = arith.constant 0 : index
    %77 = vector.load %arg8[%c0_66, %c0_67, %c1_68, %c0_69] : memref<1x1x2x4xf32, #tpu.memory_space<vmem>>, vector<1x1x1x4xf32>
    %78 = vector.shape_cast %77 : vector<1x1x1x4xf32> to vector<1x4xf32>
    %79 = vector.shape_cast %76 : vector<1x4xf32> to vector<1x1x1x4xf32>
    tpu.vector_store %arg8[%c0_66, %c0_67, %c1_68, %c0_69], %79 {strides = array<i32>} : memref<1x1x2x4xf32, #tpu.memory_space<vmem>>, vector<1x1x1x4xf32>,
    return
  }
  func.func @transform_0(%arg0: i32, %arg1: i32) -> (i32, i32, i32, i32) {
    %c0_i32 = arith.constant 0 : i32
    %c0_i32_0 = arith.constant 0 : i32
    %c0_i32_1 = arith.constant 0 : i32
    %c0_i32_2 = arith.constant 0 : i32
    return %arg0, %c0_i32, %c0_i32_0, %c0_i32_1 : i32, i32, i32, i32
  }
  func.func @transform_1(%arg0: i32, %arg1: i32) -> (i32, i32) {
    %c0_i32 = arith.constant 0 : i32
    %c0_i32_0 = arith.constant 0 : i32
    %c0_i32_1 = arith.constant 0 : i32
    return %c0_i32, %c0_i32_0 : i32, i32
  }
  func.func @transform_2(%arg0: i32, %arg1: i32) -> (i32, i32) {
    %c0_i32 = arith.constant 0 : i32
    %c0_i32_0 = arith.constant 0 : i32
    %c0_i32_1 = arith.constant 0 : i32
    return %c0_i32, %c0_i32_0 : i32, i32
  }
  func.func @transform_3(%arg0: i32, %arg1: i32) -> (i32, i32) {
    %c0_i32 = arith.constant 0 : i32
    %c0_i32_0 = arith.constant 0 : i32
    %c0_i32_1 = arith.constant 0 : i32
    return %c0_i32, %c0_i32_0 : i32, i32
  }
  func.func @transform_4(%arg0: i32, %arg1: i32) -> (i32, i32, i32) {
    %c0_i32 = arith.constant 0 : i32
    %c0_i32_0 = arith.constant 0 : i32
    %c0_i32_1 = arith.constant 0 : i32
    %c0_i32_2 = arith.constant 0 : i32
    return %c0_i32, %c0_i32_0, %c0_i32_1 : i32, i32, i32
  }
  func.func @transform_5(%arg0: i32, %arg1: i32) -> (i32, i32, i32) {
    %c0_i32 = arith.constant 0 : i32
    %c0_i32_0 = arith.constant 0 : i32
    return %arg0, %arg1, %c0_i32 : i32, i32, i32
  }
  func.func @transform_6(%arg0: i32, %arg1: i32) -> (i32, i32, i32, i32) {
    %c0_i32 = arith.constant 0 : i32
    %c0_i32_0 = arith.constant 0 : i32
    %c0_i32_1 = arith.constant 0 : i32
    return %arg0, %arg1, %c0_i32, %c0_i32_0 : i32, i32, i32, i32
  }
}

module attributes {stable_mosaic.version = 11 : i64} {
  func.func @_bn_residual_kernel(%arg0: i32, %arg1: memref<32x64xbf16, #tpu.memory_space<vmem>>, %arg2: memref<32x64xf32, #tpu.memory_space<vmem>>, %arg3: memref<1x64xf32, #tpu.memory_space<vmem>>, %arg4: memref<1x64xf32, #tpu.memory_space<vmem>>, %arg5: memref<32x64xf32, #tpu.memory_space<vmem>>) attributes {dimension_semantics = [#tpu.dimension_semantics<parallel>], iteration_bounds = array<i64: 1>, scalar_prefetch = 0 : i64, scratch_operands = 0 : i64, tpu.core_type = #tpu.core_type<tc>, window_params = [{transform_indices = @transform_0, window_bounds = array<i64: 32, 64>}, {transform_indices = @transform_1, window_bounds = array<i64: 32, 64>}, {pipeline_mode = #tpu.pipeline_mode<synchronous>, transform_indices = @transform_2, window_bounds = array<i64: 1, 64>}, {pipeline_mode = #tpu.pipeline_mode<synchronous>, transform_indices = @transform_3, window_bounds = array<i64: 1, 64>}, {transform_indices = @transform_4, window_bounds = array<i64: 32, 64>}]} {
    %c0 = arith.constant 0 : index
    %c0_0 = arith.constant 0 : index
    %0 = vector.load %arg1[%c0, %c0_0] : memref<32x64xbf16, #tpu.memory_space<vmem>>, vector<32x64xbf16>
    %1 = arith.extf %0 : vector<32x64xbf16> to vector<32x64xf32>
    %c0_1 = arith.constant 0 : index
    %c0_2 = arith.constant 0 : index
    %2 = vector.load %arg3[%c0_1, %c0_2] : memref<1x64xf32, #tpu.memory_space<vmem>>, vector<1x64xf32>
    %3 = vector.broadcast %2 : vector<1x64xf32> to vector<32x64xf32>
    %4 = arith.mulf %1, %3 : vector<32x64xf32>
    %c0_3 = arith.constant 0 : index
    %c0_4 = arith.constant 0 : index
    %5 = vector.load %arg4[%c0_3, %c0_4] : memref<1x64xf32, #tpu.memory_space<vmem>>, vector<1x64xf32>
    %6 = vector.broadcast %5 : vector<1x64xf32> to vector<32x64xf32>
    %7 = arith.addf %4, %6 : vector<32x64xf32>
    %c0_5 = arith.constant 0 : index
    %c0_6 = arith.constant 0 : index
    %8 = vector.load %arg2[%c0_5, %c0_6] : memref<32x64xf32, #tpu.memory_space<vmem>>, vector<32x64xf32>
    %9 = arith.addf %7, %8 : vector<32x64xf32>
    %c0_7 = arith.constant 0 : index
    %c0_8 = arith.constant 0 : index
    %10 = vector.load %arg5[%c0_7, %c0_8] : memref<32x64xf32, #tpu.memory_space<vmem>>, vector<32x64xf32>
    tpu.vector_store %arg5[%c0_7, %c0_8], %9 {strides = array<i32>} : memref<32x64xf32, #tpu.memory_space<vmem>>, vector<32x64xf32>,
    return
  }
  func.func @transform_0(%arg0: i32) -> (i32, i32) {
    %c0_i32 = arith.constant 0 : i32
    %c0_i32_0 = arith.constant 0 : i32
    return %arg0, %c0_i32 : i32, i32
  }
  func.func @transform_1(%arg0: i32) -> (i32, i32) {
    %c0_i32 = arith.constant 0 : i32
    %c0_i32_0 = arith.constant 0 : i32
    return %arg0, %c0_i32 : i32, i32
  }
  func.func @transform_2(%arg0: i32) -> (i32, i32) {
    %c0_i32 = arith.constant 0 : i32
    %c0_i32_0 = arith.constant 0 : i32
    %c0_i32_1 = arith.constant 0 : i32
    return %c0_i32, %c0_i32_0 : i32, i32
  }
  func.func @transform_3(%arg0: i32) -> (i32, i32) {
    %c0_i32 = arith.constant 0 : i32
    %c0_i32_0 = arith.constant 0 : i32
    %c0_i32_1 = arith.constant 0 : i32
    return %c0_i32, %c0_i32_0 : i32, i32
  }
  func.func @transform_4(%arg0: i32) -> (i32, i32) {
    %c0_i32 = arith.constant 0 : i32
    %c0_i32_0 = arith.constant 0 : i32
    return %arg0, %c0_i32 : i32, i32
  }
}

</mosaic_0001>

<bundles_post_ra>
// kernel: tile.13
= control target key start
LH: loop header
LB: loop body
LE: loop exit
PB: predicated region body
PF: predicated region fallthrough
CT: control target
= control target key end

     0   :  { %s28_s0 = inlined_call_operand.vmem [shape: f32[4], index: 0, kind: input, shape index: {}]   ;;  %s29_s1 = inlined_call_operand.vmem [shape: f32[16,4], index: 1, kind: output, shape index: {}]  }
   0x1   :  { %v4_v0 = vld [vmem:[%s28_s0] ss:$0 sm:$0xff] }
   0x2   :  { %5 = vst [vmem:[%s29_s1] sm:$0xff] %v4_v0  ;;  %8 = vst [vmem:[%s29_s1 + $0x8] sm:$0xff] %v4_v0 }

// kernel: tile.14
= control target key start
LH: loop header
LB: loop body
LE: loop exit
PB: predicated region body
PF: predicated region fallthrough
CT: control target
= control target key end

     0   :  { %s131_s10 = smov 60   ;;  %s132_s11 = smov 52   ;;  %vm3_vm0 = vcmask 31744   ;;  %vm9_vm1 = vcmask 523744   ;;  %vm15_vm2 = vcmask 490944   ;;  %vm21_vm3 = vcmask 458144   ;;  %s207_s0 = inlined_call_operand.vmem [shape: f32[16,4], index: 0, kind: input, shape index: {}]   ;;  %s208_s1 = inlined_call_operand.vmem [shape: f32[1,64], index: 1, kind: output, shape index: {}]  }
   0x1   :  { %v101_v0 = vld [vmem:[%s207_s0 + $0xf] sm:$0x1]   ;;  %v103_v1 = vld [vmem:[%s207_s0 + $0xd] sm:$0x1]   ;;  %v102_v2 = vld [vmem:[%s207_s0 + $0xe] sm:$0x1]  }
   0x2   :  { %7 = vrot.lane.b32.xlu0 %v101_v0, %s131_s10  ;;  %19 = vrot.lane.b32.xlu1 %v103_v1, %s132_s11  ;;  %v104_v3 = vld [vmem:[%s207_s0 + $0xc] sm:$0x1]   ;;  %s133_s16 = smov 56   ;;  %s134_s17 = smov 48   ;;  %v105_v4 = vld [vmem:[%s207_s0 + $0xb] sm:$0x1]  }
   0x3   :  { %v106_v5 = vld [vmem:[%s207_s0 + $0xa] sm:$0x1]   ;;  %v2_v6 = vld [vmem:[%s207_s0] sm:$0x1]   ;;  %s135_s24 = smov 44   ;;  %s136_s25 = smov 40  }
   0x4   :  { %4 = vst.msk [vmem:[#allocation0] sm:$0x1] %vm3_vm0, %v2_v6   ;;  %v107_v7 = vld [vmem:[%s207_s0 + $0x9] sm:$0x1]   ;;  %v108_v8 = vld [vmem:[%s207_s0 + $0x8] sm:$0x1]  }
   0x5   :  { %s137_s30 = smov 36   ;;  %s138_s2 = smov 32   ;;  %v109_v9 = vld [vmem:[%s207_s0 + $0x7] sm:$0x1]   ;;  %v110_v10 = vld [vmem:[%s207_s0 + $0x6] sm:$0x1]  }
   0x6   :  { %13 = vrot.lane.b32.xlu0 %v102_v2, %s133_s16  ;;  %25 = vrot.lane.b32.xlu1 %v104_v3, %s134_s17  ;;  %s139_s7 = smov 28   ;;  %s140_s8 = smov 24   ;;  %v111_v11 = vld [vmem:[%s207_s0 + $0x5] sm:$0x1]   ;;  %v112_v12 = vld [vmem:[%s207_s0 + $0x4] sm:$0x1]  }
   0x7   :  { %s141_s13 = smov 20   ;;  %s142_s14 = smov 16   ;;  %v113_v13 = vld [vmem:[%s207_s0 + $0x3] sm:$0x1]   ;;  %v114_v14 = vld [vmem:[%s207_s0 + $0x2] sm:$0x1]  }
   0x8   :  { %s143_s19 = smov 12   ;;  %s144_s20 = smov 8   ;;  %v115_v15 = vld [vmem:[%s207_s0 + $0x1] sm:$0x1]   ;;  %vm27_vm4 = vcmask 425344   ;;  %vm33_vm5 = vcmask 392544  }
   0x9   :  { %s145_s0 = smov 4   ;;  %vm39_vm6 = vcmask 359744   ;;  %vm45_vm7 = vcmask 326944   ;;  %vm51_vm8 = vcmask 294144   ;;  %vm57_vm9 = vcmask 261344  }
   0xa   :  { %31 = vrot.lane.b32.xlu0 %v105_v4, %s135_s24  ;;  %37 = vrot.lane.b32.xlu1 %v106_v5, %s136_s25  ;;  %vm63_vm10 = vcmask 228544   ;;  %vm69_vm11 = vcmask 195744   ;;  %vm75_vm12 = vcmask 162944   ;;  %vm81_vm13 = vcmask 130144  }
   0xb   :  { %vm87_vm14 = vcmask 97344   ;;  %vm93_vm15 = vcmask 64544  }
   0xe   :  { %43 = vrot.lane.b32.xlu0 %v107_v7, %s137_s30  ;;  %49 = vrot.lane.b32.xlu1 %v108_v8, %s138_s2 }
  0x12   :  { %55 = vrot.lane.b32.xlu0 %v109_v9, %s139_s7  ;;  %61 = vrot.lane.b32.xlu1 %v110_v10, %s140_s8 }
  0x16   :  { %67 = vrot.lane.b32.xlu0 %v111_v11, %s141_s13  ;;  %73 = vrot.lane.b32.xlu1 %v112_v12, %s142_s14 }
  0x1a   :  { %79 = vrot.lane.b32.xlu0 %v113_v13, %s143_s19  ;;  %85 = vrot.lane.b32.xlu1 %v114_v14, %s144_s20 }
  0x1e   :  { %91 = vrot.lane.b32.xlu0 %v115_v15, %s145_s0 }
  0x74   :  { %v8_v16 = vpop.permute.xlu0 %7   ;;  %v20_v17 = vpop.permute.xlu1 %19  }
  0x75   :  { %10 = vst.msk [vmem:[#allocation0] sm:$0x1] %vm9_vm1, %v8_v16  }
  0x78   :  { %v14_v18 = vpop.permute.xlu0 %13   ;;  %v26_v19 = vpop.permute.xlu1 %25  }
  0x79   :  { %16 = vst.msk [vmem:[#allocation0] sm:$0x1] %vm15_vm2, %v14_v18  }
  0x7a   :  { %22 = vst.msk [vmem:[#allocation0] sm:$0x1] %vm21_vm3, %v20_v17  }
  0x7b   :  { %28 = vst.msk [vmem:[#allocation0] sm:$0x1] %vm27_vm4, %v26_v19  }
  0x7c   :  { %v32_v20 = vpop.permute.xlu0 %31   ;;  %v38_v21 = vpop.permute.xlu1 %37  }
  0x7d   :  { %34 = vst.msk [vmem:[#allocation0] sm:$0x1] %vm33_vm5, %v32_v20  }
  0x7e   :  { %40 = vst.msk [vmem:[#allocation0] sm:$0x1] %vm39_vm6, %v38_v21  }
  0x80   :  { %v44_v22 = vpop.permute.xlu0 %43   ;;  %v50_v23 = vpop.permute.xlu1 %49  }
  0x81   :  { %46 = vst.msk [vmem:[#allocation0] sm:$0x1] %vm45_vm7, %v44_v22  }
  0x82   :  { %52 = vst.msk [vmem:[#allocation0] sm:$0x1] %vm51_vm8, %v50_v23  }
  0x84   :  { %v56_v24 = vpop.permute.xlu0 %55   ;;  %v62_v25 = vpop.permute.xlu1 %61  }
  0x85   :  { %58 = vst.msk [vmem:[#allocation0] sm:$0x1] %vm57_vm9, %v56_v24  }
  0x86   :  { %64 = vst.msk [vmem:[#allocation0] sm:$0x1] %vm63_vm10, %v62_v25  }
  0x88   :  { %v68_v26 = vpop.permute.xlu0 %67   ;;  %v74_v27 = vpop.permute.xlu1 %73  }
  0x89   :  { %70 = vst.msk [vmem:[#allocation0] sm:$0x1] %vm69_vm11, %v68_v26  }
  0x8a   :  { %76 = vst.msk [vmem:[#allocation0] sm:$0x1] %vm75_vm12, %v74_v27  }
  0x8c   :  { %v80_v28 = vpop.permute.xlu0 %79   ;;  %v86_v29 = vpop.permute.xlu1 %85  }
  0x8d   :  { %82 = vst.msk [vmem:[#allocation0] sm:$0x1] %vm81_vm13, %v80_v28  }
  0x8e   :  { %88 = vst.msk [vmem:[#allocation0] sm:$0x1] %vm87_vm14, %v86_v29  }
  0x90   :  { %v92_v30 = vpop.permute.xlu0 %91  }
  0x91   :  { %94 = vst.msk [vmem:[#allocation0] sm:$0x1] %vm93_vm15, %v92_v30  }
  0x98   :  { %v98_v31 = vld [vmem:[#allocation0] sm:$0x1] }
  0x99   :  { %100 = vst [vmem:[%s208_s1] sm:$0x1] %v98_v31 }

// kernel: residual_block_forward.5
= control target key start
LH: loop header
LB: loop body
LE: loop exit
PB: predicated region body
PF: predicated region fallthrough
CT: control target
= control target key end

     0   :  { %vm55_vm0 = vcmask 523264   ;;  %s136_s0 = inlined_call_operand.vmem [shape: bf16[32,64], index: 0, kind: input, shape index: {}]   ;;  %s137_s2 = inlined_call_operand.vmem [shape: f32[1,64], index: 2, kind: input, shape index: {}]   ;;  %s138_s3 = inlined_call_operand.vmem [shape: f32[1,64], index: 3, kind: input, shape index: {}]   ;;  %s139_s1 = inlined_call_operand.vmem [shape: f32[32,64], index: 1, kind: input, shape index: {}]   ;;  %s140_s4 = inlined_call_operand.vmem [shape: f32[32,64], index: 4, kind: output, shape index: {}]  }
   0x1   :  { %v67_v0 = vld [vmem:[%s136_s0] sm:$0xff]   ;;  %v74_v4 = vld [vmem:[%s136_s0 + $0x8] sm:$0xff]   ;;  %v49_v16 = vld [vmem:[%s139_s1 + $0x10] sm:$0xff] }
   0x2   :  { %v64_v1 = vld [vmem:[%s137_s2] ss:$0 sm:$0xff]  ;;  %v68_v2 = vunpack.c.l.bf16 %v67_v0  ;;  %v69_v3 = vunpack.c.h.bf16 %v67_v0  ;;  %v72_v6 = vunpack.c.l.bf16 %v74_v4  ;;  %v73_v7 = vunpack.c.h.bf16 %v74_v4  ;;  %v48_v11 = vld [vmem:[%s139_s1 + $0x8] sm:$0xff]  ;;  %v50_v17 = vld [vmem:[%s139_s1 + $0x18] sm:$0xff] }
   0x3   :  { %v65_v5 = vld [vmem:[%s138_s3] ss:$0 sm:$0xff] }
   0x4   :  { %v32_v8 = vmul.f32 %v68_v2, %v64_v1  ;;  %v33_v9 = vmul.f32 %v69_v3, %v64_v1  ;;  %v47_v10 = vld [vmem:[%s139_s1] sm:$0xff]  ;;  %v34_v12 = vmul.f32 %v72_v6, %v64_v1  ;;  %v35_v13 = vmul.f32 %v73_v7, %v64_v1 }
   0x6   :  { %v43_v14 = vadd.f32 %v65_v5, %v32_v8  ;;  %v44_v15 = vadd.f32 %v65_v5, %v33_v9  ;;  %v45_v18 = vadd.f32 %v65_v5, %v34_v12  ;;  %v46_v19 = vadd.f32 %v65_v5, %v35_v13 }
   0x8   :  { %v51_v20 = vadd.f32 %v47_v10, %v43_v14  ;;  %v52_v21 = vadd.f32 %v48_v11, %v44_v15  ;;  %v53_v22 = vadd.f32 %v49_v16, %v45_v18  ;;  %v54_v23 = vadd.f32 %v50_v17, %v46_v19 }
   0xa   :  { %56 = vst.msk [vmem:[%s140_s4] sm:$0xff] %vm55_vm0, %v51_v20  ;;  %57 = vst.msk [vmem:[%s140_s4 + $0x8] sm:$0xff] %vm55_vm0, %v52_v21 }
   0xb   :  { %58 = vst.msk [vmem:[%s140_s4 + $0x10] sm:$0xff] %vm55_vm0, %v53_v22  ;;  %59 = vst.msk [vmem:[%s140_s4 + $0x18] sm:$0xff] %vm55_vm0, %v54_v23 }

// kernel: residual_block_forward.3
= control target key start
LH: loop header
LB: loop body
LE: loop exit
PB: predicated region body
PF: predicated region fallthrough
CT: control target
= control target key end

     0   :  { %s6378_s21 = smov 0   ;;  %s6380_s22 = smov 0   ;;  %s8178_s0 = inlined_call_operand.vmem [shape: f32[2,16,16,4], index: 0, kind: input, shape index: {}]   ;;  %s8179_s1 = inlined_call_operand.vmem [shape: f32[1,4], index: 1, kind: input, shape index: {}, may-alias: {1,3}]   ;;  %s8180_s2 = inlined_call_operand.vmem [shape: f32[1,4], index: 2, kind: input, shape index: {}]   ;;  %s8181_s3 = inlined_call_operand.vmem [shape: f32[1,4], index: 3, kind: input, shape index: {}, may-alias: {1,3}]   ;;  %s8182_s4 = inlined_call_operand.vmem [shape: bf16[3,12,4], index: 4, kind: input, shape index: {}]   ;;  %s8183_s5 = inlined_call_operand.vmem [shape: bf16[2,256,4], index: 5, kind: output, shape index: {0}]   ;;  %s8184_s6 = inlined_call_operand.vmem [shape: f32[2,1,2,4], index: 6, kind: output, shape index: {1}]  }
   0x1   :  { %s6382_s23 = smov 0  }
   0x2 LB: > { %s29_s24 = sadd.s32 1, %s6334_s22  ;;  %p5361_p0 = scmp.ge.s32.totalorder %s6338_s23, 1  ;;  %s6338_s23 = sphi %s6382_s23, %s17_s23   ;;  %s6334_s22 = sphi %s6380_s22, %s8218_s22   ;;  %s6330_s21 = sphi %s6378_s21, %s8217_s21  }
   0x3   : > { %p31_p1 = scmp.ge.s32.totalorder %s29_s24, 2  ;;  %p231_p2 = scmp.lt.s32.totalorder %s6338_s23, 3 }
   0x5   : > { %s8220_s24 = smov (%p31_p1, %s29_s24), 0  ;;  %p232_p3 = pnand %p5361_p0, %p231_p2 }
   0x7   : > { %235 = sbr.rel (%p232_p3) target bundleno = 806 (0x326), region = 40 }
   0xe   : > { %vm299_vm0 = vcmask 27648   ;;  %vm302_vm1 = vcmask 24576   ;;  %v6340_v0 = vmov 0   ;;  %p272_p4 = scmp.lt.s32.totalorder %s6330_s21, 1  ;;  %vm1898_vm2 = vcmask 1042432   ;;  %s6341_s11 = smov 8  }
   0xf   : > { %300 = vst.msk [vmem:[#allocation2] sm:$0xf] %vm299_vm0, %v6340_v0  ;;  %301 = vst.msk [vmem:[#allocation2 + $0x4] sm:$0xf] %vm299_vm0, %v6340_v0  ;;  %vm1899_vm3 = vcmask 1046532   ;;  %s6342_s12 = smov 4  }
  0x10   : > { %303 = vst.msk [vmem:[#allocation2 + $0x8] sm:$0x1] %vm302_vm1, %v6340_v0  ;;  %306 = vst.msk [vmem:[#allocation2 + $0x14] sm:$0x1] %vm302_vm1, %v6340_v0  ;;  %s8222_s21 = smov (!%p272_p4, %s6330_s21), 1 }
  0x11   : > { %304 = vst.msk [vmem:[#allocation2 + $0xc] sm:$0xf] %vm299_vm0, %v6340_v0  ;;  %305 = vst.msk [vmem:[#allocation2 + $0x10] sm:$0xf] %vm299_vm0, %v6340_v0  ;;  %vm1302_vm4 = vsmask.f32 3328 }
  0x12   : > { %307 = vst.msk [vmem:[#allocation2 + $0x18] sm:$0xf] %vm299_vm0, %v6340_v0  ;;  %308 = vst.msk [vmem:[#allocation2 + $0x1c] sm:$0xf] %vm299_vm0, %v6340_v0  ;;  %v6459_v1 = vld [vmem:[%s8179_s1] ss:$0 sm:$0xff] }
  0x13   : > { %309 = vst.msk [vmem:[#allocation2 + $0x20] sm:$0x1] %vm302_vm1, %v6340_v0  ;;  %312 = vst.msk [vmem:[#allocation2 + $0x2c] sm:$0x1] %vm302_vm1, %v6340_v0  ;;  %s5939_s27 = sshll.u32 %s8222_s21, 8 }
  0x14   : > { %310 = vst.msk [vmem:[#allocation2 + $0x24] sm:$0xf] %vm299_vm0, %v6340_v0  ;;  %311 = vst.msk [vmem:[#allocation2 + $0x28] sm:$0xf] %vm299_vm0, %v6340_v0  ;;  %s6469_s30 = scalar_lea.vmem %s8178_s0, %s5939_s27  ;;  %v6474_v3 = vld [vmem:[%s8180_s2] ss:$0 sm:$0xff] }
  0x15   : > { %313 = vst.msk [vmem:[#allocation2 + $0x30] sm:$0xf] %vm299_vm0, %v6340_v0  ;;  %314 = vst.msk [vmem:[#allocation2 + $0x34] sm:$0xf] %vm299_vm0, %v6340_v0  ;;  %vm1303_vm6 = vsmask.f32 7440 }
  0x16   : > { %315 = vst.msk [vmem:[#allocation2 + $0x38] sm:$0x1] %vm302_vm1, %v6340_v0  ;;  %318 = vst.msk [vmem:[#allocation2 + $0x44] sm:$0x1] %vm302_vm1, %v6340_v0  ;;  %v357_v4 = vld [vmem:[%s6469_s30 + $0x10] sm:$0xff]  ;;  %v358_v5 = vld [vmem:[%s6469_s30 + $0x18] sm:$0xff] }
  0x17   : > { %316 = vst.msk [vmem:[#allocation2 + $0x3c] sm:$0xf] %vm299_vm0, %v6340_v0  ;;  %317 = vst.msk [vmem:[#allocation2 + $0x40] sm:$0xf] %vm299_vm0, %v6340_v0  ;;  %v355_v6 = vld [vmem:[%s6469_s30] sm:$0xff]  ;;  %v396_v10 = vmul.f32 %v6459_v1, %v357_v4  ;;  %v397_v11 = vmul.f32 %v6459_v1, %v358_v5  ;;  %v356_v31 = vld [vmem:[%s6469_s30 + $0x8] sm:$0xff] }
  0x18   : > { %319 = vst.msk [vmem:[#allocation2 + $0x48] sm:$0xf] %vm299_vm0, %v6340_v0  ;;  %320 = vst.msk [vmem:[#allocation2 + $0x4c] sm:$0xf] %vm299_vm0, %v6340_v0  ;;  %v1802_v7 = vld [vmem:[#allocation2] sm:$0xe]  ;;  %v394_v16 = vmul.f32 %v6459_v1, %v355_v6  ;;  %v395_v44 = vmul.f32 %v6459_v1, %v356_v31 }
  0x19   : > { %321 = vst.msk [vmem:[#allocation2 + $0x50] sm:$0x1] %vm302_vm1, %v6340_v0  ;;  %324 = vst.msk [vmem:[#allocation2 + $0x5c] sm:$0x1] %vm302_vm1, %v6340_v0  ;;  %v1803_v8 = vld [vmem:[#allocation2 + $0x4] sm:$0xf]  ;;  %v435_v21 = vadd.f32 %v6474_v3, %v396_v10  ;;  %v436_v22 = vadd.f32 %v6474_v3, %v397_v11 }
  0x1a   : > { %322 = vst.msk [vmem:[#allocation2 + $0x54] sm:$0xf] %vm299_vm0, %v6340_v0  ;;  %323 = vst.msk [vmem:[#allocation2 + $0x58] sm:$0xf] %vm299_vm0, %v6340_v0  ;;  %v1804_v9 = vld [vmem:[#allocation2 + $0x8] sm:$0x1]  ;;  %v433_v45 = vadd.f32 %v6474_v3, %v394_v16  ;;  %v434_v53 = vadd.f32 %v6474_v3, %v395_v44 }
  0x1b   : > { %325 = vst.msk [vmem:[#allocation2 + $0x60] sm:$0xf] %vm299_vm0, %v6340_v0  ;;  %326 = vst.msk [vmem:[#allocation2 + $0x64] sm:$0xf] %vm299_vm0, %v6340_v0  ;;  %v5434_v12 = vrot.slane %v1802_v7, 9  ;;  %v1903_v13 = vrot.slane %v1803_v8, 5 }
  0x1c   : > { %327 = vst.msk [vmem:[#allocation2 + $0x68] sm:$0x1] %vm302_vm1, %v6340_v0  ;;  %330 = vst.msk [vmem:[#allocation2 + $0x74] sm:$0x1] %vm302_vm1, %v6340_v0  ;;  %v1906_v14 = vrot.slane %v1804_v9, 5  ;;  %vm467_vm10 = vcmp.ge.f32.partialorder %v435_v21, 0.0 }
  0x1d   : > { %328 = vst.msk [vmem:[#allocation2 + $0x6c] sm:$0xf] %vm299_vm0, %v6340_v0  ;;  %329 = vst.msk [vmem:[#allocation2 + $0x70] sm:$0xf] %vm299_vm0, %v6340_v0  ;;  %v1254_v15 = vld [vmem:[#allocation2] sm:$0xf] }
  0x1e   : > { %331 = vst.msk [vmem:[#allocation2 + $0x78] sm:$0xf] %vm299_vm0, %v6340_v0  ;;  %332 = vst.msk [vmem:[#allocation2 + $0x7c] sm:$0xf] %vm299_vm0, %v6340_v0  ;;  %v1255_v17 = vld [vmem:[#allocation2 + $0x4] sm:$0xf] }
  0x1f   : > { %333 = vst.msk [vmem:[#allocation2 + $0x80] sm:$0x1] %vm302_vm1, %v6340_v0  ;;  %336 = vst.msk [vmem:[#allocation2 + $0x8c] sm:$0x1] %vm302_vm1, %v6340_v0  ;;  %v1256_v18 = vld [vmem:[#allocation2 + $0x8] sm:$0x1] }
  0x20   : > { %334 = vst.msk [vmem:[#allocation2 + $0x84] sm:$0xf] %vm299_vm0, %v6340_v0  ;;  %335 = vst.msk [vmem:[#allocation2 + $0x88] sm:$0xf] %vm299_vm0, %v6340_v0  ;;  %v1306_v19 = vshrl.u32 %v1254_v15, 16  ;;  %v1309_v20 = vshll.u32 %v1254_v15, 16 }
  0x21   : > { %337 = vst.msk [vmem:[#allocation2 + $0x90] sm:$0xf] %vm299_vm0, %v6340_v0  ;;  %338 = vst.msk [vmem:[#allocation2 + $0x94] sm:$0xf] %vm299_vm0, %v6340_v0  ;;  %vm664_vm7 = vsmask.f32 256 }
  0x22   : > { %339 = vst.msk [vmem:[#allocation2 + $0x98] sm:$0x1] %vm302_vm1, %v6340_v0  ;;  %342 = vst.msk [vmem:[#allocation2 + $0xa4] sm:$0x1] %vm302_vm1, %v6340_v0  ;;  %vm665_vm8 = vsmask.f32 4368 }
  0x23   : > { %340 = vst.msk [vmem:[#allocation2 + $0x9c] sm:$0xf] %vm299_vm0, %v6340_v0  ;;  %341 = vst.msk [vmem:[#allocation2 + $0xa0] sm:$0xf] %vm299_vm0, %v6340_v0  ;;  %v1905_v24 = vrot.slane %v1903_v13, 4  ;;  %v1315_v25 = vshll.u32 %v1255_v17, 16 }
  0x24   : > { %343 = vst.msk [vmem:[#allocation2 + $0xa8] sm:$0xf] %vm299_vm0, %v6340_v0  ;;  %344 = vst.msk [vmem:[#allocation2 + $0xac] sm:$0xf] %vm299_vm0, %v6340_v0  ;;  %v1319_v26 = vshrl.u32 %v1255_v17, 16  ;;  %v1308_v28 = vrot.slane %v1306_v19, 4 }
  0x25   : > { %345 = vst.msk [vmem:[#allocation2 + $0xb0] sm:$0x1] %vm302_vm1, %v6340_v0  ;;  %348 = vst.msk [vmem:[#allocation2 + $0xbc] sm:$0x1] %vm302_vm1, %v6340_v0  ;;  %v6489_v27 = vld [vmem:[%s8181_s3] ss:$0 sm:$0xff] }
  0x26   : > { %346 = vst.msk [vmem:[#allocation2 + $0xb4] sm:$0xf] %vm299_vm0, %v6340_v0  ;;  %347 = vst.msk [vmem:[#allocation2 + $0xb8] sm:$0xf] %vm299_vm0, %v6340_v0  ;;  %vm989_vm9 = vsmask.f32 7938  ;;  %v506_v40 = vmul.f32 %v6489_v27, %v435_v21  ;;  %v507_v43 = vmul.f32 %v6489_v27, %v436_v22  ;;  %v504_v56 = vmul.f32 %v6489_v27, %v433_v45 }
  0x27   : > { %349 = vst.msk [vmem:[#allocation2 + $0xc0] sm:$0xf] %vm299_vm0, %v6340_v0  ;;  %350 = vst.msk [vmem:[#allocation2 + $0xc4] sm:$0xf] %vm299_vm0, %v6340_v0  ;;  %v1311_v29 = vrot.slane %v1309_v20, 5  ;;  %v1325_v30 = vshll.u32 %v1256_v18, 16 }
  0x28   : > { %351 = vst.msk [vmem:[#allocation2 + $0xc8] sm:$0x1] %vm302_vm1, %v6340_v0  ;;  %354 = vst.msk [vmem:[#allocation2 + $0xd4] sm:$0x1] %vm302_vm1, %v6340_v0  ;;  %v1317_v33 = vrot.slane %v1315_v25, 5  ;;  %v1321_v34 = vrot.slane %v1319_v26, 4  ;;  %v538_v47 = vsel %vm467_vm10, %v435_v21, %v506_v40 }
  0x29   : > { %352 = vst.msk [vmem:[#allocation2 + $0xcc] sm:$0xf] %vm299_vm0, %v6340_v0  ;;  %353 = vst.msk [vmem:[#allocation2 + $0xd0] sm:$0xf] %vm299_vm0, %v6340_v0  ;;  %vm468_vm11 = vcmp.ge.f32.partialorder %v436_v22, 0.0  ;;  %v359_v35 = vld [vmem:[%s6469_s30 + $0x20] sm:$0xff]  ;;  %v1312_v38 = vor.u32 %v1311_v29, %v1308_v28  ;;  %v5943_v52 = vpack.c.bf16 %v538_v47, %v538_v47  ;;  %v505_v0 = vmul.f32 %v6489_v27, %v434_v53 }
  0x2a   : > { %vm6461_vm5 = vmor %vm1898_vm2, %vm1899_vm3  ;;  %v360_v36 = vld [vmem:[%s6469_s30 + $0x28] sm:$0xff]  ;;  %v1327_v39 = vrot.slane %v1325_v30, 5  ;;  %v1322_v42 = vor.u32 %v1321_v34, %v1317_v33  ;;  %v398_v48 = vmul.f32 %v6459_v1, %v359_v35  ;;  %v539_v51 = vsel %vm468_vm11, %v436_v22, %v507_v43  ;;  %v361_v60 = vld [vmem:[%s6469_s30 + $0x30] sm:$0xff]  ;;  %s5366_s27 = sshll.u32 %s8222_s21, 1 }
  0x2b   : > { %v1904_v23 = vsel %vm6461_vm5, %v5434_v12, %v1903_v13  ;;  %v1907_v32 = vsel %vm6461_vm5, %v1905_v24, %v1906_v14  ;;  %vm6499_vm12 = vmor %vm1302_vm4, %vm1303_vm6  ;;  %v1313_v46 = vrot.slane %v1312_v38, 4  ;;  %v399_v49 = vmul.f32 %v6459_v1, %v360_v36  ;;  %v1000_v6 = vld [vmem:[#allocation2 + $0x18] sm:$0xf]  ;;  %v1004_v12 = vld [vmem:[#allocation2 + $0x20] sm:$0x1] }
  0x2c   : > { %v5450_v37 = vcombine.low %v1904_v23, %v1907_v32  ;;  %v1323_v50 = vrot.slane %v1322_v42, 4  ;;  %v5944_v55 = vpack.c.bf16 %v539_v51, %v539_v51  ;;  %vm465_vm13 = vcmp.ge.f32.partialorder %v433_v45, 0.0  ;;  %vm6521_vm15 = vmor %vm664_vm7, %vm665_vm8  ;;  %v362_v24 = vld [vmem:[%s6469_s30 + $0x38] sm:$0xff]  ;;  %v363_v29 = vld [vmem:[%s6469_s30 + $0x40] sm:$0xff] }
  0x2d   : > { %v1318_v54 = vsel %vm6499_vm12, %v1313_v46, %v1317_v33  ;;  %v685_v58 = vshrl.u32 %v5943_v52, 16  ;;  %v688_v59 = vshll.u32 %v5943_v52, 16  ;;  %vm466_vm14 = vcmp.ge.f32.partialorder %v434_v53, 0.0  ;;  %vm6530_vm2 = vmand %vm299_vm0, %vm989_vm9  ;;  %v991_v35 = vld [vmem:[#allocation2 + $0xc] sm:$0xf] }
  0x2e   : > { %2061 = vrot.lane.b32.xlu1 %v5450_v37, %s6341_s11  ;;  %v1328_v57 = vsel %vm6499_vm12, %v1323_v50, %v1327_v39  ;;  %v693_v62 = vshrl.u32 %v5944_v55, 16  ;;  %v696_v63 = vshll.u32 %v5944_v55, 16  ;;  %v8195_v4 = vmov 0  ;;  %vm6538_vm3 = vmand %vm302_vm1, %vm664_vm7  ;;  %v997_v42 = vld [vmem:[#allocation2 + $0x14] sm:$0x1]  ;;  %v364_v52 = vld [vmem:[%s6469_s30 + $0x48] sm:$0xff] }
  0x2f   : > { %v5418_v61 = vcombine.low %v1318_v54, %v1328_v57  ;;  %v8196_v4 = vsel %vm6521_vm15, 4294967295, %v8195_v4  ;;  %v687_v5 = vrot.slane %v685_v58, 7  ;;  %v536_v7 = vsel %vm465_vm13, %v433_v45, %v504_v56  ;;  %v367_v57 = vld [vmem:[%s6469_s30 + $0x60] sm:$0xff] }
  0x30   : > { %8197 = vst [vmem:[#allocation4_spill] sm:$0xff] %v8196_v4  ;;  %v437_v8 = vadd.f32 %v6474_v3, %v398_v48  ;;  %v438_v9 = vadd.f32 %v6474_v3, %v399_v49  ;;  %v695_v10 = vrot.slane %v693_v62, 7  ;;  %v8198_v11 = vmov 0 }
  0x31   : > { %1737 = vrot.lane.b32.xlu0 %v5418_v61, %s6342_s12  ;;  %v8199_v11 = vsel %vm6530_vm2, 4294967295, %v8198_v11  ;;  %v537_v13 = vsel %vm466_vm14, %v434_v53, %v505_v0  ;;  %v5941_v14 = vpack.c.bf16 %v536_v7, %v536_v7  ;;  %v400_v15 = vmul.f32 %v6459_v1, %v361_v60 }
  0x32   : > { %8200 = vst [vmem:[#allocation5_spill] sm:$0xff] %v8199_v11  ;;  %v690_v16 = vor.u32 %v688_v59, %v687_v5  ;;  %v691_v17 = vrot.slane %v687_v5, 4  ;;  %v8201_v18 = vmov 0  ;;  %v5942_v19 = vpack.c.bf16 %v537_v13, %v537_v13 }
  0x33   : > { %v8202_v18 = vsel %vm6538_vm3, 4294967295, %v8201_v18  ;;  %vm469_vm4 = vcmp.ge.f32.partialorder %v437_v8, 0.0  ;;  %v698_v20 = vor.u32 %v696_v63, %v695_v10  ;;  %v700_v21 = vrot.slane %v695_v10, 4  ;;  %v1007_v63 = vld [vmem:[#allocation2 + $0x24] sm:$0xf] }
  0x34   : > { %8203 = vst [vmem:[#allocation6_spill] sm:$0xff] %v8202_v18  ;;  %v668_v22 = vshrl.u32 %v5941_v14, 16  ;;  %v671_v23 = vshll.u32 %v5941_v14, 16  ;;  %v1001_v25 = vsel %vm6530_vm2, %v690_v16, %v1000_v6  ;;  %v676_v26 = vshrl.u32 %v5942_v19, 16 }
  0x35   : > { %v679_v28 = vshll.u32 %v5942_v19, 16  ;;  %vm470_vm6 = vcmp.ge.f32.partialorder %v438_v9, 0.0  ;;  %v699_v30 = vsel %vm6521_vm15, %v691_v17, %v698_v20  ;;  %1002 = vst [vmem:[#allocation2 + $0x18] sm:$0xf] %v1001_v25  ;;  %v1005_v31 = vsel %vm6538_vm3, %v700_v21, %v1004_v12  ;;  %v1011_v19 = vld [vmem:[#allocation2 + $0x2c] sm:$0x1] }
  0x36   : > { %v670_v32 = vrot.slane %v668_v22, 7  ;;  %v508_v33 = vmul.f32 %v6489_v27, %v437_v8  ;;  %1003 = vst.msk [vmem:[#allocation2 + $0x1c] sm:$0xf] %vm299_vm0, %v699_v30  ;;  %1006 = vst [vmem:[#allocation2 + $0x20] sm:$0x1] %v1005_v31  ;;  %v678_v34 = vrot.slane %v676_v26, 7  ;;  %v509_v36 = vmul.f32 %v6489_v27, %v438_v9 }
  0x37   : > { %v401_v37 = vmul.f32 %v6459_v1, %v362_v24  ;;  %v439_v38 = vadd.f32 %v6474_v3, %v400_v15  ;;  %v402_v44 = vmul.f32 %v6459_v1, %v363_v29  ;;  %v403_v5 = vmul.f32 %v6459_v1, %v364_v52 }
  0x38   : > { %v673_v39 = vor.u32 %v671_v23, %v670_v32  ;;  %v674_v40 = vrot.slane %v670_v32, 4  ;;  %v540_v43 = vsel %vm469_vm4, %v437_v8, %v508_v33  ;;  %v681_v45 = vor.u32 %v679_v28, %v678_v34 }
  0x39   : > { %v683_v46 = vrot.slane %v678_v34, 4  ;;  %v541_v47 = vsel %vm470_vm6, %v438_v9, %v509_v36  ;;  %v5945_v48 = vpack.c.bf16 %v540_v43, %v540_v43  ;;  %v440_v51 = vadd.f32 %v6474_v3, %v401_v37 }
  0x3a   : > { %v992_v49 = vsel %vm6530_vm2, %v673_v39, %v991_v35  ;;  %v5946_v50 = vpack.c.bf16 %v541_v47, %v541_v47  ;;  %vm471_vm7 = vcmp.ge.f32.partialorder %v439_v38, 0.0  ;;  %v682_v53 = vsel %vm6521_vm15, %v674_v40, %v681_v45 }
  0x3b   : > { %993 = vst [vmem:[#allocation2 + $0xc] sm:$0xf] %v992_v49  ;;  %v998_v54 = vsel %vm6538_vm3, %v683_v46, %v997_v42  ;;  %v702_v55 = vshrl.u32 %v5945_v48, 16  ;;  %v705_v56 = vshll.u32 %v5945_v48, 16  ;;  %994 = vst.msk [vmem:[#allocation2 + $0x10] sm:$0xf] %vm299_vm0, %v682_v53  ;;  %v510_v60 = vmul.f32 %v6489_v27, %v439_v38 }
  0x3c   : > { %999 = vst [vmem:[#allocation2 + $0x14] sm:$0x1] %v998_v54  ;;  %v710_v58 = vshrl.u32 %v5946_v50, 16  ;;  %v713_v59 = vshll.u32 %v5946_v50, 16  ;;  %vm472_vm8 = vcmp.ge.f32.partialorder %v440_v51, 0.0  ;;  %v511_v0 = vmul.f32 %v6489_v27, %v440_v51 }
  0x3d   : > { %v1808_v61 = vld [vmem:[#allocation2 + $0x18] sm:$0xe]  ;;  %v704_v62 = vrot.slane %v702_v55, 7  ;;  %v6572_v6 = vadd.f32 %v6474_v3, %v402_v44  ;;  %v1809_v7 = vld [vmem:[#allocation2 + $0x1c] sm:$0xf]  ;;  %v542_v12 = vsel %vm471_vm7, %v439_v38, %v510_v60  ;;  %v6576_v13 = vmul.f32 %v6459_v1, %v367_v57 }
  0x3e   : > { %v1810_v8 = vld [vmem:[#allocation2 + $0x20] sm:$0x1]  ;;  %v5436_v9 = vrot.slane %v1808_v61, 9  ;;  %v712_v10 = vrot.slane %v710_v58, 7  ;;  %v1917_v14 = vrot.slane %v1809_v7, 5  ;;  %v543_v22 = vsel %vm472_vm8, %v440_v51, %v511_v0  ;;  %v6258_v11 = vld [vmem:[#allocation2 + $0x18] sm:$0xff]  }
  0x3f   : > { %v1920_v15 = vrot.slane %v1810_v8, 5  ;;  %v707_v16 = vor.u32 %v705_v56, %v704_v62  ;;  %v708_v17 = vrot.slane %v704_v62, 4  ;;  %v5947_v23 = vpack.c.bf16 %v542_v12, %v542_v12  ;;  %v5581_v29 = vld [vmem:[#allocation2 + $0x18] sm:$0xe]  ;;  %v5582_v42 = vld [vmem:[#allocation2 + $0x1c] sm:$0xf] }
  0x40   : > { %v715_v20 = vor.u32 %v713_v59, %v712_v10  ;;  %v717_v21 = vrot.slane %v712_v10, 4  ;;  %v1918_v24 = vsel %vm6461_vm5, %v5436_v9, %v1917_v14  ;;  %v1919_v25 = vrot.slane %v1917_v14, 4  ;;  %v5583_v54 = vld [vmem:[#allocation2 + $0x20] sm:$0x1]  ;;  %v1014_v58 = vld [vmem:[#allocation2 + $0x30] sm:$0xf] }
  0x41   : > { %v1008_v26 = vsel %vm6530_vm2, %v707_v16, %v1007_v63  ;;  %v5948_v28 = vpack.c.bf16 %v543_v22, %v543_v22  ;;  %v719_v34 = vshrl.u32 %v5947_v23, 16  ;;  %v722_v35 = vshll.u32 %v5947_v23, 16  ;;  %v1018_v7 = vld [vmem:[#allocation2 + $0x38] sm:$0x1] }
  0x42   : > { %v1805_v30 = vld [vmem:[#allocation2 + $0xc] sm:$0xe]  ;;  %v716_v32 = vsel %vm6521_vm15, %v708_v17, %v715_v20  ;;  %1009 = vst [vmem:[#allocation2 + $0x24] sm:$0xf] %v1008_v26  ;;  %v1012_v33 = vsel %vm6538_vm3, %v717_v21, %v1011_v19  ;;  %v1921_v36 = vsel %vm6461_vm5, %v1919_v25, %v1920_v15  ;;  %v1806_v37 = vld [vmem:[#allocation2 + $0x10] sm:$0xf]  ;;  %v6591_v43 = vadd.f32 %v6474_v3, %v403_v5 }
  0x43   : > { %v5578_v31 = vld [vmem:[#allocation2 + $0xc] sm:$0xe]  ;;  %v1807_v38 = vld [vmem:[#allocation2 + $0x14] sm:$0x1]  ;;  %v5435_v39 = vrot.slane %v1805_v30, 9  ;;  %v5452_v44 = vcombine.low %v1918_v24, %v1921_v36  ;;  %v1910_v45 = vrot.slane %v1806_v37, 5  ;;  %v512_v49 = vmul.f32 %v6489_v27, %v6572_v6 }
  0x44   : > { %v5626_v40 = vrot.slane %v5578_v31, 9  ;;  %1010 = vst.msk [vmem:[#allocation2 + $0x28] sm:$0xf] %vm299_vm0, %v716_v32  ;;  %1013 = vst [vmem:[#allocation2 + $0x2c] sm:$0x1] %v1012_v33  ;;  %v1913_v46 = vrot.slane %v1807_v38, 5 }
  0x45   : > { %v5579_v47 = vld [vmem:[#allocation2 + $0x10] sm:$0xf]  ;;  %v5580_v48 = vld [vmem:[#allocation2 + $0x14] sm:$0x1]  ;;  %v721_v52 = vrot.slane %v719_v34, 7  ;;  %v727_v53 = vshrl.u32 %v5948_v28, 16  ;;  %2065 = vrot.lane.b32.xlu0 %v5452_v44, %s6341_s11  ;;  %v1911_v55 = vsel %vm6461_vm5, %v5435_v39, %v1910_v45 }
  0x46   : > { %v2934_v50 = vrot.slane %v5579_v47, 5  ;;  %v2937_v51 = vrot.slane %v5580_v48, 5  ;;  %v1912_v56 = vrot.slane %v1910_v45, 4  ;;  %v730_v57 = vshll.u32 %v5948_v28, 16  ;;  %v1258_v45 = vld [vmem:[#allocation2 + $0x10] sm:$0xf] }
  0x47   : > { %v5627_v59 = vrot.slane %v5581_v29, 9  ;;  %v724_v62 = vor.u32 %v722_v35, %v721_v52  ;;  %v725_v63 = vrot.slane %v721_v52, 4  ;;  %v729_v5 = vrot.slane %v727_v53, 7  ;;  %v1257_v35 = vld [vmem:[#allocation2 + $0xc] sm:$0xf] }
  0x48   : > { %v2935_v60 = vsel %vm6461_vm5, %v5626_v40, %v2934_v50  ;;  %v2936_v61 = vrot.slane %v2934_v50, 4  ;;  %v1914_v0 = vsel %vm6461_vm5, %v1912_v56, %v1913_v46  ;;  %v2941_v8 = vrot.slane %v5582_v42, 5 }
  0x49   : > { %v2944_v9 = vrot.slane %v5583_v54, 5  ;;  %v5451_v10 = vcombine.low %v1911_v55, %v1914_v0  ;;  %v1811_v14 = vld [vmem:[#allocation2 + $0x24] sm:$0xe]  ;;  %v1015_v15 = vsel %vm6530_vm2, %v724_v62, %v1014_v58  ;;  %vm473_vm9 = vcmp.ge.f32.partialorder %v6572_v6, 0.0  ;;  %v368_v55 = vld [vmem:[%s6469_s30 + $0x68] sm:$0xff] }
  0x4a   : > { %v2938_v12 = vsel %vm6461_vm5, %v2936_v61, %v2937_v51  ;;  %v5584_v16 = vld [vmem:[#allocation2 + $0x24] sm:$0xe]  ;;  %v5437_v21 = vrot.slane %v1811_v14, 9  ;;  %v732_v22 = vor.u32 %v730_v57, %v729_v5  ;;  %v734_v23 = vrot.slane %v729_v5, 4  ;;  %1016 = vst [vmem:[#allocation2 + $0x30] sm:$0xf] %v1015_v15 }
  0x4b   : > { %v5642_v17 = vcombine.low %v2935_v60, %v2938_v12  ;;  %v1812_v19 = vld [vmem:[#allocation2 + $0x28] sm:$0xf]  ;;  %v1813_v20 = vld [vmem:[#allocation2 + $0x2c] sm:$0x1]  ;;  %2063 = vrot.lane.b32.xlu1 %v5451_v10, %s6341_s11  ;;  %v2942_v26 = vsel %vm6461_vm5, %v5627_v59, %v2941_v8  ;;  %v2943_v28 = vrot.slane %v2941_v8, 4  ;;  %v5628_v33 = vrot.slane %v5584_v16, 9 }
  0x4c   : > { %v1924_v24 = vrot.slane %v1812_v19, 5  ;;  %v1927_v25 = vrot.slane %v1813_v20, 5  ;;  %v5585_v29 = vld [vmem:[#allocation2 + $0x28] sm:$0xf]  ;;  %v733_v30 = vsel %vm6521_vm15, %v725_v63, %v732_v22  ;;  %v1019_v31 = vsel %vm6538_vm3, %v734_v23, %v1018_v7  ;;  %v5586_v32 = vld [vmem:[#allocation2 + $0x2c] sm:$0x1] }
  0x4d   : > { %3092 = vrot.lane.b32.xlu0 %v5642_v17, %s6341_s11  ;;  %v2948_v34 = vrot.slane %v5585_v29, 5  ;;  %1017 = vst.msk [vmem:[#allocation2 + $0x34] sm:$0xf] %vm299_vm0, %v733_v30  ;;  %1020 = vst [vmem:[#allocation2 + $0x38] sm:$0x1] %v1019_v31  ;;  %v2945_v38 = vsel %vm6461_vm5, %v2943_v28, %v2944_v9  ;;  %v2951_v39 = vrot.slane %v5586_v32, 5  ;;  %v513_v47 = vmul.f32 %v6489_v27, %v6591_v43 }
  0x4e   : > { %v1925_v36 = vsel %vm6461_vm5, %v5437_v21, %v1924_v24  ;;  %v1926_v37 = vrot.slane %v1924_v24, 4  ;;  %v5643_v40 = vcombine.low %v2942_v26, %v2945_v38  ;;  %vm474_vm10 = vcmp.ge.f32.partialorder %v6591_v43, 0.0  ;;  %v1021_v0 = vld [vmem:[#allocation2 + $0x3c] sm:$0xf]  ;;  %v1025_v21 = vld [vmem:[#allocation2 + $0x44] sm:$0x1] }
  0x4f   : > { %v6622_v42 = vsel %vm6461_vm5, %v5628_v33, %v2948_v34  ;;  %v2950_v44 = vrot.slane %v2948_v34, 4  ;;  %v544_v48 = vsel %vm473_vm9, %v6572_v6, %v512_v49  ;;  %v1330_v50 = vshrl.u32 %v1257_v35, 16  ;;  %v6257_v18 = vld [vmem:[#allocation2 + $0x24] sm:$0xff]  }
  0x50   : > { %v1928_v46 = vsel %vm6461_vm5, %v1926_v37, %v1927_v25  ;;  %v5949_v53 = vpack.c.bf16 %v544_v48, %v544_v48  ;;  %v1333_v54 = vshll.u32 %v1257_v35, 16  ;;  %v545_v58 = vsel %vm474_vm10, %v6591_v43, %v513_v47  ;;  %v1263_v37 = vld [vmem:[#allocation2 + $0x24] sm:$0xf] }
  0x51   : > { %v5453_v51 = vcombine.low %v1925_v36, %v1928_v46  ;;  %v6634_v52 = vsel %vm6461_vm5, %v2950_v44, %v2951_v39  ;;  %v1814_v56 = vld [vmem:[#allocation2 + $0x30] sm:$0xe]  ;;  %v1332_v60 = vrot.slane %v1330_v50, 4  ;;  %v1339_v61 = vshll.u32 %v1258_v45, 16 }
  0x52   : > { %v5644_v57 = vcombine.low %v6622_v42, %v6634_v52  ;;  %v5587_v59 = vld [vmem:[#allocation2 + $0x30] sm:$0xe]  ;;  %v5438_v6 = vrot.slane %v1814_v56, 9  ;;  %v5950_v49 = vpack.c.bf16 %v545_v58, %v545_v58  ;;  %v736_v62 = vshrl.u32 %v5949_v53, 16 }
  0x53   : > { %2067 = vrot.lane.b32.xlu1 %v5453_v51, %s6341_s11  ;;  %v739_v63 = vshll.u32 %v5949_v53, 16  ;;  %v5629_v5 = vrot.slane %v5587_v59, 9  ;;  %v1335_v7 = vrot.slane %v1333_v54, 5  ;;  %v6641_v8 = vrot.slane %v1339_v61, 5  ;;  %v1265_v51 = vld [vmem:[#allocation2 + $0x2c] sm:$0x1] }
  0x54   : > { %v1343_v9 = vshrl.u32 %v1258_v45, 16  ;;  %v1815_v10 = vld [vmem:[#allocation2 + $0x34] sm:$0xf]  ;;  %v1816_v12 = vld [vmem:[#allocation2 + $0x38] sm:$0x1]  ;;  %v738_v14 = vrot.slane %v736_v62, 7  ;;  %v6644_v43 = vmul.f32 %v6459_v1, %v368_v55  ;;  %v6648_v16 = vadd.f32 %v6474_v3, %v6576_v13 }
  0x55   : > { %v744_v15 = vshrl.u32 %v5950_v49, 16  ;;  %v1931_v17 = vrot.slane %v1815_v10, 5  ;;  %v1934_v19 = vrot.slane %v1816_v12, 5  ;;  %v747_v20 = vshll.u32 %v5950_v49, 16  ;;  %v5588_v22 = vld [vmem:[#allocation2 + $0x34] sm:$0xf] }
  0x56   : > { %v1336_v23 = vor.u32 %v1335_v7, %v1332_v60  ;;  %v741_v24 = vor.u32 %v739_v63, %v738_v14  ;;  %v742_v25 = vrot.slane %v738_v14, 4  ;;  %v5589_v28 = vld [vmem:[#allocation2 + $0x38] sm:$0x1]  ;;  %v2955_v29 = vrot.slane %v5588_v22, 5  ;;  %v1259_v13 = vld [vmem:[#allocation2 + $0x14] sm:$0x1] }
  0x57   : > { %3094 = vrot.lane.b32.xlu1 %v5643_v40, %s6341_s11  ;;  %v746_v26 = vrot.slane %v744_v15, 7  ;;  %v1932_v1 = vsel %vm6461_vm5, %v5438_v6, %v1931_v17  ;;  %v1933_v30 = vrot.slane %v1931_v17, 4  ;;  %v2958_v31 = vrot.slane %v5589_v28, 5  ;;  %v1264_v45 = vld [vmem:[#allocation2 + $0x28] sm:$0xf] }
  0x58   : > { %v1337_v32 = vrot.slane %v1336_v23, 4  ;;  %v1022_v35 = vsel %vm6530_vm2, %v741_v24, %v1021_v0  ;;  %v6657_v36 = vsel %vm6461_vm5, %v5629_v5, %v2955_v29  ;;  %v2957_v39 = vrot.slane %v2955_v29, 4  ;;  %v1260_v53 = vld [vmem:[#allocation2 + $0x18] sm:$0xf]  ;;  %v1261_v59 = vld [vmem:[#allocation2 + $0x1c] sm:$0xf] }
  0x59   : > { %v749_v33 = vor.u32 %v747_v20, %v746_v26  ;;  %v751_v34 = vrot.slane %v746_v26, 4  ;;  %v1935_v38 = vsel %vm6461_vm5, %v1933_v30, %v1934_v19  ;;  %1023 = vst [vmem:[#allocation2 + $0x3c] sm:$0xf] %v1022_v35  ;;  %v1345_v44 = vrot.slane %v1343_v9, 4  ;;  %v1262_v7 = vld [vmem:[#allocation2 + $0x20] sm:$0x1] }
  0x5a   : > { %v1342_v40 = vsel %vm6499_vm12, %v1337_v32, %v6641_v8  ;;  %v5454_v46 = vcombine.low %v1932_v1, %v1935_v38  ;;  %v1349_v50 = vshll.u32 %v1259_v13, 16  ;;  %v6671_v54 = vsel %vm6461_vm5, %v2957_v39, %v2958_v31  ;;  %v5517_v1 = vld [vmem:[#allocation2 + $0x18] sm:$0xf] }
  0x5b   : > { %v750_v47 = vsel %vm6521_vm15, %v742_v25, %v749_v33  ;;  %v1026_v48 = vsel %vm6538_vm3, %v751_v34, %v1025_v21  ;;  %v1346_v55 = vor.u32 %v1345_v44, %v6641_v8  ;;  %v1378_v56 = vshrl.u32 %v1263_v37, 16  ;;  %v5519_v44 = vld [vmem:[#allocation2 + $0x20] sm:$0x1] }
  0x5c   : > { %1024 = vst.msk [vmem:[#allocation2 + $0x40] sm:$0xf] %vm299_vm0, %v750_v47  ;;  %1027 = vst [vmem:[#allocation2 + $0x44] sm:$0x1] %v1026_v48  ;;  %v1381_v58 = vshll.u32 %v1263_v37, 16  ;;  %2069 = vrot.lane.b32.xlu0 %v5454_v46, %s6341_s11  ;;  %v5645_v60 = vcombine.low %v6657_v36, %v6671_v54  ;;  %v1351_v61 = vrot.slane %v1349_v50, 5  ;;  %v6685_v34 = vadd.f32 %v6474_v3, %v6644_v43 }
  0x5d   : > { %v1387_v6 = vshll.u32 %v1264_v45, 16  ;;  %v1391_v49 = vshrl.u32 %v1264_v45, 16  ;;  %v1347_v62 = vrot.slane %v1346_v55, 4  ;;  %v1380_v63 = vrot.slane %v1378_v56, 4  ;;  %v5518_v37 = vld [vmem:[#allocation2 + $0x1c] sm:$0xf] }
  0x5e   : > { %v1383_v0 = vrot.slane %v1381_v58, 5  ;;  %v1397_v5 = vshll.u32 %v1265_v51, 16  ;;  %v1354_v12 = vshrl.u32 %v1260_v53, 16  ;;  %v1357_v8 = vshll.u32 %v1260_v53, 16  ;;  %v5514_v48 = vld [vmem:[#allocation2 + $0xc] sm:$0xf] }
  0x5f   : > { %v1389_v9 = vrot.slane %v1387_v6, 5  ;;  %v1393_v10 = vrot.slane %v1391_v49, 4  ;;  %v1352_v14 = vsel %vm6499_vm12, %v1347_v62, %v1351_v61  ;;  %v1363_v19 = vshll.u32 %v1261_v59, 16  ;;  %v5515_v56 = vld [vmem:[#allocation2 + $0x10] sm:$0xf] }
  0x60   : > { %v1384_v15 = vor.u32 %v1383_v0, %v1380_v63  ;;  %v1399_v17 = vrot.slane %v1397_v5, 5  ;;  %3096 = vrot.lane.b32.xlu0 %v5644_v57, %s6341_s11  ;;  %v1817_v20 = vld [vmem:[#allocation2 + $0x3c] sm:$0xe]  ;;  %v5419_v21 = vcombine.low %v1342_v40, %v1352_v14  ;;  %v1356_v23 = vrot.slane %v1354_v12, 4  ;;  %v5516_v49 = vld [vmem:[#allocation2 + $0x14] sm:$0x1] }
  0x61   : > { %v1394_v22 = vor.u32 %v1393_v10, %v1389_v9  ;;  %v1359_v24 = vrot.slane %v1357_v8, 5  ;;  %v5439_v25 = vrot.slane %v1817_v20, 9  ;;  %v1365_v28 = vrot.slane %v1363_v19, 5 }
  0x62   : > { %v1385_v26 = vrot.slane %v1384_v15, 4  ;;  %v1367_v29 = vshrl.u32 %v1261_v59, 16  ;;  %v1373_v33 = vshll.u32 %v1262_v7, 16  ;;  %v2365_v45 = vshrl.u32 %v5517_v1, 16  ;;  %v1269_v7 = vld [vmem:[#allocation2 + $0x3c] sm:$0xf] }
  0x63   : > { %v1818_v30 = vld [vmem:[#allocation2 + $0x40] sm:$0xf]  ;;  %v1819_v31 = vld [vmem:[#allocation2 + $0x44] sm:$0x1]  ;;  %v1395_v13 = vrot.slane %v1394_v22, 4  ;;  %v1360_v32 = vor.u32 %v1359_v24, %v1356_v23  ;;  %v2368_v53 = vshll.u32 %v5517_v1, 16 }
  0x64   : > { %v1938_v42 = vrot.slane %v1818_v30, 5  ;;  %v1941_v52 = vrot.slane %v1819_v31, 5  ;;  %v1390_v57 = vsel %vm6499_vm12, %v1385_v26, %v1389_v9  ;;  %v1369_v35 = vrot.slane %v1367_v29, 4  ;;  %1739 = vrot.lane.b32.xlu0 %v5419_v21, %s6342_s12  ;;  %v1270_v20 = vld [vmem:[#allocation2 + $0x40] sm:$0xf] }
  0x65   : > { %v1400_v38 = vsel %vm6499_vm12, %v1395_v13, %v1399_v17  ;;  %v1361_v39 = vrot.slane %v1360_v32, 4  ;;  %v1375_v40 = vrot.slane %v1373_v33, 5  ;;  %v2367_v51 = vrot.slane %v2365_v45, 4  ;;  %v1266_v30 = vld [vmem:[#allocation2 + $0x30] sm:$0xf] }
  0x66   : > { %v1939_v3 = vsel %vm6461_vm5, %v5439_v25, %v1938_v42  ;;  %v1940_v43 = vrot.slane %v1938_v42, 4  ;;  %v5421_v46 = vcombine.low %v1390_v57, %v1400_v38  ;;  %v1370_v47 = vor.u32 %v1369_v35, %v1365_v28  ;;  %v1271_v25 = vld [vmem:[#allocation2 + $0x44] sm:$0x1] }
  0x67   : > { %v1366_v50 = vsel %vm6499_vm12, %v1361_v39, %v1365_v28  ;;  %v2374_v55 = vshll.u32 %v5518_v37, 16  ;;  %v2378_v61 = vshrl.u32 %v5518_v37, 16  ;;  %v2384_v6 = vshll.u32 %v5519_v44, 16  ;;  %v1267_v37 = vld [vmem:[#allocation2 + $0x34] sm:$0xf] }
  0x68   : > { %v1942_v58 = vsel %vm6461_vm5, %v1940_v43, %v1941_v52  ;;  %v1371_v59 = vrot.slane %v1370_v47, 4  ;;  %v2370_v63 = vrot.slane %v2368_v53, 5  ;;  %v2341_v5 = vshrl.u32 %v5514_v48, 16 }
  0x69   : > { %v5455_v62 = vcombine.low %v1939_v3, %v1942_v58  ;;  %v2376_v0 = vrot.slane %v2374_v55, 5  ;;  %v2380_v10 = vrot.slane %v2378_v61, 4  ;;  %v2386_v12 = vrot.slane %v2384_v6, 5  ;;  %v1268_v55 = vld [vmem:[#allocation2 + $0x38] sm:$0x1] }
  0x6a   : > { %v1376_v9 = vsel %vm6499_vm12, %v1371_v59, %v1375_v40  ;;  %v2344_v8 = vshll.u32 %v5514_v48, 16  ;;  %v2371_v15 = vor.u32 %v2370_v63, %v2367_v51  ;;  %v2343_v17 = vrot.slane %v2341_v5, 4  ;;  %v5523_v48 = vld [vmem:[#allocation2 + $0x30] sm:$0xf] }
  0x6b   : > { %2071 = vrot.lane.b32.xlu1 %v5455_v62, %s6341_s11  ;;  %v5420_v14 = vcombine.low %v1366_v50, %v1376_v9  ;;  %v2350_v19 = vshll.u32 %v5515_v56, 16  ;;  %v2381_v21 = vor.u32 %v2380_v10, %v2376_v0  ;;  %v2354_v23 = vshrl.u32 %v5515_v56, 16  ;;  %v5524_v62 = vld [vmem:[#allocation2 + $0x34] sm:$0xf] }
  0x6c   : > { %v2346_v22 = vrot.slane %v2344_v8, 5  ;;  %v2360_v24 = vshll.u32 %v5516_v49, 16  ;;  %v2372_v26 = vrot.slane %v2371_v15, 4  ;;  %v1426_v29 = vshrl.u32 %v1269_v7, 16  ;;  %v5520_v8 = vld [vmem:[#allocation2 + $0x24] sm:$0xf] }
  0x6d   : > { %1741 = vrot.lane.b32.xlu0 %v5420_v14, %s6342_s12  ;;  %v2352_v28 = vrot.slane %v2350_v19, 5  ;;  %v1429_v1 = vshll.u32 %v1269_v7, 16  ;;  %v2382_v31 = vrot.slane %v2381_v21, 4  ;;  %v2356_v32 = vrot.slane %v2354_v23, 4  ;;  %v5525_v15 = vld [vmem:[#allocation2 + $0x38] sm:$0x1] }
  0x6e   : > { %v2347_v13 = vor.u32 %v2346_v22, %v2343_v17  ;;  %v2362_v33 = vrot.slane %v2360_v24, 5  ;;  %v2377_v42 = vsel %vm6499_vm12, %v2372_v26, %v2376_v0  ;;  %v1428_v52 = vrot.slane %v1426_v29, 4 }
  0x6f   : > { %3098 = vrot.lane.b32.xlu1 %v5645_v60, %s6341_s11  ;;  %v1431_v57 = vrot.slane %v1429_v1, 5  ;;  %v1435_v35 = vshll.u32 %v1270_v20, 16  ;;  %v2387_v38 = vsel %vm6499_vm12, %v2382_v31, %v2386_v12  ;;  %v2357_v40 = vor.u32 %v2356_v32, %v2352_v28 }
  0x70   : > { %v2348_v39 = vrot.slane %v2347_v13, 4  ;;  %v1439_v44 = vshrl.u32 %v1270_v20, 16  ;;  %v5563_v45 = vcombine.low %v2377_v42, %v2387_v38  ;;  %v1445_v47 = vshll.u32 %v1271_v25, 16  ;;  %v5521_v25 = vld [vmem:[#allocation2 + $0x28] sm:$0xf] }
  0x71   : > { %v1432_v3 = vor.u32 %v1431_v57, %v1428_v52  ;;  %v1437_v43 = vrot.slane %v1435_v35, 5  ;;  %v2358_v54 = vrot.slane %v2357_v40, 4  ;;  %v1402_v50 = vshrl.u32 %v1266_v30, 16  ;;  %v5522_v52 = vld [vmem:[#allocation2 + $0x2c] sm:$0x1] }
  0x72   : > { %v2353_v36 = vsel %vm6499_vm12, %v2348_v39, %v2352_v28  ;;  %v1441_v60 = vrot.slane %v1439_v44, 4  ;;  %v1447_v53 = vrot.slane %v1445_v47, 5  ;;  %v1405_v56 = vshll.u32 %v1266_v30, 16  ;;  %v365_v47 = vld [vmem:[%s6469_s30 + $0x50] sm:$0xff] }
  0x73   : > { %1743 = vrot.lane.b32.xlu1 %v5421_v46, %s6342_s12  ;;  %v1433_v51 = vrot.slane %v1432_v3, 4  ;;  %v1411_v58 = vshll.u32 %v1267_v37, 16  ;;  %v2363_v59 = vsel %vm6499_vm12, %v2358_v54, %v2362_v33  ;;  %v1404_v6 = vrot.slane %v1402_v50, 4 }
  0x74   : > { %v1442_v61 = vor.u32 %v1441_v60, %v1437_v43  ;;  %v1415_v49 = vshrl.u32 %v1267_v37, 16  ;;  %v5562_v63 = vcombine.low %v2353_v36, %v2363_v59  ;;  %v1407_v5 = vrot.slane %v1405_v56, 5  ;;  %v6728_v60 = vld [vmem:[#allocation2 + $0x3c] sm:$0xf] }
  0x75   : > { %v1438_v0 = vsel %vm6499_vm12, %v1433_v51, %v1437_v43  ;;  %v1413_v7 = vrot.slane %v1411_v58, 5  ;;  %v1421_v10 = vshll.u32 %v1268_v55, 16  ;;  %v2413_v12 = vshrl.u32 %v5523_v48, 16  ;;  %v366_v55 = vld [vmem:[%s6469_s30 + $0x58] sm:$0xff] }
  0x76   : > { %v1443_v9 = vrot.slane %v1442_v61, 4  ;;  %v1417_v46 = vrot.slane %v1415_v49, 4  ;;  %2772 = vrot.lane.b32.xlu0 %v5562_v63, %s6342_s12  ;;  %v1408_v14 = vor.u32 %v1407_v5, %v1404_v6  ;;  %v2416_v17 = vshll.u32 %v5523_v48, 16  ;;  %v6745_v63 = vld [vmem:[%s8179_s1] ss:$0 sm:$0xff] }
  0x77   : > { %2774 = vrot.lane.b32.xlu1 %v5563_v45, %s6342_s12  ;;  %v2422_v19 = vshll.u32 %v5524_v62, 16  ;;  %v2426_v20 = vshrl.u32 %v5524_v62, 16  ;;  %v1423_v23 = vrot.slane %v1421_v10, 5  ;;  %v2415_v24 = vrot.slane %v2413_v12, 4 }
  0x78   : > { %v1448_v21 = vsel %vm6499_vm12, %v1443_v9, %v1447_v53  ;;  %v1418_v22 = vor.u32 %v1417_v46, %v1413_v7  ;;  %v1409_v28 = vrot.slane %v1408_v14, 4  ;;  %v2418_v29 = vrot.slane %v2416_v17, 5 }
  0x79   : > { %v5423_v26 = vcombine.low %v1438_v0, %v1448_v21  ;;  %v2424_v1 = vrot.slane %v2422_v19, 5  ;;  %v2428_v31 = vrot.slane %v2426_v20, 4  ;;  %v2432_v13 = vshll.u32 %v5525_v15, 16  ;;  %v6764_v21 = vld [vmem:[%s8181_s3] ss:$0 sm:$0xff] }
  0x7a   : > { %v1419_v30 = vrot.slane %v1418_v22, 4  ;;  %v2389_v32 = vshrl.u32 %v5520_v8, 16  ;;  %v1414_v33 = vsel %vm6499_vm12, %v1409_v28, %v1413_v7  ;;  %v2419_v42 = vor.u32 %v2418_v29, %v2415_v24  ;;  %v1035_v29 = vld [vmem:[#allocation2 + $0x54] sm:$0xf] }
  0x7b   : > { %1747 = vrot.lane.b32.xlu1 %v5423_v26, %s6342_s12  ;;  %v2392_v57 = vshll.u32 %v5520_v8, 16  ;;  %v2398_v35 = vshll.u32 %v5521_v25, 16  ;;  %v2429_v38 = vor.u32 %v2428_v31, %v2424_v1  ;;  %v2434_v39 = vrot.slane %v2432_v13, 5 }
  0x7c   : > { %v1424_v37 = vsel %vm6499_vm12, %v1419_v30, %v1423_v23  ;;  %v2391_v40 = vrot.slane %v2389_v32, 4  ;;  %v2420_v45 = vrot.slane %v2419_v42, 4  ;;  %v2402_v36 = vshrl.u32 %v5521_v25, 16  ;;  %v5527_v30 = vld [vmem:[#allocation2 + $0x40] sm:$0xf] }
  0x7d   : > { %v5422_v44 = vcombine.low %v1414_v33, %v1424_v37  ;;  %v2394_v3 = vrot.slane %v2392_v57, 5  ;;  %v2400_v43 = vrot.slane %v2398_v35, 5  ;;  %v2430_v48 = vrot.slane %v2429_v38, 4  ;;  %v1039_v33 = vld [vmem:[#allocation2 + $0x5c] sm:$0x1] }
  0x7e   : > { %v2408_v54 = vshll.u32 %v5522_v52, 16  ;;  %vm477_vm11 = vcmp.ge.f32.partialorder %v6648_v16, 0.0  ;;  %v2425_v50 = vsel %vm6499_vm12, %v2420_v45, %v2424_v1  ;;  %vm478_vm13 = vcmp.ge.f32.partialorder %v6685_v34, 0.0  ;;  %v5528_v38 = vld [vmem:[#allocation2 + $0x44] sm:$0x1] }
  0x7f   : > { %1745 = vrot.lane.b32.xlu0 %v5422_v44, %s6342_s12  ;;  %v2395_v51 = vor.u32 %v2394_v3, %v2391_v40  ;;  %v516_v53 = vmul.f32 %v6489_v27, %v6648_v16  ;;  %v2435_v56 = vsel %vm6499_vm12, %v2430_v48, %v2434_v39  ;;  %v2404_v58 = vrot.slane %v2402_v36, 4  ;;  %v5590_v40 = vld [vmem:[#allocation2 + $0x3c] sm:$0xe] }
  0x80   : > { %v2410_v59 = vrot.slane %v2408_v54, 5  ;;  %v517_v61 = vmul.f32 %v6489_v27, %v6685_v34  ;;  %v5565_v6 = vcombine.low %v2425_v50, %v2435_v56  ;;  %v404_v0 = vmul.f32 %v6745_v63, %v365_v47  ;;  %v5591_v47 = vld [vmem:[#allocation2 + $0x40] sm:$0xf] }
  0x81   : > { %v2396_v49 = vrot.slane %v2395_v51, 4  ;;  %v548_v62 = vsel %vm477_vm11, %v6648_v16, %v516_v53  ;;  %v2405_v5 = vor.u32 %v2404_v58, %v2400_v43  ;;  %v405_v46 = vmul.f32 %v6745_v63, %v366_v55  ;;  %v6756_v16 = vld [vmem:[%s8180_s2] ss:$0 sm:$0xff] }
  0x82   : > { %v549_v7 = vsel %vm478_vm13, %v6685_v34, %v517_v61  ;;  %v5953_v9 = vpack.c.bf16 %v548_v62, %v548_v62  ;;  %2778 = vrot.lane.b32.xlu1 %v5565_v6, %s6342_s12  ;;  %v443_v12 = vadd.f32 %v6756_v16, %v404_v0  ;;  %v2437_v8 = vshrl.u32 %v6728_v60, 16  ;;  %v371_v56 = vld [vmem:[%s6469_s30 + $0x80] sm:$0xff] }
  0x83   : > { %v2401_v27 = vsel %vm6499_vm12, %v2396_v49, %v2400_v43  ;;  %v5954_v10 = vpack.c.bf16 %v549_v7, %v549_v7  ;;  %v2406_v14 = vrot.slane %v2405_v5, 4  ;;  %v444_v17 = vadd.f32 %v6756_v16, %v405_v46  ;;  %v1032_v5 = vld [vmem:[#allocation2 + $0x50] sm:$0x1]  ;;  %v5592_v46 = vld [vmem:[#allocation2 + $0x44] sm:$0x1] }
  0x84   : > { %v770_v34 = vshrl.u32 %v5953_v9, 16  ;;  %v773_v15 = vshll.u32 %v5953_v9, 16  ;;  %vm475_vm14 = vcmp.ge.f32.partialorder %v443_v12, 0.0  ;;  %v514_v22 = vmul.f32 %v6764_v21, %v443_v12 }
  0x85   : > { %v778_v19 = vshrl.u32 %v5954_v10, 16  ;;  %v781_v20 = vshll.u32 %v5954_v10, 16  ;;  %v2411_v23 = vsel %vm6499_vm12, %v2406_v14, %v2410_v59  ;;  %vm476_vm4 = vcmp.ge.f32.partialorder %v444_v17, 0.0  ;;  %v1028_v59 = vld [vmem:[#allocation2 + $0x48] sm:$0xf] }
  0x86   : > { %v772_v24 = vrot.slane %v770_v34, 7  ;;  %v515_v25 = vmul.f32 %v6764_v21, %v444_v17  ;;  %v5564_v26 = vcombine.low %v2401_v27, %v2411_v23  ;;  %v546_v1 = vsel %vm475_vm14, %v443_v12, %v514_v22  ;;  %v372_v14 = vld [vmem:[%s6469_s30 + $0x88] sm:$0xff]  ;;  %v369_v34 = vld [vmem:[%s6469_s30 + $0x70] sm:$0xff] }
  0x87   : > { %v780_v28 = vrot.slane %v778_v19, 7  ;;  %v2439_v31 = vrot.slane %v2437_v8, 4  ;;  %v5951_v52 = vpack.c.bf16 %v546_v1, %v546_v1  ;;  %v2440_v39 = vshll.u32 %v6728_v60, 16 }
  0x88   : > { %v775_v13 = vor.u32 %v773_v15, %v772_v24  ;;  %v776_v32 = vrot.slane %v772_v24, 4  ;;  %v547_v42 = vsel %vm476_vm4, %v444_v17, %v515_v25  ;;  %2776 = vrot.lane.b32.xlu0 %v5564_v26, %s6342_s12  ;;  %v2446_v43 = vshll.u32 %v5527_v30, 16 }
  0x89   : > { %v783_v57 = vor.u32 %v781_v20, %v780_v28  ;;  %v785_v35 = vrot.slane %v780_v28, 4  ;;  %v5952_v37 = vpack.c.bf16 %v547_v42, %v547_v42  ;;  %v753_v45 = vshrl.u32 %v5951_v52, 16 }
  0x8a   : > { %v1036_v44 = vsel %vm6530_vm2, %v775_v13, %v1035_v29  ;;  %v756_v3 = vshll.u32 %v5951_v52, 16  ;;  %v2442_v51 = vrot.slane %v2440_v39, 5  ;;  %v2448_v53 = vrot.slane %v2446_v43, 5 }
  0x8b   : > { %v784_v48 = vsel %vm6521_vm15, %v776_v32, %v783_v57  ;;  %1037 = vst [vmem:[#allocation2 + $0x54] sm:$0xf] %v1036_v44  ;;  %v1040_v36 = vsel %vm6538_vm3, %v785_v35, %v1039_v33  ;;  %v761_v54 = vshrl.u32 %v5952_v37, 16  ;;  %v764_v50 = vshll.u32 %v5952_v37, 16 }
  0x8c   : > { %1038 = vst.msk [vmem:[#allocation2 + $0x58] sm:$0xf] %vm299_vm0, %v784_v48  ;;  %1041 = vst [vmem:[#allocation2 + $0x5c] sm:$0x1] %v1040_v36  ;;  %v755_v60 = vrot.slane %v753_v45, 7  ;;  %v2450_v55 = vshrl.u32 %v5527_v30, 16  ;;  %v2443_v7 = vor.u32 %v2442_v51, %v2439_v31  ;;  %v410_v25 = vmul.f32 %v6745_v63, %v371_v56 }
  0x8d   : > { %v763_v58 = vrot.slane %v761_v54, 7  ;;  %v2456_v61 = vshll.u32 %v5528_v38, 16  ;;  %v5630_v6 = vrot.slane %v5590_v40, 9  ;;  %v2962_v49 = vrot.slane %v5591_v47, 5 }
  0x8e   : > { %v758_v62 = vor.u32 %v756_v3, %v755_v60  ;;  %v759_v0 = vrot.slane %v755_v60, 4  ;;  %v2452_v9 = vrot.slane %v2450_v55, 4  ;;  %v2444_v17 = vrot.slane %v2443_v7, 4  ;;  %v370_v60 = vld [vmem:[%s6469_s30 + $0x78] sm:$0xff] }
  0x8f   : > { %v766_v27 = vor.u32 %v764_v50, %v763_v58  ;;  %v768_v10 = vrot.slane %v763_v58, 4  ;;  %v2458_v12 = vrot.slane %v2456_v61, 5  ;;  %v6782_v8 = vsel %vm6461_vm5, %v5630_v6, %v2962_v49 }
  0x90   : > { %v1029_v15 = vsel %vm6530_vm2, %v758_v62, %v1028_v59  ;;  %v2453_v19 = vor.u32 %v2452_v9, %v2448_v53  ;;  %v2964_v20 = vrot.slane %v2962_v49, 4  ;;  %v2965_v24 = vrot.slane %v5592_v46, 5 }
  0x91   : > { %v767_v22 = vsel %vm6521_vm15, %v759_v0, %v766_v27  ;;  %1030 = vst [vmem:[#allocation2 + $0x48] sm:$0xf] %v1029_v15  ;;  %v1033_v23 = vsel %vm6538_vm3, %v768_v10, %v1032_v5  ;;  %v2449_v29 = vsel %vm6499_vm12, %v2444_v17, %v2448_v53  ;;  %v411_v30 = vmul.f32 %v6745_v63, %v372_v14 }
  0x92   : > { %v1275_v26 = vld [vmem:[#allocation2 + $0x54] sm:$0xf]  ;;  %1031 = vst.msk [vmem:[#allocation2 + $0x4c] sm:$0xf] %vm299_vm0, %v767_v22  ;;  %1034 = vst [vmem:[#allocation2 + $0x50] sm:$0x1] %v1033_v23  ;;  %v6798_v31 = vmul.f32 %v6745_v63, %v369_v34  ;;  %v6802_v52 = vsel %vm6461_vm5, %v2964_v20, %v2965_v24  ;;  %v6805_v57 = vadd.f32 %v6756_v16, %v410_v25 }
  0x93   : > { %v1823_v28 = vld [vmem:[#allocation2 + $0x54] sm:$0xe]  ;;  %v2454_v1 = vrot.slane %v2453_v19, 4  ;;  %v1276_v13 = vld [vmem:[#allocation2 + $0x58] sm:$0xf]  ;;  %v1474_v33 = vshrl.u32 %v1275_v26, 16  ;;  %v5646_v6 = vcombine.low %v6782_v8, %v6802_v52  ;;  %v6817_v49 = vadd.f32 %v6756_v16, %v411_v30 }
  0x94   : > { %v1277_v32 = vld [vmem:[#allocation2 + $0x5c] sm:$0x1]  ;;  %v1477_v42 = vshll.u32 %v1275_v26, 16  ;;  %v1483_v35 = vshll.u32 %v1276_v13, 16  ;;  %v1487_v37 = vshrl.u32 %v1276_v13, 16  ;;  %v5441_v40 = vrot.slane %v1823_v28, 9 }
  0x95   : > { %v1493_v38 = vshll.u32 %v1277_v32, 16  ;;  %v1824_v39 = vld [vmem:[#allocation2 + $0x58] sm:$0xf]  ;;  %v1476_v44 = vrot.slane %v1474_v33, 4  ;;  %v1825_v3 = vld [vmem:[#allocation2 + $0x5c] sm:$0x1]  ;;  %v2459_v47 = vsel %vm6499_vm12, %v2454_v1, %v2458_v12  ;;  %v6821_v62 = vmul.f32 %v6764_v21, %v6805_v57 }
  0x96   : > { %v1479_v45 = vrot.slane %v1477_v42, 5  ;;  %v1952_v43 = vrot.slane %v1824_v39, 5  ;;  %v1485_v48 = vrot.slane %v1483_v35, 5  ;;  %v1489_v36 = vrot.slane %v1487_v37, 4 }
  0x97   : > { %v1495_v54 = vrot.slane %v1493_v38, 5  ;;  %v1955_v50 = vrot.slane %v1825_v3, 5  ;;  %v6812_v56 = vcombine.low %v2449_v29, %v2459_v47  ;;  %v6826_v27 = vmul.f32 %v6745_v63, %v370_v60 }
  0x98   : > { %v1480_v51 = vor.u32 %v1479_v45, %v1476_v44  ;;  %v1953_v53 = vsel %vm6461_vm5, %v5441_v40, %v1952_v43  ;;  %v1954_v55 = vrot.slane %v1952_v43, 4  ;;  %v1490_v58 = vor.u32 %v1489_v36, %v1485_v48  ;;  %v1272_v59 = vld [vmem:[#allocation2 + $0x48] sm:$0xf] }
  0x99   : > { %v1820_v61 = vld [vmem:[#allocation2 + $0x48] sm:$0xe]  ;;  %v1273_v5 = vld [vmem:[#allocation2 + $0x4c] sm:$0xf]  ;;  %v1274_v7 = vld [vmem:[#allocation2 + $0x50] sm:$0x1] }
  0x9a   : > { %v1481_v0 = vrot.slane %v1480_v51, 4  ;;  %v1450_v9 = vshrl.u32 %v1272_v59, 16  ;;  %v1956_v46 = vsel %vm6461_vm5, %v1954_v55, %v1955_v50  ;;  %v1491_v10 = vrot.slane %v1490_v58, 4  ;;  %v1821_v15 = vld [vmem:[#allocation2 + $0x4c] sm:$0xf] }
  0x9b   : > { %v1453_v12 = vshll.u32 %v1272_v59, 16  ;;  %v1459_v14 = vshll.u32 %v1273_v5, 16  ;;  %v1463_v34 = vshrl.u32 %v1273_v5, 16  ;;  %v1469_v20 = vshll.u32 %v1274_v7, 16  ;;  %v1822_v23 = vld [vmem:[#allocation2 + $0x50] sm:$0x1] }
  0x9c   : > { %v1486_v17 = vsel %vm6499_vm12, %v1481_v0, %v1485_v48  ;;  %v1452_v19 = vrot.slane %v1450_v9, 4  ;;  %v5457_v22 = vcombine.low %v1953_v53, %v1956_v46  ;;  %v5529_v24 = vld [vmem:[#allocation2 + $0x48] sm:$0xf]  ;;  %v1496_v25 = vsel %vm6499_vm12, %v1491_v10, %v1495_v54  ;;  %v5530_v1 = vld [vmem:[#allocation2 + $0x4c] sm:$0xf] }
  0x9d   : > { %v1455_v26 = vrot.slane %v1453_v12, 5  ;;  %v1461_v28 = vrot.slane %v1459_v14, 5  ;;  %v1465_v29 = vrot.slane %v1463_v34, 4  ;;  %v5425_v30 = vcombine.low %v1486_v17, %v1496_v25  ;;  %v5531_v38 = vld [vmem:[#allocation2 + $0x50] sm:$0x1] }
  0x9e   : > { %v1471_v13 = vrot.slane %v1469_v20, 5  ;;  %v5440_v32 = vrot.slane %v1820_v61, 9  ;;  %v1945_v33 = vrot.slane %v1821_v15, 5  ;;  %v1948_v37 = vrot.slane %v1822_v23, 5  ;;  %v5593_v43 = vld [vmem:[#allocation2 + $0x48] sm:$0xe] }
  0x9f   : > { %v1456_v42 = vor.u32 %v1455_v26, %v1452_v19  ;;  %v1466_v35 = vor.u32 %v1465_v29, %v1461_v28  ;;  %v2461_v39 = vshrl.u32 %v5529_v24, 16  ;;  %1751 = vrot.lane.b32.xlu1 %v5425_v30, %s6342_s12  ;;  %v2464_v45 = vshll.u32 %v5529_v24, 16  ;;  %v5594_v50 = vld [vmem:[#allocation2 + $0x4c] sm:$0xf]  ;;  %v5595_v58 = vld [vmem:[#allocation2 + $0x50] sm:$0x1] }
  0xa0   : > { %v1946_v40 = vsel %vm6461_vm5, %v5440_v32, %v1945_v33  ;;  %v1947_v44 = vrot.slane %v1945_v33, 4  ;;  %v2470_v3 = vshll.u32 %v5530_v1, 16  ;;  %v2474_v54 = vshrl.u32 %v5530_v1, 16 }
  0xa1   : > { %v1457_v47 = vrot.slane %v1456_v42, 4  ;;  %v1467_v48 = vrot.slane %v1466_v35, 4  ;;  %v2463_v36 = vrot.slane %v2461_v39, 4  ;;  %v2466_v51 = vrot.slane %v2464_v45, 5  ;;  %v5533_v42 = vld [vmem:[#allocation2 + $0x58] sm:$0xf] }
  0xa2   : > { %v1949_v60 = vsel %vm6461_vm5, %v1947_v44, %v1948_v37  ;;  %v2472_v53 = vrot.slane %v2470_v3, 5  ;;  %v2480_v55 = vshll.u32 %v5531_v38, 16  ;;  %v2476_v5 = vrot.slane %v2474_v54, 4 }
  0xa3   : > { %v1462_v59 = vsel %vm6499_vm12, %v1457_v47, %v1461_v28  ;;  %v1472_v61 = vsel %vm6499_vm12, %v1467_v48, %v1471_v13  ;;  %v5456_v0 = vcombine.low %v1946_v40, %v1949_v60  ;;  %2075 = vrot.lane.b32.xlu1 %v5457_v22, %s6341_s11  ;;  %v2467_v9 = vor.u32 %v2466_v51, %v2463_v36  ;;  %v5532_v13 = vld [vmem:[#allocation2 + $0x54] sm:$0xf] }
  0xa4   : > { %v5424_v7 = vcombine.low %v1462_v59, %v1472_v61  ;;  %v2482_v46 = vrot.slane %v2480_v55, 5  ;;  %v5631_v10 = vrot.slane %v5593_v43, 9  ;;  %v2477_v12 = vor.u32 %v2476_v5, %v2472_v53  ;;  %v1053_v48 = vld [vmem:[#allocation2 + $0x74] sm:$0x1]  ;;  %v5534_v59 = vld [vmem:[#allocation2 + $0x5c] sm:$0x1] }
  0xa5   : > { %v2969_v14 = vrot.slane %v5594_v50, 5  ;;  %v2972_v34 = vrot.slane %v5595_v58, 5  ;;  %vm481_vm6 = vcmp.ge.f32.partialorder %v6805_v57, 0.0  ;;  %v2468_v15 = vrot.slane %v2467_v9, 4  ;;  %v5597_v9 = vld [vmem:[#allocation2 + $0x58] sm:$0xf] }
  0xa6   : > { %1749 = vrot.lane.b32.xlu0 %v5424_v7, %s6342_s12  ;;  %vm482_vm7 = vcmp.ge.f32.partialorder %v6817_v49, 0.0  ;;  %v521_v17 = vmul.f32 %v6764_v21, %v6817_v49  ;;  %v552_v19 = vsel %vm481_vm6, %v6805_v57, %v6821_v62  ;;  %v2478_v20 = vrot.slane %v2477_v12, 4  ;;  %v5596_v7 = vld [vmem:[#allocation2 + $0x54] sm:$0xe] }
  0xa7   : > { %v2970_v22 = vsel %vm6461_vm5, %v5631_v10, %v2969_v14  ;;  %v2971_v23 = vrot.slane %v2969_v14, 4  ;;  %v5957_v24 = vpack.c.bf16 %v552_v19, %v552_v19  ;;  %v2473_v25 = vsel %vm6499_vm12, %v2468_v15, %v2472_v53 }
  0xa8   : > { %v553_v26 = vsel %vm482_vm7, %v6817_v49, %v521_v17  ;;  %v447_v28 = vadd.f32 %v6756_v16, %v6798_v31  ;;  %v448_v29 = vadd.f32 %v6756_v16, %v6826_v27  ;;  %v2483_v57 = vsel %vm6499_vm12, %v2478_v20, %v2482_v46  ;;  %v1049_v27 = vld [vmem:[#allocation2 + $0x6c] sm:$0xf]  ;;  %v5598_v20 = vld [vmem:[#allocation2 + $0x5c] sm:$0x1] }
  0xa9   : > { %v2973_v62 = vsel %vm6461_vm5, %v2971_v23, %v2972_v34  ;;  %v5958_v1 = vpack.c.bf16 %v553_v26, %v553_v26  ;;  %v804_v30 = vshrl.u32 %v5957_v24, 16  ;;  %v5567_v32 = vcombine.low %v2473_v25, %v2483_v57 }
  0xaa   : > { %2073 = vrot.lane.b32.xlu0 %v5456_v0, %s6341_s11  ;;  %v5647_v33 = vcombine.low %v2970_v22, %v2973_v62  ;;  %v807_v49 = vshll.u32 %v5957_v24, 16  ;;  %vm479_vm8 = vcmp.ge.f32.partialorder %v447_v28, 0.0  ;;  %vm480_vm9 = vcmp.ge.f32.partialorder %v448_v29, 0.0 }
  0xab   : > { %v806_v31 = vrot.slane %v804_v30, 7  ;;  %v812_v35 = vshrl.u32 %v5958_v1, 16  ;;  %v815_v37 = vshll.u32 %v5958_v1, 16  ;;  %2782 = vrot.lane.b32.xlu1 %v5567_v32, %s6342_s12  ;;  %v518_v38 = vmul.f32 %v6764_v21, %v447_v28  ;;  %v1046_v1 = vld [vmem:[#allocation2 + $0x68] sm:$0x1] }
  0xac   : > { %v519_v39 = vmul.f32 %v6764_v21, %v448_v29  ;;  %v2485_v40 = vshrl.u32 %v5532_v13, 16  ;;  %v2488_v44 = vshll.u32 %v5532_v13, 16  ;;  %v2494_v47 = vshll.u32 %v5533_v42, 16 }
  0xad   : > { %v809_v45 = vor.u32 %v807_v49, %v806_v31  ;;  %v810_v3 = vrot.slane %v806_v31, 4  ;;  %v814_v43 = vrot.slane %v812_v35, 7  ;;  %v550_v36 = vsel %vm479_vm8, %v447_v28, %v518_v38  ;;  %v1042_v28 = vld [vmem:[#allocation2 + $0x60] sm:$0xf] }
  0xae   : > { %2780 = vrot.lane.b32.xlu0 %v6812_v56, %s6342_s12  ;;  %v551_v54 = vsel %vm480_vm9, %v448_v29, %v519_v39  ;;  %v2487_v50 = vrot.slane %v2485_v40, 4  ;;  %v2490_v60 = vrot.slane %v2488_v44, 5  ;;  %v5955_v58 = vpack.c.bf16 %v550_v36, %v550_v36  ;;  %v376_v29 = vld [vmem:[%s6469_s30 + $0xa8] sm:$0xff] }
  0xaf   : > { %v817_v51 = vor.u32 %v815_v37, %v814_v43  ;;  %v819_v53 = vrot.slane %v814_v43, 4  ;;  %v1050_v55 = vsel %vm6530_vm2, %v809_v45, %v1049_v27  ;;  %3102 = vrot.lane.b32.xlu1 %v5647_v33, %s6341_s11  ;;  %v5956_v61 = vpack.c.bf16 %v551_v54, %v551_v54  ;;  %v373_v43 = vld [vmem:[%s6469_s30 + $0x90] sm:$0xff] }
  0xb0   : > { %1051 = vst [vmem:[#allocation2 + $0x6c] sm:$0xf] %v1050_v55  ;;  %v2491_v0 = vor.u32 %v2490_v60, %v2487_v50  ;;  %v6872_v5 = vrot.slane %v2494_v47, 5  ;;  %v2498_v56 = vshrl.u32 %v5533_v42, 16  ;;  %v787_v12 = vshrl.u32 %v5955_v58, 16 }
  0xb1   : > { %v818_v46 = vsel %vm6521_vm15, %v810_v3, %v817_v51  ;;  %v1054_v10 = vsel %vm6538_vm3, %v819_v53, %v1053_v48  ;;  %v790_v14 = vshll.u32 %v5955_v58, 16  ;;  %v795_v34 = vshrl.u32 %v5956_v61, 16 }
  0xb2   : > { %3100 = vrot.lane.b32.xlu0 %v5646_v6, %s6341_s11  ;;  %1052 = vst.msk [vmem:[#allocation2 + $0x70] sm:$0xf] %vm299_vm0, %v818_v46  ;;  %1055 = vst [vmem:[#allocation2 + $0x74] sm:$0x1] %v1054_v10  ;;  %v798_v15 = vshll.u32 %v5956_v61, 16  ;;  %v2492_v17 = vrot.slane %v2491_v0, 4  ;;  %v415_v38 = vmul.f32 %v6745_v63, %v376_v29 }
  0xb3   : > { %v2500_v19 = vrot.slane %v2498_v56, 4  ;;  %v789_v22 = vrot.slane %v787_v12, 7  ;;  %v2504_v23 = vshll.u32 %v5534_v59, 16  ;;  %v5632_v24 = vrot.slane %v5596_v7, 9  ;;  %v375_v6 = vld [vmem:[%s6469_s30 + $0xa0] sm:$0xff]  ;;  %v374_v12 = vld [vmem:[%s6469_s30 + $0x98] sm:$0xff] }
  0xb4   : > { %v2976_v25 = vrot.slane %v5597_v9, 5  ;;  %v797_v26 = vrot.slane %v795_v34, 7  ;;  %v2497_v8 = vsel %vm6499_vm12, %v2492_v17, %v6872_v5  ;;  %v2979_v13 = vrot.slane %v5598_v20, 5 }
  0xb5   : > { %v2501_v52 = vor.u32 %v2500_v19, %v6872_v5  ;;  %v792_v57 = vor.u32 %v790_v14, %v789_v22  ;;  %v793_v62 = vrot.slane %v789_v22, 4  ;;  %v2506_v30 = vrot.slane %v2504_v23, 5 }
  0xb6   : > { %v800_v32 = vor.u32 %v798_v15, %v797_v26  ;;  %v802_v33 = vrot.slane %v797_v26, 4  ;;  %v2978_v42 = vrot.slane %v2976_v25, 4  ;;  %v6893_v37 = vsel %vm6461_vm5, %v5632_v24, %v2976_v25 }
  0xb7   : > { %v2502_v49 = vrot.slane %v2501_v52, 4  ;;  %v1281_v31 = vld [vmem:[#allocation2 + $0x6c] sm:$0xf]  ;;  %v1043_v35 = vsel %vm6530_vm2, %v792_v57, %v1042_v28  ;;  %v414_v27 = vmul.f32 %v6745_v63, %v375_v6  ;;  %v6913_v51 = vadd.f32 %v6756_v16, %v415_v38 }
  0xb8   : > { %v1522_v39 = vshrl.u32 %v1281_v31, 16  ;;  %v1525_v40 = vshll.u32 %v1281_v31, 16  ;;  %v801_v44 = vsel %vm6521_vm15, %v793_v62, %v800_v32  ;;  %1044 = vst [vmem:[#allocation2 + $0x60] sm:$0xf] %v1043_v35  ;;  %v1047_v45 = vsel %vm6538_vm3, %v802_v33, %v1046_v1  ;;  %v1829_v3 = vld [vmem:[#allocation2 + $0x6c] sm:$0xe] }
  0xb9   : > { %v1282_v47 = vld [vmem:[#allocation2 + $0x70] sm:$0xf]  ;;  %v1283_v48 = vld [vmem:[#allocation2 + $0x74] sm:$0x1]  ;;  %1045 = vst.msk [vmem:[#allocation2 + $0x64] sm:$0xf] %vm299_vm0, %v801_v44  ;;  %v2507_v54 = vsel %vm6499_vm12, %v2502_v49, %v2506_v30  ;;  %v6907_v50 = vsel %vm6461_vm5, %v2978_v42, %v2979_v13  ;;  %v6910_v60 = vadd.f32 %v6756_v16, %v414_v27  ;;  %v6923_v17 = vmul.f32 %v6745_v63, %v373_v43 }
  0xba   : > { %1048 = vst [vmem:[#allocation2 + $0x68] sm:$0x1] %v1047_v45  ;;  %v1830_v36 = vld [vmem:[#allocation2 + $0x70] sm:$0xf]  ;;  %v1524_v53 = vrot.slane %v1522_v39, 4  ;;  %v1527_v55 = vrot.slane %v1525_v40, 5  ;;  %v6920_v15 = vcombine.low %v2497_v8, %v2507_v54  ;;  %v5648_v23 = vcombine.low %v6893_v37, %v6907_v50 }
  0xbb   : > { %v1531_v58 = vshll.u32 %v1282_v47, 16  ;;  %v1535_v59 = vshrl.u32 %v1282_v47, 16  ;;  %v1831_v61 = vld [vmem:[#allocation2 + $0x74] sm:$0x1]  ;;  %v1541_v0 = vshll.u32 %v1283_v48, 16  ;;  %v5443_v5 = vrot.slane %v1829_v3, 9 }
  0xbc   : > { %v1966_v56 = vrot.slane %v1830_v36, 5  ;;  %v1969_v7 = vrot.slane %v1831_v61, 5  ;;  %v1528_v9 = vor.u32 %v1527_v55, %v1524_v53  ;;  %v6931_v28 = vmul.f32 %v6764_v21, %v6910_v60  ;;  %v379_v50 = vld [vmem:[%s6469_s30 + $0xc0] sm:$0xff] }
  0xbd   : > { %v1533_v46 = vrot.slane %v1531_v58, 5  ;;  %v1537_v10 = vrot.slane %v1535_v59, 4  ;;  %v1543_v22 = vrot.slane %v1541_v0, 5  ;;  %v6935_v8 = vmul.f32 %v6764_v21, %v6913_v51 }
  0xbe   : > { %v6918_v14 = vsel %vm6461_vm5, %v5443_v5, %v1966_v56  ;;  %v1968_v34 = vrot.slane %v1966_v56, 4  ;;  %v1529_v19 = vrot.slane %v1528_v9, 4  ;;  %v6938_v52 = vmul.f32 %v6745_v63, %v374_v12 }
  0xbf   : > { %v1538_v20 = vor.u32 %v1537_v10, %v1533_v46  ;;  %v1278_v24 = vld [vmem:[#allocation2 + $0x60] sm:$0xf]  ;;  %vm485_vm10 = vcmp.ge.f32.partialorder %v6910_v60, 0.0  ;;  %vm486_vm11 = vcmp.ge.f32.partialorder %v6913_v51, 0.0  ;;  %vm1237_vm9 = vcmask 31744  }
  0xc0   : > { %v1970_v25 = vsel %vm6461_vm5, %v1968_v34, %v1969_v7  ;;  %v1826_v26 = vld [vmem:[#allocation2 + $0x60] sm:$0xe]  ;;  %v1534_v6 = vsel %vm6499_vm12, %v1529_v19, %v1533_v46  ;;  %v1279_v57 = vld [vmem:[#allocation2 + $0x64] sm:$0xf]  ;;  %v1498_v1 = vshrl.u32 %v1278_v24, 16  ;;  %v1501_v32 = vshll.u32 %v1278_v24, 16 }
  0xc1   : > { %v1539_v29 = vrot.slane %v1538_v20, 4  ;;  %v1280_v62 = vld [vmem:[#allocation2 + $0x68] sm:$0x1]  ;;  %v5459_v30 = vcombine.low %v6918_v14, %v1970_v25  ;;  %v5535_v13 = vld [vmem:[#allocation2 + $0x60] sm:$0xf]  ;;  %v1507_v33 = vshll.u32 %v1279_v57, 16 }
  0xc2   : > { %v1511_v49 = vshrl.u32 %v1279_v57, 16  ;;  %v1517_v42 = vshll.u32 %v1280_v62, 16  ;;  %v1827_v31 = vld [vmem:[#allocation2 + $0x64] sm:$0xf]  ;;  %v1500_v27 = vrot.slane %v1498_v1, 4  ;;  %v5442_v39 = vrot.slane %v1826_v26, 9 }
  0xc3   : > { %v1544_v35 = vsel %vm6499_vm12, %v1539_v29, %v1543_v22  ;;  %v1828_v38 = vld [vmem:[#allocation2 + $0x68] sm:$0x1]  ;;  %v1959_v40 = vrot.slane %v1827_v31, 5  ;;  %v1503_v45 = vrot.slane %v1501_v32, 5  ;;  %v1509_v3 = vrot.slane %v1507_v33, 5  ;;  %1241 = vst.msk [vmem:[#allocation3 + $0x18] sm:$0xff] %vm1237_vm9, %v6257_v18 }
  0xc4   : > { %v5427_v44 = vcombine.low %v1534_v6, %v1544_v35  ;;  %v1513_v43 = vrot.slane %v1511_v49, 4  ;;  %v5536_v47 = vld [vmem:[#allocation2 + $0x64] sm:$0xf]  ;;  %v1519_v48 = vrot.slane %v1517_v42, 5  ;;  %v1962_v53 = vrot.slane %v1828_v38, 5  ;;  %1240 = vst.msk [vmem:[#allocation3 + $0x10] sm:$0xff] %vm1237_vm9, %v6258_v11 }
  0xc5   : > { %v1960_v36 = vsel %vm6461_vm5, %v5442_v39, %v1959_v40  ;;  %v1961_v54 = vrot.slane %v1959_v40, 4  ;;  %v5537_v55 = vld [vmem:[#allocation2 + $0x68] sm:$0x1]  ;;  %v1504_v58 = vor.u32 %v1503_v45, %v1500_v27  ;;  %v2509_v61 = vshrl.u32 %v5535_v13, 16  ;;  %v5599_v5 = vld [vmem:[#allocation2 + $0x60] sm:$0xe] }
  0xc6   : > { %1755 = vrot.lane.b32.xlu1 %v5427_v44, %s6342_s12  ;;  %v1514_v59 = vor.u32 %v1513_v43, %v1509_v3  ;;  %v2512_v0 = vshll.u32 %v5535_v13, 16  ;;  %v2518_v7 = vshll.u32 %v5536_v47, 16  ;;  %v2522_v9 = vshrl.u32 %v5536_v47, 16  ;;  %v5600_v10 = vld [vmem:[#allocation2 + $0x64] sm:$0xf] }
  0xc7   : > { %v1963_v56 = vsel %vm6461_vm5, %v1961_v54, %v1962_v53  ;;  %v2528_v46 = vshll.u32 %v5537_v55, 16  ;;  %v1505_v12 = vrot.slane %v1504_v58, 4  ;;  %v2511_v19 = vrot.slane %v2509_v61, 4  ;;  %v5601_v20 = vld [vmem:[#allocation2 + $0x68] sm:$0x1] }
  0xc8   : > { %v1515_v14 = vrot.slane %v1514_v59, 4  ;;  %v5458_v34 = vcombine.low %v1960_v36, %v1963_v56  ;;  %v2514_v22 = vrot.slane %v2512_v0, 5  ;;  %v2520_v24 = vrot.slane %v2518_v7, 5  ;;  %v5742_v6 = vld [vmem:[#allocation2 + $0x18] sm:$0xf] }
  0xc9   : > { %v2524_v25 = vrot.slane %v2522_v9, 4  ;;  %v2530_v26 = vrot.slane %v2528_v46, 5  ;;  %v1510_v29 = vsel %vm6499_vm12, %v1505_v12, %v1509_v3  ;;  %v5633_v62 = vrot.slane %v5599_v5, 9  ;;  %v5743_v47 = vld [vmem:[#allocation2 + $0x1c] sm:$0xf] }
  0xca   : > { %v1520_v57 = vsel %vm6499_vm12, %v1515_v14, %v1519_v48  ;;  %2079 = vrot.lane.b32.xlu1 %v5459_v30, %s6341_s11  ;;  %v2983_v1 = vrot.slane %v5600_v10, 5  ;;  %v2515_v32 = vor.u32 %v2514_v22, %v2511_v19  ;;  %v2986_v49 = vrot.slane %v5601_v20, 5  ;;  %v1063_v55 = vld [vmem:[#allocation2 + $0x84] sm:$0xf]  ;;  %v1067_v56 = vld [vmem:[#allocation2 + $0x8c] sm:$0x1] }
  0xcb   : > { %v5426_v13 = vcombine.low %v1510_v29, %v1520_v57  ;;  %v2525_v33 = vor.u32 %v2524_v25, %v2520_v24  ;;  %v556_v35 = vsel %vm485_vm10, %v6910_v60, %v6931_v28  ;;  %v557_v30 = vsel %vm486_vm11, %v6913_v51, %v6935_v8  ;;  %v5744_v20 = vld [vmem:[#allocation2 + $0x20] sm:$0x1]  ;;  %v6993_v29 = vld [vmem:[#allocation2 + $0x70] sm:$0xf] }
  0xcc   : > { %v2984_v42 = vsel %vm6461_vm5, %v5633_v62, %v2983_v1  ;;  %v2985_v31 = vrot.slane %v2983_v1, 4  ;;  %v2516_v27 = vrot.slane %v2515_v32, 4  ;;  %v5961_v39 = vpack.c.bf16 %v556_v35, %v556_v35 }
  0xcd   : > { %1753 = vrot.lane.b32.xlu0 %v5426_v13, %s6342_s12  ;;  %v2526_v38 = vrot.slane %v2525_v33, 4  ;;  %v5962_v40 = vpack.c.bf16 %v557_v30, %v557_v30  ;;  %v451_v45 = vadd.f32 %v6756_v16, %v6923_v17  ;;  %v452_v60 = vadd.f32 %v6756_v16, %v6938_v52  ;;  %v1056_v33 = vld [vmem:[#allocation2 + $0x78] sm:$0xf]  ;;  %v1060_v30 = vld [vmem:[#allocation2 + $0x80] sm:$0x1] }
  0xce   : > { %v2987_v44 = vsel %vm6461_vm5, %v2985_v31, %v2986_v49  ;;  %v3808_v28 = vshrl.u32 %v5742_v6, 16  ;;  %v2521_v3 = vsel %vm6499_vm12, %v2516_v27, %v2520_v24  ;;  %v838_v43 = vshrl.u32 %v5961_v39, 16  ;;  %v5538_v24 = vld [vmem:[#allocation2 + $0x6c] sm:$0xf] }
  0xcf   : > { %v2531_v51 = vsel %vm6499_vm12, %v2526_v38, %v2530_v26  ;;  %v5649_v8 = vcombine.low %v2984_v42, %v2987_v44  ;;  %v841_v36 = vshll.u32 %v5961_v39, 16  ;;  %v846_v54 = vshrl.u32 %v5962_v40, 16 }
  0xd0   : > { %v5569_v48 = vcombine.low %v2521_v3, %v2531_v51  ;;  %v849_v53 = vshll.u32 %v5962_v40, 16  ;;  %v840_v17 = vrot.slane %v838_v43, 7  ;;  %vm483_vm13 = vcmp.ge.f32.partialorder %v451_v45, 0.0 }
  0xd1   : > { %2077 = vrot.lane.b32.xlu0 %v5458_v34, %s6341_s11  ;;  %vm484_vm14 = vcmp.ge.f32.partialorder %v452_v60, 0.0  ;;  %v522_v16 = vmul.f32 %v6764_v21, %v451_v45  ;;  %v848_v52 = vrot.slane %v846_v54, 7  ;;  %v523_v58 = vmul.f32 %v6764_v21, %v452_v60 }
  0xd2   : > { %2786 = vrot.lane.b32.xlu1 %v5569_v48, %s6342_s12  ;;  %v3810_v59 = vrot.slane %v3808_v28, 4  ;;  %v3811_v61 = vshll.u32 %v5742_v6, 16  ;;  %v843_v0 = vor.u32 %v841_v36, %v840_v17  ;;  %v844_v5 = vrot.slane %v840_v17, 4 }
  0xd3   : > { %v554_v7 = vsel %vm483_vm13, %v451_v45, %v522_v16  ;;  %v3817_v9 = vshll.u32 %v5743_v47, 16  ;;  %v851_v46 = vor.u32 %v849_v53, %v848_v52  ;;  %v853_v10 = vrot.slane %v848_v52, 4 }
  0xd4   : > { %v555_v12 = vsel %vm484_vm14, %v452_v60, %v523_v58  ;;  %v5959_v14 = vpack.c.bf16 %v554_v7, %v554_v7  ;;  %v1064_v34 = vsel %vm6530_vm2, %v843_v0, %v1063_v55  ;;  %v3813_v21 = vrot.slane %v3811_v61, 5  ;;  %v5540_v60 = vld [vmem:[#allocation2 + $0x74] sm:$0x1] }
  0xd5   : > { %2784 = vrot.lane.b32.xlu0 %v6920_v15, %s6342_s12  ;;  %v5960_v19 = vpack.c.bf16 %v555_v12, %v555_v12  ;;  %v6986_v22 = vrot.slane %v3817_v9, 5  ;;  %v852_v25 = vsel %vm6521_vm15, %v844_v5, %v851_v46  ;;  %1065 = vst [vmem:[#allocation2 + $0x84] sm:$0xf] %v1064_v34  ;;  %v1068_v26 = vsel %vm6538_vm3, %v853_v10, %v1067_v56 }
  0xd6   : > { %3106 = vrot.lane.b32.xlu1 %v5649_v8, %s6341_s11  ;;  %v821_v6 = vshrl.u32 %v5959_v14, 16  ;;  %v824_v15 = vshll.u32 %v5959_v14, 16  ;;  %1066 = vst.msk [vmem:[#allocation2 + $0x88] sm:$0xf] %vm299_vm0, %v852_v25  ;;  %1069 = vst [vmem:[#allocation2 + $0x8c] sm:$0x1] %v1068_v26  ;;  %v3814_v1 = vor.u32 %v3813_v21, %v3810_v59  ;;  %v7017_v5 = vmul.f32 %v6745_v63, %v379_v50 }
  0xd7   : > { %v829_v57 = vshrl.u32 %v5960_v19, 16  ;;  %v832_v62 = vshll.u32 %v5960_v19, 16  ;;  %v3821_v13 = vshrl.u32 %v5743_v47, 16  ;;  %v3827_v49 = vshll.u32 %v5744_v20, 16  ;;  %v380_v21 = vld [vmem:[%s6469_s30 + $0xc8] sm:$0xff] }
  0xd8   : > { %v823_v32 = vrot.slane %v821_v6, 7  ;;  %v2533_v42 = vshrl.u32 %v5538_v24, 16  ;;  %v2536_v31 = vshll.u32 %v5538_v24, 16  ;;  %v3815_v27 = vrot.slane %v3814_v1, 4  ;;  %v5602_v6 = vld [vmem:[#allocation2 + $0x6c] sm:$0xe] }
  0xd9   : > { %3104 = vrot.lane.b32.xlu0 %v5648_v23, %s6341_s11  ;;  %v831_v35 = vrot.slane %v829_v57, 7  ;;  %v3823_v38 = vrot.slane %v3821_v13, 4  ;;  %v2542_v39 = vshll.u32 %v6993_v29, 16  ;;  %v3829_v45 = vrot.slane %v3827_v49, 5  ;;  %v7034_v49 = vpop.permute.xlu0 %1737 }
  0xda   : > { %v826_v40 = vor.u32 %v824_v15, %v823_v32  ;;  %v827_v44 = vrot.slane %v823_v32, 4  ;;  %v2535_v28 = vrot.slane %v2533_v42, 4  ;;  %v3820_v8 = vsel %vm6499_vm12, %v3815_v27, %v6986_v22 }
  0xdb   : > { %v834_v3 = vor.u32 %v832_v62, %v831_v35  ;;  %v836_v51 = vrot.slane %v831_v35, 4  ;;  %v3824_v37 = vor.u32 %v3823_v38, %v6986_v22  ;;  %v2538_v43 = vrot.slane %v2536_v31, 5  ;;  %v7041_v38 = vld [vmem:[%s8179_s1] ss:$0 sm:$0xff] }
  0xdc   : > { %v1057_v23 = vsel %vm6530_vm2, %v826_v40, %v1056_v33  ;;  %v7008_v47 = vrot.slane %v2542_v39, 5  ;;  %v2546_v48 = vshrl.u32 %v6993_v29, 16  ;;  %v1287_v36 = vld [vmem:[#allocation2 + $0x84] sm:$0xf]  ;;  %v2552_v52 = vshll.u32 %v5540_v60, 16  ;;  %v7032_v33 = vpop.permute.xlu1 %2061 }
  0xdd   : > { %v835_v54 = vsel %vm6521_vm15, %v827_v44, %v834_v3  ;;  %1058 = vst [vmem:[#allocation2 + $0x78] sm:$0xf] %v1057_v23  ;;  %v1061_v53 = vsel %vm6538_vm3, %v836_v51, %v1060_v30  ;;  %v1835_v17 = vld [vmem:[#allocation2 + $0x84] sm:$0xe]  ;;  %v3825_v16 = vrot.slane %v3824_v37, 4  ;;  %v1570_v59 = vshrl.u32 %v1287_v36, 16 }
  0xde   : > { %v1288_v55 = vld [vmem:[#allocation2 + $0x88] sm:$0xf]  ;;  %v1289_v58 = vld [vmem:[#allocation2 + $0x8c] sm:$0x1]  ;;  %v1573_v61 = vshll.u32 %v1287_v36, 16  ;;  %v2539_v0 = vor.u32 %v2538_v43, %v2535_v28  ;;  %v5445_v10 = vrot.slane %v1835_v17, 9  ;;  %v7044_v39 = vmul.f32 %v7041_v38, %v380_v21 }
  0xdf   : > { %1059 = vst.msk [vmem:[#allocation2 + $0x7c] sm:$0xf] %vm299_vm0, %v835_v54  ;;  %1062 = vst [vmem:[#allocation2 + $0x80] sm:$0x1] %v1061_v53  ;;  %v1579_v56 = vshll.u32 %v1288_v55, 16  ;;  %v1583_v7 = vshrl.u32 %v1288_v55, 16  ;;  %v3830_v20 = vsel %vm6499_vm12, %v3825_v16, %v3829_v45 }
  0xe0   : > { %v1589_v9 = vshll.u32 %v1289_v58, 16  ;;  %v1836_v46 = vld [vmem:[#allocation2 + $0x88] sm:$0xf]  ;;  %v1572_v12 = vrot.slane %v1570_v59, 4  ;;  %v1575_v14 = vrot.slane %v1573_v61, 5  ;;  %v7026_v57 = vcombine.low %v3820_v8, %v3830_v20 }
  0xe1   : > { %v1837_v34 = vld [vmem:[#allocation2 + $0x8c] sm:$0x1]  ;;  %v1980_v19 = vrot.slane %v1836_v46, 5  ;;  %v1581_v22 = vrot.slane %v1579_v56, 5  ;;  %v1585_v24 = vrot.slane %v1583_v7, 4  ;;  %v7028_v1 = vrot.slane %v2539_v0, 4  ;;  %v7056_v46 = vpop.permute.xlu0 %2065 }
  0xe2   : > { %v1591_v25 = vrot.slane %v1589_v9, 5  ;;  %v1983_v26 = vrot.slane %v1837_v34, 5  ;;  %v1576_v63 = vor.u32 %v1575_v14, %v1572_v12  ;;  %v2548_v13 = vrot.slane %v2546_v48, 4  ;;  %v5603_v51 = vld [vmem:[#allocation2 + $0x70] sm:$0xf] }
  0xe3   : > { %v7024_v15 = vsel %vm6461_vm5, %v5445_v10, %v1980_v19  ;;  %v1982_v29 = vrot.slane %v1980_v19, 4  ;;  %v1586_v62 = vor.u32 %v1585_v24, %v1581_v22  ;;  %v7030_v32 = vrot.slane %v2552_v52, 5  ;;  %v5604_v8 = vld [vmem:[#allocation2 + $0x74] sm:$0x1]  ;;  %v7058_v10 = vpop.permute.xlu1 %2063 }
  0xe4   : > { %v1577_v42 = vrot.slane %v1576_v63, 4  ;;  %v1284_v31 = vld [vmem:[#allocation2 + $0x78] sm:$0xf]  ;;  %v5634_v27 = vrot.slane %v5602_v6, 9  ;;  %v2545_v3 = vsel %vm6499_vm12, %v7028_v1, %v7008_v47  ;;  %v2549_v9 = vor.u32 %v2548_v13, %v7008_v47 }
  0xe5   : > { %v1984_v35 = vsel %vm6461_vm5, %v1982_v29, %v1983_v26  ;;  %v1832_v30 = vld [vmem:[#allocation2 + $0x78] sm:$0xe]  ;;  %v1587_v40 = vrot.slane %v1586_v62, 4  ;;  %v1546_v60 = vshrl.u32 %v1284_v31, 16  ;;  %v1549_v50 = vshll.u32 %v1284_v31, 16 }
  0xe6   : > { %v1285_v44 = vld [vmem:[#allocation2 + $0x7c] sm:$0xf]  ;;  %v1286_v45 = vld [vmem:[#allocation2 + $0x80] sm:$0x1]  ;;  %v5461_v28 = vcombine.low %v7024_v15, %v1984_v35  ;;  %v1582_v37 = vsel %vm6499_vm12, %v1577_v42, %v1581_v22  ;;  %v5444_v16 = vrot.slane %v1832_v30, 9  ;;  %v2990_v34 = vrot.slane %v5603_v51, 5 }
  0xe7   : > { %v1555_v23 = vshll.u32 %v1285_v44, 16  ;;  %v1559_v43 = vshrl.u32 %v1285_v44, 16  ;;  %v1833_v48 = vld [vmem:[#allocation2 + $0x7c] sm:$0xf]  ;;  %v1592_v36 = vsel %vm6499_vm12, %v1587_v40, %v1591_v25  ;;  %v1548_v54 = vrot.slane %v1546_v60, 4 }
  0xe8   : > { %v1565_v53 = vshll.u32 %v1286_v45, 16  ;;  %v1834_v17 = vld [vmem:[#allocation2 + $0x80] sm:$0x1]  ;;  %v5429_v52 = vcombine.low %v1582_v37, %v1592_v36  ;;  %v1551_v55 = vrot.slane %v1549_v50, 5  ;;  %v5541_v61 = vld [vmem:[#allocation2 + $0x78] sm:$0xf]  ;;  %v2991_v47 = vsel %vm6461_vm5, %v5634_v27, %v2990_v34  ;;  %v7077_v37 = vpop.permute.xlu0 %3092  ;;  %v7079_v50 = vpop.permute.xlu1 %2067 }
  0xe9   : > { %v1557_v58 = vrot.slane %v1555_v23, 5  ;;  %v1561_v59 = vrot.slane %v1559_v43, 4  ;;  %v1973_v56 = vrot.slane %v1833_v48, 5  ;;  %v1976_v7 = vrot.slane %v1834_v17, 5  ;;  %v5542_v63 = vld [vmem:[#allocation2 + $0x7c] sm:$0xf] }
  0xea   : > { %v1567_v0 = vrot.slane %v1565_v53, 5  ;;  %1759 = vrot.lane.b32.xlu1 %v5429_v52, %s6342_s12  ;;  %v1552_v12 = vor.u32 %v1551_v55, %v1548_v54  ;;  %v2993_v19 = vrot.slane %v5604_v8, 5  ;;  %v2550_v22 = vrot.slane %v2549_v9, 4  ;;  %v5543_v62 = vld [vmem:[#allocation2 + $0x80] sm:$0x1]  ;;  %8204 = vst [vmem:[#allocation7_spill] sm:$0xff] %v7077_v37 }
  0xeb   : > { %v1562_v14 = vor.u32 %v1561_v59, %v1557_v58  ;;  %v1974_v20 = vsel %vm6461_vm5, %v5444_v16, %v1973_v56  ;;  %v1975_v21 = vrot.slane %v1973_v56, 4  ;;  %v2557_v24 = vshrl.u32 %v5541_v61, 16  ;;  %v5806_v42 = vld [vmem:[#allocation2 + $0x18] sm:$0xe]  ;;  %v5807_v40 = vld [vmem:[#allocation2 + $0x1c] sm:$0xf] }
  0xec   : > { %v1553_v25 = vrot.slane %v1552_v12, 4  ;;  %v2992_v6 = vrot.slane %v2990_v34, 4  ;;  %v2555_v29 = vsel %vm6499_vm12, %v2550_v22, %v7030_v32  ;;  %v2560_v13 = vshll.u32 %v5541_v61, 16  ;;  %v5808_v44 = vld [vmem:[#allocation2 + $0x20] sm:$0x1] }
  0xed   : > { %v1563_v26 = vrot.slane %v1562_v14, 4  ;;  %v1977_v15 = vsel %vm6461_vm5, %v1975_v21, %v1976_v7  ;;  %v2559_v1 = vrot.slane %v2557_v24, 4  ;;  %v5570_v27 = vcombine.low %v2545_v3, %v2555_v29  ;;  %v5745_v8 = vld [vmem:[#allocation2 + $0x24] sm:$0xf]  ;;  %v5747_v16 = vld [vmem:[#allocation2 + $0x2c] sm:$0x1] }
  0xee   : > { %v1558_v31 = vsel %vm6499_vm12, %v1553_v25, %v1557_v58  ;;  %2083 = vrot.lane.b32.xlu1 %v5461_v28, %s6341_s11  ;;  %v5460_v30 = vcombine.low %v1974_v20, %v1977_v15  ;;  %v2994_v32 = vsel %vm6461_vm5, %v2992_v6, %v2993_v19  ;;  %v2562_v60 = vrot.slane %v2560_v13, 5  ;;  %v5746_v28 = vld [vmem:[#allocation2 + $0x28] sm:$0xf]  ;;  %v5809_v61 = vld [vmem:[#allocation2 + $0x24] sm:$0xe]  ;;  %v7093_v15 = vpop.permute.xlu1 %3094 }
  0xef   : > { %v1568_v35 = vsel %vm6499_vm12, %v1563_v26, %v1567_v0  ;;  %v2566_v51 = vshll.u32 %v5542_v63, 16  ;;  %v5650_v23 = vcombine.low %v2991_v47, %v2994_v32  ;;  %v2570_v43 = vshrl.u32 %v5542_v63, 16  ;;  %v5810_v0 = vld [vmem:[#allocation2 + $0x28] sm:$0xf]  ;;  %v5811_v56 = vld [vmem:[#allocation2 + $0x2c] sm:$0x1]  ;;  %v7091_v63 = vpop.permute.xlu0 %2069 }
  0xf0   : > { %v5428_v45 = vcombine.low %v1558_v31, %v1568_v35  ;;  %v2576_v48 = vshll.u32 %v5543_v62, 16  ;;  %v5854_v36 = vrot.slane %v5806_v42, 9  ;;  %v2563_v3 = vor.u32 %v2562_v60, %v2559_v1  ;;  %v5605_v34 = vld [vmem:[#allocation2 + $0x78] sm:$0xe]  ;;  %v5606_v24 = vld [vmem:[#allocation2 + $0x7c] sm:$0xf] }
  0xf1   : > { %v2568_v54 = vrot.slane %v2566_v51, 5  ;;  %v4401_v53 = vrot.slane %v5807_v40, 5  ;;  %v4404_v17 = vrot.slane %v5808_v44, 5  ;;  %v2572_v52 = vrot.slane %v2570_v43, 4  ;;  %v5607_v6 = vld [vmem:[#allocation2 + $0x80] sm:$0x1] }
  0xf2   : > { %1757 = vrot.lane.b32.xlu0 %v5428_v45, %s6342_s12  ;;  %4239 = vrot.lane.b32.xlu1 %v7026_v57, %s6342_s12  ;;  %v2578_v55 = vrot.slane %v2576_v48, 5  ;;  %v3832_v58 = vshrl.u32 %v5745_v8, 16  ;;  %v3835_v59 = vshll.u32 %v5745_v8, 16  ;;  %v2564_v7 = vrot.slane %v2563_v3, 4  ;;  %v377_v43 = vld [vmem:[%s6469_s30 + $0xb0] sm:$0xff] }
  0xf3   : > { %v4402_v9 = vsel %vm6461_vm5, %v5854_v36, %v4401_v53  ;;  %v4403_v12 = vrot.slane %v4401_v53, 4  ;;  %v3841_v14 = vshll.u32 %v5746_v28, 16  ;;  %v2573_v19 = vor.u32 %v2572_v52, %v2568_v54  ;;  %v7108_v3 = vld [vmem:[%s8180_s2] ss:$0 sm:$0xff]  ;;  %v378_v52 = vld [vmem:[%s6469_s30 + $0xb8] sm:$0xff] }
  0xf4   : > { %v3834_v20 = vrot.slane %v3832_v58, 4  ;;  %v3837_v21 = vrot.slane %v3835_v59, 5  ;;  %v3845_v22 = vshrl.u32 %v5746_v28, 16  ;;  %v2569_v57 = vsel %vm6499_vm12, %v2564_v7, %v2568_v54  ;;  %v7121_v58 = vpop.permute.xlu1 %2071 }
  0xf5   : > { %v4405_v25 = vsel %vm6461_vm5, %v4403_v12, %v4404_v17  ;;  %v3843_v26 = vrot.slane %v3841_v14, 5  ;;  %v3851_v47 = vshll.u32 %v5747_v16, 16  ;;  %v2574_v29 = vrot.slane %v2573_v19, 4  ;;  %v5749_v12 = vld [vmem:[#allocation2 + $0x34] sm:$0xf] }
  0xf6   : > { %2081 = vrot.lane.b32.xlu0 %v5460_v30, %s6341_s11  ;;  %3108 = vrot.lane.b32.xlu1 %v5650_v23, %s6341_s11  ;;  %v5870_v62 = vcombine.low %v4402_v9, %v4405_v25  ;;  %v3838_v1 = vor.u32 %v3837_v21, %v3834_v20  ;;  %v3847_v13 = vrot.slane %v3845_v22, 4  ;;  %v5855_v31 = vrot.slane %v5809_v61, 9 }
  0xf7   : > { %v3853_v42 = vrot.slane %v3851_v47, 5  ;;  %v4408_v35 = vrot.slane %v5810_v0, 5  ;;  %v4411_v30 = vrot.slane %v5811_v56, 5  ;;  %v2579_v40 = vsel %vm6499_vm12, %v2574_v29, %v2578_v55  ;;  %v7119_v55 = vpop.permute.xlu0 %3096  ;;  %v5748_v56 = vld [vmem:[#allocation2 + $0x30] sm:$0xf] }
  0xf8   : > { %v3839_v44 = vrot.slane %v3838_v1, 4  ;;  %v3848_v45 = vor.u32 %v3847_v13, %v3843_v26  ;;  %v5635_v32 = vrot.slane %v5605_v34, 9  ;;  %v5571_v60 = vcombine.low %v2569_v57, %v2579_v40  ;;  %8205 = vst [vmem:[#allocation8_spill] sm:$0xff] %v7119_v55  ;;  %v5750_v1 = vld [vmem:[#allocation2 + $0x38] sm:$0x1] }
  0xf9   : > { %v4409_v51 = vsel %vm6461_vm5, %v5855_v31, %v4408_v35  ;;  %v4410_v8 = vrot.slane %v4408_v35, 4  ;;  %v2997_v23 = vrot.slane %v5606_v24, 5  ;;  %v3000_v28 = vrot.slane %v5607_v6, 5  ;;  %v7141_v31 = vpop.permute.xlu1 %3098  ;;  %v5816_v55 = vld [vmem:[#allocation2 + $0x40] sm:$0xf] }
  0xfa   : > { %2788 = vrot.lane.b32.xlu0 %v5570_v27, %s6342_s12  ;;  %4559 = vrot.lane.b32.xlu1 %v5870_v62, %s6341_s11  ;;  %v3844_v48 = vsel %vm6499_vm12, %v3839_v44, %v3843_v26  ;;  %v3849_v36 = vrot.slane %v3848_v45, 4  ;;  %v457_v27 = vadd.f32 %v7108_v3, %v7017_v5  ;;  %v458_v16 = vadd.f32 %v7108_v3, %v7044_v39  ;;  %v7128_v5 = vld [vmem:[%s8181_s3] ss:$0 sm:$0xff] }
  0xfb   : > { %v4412_v54 = vsel %vm6461_vm5, %v4410_v8, %v4411_v30  ;;  %v2998_v53 = vsel %vm6461_vm5, %v5635_v32, %v2997_v23  ;;  %v2999_v17 = vrot.slane %v2997_v23, 4  ;;  %v416_v19 = vmul.f32 %v7041_v38, %v377_v43  ;;  %8206 = vst [vmem:[#allocation9_spill] sm:$0xff] %v7141_v31  ;;  %v7143_v35 = vpop.permute.xlu0 %1739  ;;  %v1077_v8 = vld [vmem:[#allocation2 + $0x9c] sm:$0xf]  ;;  %v6267_v31 = vld [vmem:[#allocation2 + $0x54] sm:$0xff]  }
  0xfc   : > { %v3854_v59 = vsel %vm6499_vm12, %v3849_v36, %v3853_v42  ;;  %v5871_v61 = vcombine.low %v4409_v51, %v4412_v54  ;;  %vm489_vm4 = vcmp.ge.f32.partialorder %v457_v27, 0.0  ;;  %v528_v0 = vmul.f32 %v7128_v5, %v457_v27  ;;  %1245 = vst.msk [vmem:[#allocation3 + $0x38] sm:$0xff] %vm1237_vm9, %v6267_v31 }
  0xfd   : > { %v5791_v39 = vcombine.low %v3844_v48, %v3854_v59  ;;  %v3001_v7 = vsel %vm6461_vm5, %v2999_v17, %v3000_v28  ;;  %vm490_vm6 = vcmp.ge.f32.partialorder %v458_v16, 0.0  ;;  %v529_v9 = vmul.f32 %v7128_v5, %v458_v16 }
  0xfe   : > { %2790 = vrot.lane.b32.xlu0 %v5571_v60, %s6342_s12  ;;  %4561 = vrot.lane.b32.xlu1 %v5871_v61, %s6341_s11  ;;  %v5651_v14 = vcombine.low %v2998_v53, %v3001_v7  ;;  %v560_v34 = vsel %vm489_vm4, %v457_v27, %v528_v0  ;;  %v417_v20 = vmul.f32 %v7041_v38, %v378_v52  ;;  %v3856_v24 = vshrl.u32 %v5748_v56, 16  ;;  %v1081_v27 = vld [vmem:[#allocation2 + $0xa4] sm:$0x1] }
  0xff   : > { %v561_v21 = vsel %vm490_vm6, %v458_v16, %v529_v9  ;;  %v5965_v22 = vpack.c.bf16 %v560_v34, %v560_v34  ;;  %v3859_v57 = vshll.u32 %v5748_v56, 16  ;;  %v455_v26 = vadd.f32 %v7108_v3, %v416_v19  ;;  %v5544_v61 = vld [vmem:[#allocation2 + $0x84] sm:$0xf]  ;;  %v5545_v9 = vld [vmem:[#allocation2 + $0x88] sm:$0xf] }
 0x100   : > { %v5966_v25 = vpack.c.bf16 %v561_v21, %v561_v21  ;;  %v456_v47 = vadd.f32 %v7108_v3, %v417_v20  ;;  %v3865_v6 = vshll.u32 %v5749_v12, 16  ;;  %v3858_v13 = vrot.slane %v3856_v24, 4 }
 0x101   : > { %v872_v29 = vshrl.u32 %v5965_v22, 16  ;;  %v875_v62 = vshll.u32 %v5965_v22, 16  ;;  %v3861_v42 = vrot.slane %v3859_v57, 5  ;;  %vm487_vm7 = vcmp.ge.f32.partialorder %v455_v26, 0.0  ;;  %v5546_v22 = vld [vmem:[#allocation2 + $0x8c] sm:$0x1] }
 0x102   : > { %4241 = vrot.lane.b32.xlu0 %v5791_v39, %s6342_s12  ;;  %v880_v30 = vshrl.u32 %v5966_v25, 16  ;;  %v883_v40 = vshll.u32 %v5966_v25, 16  ;;  %vm488_vm8 = vcmp.ge.f32.partialorder %v456_v47, 0.0  ;;  %v526_v45 = vmul.f32 %v7128_v5, %v455_v26 }
 0x103   : > { %v874_v44 = vrot.slane %v872_v29, 7  ;;  %v527_v32 = vmul.f32 %v7128_v5, %v456_v47  ;;  %v3862_v60 = vor.u32 %v3861_v42, %v3858_v13  ;;  %v3867_v23 = vrot.slane %v3865_v6, 5  ;;  %v1070_v6 = vld [vmem:[#allocation2 + $0x90] sm:$0xf]  ;;  %v1074_v42 = vld [vmem:[#allocation2 + $0x98] sm:$0x1] }
 0x104   : > { %v882_v51 = vrot.slane %v880_v30, 7  ;;  %v3869_v43 = vshrl.u32 %v5749_v12, 16  ;;  %v3875_v48 = vshll.u32 %v5750_v1, 16  ;;  %v558_v54 = vsel %vm487_vm7, %v455_v26, %v526_v45  ;;  %v7150_v12 = vpop.permute.xlu1 %1743 }
 0x105   : > { %v877_v36 = vor.u32 %v875_v62, %v874_v44  ;;  %v878_v28 = vrot.slane %v874_v44, 4  ;;  %v559_v53 = vsel %vm488_vm8, %v456_v47, %v527_v32  ;;  %v5963_v52 = vpack.c.bf16 %v558_v54, %v558_v54 }
 0x106   : > { %3110 = vrot.lane.b32.xlu0 %v5651_v14, %s6341_s11  ;;  %v885_v17 = vor.u32 %v883_v40, %v882_v51  ;;  %v887_v16 = vrot.slane %v882_v51, 4  ;;  %v5964_v59 = vpack.c.bf16 %v559_v53, %v559_v53  ;;  %v3863_v56 = vrot.slane %v3862_v60, 4  ;;  %v7152_v14 = vpop.permute.xlu0 %1741 }
 0x107   : > { %v1078_v0 = vsel %vm6530_vm2, %v877_v36, %v1077_v8  ;;  %v3871_v39 = vrot.slane %v3869_v43, 4  ;;  %v3877_v7 = vrot.slane %v3875_v48, 5  ;;  %v855_v20 = vshrl.u32 %v5963_v52, 16  ;;  %v7161_v8 = vld [vmem:[#allocation2 + $0x84] sm:$0xe] }
 0x108   : > { %v886_v34 = vsel %vm6521_vm15, %v878_v28, %v885_v17  ;;  %1079 = vst [vmem:[#allocation2 + $0x9c] sm:$0xf] %v1078_v0  ;;  %v1082_v19 = vsel %vm6538_vm3, %v887_v16, %v1081_v27  ;;  %v858_v21 = vshll.u32 %v5963_v52, 16  ;;  %v863_v24 = vshrl.u32 %v5964_v59, 16  ;;  %v383_v28 = vld [vmem:[%s6469_s30 + $0xe0] sm:$0xff]  ;;  %v7168_v27 = vpop.permute.xlu1 %2774 }
 0x109   : > { %1080 = vst.msk [vmem:[#allocation2 + $0xa0] sm:$0xf] %vm299_vm0, %v886_v34  ;;  %1083 = vst [vmem:[#allocation2 + $0xa4] sm:$0x1] %v1082_v19  ;;  %v866_v57 = vshll.u32 %v5964_v59, 16  ;;  %v3868_v25 = vsel %vm6499_vm12, %v3863_v56, %v3867_v23  ;;  %v3872_v26 = vor.u32 %v3871_v39, %v3867_v23  ;;  %v857_v47 = vrot.slane %v855_v20, 7 }
 0x10a   : > { %v2581_v29 = vshrl.u32 %v5544_v61, 16  ;;  %v2584_v62 = vshll.u32 %v5544_v61, 16  ;;  %v2590_v1 = vshll.u32 %v5545_v9, 16  ;;  %v865_v13 = vrot.slane %v863_v24, 7  ;;  %v7170_v54 = vpop.permute.xlu0 %2772  ;;  %v7187_v24 = vld [vmem:[#allocation2 + $0x8c] sm:$0x1] }
 0x10b   : > { %v3873_v30 = vrot.slane %v3872_v26, 4  ;;  %v2594_v40 = vshrl.u32 %v5545_v9, 16  ;;  %v2600_v44 = vshll.u32 %v5546_v22, 16  ;;  %v860_v45 = vor.u32 %v858_v21, %v857_v47  ;;  %v7185_v22 = vld [vmem:[#allocation2 + $0x88] sm:$0xf] }
 0x10c   : > { %v861_v32 = vrot.slane %v857_v47, 4  ;;  %v2583_v60 = vrot.slane %v2581_v29, 4  ;;  %v2586_v51 = vrot.slane %v2584_v62, 5  ;;  %v868_v43 = vor.u32 %v866_v57, %v865_v13  ;;  %v384_v62 = vld [vmem:[%s6469_s30 + $0xe8] sm:$0xff] }
 0x10d   : > { %v870_v48 = vrot.slane %v865_v13, 4  ;;  %v3878_v23 = vsel %vm6499_vm12, %v3873_v30, %v3877_v7  ;;  %v7165_v36 = vrot.slane %v2590_v1, 5  ;;  %v1071_v53 = vsel %vm6530_vm2, %v860_v45, %v1070_v6 }
 0x10e   : > { %v7174_v17 = vcombine.low %v3868_v25, %v3878_v23  ;;  %v2587_v16 = vor.u32 %v2586_v51, %v2583_v60  ;;  %v2596_v52 = vrot.slane %v2594_v40, 4  ;;  %v869_v61 = vsel %vm6521_vm15, %v861_v32, %v868_v43  ;;  %1072 = vst [vmem:[#allocation2 + $0x90] sm:$0xf] %v1071_v53  ;;  %v7193_v51 = vld [vmem:[#allocation2 + $0x30] sm:$0xe]  ;;  %v7195_v43 = vpop.permute.xlu1 %1747 }
 0x10f   : > { %v1293_v59 = vld [vmem:[#allocation2 + $0x9c] sm:$0xf]  ;;  %v1075_v0 = vsel %vm6538_vm3, %v870_v48, %v1074_v42  ;;  %v7180_v39 = vrot.slane %v2600_v44, 5  ;;  %v5636_v7 = vrot.slane %v7161_v8, 9  ;;  %1073 = vst.msk [vmem:[#allocation2 + $0x94] sm:$0xf] %vm299_vm0, %v869_v61  ;;  %v7190_v57 = vmul.f32 %v7041_v38, %v383_v28  ;;  %v7197_v48 = vpop.permute.xlu0 %1745 }
 0x110   : > { %v1841_v56 = vld [vmem:[#allocation2 + $0x9c] sm:$0xe]  ;;  %v1294_v9 = vld [vmem:[#allocation2 + $0xa0] sm:$0xf]  ;;  %v1295_v34 = vld [vmem:[#allocation2 + $0xa4] sm:$0x1]  ;;  %v2597_v21 = vor.u32 %v2596_v52, %v7165_v36 }
 0x111   : > { %v1618_v19 = vshrl.u32 %v1293_v59, 16  ;;  %v1621_v20 = vshll.u32 %v1293_v59, 16  ;;  %1076 = vst [vmem:[#allocation2 + $0x98] sm:$0x1] %v1075_v0  ;;  %v1627_v25 = vshll.u32 %v1294_v9, 16  ;;  %v1631_v26 = vshrl.u32 %v1294_v9, 16 }
 0x112   : > { %v1637_v47 = vshll.u32 %v1295_v34, 16  ;;  %v1842_v6 = vld [vmem:[#allocation2 + $0xa0] sm:$0xf]  ;;  %v5447_v29 = vrot.slane %v1841_v56, 9  ;;  %v1843_v42 = vld [vmem:[#allocation2 + $0xa4] sm:$0x1] }
 0x113   : > { %v1620_v1 = vrot.slane %v1618_v19, 4  ;;  %v1623_v13 = vrot.slane %v1621_v20, 5  ;;  %v1994_v30 = vrot.slane %v1842_v6, 5  ;;  %v2588_v40 = vrot.slane %v2587_v16, 4 }
 0x114   : > { %v1629_v44 = vrot.slane %v1627_v25, 5  ;;  %v1633_v45 = vrot.slane %v1631_v26, 4  ;;  %v1639_v32 = vrot.slane %v1637_v47, 5  ;;  %v1997_v60 = vrot.slane %v1843_v42, 5 }
 0x115   : > { %v1624_v23 = vor.u32 %v1623_v13, %v1620_v1  ;;  %v7201_v28 = vsel %vm6461_vm5, %v5447_v29, %v1994_v30  ;;  %v1996_v53 = vrot.slane %v1994_v30, 4  ;;  %v2593_v16 = vsel %vm6499_vm12, %v2588_v40, %v7165_v36  ;;  %v1290_v9 = vld [vmem:[#allocation2 + $0x90] sm:$0xf] }
 0x116   : > { %v1634_v52 = vor.u32 %v1633_v45, %v1629_v44  ;;  %v2598_v59 = vrot.slane %v2597_v21, 4  ;;  %v3004_v61 = vrot.slane %v7185_v22, 5  ;;  %v3007_v0 = vrot.slane %v7187_v24, 5  ;;  %v1838_v19 = vld [vmem:[#allocation2 + $0x90] sm:$0xe] }
 0x117   : > { %v1625_v56 = vrot.slane %v1624_v23, 4  ;;  %v1998_v34 = vsel %vm6461_vm5, %v1996_v53, %v1997_v60  ;;  %v7212_v25 = vmul.f32 %v7041_v38, %v384_v62  ;;  %v1291_v47 = vld [vmem:[#allocation2 + $0x94] sm:$0xf]  ;;  %v1594_v6 = vshrl.u32 %v1290_v9, 16  ;;  %v7222_v23 = vpop.permute.xlu1 %2778  ;;  %v5611_v37 = vld [vmem:[#allocation2 + $0x90] sm:$0xe] }
 0x118   : > { %v1635_v26 = vrot.slane %v1634_v52, 4  ;;  %v1292_v36 = vld [vmem:[#allocation2 + $0x98] sm:$0x1]  ;;  %v5463_v21 = vcombine.low %v7201_v28, %v1998_v34  ;;  %v2603_v22 = vsel %vm6499_vm12, %v2598_v59, %v7180_v39  ;;  %v1597_v29 = vshll.u32 %v1290_v9, 16  ;;  %v1839_v42 = vld [vmem:[#allocation2 + $0x94] sm:$0xf]  ;;  %v7224_v28 = vpop.permute.xlu0 %2776 }
 0x119   : > { %v1630_v24 = vsel %vm6499_vm12, %v1625_v56, %v1629_v44  ;;  %v1603_v1 = vshll.u32 %v1291_v47, 16  ;;  %v1607_v13 = vshrl.u32 %v1291_v47, 16  ;;  %v1596_v30 = vrot.slane %v1594_v6, 4  ;;  %v1840_v45 = vld [vmem:[#allocation2 + $0x98] sm:$0x1]  ;;  %8207 = vst [vmem:[#allocation10_spill] sm:$0xff] %v7222_v23 }
 0x11a   : > { %v1640_v62 = vsel %vm6499_vm12, %v1635_v26, %v1639_v32  ;;  %v1613_v40 = vshll.u32 %v1292_v36, 16  ;;  %v5446_v60 = vrot.slane %v1838_v19, 9  ;;  %v1599_v39 = vrot.slane %v1597_v29, 5  ;;  %v5547_v44 = vld [vmem:[#allocation2 + $0x90] sm:$0xf] }
 0x11b   : > { %v5431_v53 = vcombine.low %v1630_v24, %v1640_v62  ;;  %v1605_v52 = vrot.slane %v1603_v1, 5  ;;  %v1609_v59 = vrot.slane %v1607_v13, 4  ;;  %v1987_v9 = vrot.slane %v1839_v42, 5  ;;  %v5548_v20 = vld [vmem:[#allocation2 + $0x94] sm:$0xf] }
 0x11c   : > { %v1615_v56 = vrot.slane %v1613_v40, 5  ;;  %v1990_v34 = vrot.slane %v1840_v45, 5  ;;  %v7226_v47 = vcombine.low %v2593_v16, %v2603_v22  ;;  %v1600_v32 = vor.u32 %v1599_v39, %v1596_v30  ;;  %v5751_v22 = vld [vmem:[#allocation2 + $0x3c] sm:$0xf]  ;;  %v5549_v8 = vld [vmem:[#allocation2 + $0x98] sm:$0x1]  ;;  %v7249_v39 = vpop.permute.xlu0 %1749 }
 0x11d   : > { %1763 = vrot.lane.b32.xlu1 %v5431_v53, %s6342_s12  ;;  %v1610_v26 = vor.u32 %v1609_v59, %v1605_v52  ;;  %v7233_v19 = vsel %vm6461_vm5, %v5636_v7, %v3004_v61  ;;  %v3006_v36 = vrot.slane %v3004_v61, 4  ;;  %v7237_v6 = vsel %vm6461_vm5, %v5446_v60, %v1987_v9  ;;  %v5813_v45 = vld [vmem:[#allocation2 + $0x34] sm:$0xf]  ;;  %v5814_v60 = vld [vmem:[#allocation2 + $0x38] sm:$0x1]  ;;  %v7247_v53 = vpop.permute.xlu1 %1751  ;;  %v6256_v61 = vld [vmem:[#allocation2 + $0xc] sm:$0xff]  }
 0x11e   : > { %v1989_v24 = vrot.slane %v1987_v9, 4  ;;  %v2605_v29 = vshrl.u32 %v5547_v44, 16  ;;  %v2608_v16 = vshll.u32 %v5547_v44, 16  ;;  %v1601_v1 = vrot.slane %v1600_v32, 4  ;;  %1239 = vst.msk [vmem:[#allocation3 + $0x8] sm:$0xff] %vm1237_vm9, %v6256_v61 }
 0x11f   : > { %v1611_v13 = vrot.slane %v1610_v26, 4  ;;  %v7241_v42 = vsel %vm6461_vm5, %v3006_v36, %v3007_v0  ;;  %v2614_v62 = vshll.u32 %v5548_v20, 16  ;;  %v2618_v36 = vshrl.u32 %v5548_v20, 16 }
 0x120   : > { %v1991_v7 = vsel %vm6461_vm5, %v1989_v24, %v1990_v34  ;;  %v2607_v30 = vrot.slane %v2605_v29, 4  ;;  %v2610_v40 = vrot.slane %v2608_v16, 5  ;;  %v1606_v0 = vsel %vm6499_vm12, %v1601_v1, %v1605_v52  ;;  %v5752_v34 = vld [vmem:[#allocation2 + $0x40] sm:$0xf]  ;;  %v5753_v29 = vld [vmem:[#allocation2 + $0x44] sm:$0x1]  ;;  %v2074_v23 = vpop.permute.xlu0 %2073 }
 0x121   : > { %v1616_v59 = vsel %vm6499_vm12, %v1611_v13, %v1615_v56  ;;  %2087 = vrot.lane.b32.xlu1 %v5463_v21, %s6341_s11  ;;  %v5462_v44 = vcombine.low %v7237_v6, %v1991_v7  ;;  %v7257_v9 = vrot.slane %v2614_v62, 5  ;;  %v2624_v24 = vshll.u32 %v5549_v8, 16  ;;  %v6255_v16 = vld [vmem:[#allocation2] sm:$0xff]   ;;  %v6263_v1 = vld [vmem:[#allocation2 + $0x30] sm:$0xff]   ;;  %v6268_v6 = vld [vmem:[#allocation2 + $0x48] sm:$0xff]  }
 0x122   : > { %v5430_v32 = vcombine.low %v1606_v0, %v1616_v59  ;;  %v2611_v26 = vor.u32 %v2610_v40, %v2607_v30  ;;  %v6262_v52 = vld [vmem:[#allocation2 + $0x3c] sm:$0xff]   ;;  %v4415_v4 = vrot.slane %v5813_v45, 5  ;;  %v4418_v56 = vrot.slane %v5814_v60, 5  ;;  %v6271_v30 = vld [vmem:[#allocation2 + $0x6c] sm:$0xff]   ;;  %1238 = vst.msk [vmem:[#allocation3] sm:$0xff] %vm1237_vm9, %v6255_v16  ;;  %1242 = vst.msk [vmem:[#allocation3 + $0x20] sm:$0xff] %vm1237_vm9, %v6263_v1 }
 0x123   : > { %v3880_v13 = vshrl.u32 %v5751_v22, 16  ;;  %v3883_v21 = vshll.u32 %v5751_v22, 16  ;;  %v2620_v7 = vrot.slane %v2618_v36, 4  ;;  %v7262_v20 = vrot.slane %v2624_v24, 5  ;;  %v6272_v40 = vld [vmem:[#allocation2 + $0x60] sm:$0xff]   ;;  %1243 = vst.msk [vmem:[#allocation3 + $0x28] sm:$0xff] %vm1237_vm9, %v6262_v52 }
 0x124   : > { %1761 = vrot.lane.b32.xlu0 %v5430_v32, %s6342_s12  ;;  %v7260_v62 = vrot.slane %v2611_v26, 4  ;;  %v3889_v8 = vshll.u32 %v5752_v34, 16  ;;  %v8208_v45 = vrot.slane %v7193_v51, 9  ;;  %v4417_v60 = vrot.slane %v4415_v4, 4  ;;  %v2076_v51 = vpop.permute.xlu1 %2075  ;;  %1244 = vst.msk [vmem:[#allocation3 + $0x30] sm:$0xff] %vm1237_vm9, %v6268_v6  ;;  %1247 = vst.msk [vmem:[#allocation3 + $0x48] sm:$0xff] %vm1237_vm9, %v6271_v30 }
 0x125   : > { %4243 = vrot.lane.b32.xlu1 %v7174_v17, %s6342_s12  ;;  %v3882_v0 = vrot.slane %v3880_v13, 4  ;;  %v3885_v59 = vrot.slane %v3883_v21, 5  ;;  %v2621_v26 = vor.u32 %v2620_v7, %v7257_v9  ;;  %v3893_v24 = vshrl.u32 %v5752_v34, 16  ;;  %v5815_v17 = vld [vmem:[#allocation2 + $0x3c] sm:$0xe]  ;;  %1246 = vst.msk [vmem:[#allocation3 + $0x40] sm:$0xff] %vm1237_vm9, %v6272_v40 }
 0x126   : > { %v7270_v22 = vsel %vm6461_vm5, %v8208_v45, %v4415_v4  ;;  %v2617_v32 = vsel %vm6499_vm12, %v7260_v62, %v7257_v9  ;;  %v7277_v36 = vrot.slane %v3889_v8, 5  ;;  %v4419_v45 = vsel %vm6461_vm5, %v4417_v60, %v4418_v56  ;;  %v7281_v21 = vld [vmem:[#allocation2 + $0x44] sm:$0x1]  ;;  %v5612_v34 = vld [vmem:[#allocation2 + $0x94] sm:$0xf]  ;;  %v6260_v52 = vld [vmem:[#allocation2 + $0x18] sm:$0xff]  }
 0x127   : > { %v3886_v4 = vor.u32 %v3885_v59, %v3882_v0  ;;  %v3899_v13 = vshll.u32 %v5753_v29, 16  ;;  %v2622_v62 = vrot.slane %v2621_v26, 4  ;;  %v5872_v9 = vcombine.low %v7270_v22, %v4419_v45  ;;  %v5613_v29 = vld [vmem:[#allocation2 + $0x98] sm:$0x1]  ;;  %v7358_v16 = vld [vmem:[#allocation2 + $0x4c] sm:$0xf] }
 0x128   : > { %2085 = vrot.lane.b32.xlu0 %v5462_v44, %s6341_s11  ;;  %v3895_v7 = vrot.slane %v3893_v24, 4  ;;  %vm1785_vm10 = vcmask 64544   ;;  %v8209_v61 = vcombine.low %v7233_v19, %v7241_v42  ;;  %vm2109_vm11 = vcmask 97344   ;;  %v7343_v19 = vld [vmem:[#allocation2 + $0x48] sm:$0xf]  ;;  %v7347_v42 = vpop.permute.xlu0 %2780  ;;  %v6261_v1 = vld [vmem:[#allocation2 + $0xc] sm:$0xff]  }
 0x129   : > { %v3887_v18 = vrot.slane %v3886_v4, 4  ;;  %v3901_v44 = vrot.slane %v3899_v13, 5  ;;  %1786 = vst.msk [vmem:[#allocation3] sm:$0xff] %vm1785_vm10, %v7034_v49  ;;  %v5857_v11 = vrot.slane %v5815_v17, 9  ;;  %1787 = vst.msk [vmem:[#allocation3 + $0x8] sm:$0xff] %vm1785_vm10, %v7143_v35  ;;  %v2627_v49 = vsel %vm6499_vm12, %v2622_v62, %v7262_v20  ;;  %v6265_v30 = vld [vmem:[#allocation2 + $0x30] sm:$0xff]  }
 0x12a   : > { %3112 = vrot.lane.b32.xlu1 %v8209_v61, %s6341_s11  ;;  %1789 = vst.msk [vmem:[#allocation3 + $0x18] sm:$0xff] %vm1785_vm10, %v7150_v12  ;;  %1788 = vst.msk [vmem:[#allocation3 + $0x10] sm:$0xff] %vm1785_vm10, %v7152_v14  ;;  %v3896_v31 = vor.u32 %v3895_v7, %v7277_v36  ;;  %v4422_v35 = vrot.slane %v5816_v55, 5  ;;  %v4425_v12 = vrot.slane %v7281_v21, 5  ;;  %v5637_v55 = vrot.slane %v5611_v37, 9  ;;  %v381_v14 = vld [vmem:[%s6469_s30 + $0xd0] sm:$0xff] }
 0x12b   : > { %1791 = vst.msk [vmem:[#allocation3 + $0x28] sm:$0xff] %vm1785_vm10, %v7195_v43  ;;  %1790 = vst.msk [vmem:[#allocation3 + $0x20] sm:$0xff] %vm1785_vm10, %v7197_v48  ;;  %v382_v43 = vld [vmem:[%s6469_s30 + $0xd8] sm:$0xff]  ;;  %v3014_v48 = vrot.slane %v5613_v29, 5  ;;  %v420_v20 = vmul.f32 %v7041_v38, %v381_v14  ;;  %v6266_v40 = vld [vmem:[#allocation2 + $0x24] sm:$0xff]   ;;  %vm3180_vm4 = vcmask 97280  }
 0x12c   : > { %1793 = vst.msk [vmem:[#allocation3 + $0x38] sm:$0xff] %vm1785_vm10, %v7247_v53  ;;  %1792 = vst.msk [vmem:[#allocation3 + $0x30] sm:$0xff] %vm1785_vm10, %v7249_v39  ;;  %2792 = vrot.lane.b32.xlu0 %v7226_v47, %s6342_s12  ;;  %v461_v47 = vadd.f32 %v7108_v3, %v7190_v57  ;;  %v462_v39 = vadd.f32 %v7108_v3, %v7212_v25  ;;  %v421_v8 = vmul.f32 %v7041_v38, %v382_v43  ;;  %v6269_v57 = vld [vmem:[#allocation2 + $0x48] sm:$0xff]   ;;  %v6270_v0 = vld [vmem:[#allocation2 + $0x3c] sm:$0xff]   ;;  %vm3229_vm8 = vcmask 1045504  }
 0x12d   : > { %2110 = vst.msk [vmem:[#allocation3] sm:$0xff] %vm2109_vm11, %v7032_v33  ;;  %2111 = vst.msk [vmem:[#allocation3 + $0x8] sm:$0xff] %vm2109_vm11, %v7058_v10  ;;  %v5573_v33 = vcombine.low %v2617_v32, %v2627_v49  ;;  %v3892_v10 = vsel %vm6499_vm12, %v3887_v18, %v7277_v36  ;;  %v6273_v59 = vld [vmem:[#allocation2 + $0x60] sm:$0xff]   ;;  %v6274_v32 = vld [vmem:[#allocation2 + $0x54] sm:$0xff]   ;;  %v459_v17 = vadd.f32 %v7108_v3, %v420_v20  ;;  %v3904_v4 = vshrl.u32 %v7343_v19, 16 }
 0x12e   : > { %2113 = vst.msk [vmem:[#allocation3 + $0x18] sm:$0xff] %vm2109_vm11, %v7079_v50  ;;  %2112 = vst.msk [vmem:[#allocation3 + $0x10] sm:$0xff] %vm2109_vm11, %v7056_v46  ;;  %v3011_v50 = vrot.slane %v5612_v34, 5  ;;  %v3897_v46 = vrot.slane %v3896_v31, 4  ;;  %4563 = vrot.lane.b32.xlu1 %v5872_v9, %s6341_s11  ;;  %vm493_vm13 = vcmp.ge.f32.partialorder %v461_v47, 0.0  ;;  %vm494_vm14 = vcmp.ge.f32.partialorder %v462_v39, 0.0 }
 0x12f   : > { %2115 = vst.msk [vmem:[#allocation3 + $0x28] sm:$0xff] %vm2109_vm11, %v7121_v58  ;;  %2114 = vst.msk [vmem:[#allocation3 + $0x20] sm:$0xff] %vm2109_vm11, %v7091_v63  ;;  %v4423_v63 = vsel %vm6461_vm5, %v5857_v11, %v4422_v35  ;;  %v4424_v58 = vrot.slane %v4422_v35, 4  ;;  %v532_v38 = vmul.f32 %v7128_v5, %v461_v47  ;;  %v533_v36 = vmul.f32 %v7128_v5, %v462_v39  ;;  %v6276_v24 = vld [vmem:[#allocation2 + $0x78] sm:$0xff]   ;;  %v3101_v11 = vpop.permute.xlu0 %3100  ;;  %v7397_v31 = vld [vmem:[#allocation2 + $0x50] sm:$0x1] }
 0x130   : > { %2117 = vst.msk [vmem:[#allocation3 + $0x38] sm:$0xff] %vm2109_vm11, %v2076_v51  ;;  %2116 = vst.msk [vmem:[#allocation3 + $0x30] sm:$0xff] %vm2109_vm11, %v2074_v23  ;;  %v7345_v23 = vpop.permute.xlu1 %2782  ;;  %v7352_v37 = vsel %vm6461_vm5, %v5637_v55, %v3011_v50  ;;  %v3013_v53 = vrot.slane %v3011_v50, 4  ;;  %v3902_v56 = vsel %vm6499_vm12, %v3897_v46, %v3901_v44  ;;  %2794 = vrot.lane.b32.xlu0 %v5573_v33, %s6342_s12  ;;  %v3907_v7 = vshll.u32 %v7343_v19, 16  ;;  %v6275_v33 = vld [vmem:[#allocation2 + $0x84] sm:$0xff]   ;;  %v8212_v14 = vld [vmem:[#allocation8_spill] sm:$0xff] }
 0x131   : > { %v4426_v6 = vsel %vm6461_vm5, %v4424_v58, %v4425_v12  ;;  %v5793_v22 = vcombine.low %v3892_v10, %v3902_v56  ;;  %v460_v51 = vadd.f32 %v7108_v3, %v421_v8  ;;  %v564_v62 = vsel %vm493_vm13, %v461_v47, %v532_v38  ;;  %1248 = vst.msk [vmem:[#allocation3 + $0x50] sm:$0xff] %vm1237_vm9, %v6276_v24  ;;  %v8211_v50 = vld [vmem:[#allocation10_spill] sm:$0xff]  ;;  %v8213_v58 = vld [vmem:[#allocation9_spill] sm:$0xff]  ;;  %v6282_v20 = vld [vmem:[#allocation2 + $0x90] sm:$0xff]  }
 0x132   : > { %v5873_v60 = vcombine.low %v4423_v63, %v4426_v6  ;;  %v7368_v25 = vsel %vm6461_vm5, %v3013_v53, %v3014_v48  ;;  %v565_v9 = vsel %vm494_vm14, %v462_v39, %v533_v36  ;;  %v3913_v34 = vshll.u32 %v7358_v16, 16  ;;  %v7429_v63 = vld [vmem:[#allocation2 + $0x9c] sm:$0xf]  ;;  %1249 = vst.msk [vmem:[#allocation3 + $0x58] sm:$0xff] %vm1237_vm9, %v6275_v33  ;;  %v1091_v48 = vld [vmem:[#allocation2 + $0xb4] sm:$0xf] }
 0x133   : > { %v5653_v26 = vcombine.low %v7352_v37, %v7368_v25  ;;  %v5969_v29 = vpack.c.bf16 %v564_v62, %v564_v62  ;;  %v5970_v49 = vpack.c.bf16 %v565_v9, %v565_v9  ;;  %vm491_vm6 = vcmp.ge.f32.partialorder %v459_v17, 0.0  ;;  %v6281_v53 = vld [vmem:[#allocation2 + $0x9c] sm:$0xff]   ;;  %1250 = vst.msk [vmem:[#allocation3 + $0x60] sm:$0xff] %vm1237_vm9, %v6282_v20 }
 0x134   : > { %4565 = vrot.lane.b32.xlu1 %v5873_v60, %s6341_s11  ;;  %v2126_v45 = vld [vmem:[#allocation3] sm:$0xff]  ;;  %v7379_v13 = vld [vmem:[#allocation3 + $0x8] sm:$0xff]  ;;  %v3103_v44 = vpop.permute.xlu1 %3102  ;;  %vm492_vm7 = vcmp.ge.f32.partialorder %v460_v51, 0.0  ;;  %4245 = vrot.lane.b32.xlu0 %v5793_v22, %s6342_s12  ;;  %v3906_v10 = vrot.slane %v3904_v4, 4  ;;  %v3909_v55 = vrot.slane %v3907_v7, 5  ;;  %v7442_v8 = vrot.slane %v3913_v34, 5 }
 0x135   : > { %v7381_v21 = vld [vmem:[#allocation3 + $0x10] sm:$0xff]  ;;  %6092 = vmatprep.mubr.msk.bf16.mxu0 %vm3180_vm4, %v2126_v45  ;;  %2277 = vst.msk [vmem:[#allocation3 + $0x8] sm:$0xff] %vm1237_vm9, %v6260_v52  ;;  %2276 = vst.msk [vmem:[#allocation3] sm:$0xff] %vm1237_vm9, %v6261_v1  ;;  %v7389_v3 = vld [vmem:[#allocation3 + $0x18] sm:$0xff]  ;;  %v914_v43 = vshrl.u32 %v5970_v49, 16  ;;  %v917_v46 = vshll.u32 %v5970_v49, 16 }
 0x136   : > { %2278 = vst.msk [vmem:[#allocation3 + $0x10] sm:$0xff] %vm1237_vm9, %v6266_v40  ;;  %v7392_v61 = vld [vmem:[#allocation3 + $0x20] sm:$0xff]  ;;  %v7394_v18 = vld [vmem:[#allocation3 + $0x28] sm:$0xff]  ;;  %2279 = vst.msk [vmem:[#allocation3 + $0x18] sm:$0xff] %vm1237_vm9, %v6265_v30  ;;  %v3917_v30 = vshrl.u32 %v7358_v16, 16  ;;  %v3923_v40 = vshll.u32 %v7397_v31, 16 }
 0x137   : > { %2821 = vst.msk [vmem:[#allocation3 + $0x8] sm:$0xff] %vm1785_vm10, %v7168_v27  ;;  %2820 = vst.msk [vmem:[#allocation3] sm:$0xff] %vm1785_vm10, %v7170_v54  ;;  %v7408_v35 = vld [vmem:[#allocation3 + $0x30] sm:$0xff]  ;;  %v7410_v12 = vld [vmem:[#allocation3 + $0x38] sm:$0xff]  ;;  %v530_v27 = vmul.f32 %v7128_v5, %v459_v17  ;;  %v531_v54 = vmul.f32 %v7128_v5, %v460_v51  ;;  %v909_v5 = vshll.u32 %v5969_v29, 16  ;;  %v916_v39 = vrot.slane %v914_v43, 7 }
 0x138   : > { %2822 = vst.msk [vmem:[#allocation3 + $0x10] sm:$0xff] %vm1785_vm10, %v7224_v28  ;;  %v8210_v28 = vld [vmem:[#allocation7_spill] sm:$0xff]  ;;  %2823 = vst.msk [vmem:[#allocation3 + $0x18] sm:$0xff] %vm1785_vm10, %v8211_v50  ;;  %v1095_v52 = vld [vmem:[#allocation2 + $0xbc] sm:$0x1]  ;;  %3114 = vrot.lane.b32.xlu0 %v5653_v26, %s6341_s11  ;;  %v2629_v22 = vshrl.u32 %v7429_v63, 16  ;;  %v1756_v24 = vpop.permute.xlu1 %1755 }
 0x139   : > { %2281 = vst.msk [vmem:[#allocation3 + $0x28] sm:$0xff] %vm1237_vm9, %v6269_v57  ;;  %2280 = vst.msk [vmem:[#allocation3 + $0x20] sm:$0xff] %vm1237_vm9, %v6270_v0  ;;  %v562_v19 = vsel %vm491_vm6, %v459_v17, %v530_v27  ;;  %v6277_v6 = vld [vmem:[#allocation2 + $0x18] sm:$0xff]   ;;  %v5551_v57 = vld [vmem:[#allocation2 + $0xa0] sm:$0xf]  ;;  %v919_v38 = vor.u32 %v917_v46, %v916_v39  ;;  %v921_v36 = vrot.slane %v916_v39, 4 }
 0x13a   : > { %3141 = vst.msk [vmem:[#allocation3 + $0x8] sm:$0xff] %vm2109_vm11, %v7093_v15  ;;  %3140 = vst.msk [vmem:[#allocation3] sm:$0xff] %vm2109_vm11, %v8210_v28  ;;  %v906_v15 = vshrl.u32 %v5969_v29, 16  ;;  %v5967_v1 = vpack.c.bf16 %v562_v19, %v562_v19  ;;  %v6280_v60 = vld [vmem:[#allocation2 + $0x24] sm:$0xff]   ;;  %v6284_v0 = vld [vmem:[#allocation2 + $0x30] sm:$0xff]   ;;  %v2642_v43 = vshrl.u32 %v5551_v57, 16 }
 0x13b   : > { %3142 = vst.msk [vmem:[#allocation3 + $0x10] sm:$0xff] %vm2109_vm11, %v8212_v14  ;;  %3143 = vst.msk [vmem:[#allocation3 + $0x18] sm:$0xff] %vm2109_vm11, %v8213_v58  ;;  %v6287_v17 = vld [vmem:[#allocation2 + $0x3c] sm:$0xff]   ;;  %v1096_v7 = vsel %vm6538_vm3, %v921_v36, %v1095_v52  ;;  %v1084_v34 = vld [vmem:[#allocation2 + $0xa8] sm:$0xf]  ;;  %v7473_v14 = vrot.slane %v2629_v22, 4 }
 0x13c   : > { %2825 = vst.msk [vmem:[#allocation3 + $0x28] sm:$0xff] %vm1785_vm10, %v7345_v23  ;;  %2824 = vst.msk [vmem:[#allocation3 + $0x20] sm:$0xff] %vm1785_vm10, %v7347_v42  ;;  %v563_v23 = vsel %vm492_vm7, %v460_v51, %v531_v54  ;;  %v3910_v42 = vor.u32 %v3909_v55, %v3906_v10  ;;  %v908_v47 = vrot.slane %v906_v15, 7  ;;  %v889_v37 = vshrl.u32 %v5967_v1, 16  ;;  %v5552_v29 = vld [vmem:[#allocation2 + $0xa4] sm:$0x1]  ;;  %v2080_v19 = vpop.permute.xlu1 %2079 }
 0x13d   : > { %2283 = vst.msk [vmem:[#allocation3 + $0x38] sm:$0xff] %vm1237_vm9, %v6273_v59  ;;  %2282 = vst.msk [vmem:[#allocation3 + $0x30] sm:$0xff] %vm1237_vm9, %v6274_v32  ;;  %v5968_v56 = vpack.c.bf16 %v563_v23, %v563_v23  ;;  %v892_v25 = vshll.u32 %v5967_v1, 16  ;;  %v3919_v10 = vrot.slane %v3917_v30, 4  ;;  %v7463_v55 = vrot.slane %v3923_v40, 5 }
 0x13e   : > { %3145 = vst.msk [vmem:[#allocation3 + $0x28] sm:$0xff] %vm2109_vm11, %v3103_v44  ;;  %3144 = vst.msk [vmem:[#allocation3 + $0x20] sm:$0xff] %vm2109_vm11, %v3101_v11  ;;  %v911_v59 = vor.u32 %v909_v5, %v908_v47  ;;  %v912_v32 = vrot.slane %v908_v47, 4  ;;  %v1088_v44 = vld [vmem:[#allocation2 + $0xb0] sm:$0x1]  ;;  %v7456_v11 = vrot.slane %v3910_v42, 4 }
 0x13f   : > { %1251 = vst.msk [vmem:[#allocation3 + $0x68] sm:$0xff] %vm1237_vm9, %v6281_v53  ;;  %v897_v26 = vshrl.u32 %v5968_v56, 16  ;;  %v900_v16 = vshll.u32 %v5968_v56, 16  ;;  %1097 = vst [vmem:[#allocation2 + $0xbc] sm:$0x1] %v1096_v7  ;;  %v891_v27 = vrot.slane %v889_v37, 7  ;;  %v1754_v22 = vpop.permute.xlu0 %1753 }
 0x140   : > { %1795 = vst.msk [vmem:[#allocation3 + $0x48] sm:$0xff] %vm1785_vm10, %v1756_v24  ;;  %v920_v45 = vsel %vm6521_vm15, %v912_v32, %v919_v38  ;;  %v1092_v62 = vsel %vm6530_vm2, %v911_v59, %v1091_v48  ;;  %v7465_v28 = vld [vmem:[#allocation2 + $0x9c] sm:$0xe]  ;;  %v2632_v15 = vshll.u32 %v7429_v63, 16  ;;  %v2638_v5 = vshll.u32 %v5551_v57, 16  ;;  %v385_v56 = vld [vmem:[%s6469_s30 + $0xf0] sm:$0xff] }
 0x141   : > { %v3156_v49 = vld [vmem:[#allocation3] sm:$0xff]  ;;  %v7458_v31 = vld [vmem:[#allocation3 + $0x8] sm:$0xff]  ;;  %1093 = vst [vmem:[#allocation2 + $0xb4] sm:$0xf] %v1092_v62  ;;  %1094 = vst.msk [vmem:[#allocation2 + $0xb8] sm:$0xf] %vm299_vm0, %v920_v45  ;;  %v894_v23 = vor.u32 %v892_v25, %v891_v27  ;;  %v3920_v63 = vor.u32 %v3919_v10, %v7442_v8 }
 0x142   : > { %v7460_v33 = vld [vmem:[#allocation3 + $0x10] sm:$0xff]  ;;  %v899_v54 = vrot.slane %v897_v26, 7  ;;  %6058 = vmatprep.mubr.msk.bf16.mxu1 %vm3180_vm4, %v3156_v49  ;;  %v7468_v50 = vld [vmem:[#allocation3 + $0x18] sm:$0xff]  ;;  %3743 = vst.msk [vmem:[#allocation3] sm:$0xff] %vm1237_vm9, %v6277_v6  ;;  %3744 = vst.msk [vmem:[#allocation3 + $0x8] sm:$0xff] %vm1237_vm9, %v6280_v60  ;;  %v895_v42 = vrot.slane %v891_v27, 4  ;;  %v3916_v60 = vsel %vm6499_vm12, %v7456_v11, %v7442_v8 }
 0x143   : > { %3745 = vst.msk [vmem:[#allocation3 + $0x10] sm:$0xff] %vm1237_vm9, %v6284_v0  ;;  %v7476_v46 = vld [vmem:[#allocation2 + $0xa0] sm:$0xf]  ;;  %v7478_v58 = vld [vmem:[#allocation2 + $0xa4] sm:$0x1]  ;;  %3746 = vst.msk [vmem:[#allocation3 + $0x18] sm:$0xff] %vm1237_vm9, %v6287_v17  ;;  %v1085_v20 = vsel %vm6530_vm2, %v894_v23, %v1084_v34  ;;  %v2078_v27 = vpop.permute.xlu0 %2077 }
 0x144   : > { %v7480_v48 = vld [vmem:[#allocation2 + $0x48] sm:$0xe]  ;;  %v902_v53 = vor.u32 %v900_v16, %v899_v54  ;;  %v904_v47 = vrot.slane %v899_v54, 4  ;;  %2119 = vst.msk [vmem:[#allocation3 + $0x48] sm:$0xff] %vm2109_vm11, %v2080_v19  ;;  %v2634_v39 = vrot.slane %v2632_v15, 5  ;;  %v7485_v52 = vrot.slane %v2638_v5, 5  ;;  %v2787_v5 = vpop.permute.xlu1 %2786 }
 0x145   : > { %v7487_v1 = vrot.slane %v2642_v43, 4  ;;  %v2648_v40 = vshll.u32 %v5552_v29, 16  ;;  %v386_v57 = vld [vmem:[%s6469_s30 + $0xf8] sm:$0xff]  ;;  %1086 = vst [vmem:[#allocation2 + $0xa8] sm:$0xf] %v1085_v20  ;;  %v3921_v0 = vrot.slane %v3920_v63, 4  ;;  %s293_s30 = scalar_lea.vmem %s8184_s6, %s5366_s27 }
 0x146   : > { %v903_v6 = vsel %vm6521_vm15, %v895_v42, %v902_v53  ;;  %v1089_v30 = vsel %vm6538_vm3, %v904_v47, %v1088_v44  ;;  %v2635_v59 = vor.u32 %v2634_v39, %v7473_v14  ;;  %v5638_v32 = vrot.slane %v7465_v28, 9  ;;  %1794 = vst.msk [vmem:[#allocation3 + $0x40] sm:$0xff] %vm1785_vm10, %v1754_v22  ;;  %v1301_v16 = vld [vmem:[#allocation2 + $0xbc] sm:$0x1]  ;;  %v6312_v45 = vld [vmem:[%s8179_s1] ss:$0 sm:$0xff] }
 0x147   : > { %1087 = vst.msk [vmem:[#allocation2 + $0xac] sm:$0xf] %vm299_vm0, %v903_v6  ;;  %1090 = vst [vmem:[#allocation2 + $0xb0] sm:$0x1] %v1089_v30  ;;  %v7505_v38 = vrot.slane %v2648_v40, 5  ;;  %v3018_v36 = vrot.slane %v7476_v46, 5  ;;  %v3926_v8 = vsel %vm6499_vm12, %v3921_v0, %v7463_v55  ;;  %v2645_v17 = vor.u32 %v7487_v1, %v7485_v52 }
 0x148   : > { %v3021_v24 = vrot.slane %v7478_v58, 5  ;;  %v5858_v37 = vrot.slane %v7480_v48, 9  ;;  %v1299_v25 = vld [vmem:[#allocation2 + $0xb4] sm:$0xf]  ;;  %v1300_v26 = vld [vmem:[#allocation2 + $0xb8] sm:$0xf]  ;;  %v424_v62 = vmul.f32 %v6312_v45, %v385_v56  ;;  %v425_v7 = vmul.f32 %v6312_v45, %v386_v57 }
 0x149   : > { %v1666_v34 = vshrl.u32 %v1299_v25, 16  ;;  %v1669_v44 = vshll.u32 %v1299_v25, 16  ;;  %v1675_v11 = vshll.u32 %v1300_v26, 16  ;;  %v1679_v29 = vshrl.u32 %v1300_v26, 16  ;;  %v1847_v49 = vld [vmem:[#allocation2 + $0xb4] sm:$0xe] }
 0x14a   : > { %v1685_v54 = vshll.u32 %v1301_v16, 16  ;;  %v1848_v10 = vld [vmem:[#allocation2 + $0xb8] sm:$0xf]  ;;  %v1849_v28 = vld [vmem:[#allocation2 + $0xbc] sm:$0x1]  ;;  %v5449_v14 = vrot.slane %v1847_v49, 9  ;;  %v7518_v55 = vcombine.low %v3916_v60, %v3926_v8  ;;  %v7524_v15 = vsel %vm6461_vm5, %v5638_v32, %v3018_v36  ;;  %v2785_v32 = vpop.permute.xlu0 %2784 }
 0x14b   : > { %2118 = vst.msk [vmem:[#allocation3 + $0x40] sm:$0xff] %vm2109_vm11, %v2078_v27  ;;  %v1668_v43 = vrot.slane %v1666_v34, 4  ;;  %v1671_v19 = vrot.slane %v1669_v44, 5  ;;  %v1677_v23 = vrot.slane %v1675_v11, 5  ;;  %v1681_v42 = vrot.slane %v1679_v29, 4  ;;  %v6279_v56 = vld [vmem:[#allocation2 + $0x78] sm:$0xff]   ;;  %v3107_v34 = vpop.permute.xlu1 %3106 }
 0x14c   : > { %2827 = vst.msk [vmem:[#allocation3 + $0x38] sm:$0xff] %vm1785_vm10, %v2787_v5  ;;  %v1687_v53 = vrot.slane %v1685_v54, 5  ;;  %v2008_v47 = vrot.slane %v1848_v10, 5  ;;  %v2011_v63 = vrot.slane %v1849_v28, 5  ;;  %v7528_v39 = vrot.slane %v2635_v59, 4  ;;  %v6278_v25 = vld [vmem:[#allocation2 + $0x6c] sm:$0xff]  }
 0x14d   : > { %v1672_v6 = vor.u32 %v1671_v19, %v1668_v43  ;;  %v1682_v20 = vor.u32 %v1681_v42, %v1677_v23  ;;  %v1296_v30 = vld [vmem:[#allocation2 + $0xa8] sm:$0xf]  ;;  %v6313_v22 = vld [vmem:[%s8180_s2] ss:$0 sm:$0xff]  ;;  %2826 = vst.msk [vmem:[#allocation3 + $0x30] sm:$0xff] %vm1785_vm10, %v2785_v32  ;;  %v7602_v48 = vld [vmem:[#allocation3 + $0x20] sm:$0xff] }
 0x14e   : > { %v1297_v40 = vld [vmem:[#allocation2 + $0xac] sm:$0xf]  ;;  %v1298_v57 = vld [vmem:[#allocation2 + $0xb0] sm:$0x1]  ;;  %v7533_v60 = vadd.f32 %v6313_v22, %v424_v62  ;;  %v7535_v0 = vadd.f32 %v6313_v22, %v425_v7  ;;  %v1642_v26 = vshrl.u32 %v1296_v30, 16  ;;  %v1645_v16 = vshll.u32 %v1296_v30, 16 }
 0x14f   : > { %v1651_v59 = vshll.u32 %v1297_v40, 16  ;;  %v1655_v8 = vshrl.u32 %v1297_v40, 16  ;;  %v1844_v45 = vld [vmem:[#allocation2 + $0xa8] sm:$0xe]  ;;  %v1673_v44 = vrot.slane %v1672_v6, 4  ;;  %v1683_v11 = vrot.slane %v1682_v20, 4  ;;  %v3105_v6 = vpop.permute.xlu0 %3104 }
 0x150   : > { %v1661_v29 = vshll.u32 %v1298_v57, 16  ;;  %v2009_v49 = vsel %vm6461_vm5, %v5449_v14, %v2008_v47  ;;  %v1845_v62 = vld [vmem:[#allocation2 + $0xac] sm:$0xf]  ;;  %3147 = vst.msk [vmem:[#allocation3 + $0x38] sm:$0xff] %vm2109_vm11, %v3107_v34  ;;  %v7541_v7 = vld [vmem:[#allocation3 + $0x48] sm:$0xff]  ;;  %v1644_v27 = vrot.slane %v1642_v26, 4 }
 0x151   : > { %v1647_v54 = vrot.slane %v1645_v16, 5  ;;  %v1653_v10 = vrot.slane %v1651_v59, 5  ;;  %v1657_v28 = vrot.slane %v1655_v8, 4  ;;  %v1846_v5 = vld [vmem:[#allocation2 + $0xb0] sm:$0x1]  ;;  %2285 = vst.msk [vmem:[#allocation3 + $0x48] sm:$0xff] %vm1237_vm9, %v6279_v56  ;;  %v1678_v43 = vsel %vm6499_vm12, %v1673_v44, %v1677_v23 }
 0x152   : > { %v1688_v19 = vsel %vm6499_vm12, %v1683_v11, %v1687_v53  ;;  %v1663_v42 = vrot.slane %v1661_v29, 5  ;;  %v2010_v14 = vrot.slane %v2008_v47, 4  ;;  %v5448_v57 = vrot.slane %v1844_v45, 9  ;;  %v5553_v22 = vld [vmem:[#allocation2 + $0xa8] sm:$0xf]  ;;  %3146 = vst.msk [vmem:[#allocation3 + $0x30] sm:$0xff] %vm2109_vm11, %v3105_v6 }
 0x153   : > { %v5433_v20 = vcombine.low %v1678_v43, %v1688_v19  ;;  %v1648_v30 = vor.u32 %v1647_v54, %v1644_v27  ;;  %v1658_v40 = vor.u32 %v1657_v28, %v1653_v10  ;;  %v7549_v32 = vld [vmem:[#allocation3 + $0x40] sm:$0xff]  ;;  %v2001_v26 = vrot.slane %v1845_v62, 5  ;;  %v5819_v11 = vld [vmem:[#allocation2 + $0x4c] sm:$0xf]  ;;  %v5757_v28 = vld [vmem:[#allocation2 + $0x54] sm:$0xf] }
 0x154   : > { %v2012_v56 = vsel %vm6461_vm5, %v2010_v14, %v2011_v63  ;;  %v2004_v23 = vrot.slane %v1846_v5, 5  ;;  %v2641_v53 = vsel %vm6499_vm12, %v7528_v39, %v7485_v52  ;;  %2284 = vst.msk [vmem:[#allocation3 + $0x40] sm:$0xff] %vm1237_vm9, %v6278_v25  ;;  %v2646_v8 = vrot.slane %v2645_v17, 4  ;;  %v6288_v45 = vld [vmem:[#allocation2 + $0xb4] sm:$0xff]   ;;  %v6289_v25 = vld [vmem:[#allocation2 + $0xa8] sm:$0xff]  }
 0x155   : > { %1767 = vrot.lane.b32.xlu1 %v5433_v20, %s6342_s12  ;;  %v1649_v47 = vrot.slane %v1648_v30, 4  ;;  %v1659_v16 = vrot.slane %v1658_v40, 4  ;;  %v5465_v59 = vcombine.low %v2009_v49, %v2012_v56  ;;  %v2002_v63 = vsel %vm6461_vm5, %v5448_v57, %v2001_v26  ;;  %v5554_v1 = vld [vmem:[#allocation2 + $0xac] sm:$0xf]  ;;  %v5555_v17 = vld [vmem:[#allocation2 + $0xb0] sm:$0x1] }
 0x156   : > { %v2003_v34 = vrot.slane %v2001_v26, 4  ;;  %v3020_v44 = vrot.slane %v3018_v36, 4  ;;  %v2653_v39 = vshrl.u32 %v5553_v22, 16  ;;  %v2651_v52 = vsel %vm6499_vm12, %v2646_v8, %v7505_v38  ;;  %1253 = vst.msk [vmem:[#allocation3 + $0x78] sm:$0xff] %vm1237_vm9, %v6288_v45  ;;  %1252 = vst.msk [vmem:[#allocation3 + $0x70] sm:$0xff] %vm1237_vm9, %v6289_v25  ;;  %v6290_v8 = vld [vmem:[#allocation2 + $0x48] sm:$0xff]  }
 0x157   : > { %v1654_v29 = vsel %vm6499_vm12, %v1649_v47, %v1653_v10  ;;  %v1664_v49 = vsel %vm6499_vm12, %v1659_v16, %v1663_v42  ;;  %v2656_v62 = vshll.u32 %v5553_v22, 16  ;;  %v7576_v27 = vcombine.low %v2641_v53, %v2651_v52  ;;  %v5820_v10 = vld [vmem:[#allocation2 + $0x50] sm:$0x1]  ;;  %v5758_v42 = vld [vmem:[#allocation2 + $0x58] sm:$0xf]  ;;  %3747 = vst.msk [vmem:[#allocation3 + $0x20] sm:$0xff] %vm1237_vm9, %v6290_v8 }
 0x158   : > { %v5432_v46 = vcombine.low %v1654_v29, %v1664_v49  ;;  %v2005_v36 = vsel %vm6461_vm5, %v2003_v34, %v2004_v23  ;;  %v3022_v54 = vsel %vm6461_vm5, %v3020_v44, %v3021_v24  ;;  %v2655_v43 = vrot.slane %v2653_v39, 4  ;;  %v5759_v30 = vld [vmem:[#allocation2 + $0x5c] sm:$0x1]  ;;  %v7589_v56 = vld [vmem:[%s8182_s4] sm:$0x3f]  }
 0x159   : > { %2091 = vrot.lane.b32.xlu1 %v5465_v59, %s6341_s11  ;;  %v5464_v38 = vcombine.low %v2002_v63, %v2005_v36  ;;  %v5654_v5 = vcombine.low %v7524_v15, %v3022_v54  ;;  %v2658_v19 = vrot.slane %v2656_v62, 5  ;;  %v2662_v14 = vshll.u32 %v5554_v1, 16  ;;  %v5821_v47 = vld [vmem:[#allocation2 + $0x54] sm:$0xe]  ;;  %v5822_v16 = vld [vmem:[#allocation2 + $0x58] sm:$0xf]  ;;  %6225 = vmatprep.subr.msk.bf16.mxu0 %vm3229_vm8, %v7589_v56 }
 0x15a   : > { %1765 = vrot.lane.b32.xlu0 %v5432_v46, %s6342_s12  ;;  %v2666_v6 = vshrl.u32 %v5554_v1, 16  ;;  %v2672_v58 = vshll.u32 %v5555_v17, 16  ;;  %v4429_v20 = vrot.slane %v5819_v11, 5  ;;  %v4432_v40 = vrot.slane %v5820_v10, 5  ;;  %v7598_v59 = vld [vmem:[%s8182_s4 + $0x8] sm:$0x3f]  }
 0x15b   : > { %v2659_v24 = vor.u32 %v2658_v19, %v2655_v43  ;;  %v3928_v57 = vshrl.u32 %v5757_v28, 16  ;;  %v3931_v22 = vshll.u32 %v5757_v28, 16  ;;  %v2664_v15 = vrot.slane %v2662_v14, 5  ;;  %v5823_v39 = vld [vmem:[#allocation2 + $0x5c] sm:$0x1]  ;;  %v7610_v46 = vld [vmem:[#allocation3 + $0x28] sm:$0xff]  ;;  %6224 = vmatprep.subr.msk.bf16.mxu1 %vm3229_vm8, %v7598_v59 }
 0x15c   : > { %v2668_v26 = vrot.slane %v2666_v6, 4  ;;  %v2674_v23 = vrot.slane %v2672_v58, 5  ;;  %v4430_v53 = vsel %vm6461_vm5, %v5858_v37, %v4429_v20  ;;  %v4431_v63 = vrot.slane %v4429_v20, 4  ;;  %v5617_v49 = vld [vmem:[#allocation2 + $0xa8] sm:$0xe]  ;;  %v6294_v8 = vld [vmem:[#allocation2 + $0x60] sm:$0xff]  }
 0x15d   : > { %4247 = vrot.lane.b32.xlu1 %v7518_v55, %s6342_s12  ;;  %v2660_v45 = vrot.slane %v2659_v24, 4  ;;  %v3930_v34 = vrot.slane %v3928_v57, 4  ;;  %v3933_v44 = vrot.slane %v3931_v22, 5  ;;  %v3937_v11 = vshll.u32 %v5758_v42, 16  ;;  %v5618_v17 = vld [vmem:[#allocation2 + $0xac] sm:$0xf] }
 0x15e   : > { %2089 = vrot.lane.b32.xlu0 %v5464_v38, %s6341_s11  ;;  %v2669_v37 = vor.u32 %v2668_v26, %v2664_v15  ;;  %v3941_v25 = vshrl.u32 %v5758_v42, 16  ;;  %v3947_v29 = vshll.u32 %v5759_v30, 16  ;;  %v4433_v55 = vsel %vm6461_vm5, %v4431_v63, %v4432_v40  ;;  %v5619_v62 = vld [vmem:[#allocation2 + $0xb0] sm:$0x1]  ;;  %v5760_v38 = vld [vmem:[#allocation2 + $0x60] sm:$0xf] }
 0x15f   : > { %v2665_v52 = vsel %vm6499_vm12, %v2660_v45, %v2664_v15  ;;  %v3934_v1 = vor.u32 %v3933_v44, %v3930_v34  ;;  %v5874_v54 = vcombine.low %v4430_v53, %v4433_v55  ;;  %v3939_v10 = vrot.slane %v3937_v11, 5  ;;  %v7614_v43 = vld [vmem:[#allocation2 + $0x64] sm:$0xf]  ;;  %v6283_v19 = vld [vmem:[%s8182_s4 + $0x10] sm:$0x3f]   ;;  %v7626_v22 = vld [vmem:[#allocation3 + $0x30] sm:$0xff] }
 0x160   : > { %v2670_v36 = vrot.slane %v2669_v37, 4  ;;  %v3943_v28 = vrot.slane %v3941_v25, 4  ;;  %v6293_v42 = vld [vmem:[#allocation2 + $0x54] sm:$0xff]   ;;  %v3949_v6 = vrot.slane %v3947_v29, 5  ;;  %v5859_v58 = vrot.slane %v5821_v47, 9  ;;  %3749 = vst.msk [vmem:[#allocation3 + $0x30] sm:$0xff] %vm1237_vm9, %v6294_v8 }
 0x161   : > { %3116 = vrot.lane.b32.xlu1 %v5654_v5, %s6341_s11  ;;  %v3935_v14 = vrot.slane %v3934_v1, 4  ;;  %v4436_v20 = vrot.slane %v5822_v16, 5  ;;  %v4439_v40 = vrot.slane %v5823_v39, 5  ;;  %v5639_v57 = vrot.slane %v5617_v49, 9  ;;  %3748 = vst.msk [vmem:[#allocation3 + $0x28] sm:$0xff] %vm1237_vm9, %v6293_v42  ;;  %v1760_v16 = vpop.permute.xlu1 %1759 }
 0x162   : > { %2796 = vrot.lane.b32.xlu0 %v7576_v27, %s6342_s12  ;;  %v2675_v30 = vsel %vm6499_vm12, %v2670_v36, %v2674_v23  ;;  %v3944_v24 = vor.u32 %v3943_v28, %v3939_v10  ;;  %v5762_v47 = vld [vmem:[#allocation2 + $0x68] sm:$0x1]  ;;  %v5556_v27 = vld [vmem:[#allocation2 + $0xb4] sm:$0xf]  ;;  %v3025_v45 = vrot.slane %v5618_v17, 5  ;;  %v3028_v63 = vrot.slane %v5619_v62, 5 }
 0x163   : > { %v5575_v15 = vcombine.low %v2665_v52, %v2675_v30  ;;  %v3940_v5 = vsel %vm6499_vm12, %v3935_v14, %v3939_v10  ;;  %v4437_v26 = vsel %vm6461_vm5, %v5859_v58, %v4436_v20  ;;  %v4438_v53 = vrot.slane %v4436_v20, 4  ;;  %v5557_v44 = vld [vmem:[#allocation2 + $0xb8] sm:$0xf]  ;;  %1797 = vst.msk [vmem:[#allocation3 + $0x58] sm:$0xff] %vm1785_vm10, %v1760_v16  ;;  %v5558_v1 = vld [vmem:[#allocation2 + $0xbc] sm:$0x1] }
 0x164   : > { %v3945_v23 = vrot.slane %v3944_v24, 4  ;;  %v7635_v34 = vsel %vm3229_vm8, %v7589_v56, 0  ;;  %v3952_v37 = vshrl.u32 %v5760_v38, 16  ;;  %v3955_v11 = vshll.u32 %v5760_v38, 16  ;;  %v5620_v30 = vld [vmem:[#allocation2 + $0xb4] sm:$0xe] }
 0x165   : > { %4567 = vrot.lane.b32.xlu1 %v5874_v54, %s6341_s11  ;;  %v4440_v39 = vsel %vm6461_vm5, %v4438_v53, %v4439_v40  ;;  %6091 = vmatpush3.bf16.msra.mxu0 %v7635_v34  ;;  %v3961_v25 = vshll.u32 %v7614_v43, 16  ;;  %v3026_v52 = vsel %vm6461_vm5, %v5639_v57, %v3025_v45  ;;  %v3027_v55 = vrot.slane %v3025_v45, 4  ;;  %v2084_v10 = vpop.permute.xlu1 %2083  ;;  %v5621_v24 = vld [vmem:[#allocation2 + $0xb8] sm:$0xf] }
 0x166   : > { %2798 = vrot.lane.b32.xlu0 %v5575_v15, %s6342_s12  ;;  %v3950_v29 = vsel %vm6499_vm12, %v3945_v23, %v3949_v6  ;;  %v5875_v49 = vcombine.low %v4437_v26, %v4440_v39  ;;  %6227 = vmatprep.subr.msk.bf16.mxu0 %vm3229_vm8, %v6283_v19  ;;  %v3954_v62 = vrot.slane %v3952_v37, 4  ;;  %v3957_v36 = vrot.slane %v3955_v11, 5  ;;  %2121 = vst.msk [vmem:[#allocation3 + $0x58] sm:$0xff] %vm2109_vm11, %v2084_v10 }
 0x167   : > { %v5795_v17 = vcombine.low %v3940_v5, %v3950_v29  ;;  %v3963_v54 = vrot.slane %v3961_v25, 5  ;;  %v3029_v28 = vsel %vm6461_vm5, %v3027_v55, %v3028_v63  ;;  %v3965_v38 = vshrl.u32 %v7614_v43, 16  ;;  %v1758_v5 = vpop.permute.xlu0 %1757 }
 0x168   : > { %v3971_v42 = vshll.u32 %v5762_v47, 16  ;;  %v2677_v14 = vshrl.u32 %v5556_v27, 16  ;;  %6093 = vmatmul.mubr.msk.bf16.vlgmr.msra.gmra.mrb[0].mxu0 %vm3180_vm4, %v7379_v13  ;;  %v5655_v19 = vcombine.low %v3026_v52, %v3029_v28  ;;  %v3958_v6 = vor.u32 %v3957_v36, %v3954_v62  ;;  %v5622_v13 = vld [vmem:[#allocation2 + $0xbc] sm:$0x1]  ;;  %1796 = vst.msk [vmem:[#allocation3 + $0x50] sm:$0xff] %vm1785_vm10, %v1758_v5 }
 0x169   : > { %4569 = vrot.lane.b32.xlu1 %v5875_v49, %s6341_s11  ;;  %v2680_v58 = vshll.u32 %v5556_v27, 16  ;;  %v2686_v20 = vshll.u32 %v5557_v44, 16  ;;  %6096 = vmatprep.mubr.msk.bf16.mxu0 %vm3180_vm4, %v7381_v21  ;;  %v3967_v43 = vrot.slane %v3965_v38, 4  ;;  %v2690_v15 = vshrl.u32 %v5557_v44, 16  ;;  %v4240_v27 = vpop.permute.xlu1 %4239  ;;  %v6286_v21 = vld [vmem:[#allocation2 + $0x90] sm:$0xff]  }
 0x16a   : > { %4249 = vrot.lane.b32.xlu0 %v5795_v17, %s6342_s12  ;;  %v3973_v40 = vrot.slane %v3971_v42, 5  ;;  %v2679_v57 = vrot.slane %v2677_v14, 4  ;;  %v3959_v26 = vrot.slane %v3958_v6, 4  ;;  %v2696_v16 = vshll.u32 %v5558_v1, 16  ;;  %4287 = vst.msk [vmem:[#allocation3] sm:$0xff] %vm1785_vm10, %v4240_v27 }
 0x16b   : > { %v2682_v53 = vrot.slane %v2680_v58, 5  ;;  %v2688_v47 = vrot.slane %v2686_v20, 5  ;;  %v3968_v8 = vor.u32 %v3967_v43, %v3963_v54  ;;  %v2692_v23 = vrot.slane %v2690_v15, 4  ;;  %v2082_v55 = vpop.permute.xlu0 %2081  ;;  %v6314_v17 = vld [vmem:[%s8181_s3] ss:$0 sm:$0xff] }
 0x16c   : > { %v5640_v45 = vrot.slane %v5620_v30, 9  ;;  %v3032_v63 = vrot.slane %v5621_v24, 5  ;;  %v3964_v39 = vsel %vm6499_vm12, %v3959_v26, %v3963_v54  ;;  %v2698_v37 = vrot.slane %v2696_v16, 5  ;;  %2120 = vst.msk [vmem:[#allocation3 + $0x50] sm:$0xff] %vm2109_vm11, %v2082_v55  ;;  %v5824_v14 = vld [vmem:[#allocation2 + $0x60] sm:$0xe] }
 0x16d   : > { %v2683_v44 = vor.u32 %v2682_v53, %v2679_v57  ;;  %v3035_v11 = vrot.slane %v5622_v13, 5  ;;  %v3969_v25 = vrot.slane %v3968_v8, 4  ;;  %v2693_v29 = vor.u32 %v2692_v23, %v2688_v47  ;;  %v3109_v36 = vpop.permute.xlu1 %3108  ;;  %v7676_v54 = vld [vmem:[#allocation3 + $0x58] sm:$0xff]  ;;  %v5826_v24 = vld [vmem:[#allocation2 + $0x68] sm:$0x1] }
 0x16e   : > { %3118 = vrot.lane.b32.xlu0 %v5655_v19, %s6341_s11  ;;  %v7667_v49 = vsel %vm6461_vm5, %v5640_v45, %v3032_v63  ;;  %v3034_v52 = vrot.slane %v3032_v63, 4  ;;  %vm495_vm13 = vcmp.ge.f32.partialorder %v7533_v60, 0.0  ;;  %vm496_vm14 = vcmp.ge.f32.partialorder %v7535_v0, 0.0  ;;  %v5825_v19 = vld [vmem:[#allocation2 + $0x64] sm:$0xf]  ;;  %2287 = vst.msk [vmem:[#allocation3 + $0x58] sm:$0xff] %vm1237_vm9, %v6286_v21 }
 0x16f   : > { %v2684_v1 = vrot.slane %v2683_v44, 4  ;;  %v534_v62 = vmul.f32 %v6314_v17, %v7533_v60  ;;  %v3974_v10 = vsel %vm6499_vm12, %v3969_v25, %v3973_v40  ;;  %v2694_v28 = vrot.slane %v2693_v29, 4  ;;  %v5763_v43 = vld [vmem:[#allocation2 + $0x6c] sm:$0xf]  ;;  %v2789_v13 = vpop.permute.xlu0 %2788  ;;  %v6285_v16 = vld [vmem:[#allocation2 + $0x84] sm:$0xff]  }
 0x170   : > { %v3036_v38 = vsel %vm6461_vm5, %v3034_v52, %v3035_v11  ;;  %v535_v42 = vmul.f32 %v6314_v17, %v7535_v0  ;;  %6097 = vmatmul.mubr.msk.bf16.gmra.mrb[4].mxu0 %vm3180_vm4, %v7389_v3  ;;  %v5796_v6 = vcombine.low %v3964_v39, %v3974_v10  ;;  %v3231_v15 = vsel %vm3229_vm8, %v7598_v59, 0  ;;  %2828 = vst.msk [vmem:[#allocation3 + $0x40] sm:$0xff] %vm1785_vm10, %v2789_v13  ;;  %v5765_v23 = vld [vmem:[#allocation2 + $0x74] sm:$0x1]  ;;  %v1098_v21 = vld [vmem:[#allocation2 + $0xc0] sm:$0xf] }
 0x171   : > { %v2689_v58 = vsel %vm6499_vm12, %v2684_v1, %v2688_v47  ;;  %v5656_v20 = vcombine.low %v7667_v49, %v3036_v38  ;;  %v566_v30 = vsel %vm495_vm13, %v7533_v60, %v534_v62  ;;  %6100 = vmatprep.mubr.msk.bf16.mxu0 %vm3180_vm4, %v7392_v61  ;;  %v2699_v3 = vsel %vm6499_vm12, %v2694_v28, %v2698_v37  ;;  %v5764_v61 = vld [vmem:[#allocation2 + $0x70] sm:$0xf]  ;;  %v4560_v47 = vpop.permute.xlu1 %4559  ;;  %v1102_v11 = vld [vmem:[#allocation2 + $0xc8] sm:$0x1] }
 0x172   : > { %v567_v40 = vsel %vm496_vm14, %v7535_v0, %v535_v42  ;;  %v5971_v57 = vpack.c.bf16 %v566_v30, %v566_v30  ;;  %4251 = vrot.lane.b32.xlu1 %v5796_v6, %s6342_s12  ;;  %v5576_v60 = vcombine.low %v2689_v58, %v2699_v3  ;;  %6057 = vmatpush3.bf16.msra.mxu1 %v3231_v15  ;;  %v5860_v26 = vrot.slane %v5824_v14, 9  ;;  %v5828_v42 = vld [vmem:[#allocation2 + $0x70] sm:$0xf]  ;;  %v5766_v14 = vld [vmem:[#allocation2 + $0x78] sm:$0xf] }
 0x173   : > { %v5972_v5 = vpack.c.bf16 %v567_v40, %v567_v40  ;;  %v4443_v53 = vrot.slane %v5825_v19, 5  ;;  %v4446_v0 = vrot.slane %v5826_v24, 5  ;;  %v3976_v45 = vshrl.u32 %v5763_v43, 16  ;;  %3148 = vst.msk [vmem:[#allocation3 + $0x40] sm:$0xff] %vm2109_vm11, %v3109_v36  ;;  %4607 = vst.msk [vmem:[#allocation3] sm:$0xff] %vm2109_vm11, %v4560_v47  ;;  %6226 = vmatprep.subr.msk.bf16.mxu1 %vm3229_vm8, %v7589_v56  ;;  %v2791_v52 = vpop.permute.xlu0 %2790  ;;  %v7712_v55 = vld [vmem:[#allocation3 + $0x50] sm:$0xff] }
 0x174   : > { %v923_v27 = vshrl.u32 %v5971_v57, 16  ;;  %v926_v8 = vshll.u32 %v5971_v57, 16  ;;  %2800 = vrot.lane.b32.xlu0 %v5576_v60, %s6342_s12  ;;  %v3979_v29 = vshll.u32 %v5763_v43, 16  ;;  %v3985_v49 = vshll.u32 %v5764_v61, 16  ;;  %v5827_v36 = vld [vmem:[#allocation2 + $0x6c] sm:$0xe] }
 0x175   : > { %v931_v59 = vshrl.u32 %v5972_v5, 16  ;;  %v934_v63 = vshll.u32 %v5972_v5, 16  ;;  %v4444_v39 = vsel %vm6461_vm5, %v5860_v26, %v4443_v53  ;;  %v4445_v44 = vrot.slane %v4443_v53, 4  ;;  %6059 = vmatmul.mubr.msk.bf16.vlgmr.msra.gmra.mrb[0].mxu1 %vm3180_vm4, %v7458_v31  ;;  %2829 = vst.msk [vmem:[#allocation3 + $0x48] sm:$0xff] %vm1785_vm10, %v2791_v52  ;;  %v4562_v30 = vpop.permute.xlu1 %4561  ;;  %v5767_v57 = vld [vmem:[#allocation2 + $0x7c] sm:$0xf] }
 0x176   : > { %v925_v37 = vrot.slane %v923_v27, 7  ;;  %v3978_v25 = vrot.slane %v3976_v45, 4  ;;  %3120 = vrot.lane.b32.xlu1 %v5656_v20, %s6341_s11  ;;  %v3989_v17 = vshrl.u32 %v5764_v61, 16  ;;  %v3995_v62 = vshll.u32 %v5765_v23, 16  ;;  %6062 = vmatprep.mubr.msk.bf16.mxu1 %vm3180_vm4, %v7460_v33  ;;  %2286 = vst.msk [vmem:[#allocation3 + $0x50] sm:$0xff] %vm1237_vm9, %v6285_v16 }
 0x177   : > { %v933_v56 = vrot.slane %v931_v59, 7  ;;  %v4447_v1 = vsel %vm6461_vm5, %v4445_v44, %v4446_v0  ;;  %v3981_v38 = vrot.slane %v3979_v29, 5  ;;  %6159 = vmatpush3.bf16.msra.mxu1 %v7635_v34  ;;  %v7724_v58 = vrot.slane %v3985_v49, 5  ;;  %v5829_v20 = vld [vmem:[#allocation2 + $0x74] sm:$0x1] }
 0x178   : > { %v928_v31 = vor.u32 %v926_v8, %v925_v37  ;;  %v929_v10 = vrot.slane %v925_v37, 4  ;;  %v5876_v28 = vcombine.low %v4444_v39, %v4447_v1  ;;  %6101 = vmatmul.mubr.msk.bf16.gmra.mrb[8].mxu0 %vm3180_vm4, %v7394_v18  ;;  %v3991_v33 = vrot.slane %v3989_v17, 4  ;;  %v4242_v18 = vpop.permute.xlu0 %4241  ;;  %v5768_v5 = vld [vmem:[#allocation2 + $0x80] sm:$0x1]  ;;  %v5769_v16 = vld [vmem:[#allocation2 + $0x84] sm:$0xf] }
 0x179   : > { %v936_v19 = vor.u32 %v934_v63, %v933_v56  ;;  %v938_v6 = vrot.slane %v933_v56, 4  ;;  %6104 = vmatprep.mubr.msk.bf16.mxu0 %vm3180_vm4, %v7408_v35  ;;  %v3982_v43 = vor.u32 %v3981_v38, %v3978_v25  ;;  %v3997_v3 = vrot.slane %v3995_v62, 5  ;;  %4288 = vst.msk [vmem:[#allocation3 + $0x8] sm:$0xff] %vm1785_vm10, %v4242_v18  ;;  %v7741_v23 = vld [vmem:[#allocation2 + $0x88] sm:$0xf] }
 0x17a   : > { %v1099_v24 = vsel %vm6530_vm2, %v928_v31, %v1098_v21  ;;  %v5861_v40 = vrot.slane %v5827_v36, 9  ;;  %4571 = vrot.lane.b32.xlu1 %v5876_v28, %s6341_s11  ;;  %v3992_v35 = vor.u32 %v3991_v33, %v7724_v58  ;;  %v4450_v13 = vrot.slane %v5828_v42, 5  ;;  %4608 = vst.msk [vmem:[#allocation3 + $0x8] sm:$0xff] %vm2109_vm11, %v4562_v30  ;;  %v4623_v59 = vld [vmem:[#allocation3] sm:$0xff] }
 0x17b   : > { %v937_v34 = vsel %vm6521_vm15, %v929_v10, %v936_v19  ;;  %1100 = vst [vmem:[#allocation2 + $0xc0] sm:$0xf] %v1099_v24  ;;  %v1103_v15 = vsel %vm6538_vm3, %v938_v6, %v1102_v11  ;;  %v3983_v4 = vrot.slane %v3982_v43, 4  ;;  %v4453_v60 = vrot.slane %v5829_v20, 5 }
 0x17c   : > { %1101 = vst.msk [vmem:[#allocation2 + $0xc4] sm:$0xf] %vm299_vm0, %v937_v34  ;;  %1104 = vst [vmem:[#allocation2 + $0xc8] sm:$0x1] %v1103_v15  ;;  %v4000_v26 = vshrl.u32 %v5766_v14, 16  ;;  %v4003_v51 = vshll.u32 %v5766_v14, 16  ;;  %v4451_v9 = vsel %vm6461_vm5, %v5861_v40, %v4450_v13  ;;  %v3111_v45 = vpop.permute.xlu0 %3110 }
 0x17d   : > { %v3993_v53 = vrot.slane %v3992_v35, 4  ;;  %v4452_v61 = vrot.slane %v4450_v13, 4  ;;  %v4009_v47 = vshll.u32 %v5767_v57, 16  ;;  %v4013_v0 = vshrl.u32 %v5767_v57, 16  ;;  %6063 = vmatmul.mubr.msk.bf16.gmra.mrb[4].mxu1 %vm3180_vm4, %v7468_v50  ;;  %3149 = vst.msk [vmem:[#allocation3 + $0x48] sm:$0xff] %vm2109_vm11, %v3111_v45 }
 0x17e   : > { %v4002_v27 = vrot.slane %v4000_v26, 4  ;;  %v4005_v8 = vrot.slane %v4003_v51, 5  ;;  %v3988_v63 = vsel %vm6499_vm12, %v3983_v4, %v7724_v58  ;;  %v4019_v44 = vshll.u32 %v5768_v5, 16  ;;  %6066 = vmatprep.mubr.msk.bf16.mxu1 %vm3180_vm4, %v7602_v48  ;;  %v5771_v34 = vld [vmem:[#allocation2 + $0x8c] sm:$0x1] }
 0x17f   : > { %v4454_v21 = vsel %vm6461_vm5, %v4452_v61, %v4453_v60  ;;  %v4011_v39 = vrot.slane %v4009_v47, 5  ;;  %v3998_v37 = vsel %vm6499_vm12, %v3993_v53, %v3997_v3  ;;  %v4015_v25 = vrot.slane %v4013_v0, 4  ;;  %v5830_v60 = vld [vmem:[#allocation2 + $0x78] sm:$0xe]  ;;  %v5831_v5 = vld [vmem:[#allocation2 + $0x7c] sm:$0xf] }
 0x180   : > { %v5877_v50 = vcombine.low %v4451_v9, %v4454_v21  ;;  %v4006_v11 = vor.u32 %v4005_v8, %v4002_v27  ;;  %6105 = vmatmul.mubr.msk.bf16.gmra.mrb[12].mxu0 %vm3180_vm4, %v7410_v12  ;;  %v4021_v29 = vrot.slane %v4019_v44, 5  ;;  %v4024_v49 = vshrl.u32 %v5769_v16, 16  ;;  %v5832_v61 = vld [vmem:[#allocation2 + $0x80] sm:$0x1]  ;;  %v5833_v8 = vld [vmem:[#allocation2 + $0x84] sm:$0xe] }
 0x181   : > { %v4027_v52 = vshll.u32 %v5769_v16, 16  ;;  %v4033_v56 = vshll.u32 %v7741_v23, 16  ;;  %6126 = vmatprep.mubr.msk.bf16.mxu0 %vm3180_vm4, %v4623_v59  ;;  %v4037_v62 = vshrl.u32 %v7741_v23, 16  ;;  %v7761_v38 = vcombine.low %v3988_v63, %v3998_v37  ;;  %v5834_v0 = vld [vmem:[#allocation2 + $0x88] sm:$0xf] }
 0x182   : > { %v5559_v1 = vld [vmem:[#allocation2 + $0xc0] sm:$0xf]  ;;  %4573 = vrot.lane.b32.xlu1 %v5877_v50, %s6341_s11  ;;  %v4007_v17 = vrot.slane %v4006_v11, 4  ;;  %v4016_v12 = vor.u32 %v4015_v25, %v4011_v39  ;;  %v4026_v51 = vrot.slane %v4024_v49, 4  ;;  %v5835_v63 = vld [vmem:[#allocation2 + $0x8c] sm:$0x1] }
 0x183   : > { %v5623_v48 = vld [vmem:[#allocation2 + $0xc0] sm:$0xe]  ;;  %v5560_v36 = vld [vmem:[#allocation2 + $0xc4] sm:$0xf]  ;;  %v5561_v31 = vld [vmem:[#allocation2 + $0xc8] sm:$0x1] }
 0x184   : > { %v2701_v10 = vshrl.u32 %v5559_v1, 16  ;;  %v2704_v28 = vshll.u32 %v5559_v1, 16  ;;  %v2710_v42 = vshll.u32 %v5560_v36, 16  ;;  %v2714_v14 = vshrl.u32 %v5560_v36, 16  ;;  %v5624_v6 = vld [vmem:[#allocation2 + $0xc4] sm:$0xf] }
 0x185   : > { %v2720_v19 = vshll.u32 %v5561_v31, 16  ;;  %v5641_v58 = vrot.slane %v5623_v48, 9  ;;  %v5625_v30 = vld [vmem:[#allocation2 + $0xc8] sm:$0x1]  ;;  %v3039_v24 = vrot.slane %v5624_v6, 5  ;;  %v4012_v43 = vsel %vm6499_vm12, %v4007_v17, %v4011_v39  ;;  %6067 = vmatmul.mubr.msk.bf16.gmra.mrb[8].mxu1 %vm3180_vm4, %v7610_v46  ;;  %v3163_v39 = vld [vmem:[#allocation3 + $0x38] sm:$0xff] }
 0x186   : > { %v2703_v33 = vrot.slane %v2701_v10, 4  ;;  %v2706_v20 = vrot.slane %v2704_v28, 5  ;;  %v2712_v3 = vrot.slane %v2710_v42, 5  ;;  %v2716_v40 = vrot.slane %v2714_v14, 4  ;;  %6070 = vmatprep.mubr.msk.bf16.mxu1 %vm3180_vm4, %v7626_v22  ;;  %v5772_v21 = vld [vmem:[#allocation2 + $0x90] sm:$0xf] }
 0x187   : > { %v2722_v57 = vrot.slane %v2720_v19, 5  ;;  %v3042_v18 = vrot.slane %v5625_v30, 5  ;;  %v7769_v35 = vsel %vm6461_vm5, %v5641_v58, %v3039_v24  ;;  %v3041_v13 = vrot.slane %v3039_v24, 4  ;;  %v6297_v25 = vld [vmem:[#allocation2 + $0x6c] sm:$0xff]   ;;  %v3164_v48 = vld [vmem:[#allocation3 + $0x40] sm:$0xff]  ;;  %v6299_v6 = vld [vmem:[#allocation2 + $0x84] sm:$0xff]  }
 0x188   : > { %v2707_v15 = vor.u32 %v2706_v20, %v2703_v33  ;;  %v4017_v4 = vrot.slane %v4016_v12, 4  ;;  %v2717_v26 = vor.u32 %v2716_v40, %v2712_v3  ;;  %v4029_v53 = vrot.slane %v4027_v52, 5  ;;  %v5773_v10 = vld [vmem:[#allocation2 + $0x94] sm:$0xf]  ;;  %3750 = vst.msk [vmem:[#allocation3 + $0x38] sm:$0xff] %vm1237_vm9, %v6297_v25 }
 0x189   : > { %v4035_v9 = vrot.slane %v4033_v56, 5  ;;  %v7775_v46 = vsel %vm6461_vm5, %v3041_v13, %v3042_v18  ;;  %v4039_v27 = vrot.slane %v4037_v62, 4  ;;  %v4043_v50 = vshll.u32 %v5771_v34, 16  ;;  %v5774_v19 = vld [vmem:[#allocation2 + $0x98] sm:$0x1] }
 0x18a   : > { %v2708_v47 = vrot.slane %v2707_v15, 4  ;;  %v4022_v16 = vsel %vm6499_vm12, %v4017_v4, %v4021_v29  ;;  %v2718_v23 = vrot.slane %v2717_v26, 4  ;;  %v5657_v22 = vcombine.low %v7769_v35, %v7775_v46  ;;  %v6298_v29 = vld [vmem:[#allocation2 + $0x78] sm:$0xff]  }
 0x18b   : > { %v7781_v45 = vcombine.low %v4012_v43, %v4022_v16  ;;  %v4030_v59 = vor.u32 %v4029_v53, %v4026_v51  ;;  %v4040_v37 = vor.u32 %v4039_v27, %v4035_v9  ;;  %v5862_v11 = vrot.slane %v5830_v60, 9  ;;  %3751 = vst.msk [vmem:[#allocation3 + $0x40] sm:$0xff] %vm1237_vm9, %v6298_v29  ;;  %v5775_v24 = vld [vmem:[#allocation2 + $0x9c] sm:$0xf]  ;;  %v3165_v43 = vld [vmem:[#allocation3 + $0x48] sm:$0xff] }
 0x18c   : > { %v2713_v44 = vsel %vm6499_vm12, %v2708_v47, %v2712_v3  ;;  %v2723_v49 = vsel %vm6499_vm12, %v2718_v23, %v2722_v57  ;;  %v4457_v56 = vrot.slane %v5831_v5, 5  ;;  %v4460_v1 = vrot.slane %v5832_v61, 5  ;;  %3752 = vst.msk [vmem:[#allocation3 + $0x48] sm:$0xff] %vm1237_vm9, %v6299_v6  ;;  %v5776_v60 = vld [vmem:[#allocation2 + $0xa0] sm:$0xf] }
 0x18d   : > { %v4031_v52 = vrot.slane %v4030_v59, 4  ;;  %v5577_v17 = vcombine.low %v2713_v44, %v2723_v49  ;;  %v4041_v62 = vrot.slane %v4040_v37, 4  ;;  %v4045_v36 = vrot.slane %v4043_v50, 5  ;;  %6071 = vmatmul.mubr.msk.bf16.gmra.mrb[12].mxu1 %vm3180_vm4, %v3163_v39  ;;  %v5777_v53 = vld [vmem:[#allocation2 + $0xa4] sm:$0x1] }
 0x18e   : > { %v5863_v31 = vrot.slane %v5833_v8, 9  ;;  %v7793_v12 = vsel %vm6461_vm5, %v5862_v11, %v4457_v56  ;;  %v4459_v42 = vrot.slane %v4457_v56, 4  ;;  %v4464_v14 = vrot.slane %v5834_v0, 5  ;;  %6074 = vmatprep.mubr.msk.bf16.mxu1 %vm3180_vm4, %v3164_v48  ;;  %v5836_v8 = vld [vmem:[#allocation2 + $0x90] sm:$0xe] }
 0x18f   : > { %v4036_v28 = vsel %vm6499_vm12, %v4031_v52, %v4035_v9  ;;  %2802 = vrot.lane.b32.xlu0 %v5577_v17, %s6342_s12  ;;  %v4046_v58 = vsel %vm6499_vm12, %v4041_v62, %v4045_v36  ;;  %v4467_v33 = vrot.slane %v5835_v63, 5  ;;  %v4048_v20 = vshrl.u32 %v5772_v21, 16  ;;  %v5837_v0 = vld [vmem:[#allocation2 + $0x94] sm:$0xf]  ;;  %v5838_v39 = vld [vmem:[#allocation2 + $0x98] sm:$0x1]  ;;  %v1764_v29 = vpop.permute.xlu1 %1763 }
 0x190   : > { %v4051_v30 = vshll.u32 %v5772_v21, 16  ;;  %v5799_v3 = vcombine.low %v4036_v28, %v4046_v58  ;;  %v7802_v40 = vsel %vm6461_vm5, %v4459_v42, %v4460_v1  ;;  %v4465_v57 = vsel %vm6461_vm5, %v5863_v31, %v4464_v14  ;;  %v5839_v25 = vld [vmem:[#allocation2 + $0x9c] sm:$0xe]  ;;  %v5840_v1 = vld [vmem:[#allocation2 + $0xa0] sm:$0xf]  ;;  %1799 = vst.msk [vmem:[#allocation3 + $0x68] sm:$0xff] %vm1785_vm10, %v1764_v29 }
 0x191   : > { %v4466_v18 = vrot.slane %v4464_v14, 4  ;;  %v5878_v34 = vcombine.low %v7793_v12, %v7802_v40  ;;  %v4050_v15 = vrot.slane %v4048_v20, 4  ;;  %v4057_v4 = vshll.u32 %v5773_v10, 16  ;;  %v5841_v31 = vld [vmem:[#allocation2 + $0xa4] sm:$0x1] }
 0x192   : > { %v4053_v13 = vrot.slane %v4051_v30, 5  ;;  %4257 = vrot.lane.b32.xlu1 %v5799_v3, %s6342_s12  ;;  %v4061_v26 = vshrl.u32 %v5773_v10, 16  ;;  %v4067_v51 = vshll.u32 %v5774_v19, 16  ;;  %v4072_v9 = vshrl.u32 %v5775_v24, 16  ;;  %v5778_v10 = vld [vmem:[#allocation2 + $0xa8] sm:$0xf] }
 0x193   : > { %v4468_v5 = vsel %vm6461_vm5, %v4466_v18, %v4467_v33  ;;  %4253 = vrot.lane.b32.xlu0 %v7761_v38, %s6342_s12  ;;  %v4059_v16 = vrot.slane %v4057_v4, 5  ;;  %v4075_v27 = vshll.u32 %v5775_v24, 16  ;;  %v4081_v21 = vshll.u32 %v5776_v60, 16  ;;  %v2088_v46 = vpop.permute.xlu1 %2087  ;;  %v5779_v24 = vld [vmem:[#allocation2 + $0xac] sm:$0xf] }
 0x194   : > { %v5879_v61 = vcombine.low %v4465_v57, %v4468_v5  ;;  %v4054_v47 = vor.u32 %v4053_v13, %v4050_v15  ;;  %v4063_v23 = vrot.slane %v4061_v26, 4  ;;  %v4069_v59 = vrot.slane %v4067_v51, 5  ;;  %2123 = vst.msk [vmem:[#allocation3 + $0x68] sm:$0xff] %vm2109_vm11, %v2088_v46  ;;  %v5781_v4 = vld [vmem:[#allocation2 + $0xb4] sm:$0xf] }
 0x195   : > { %v4074_v63 = vrot.slane %v4072_v9, 4  ;;  %v4077_v37 = vrot.slane %v4075_v27, 5  ;;  %v4085_v50 = vshrl.u32 %v5776_v60, 16  ;;  %v4091_v11 = vshll.u32 %v5777_v53, 16  ;;  %6075 = vmatmul.mubr.msk.bf16.gmra.mrb[16].mxu1 %vm3180_vm4, %v3165_v43  ;;  %v5780_v43 = vld [vmem:[#allocation2 + $0xb0] sm:$0x1] }
 0x196   : > { %v4055_v44 = vrot.slane %v4054_v47, 4  ;;  %4577 = vrot.lane.b32.xlu1 %v5879_v61, %s6341_s11  ;;  %v4064_v38 = vor.u32 %v4063_v23, %v4059_v16  ;;  %v4083_v49 = vrot.slane %v4081_v21, 5  ;;  %v5864_v52 = vrot.slane %v5836_v8, 9  ;;  %v5782_v53 = vld [vmem:[#allocation2 + $0xb8] sm:$0xf]  ;;  %v1762_v9 = vpop.permute.xlu0 %1761 }
 0x197   : > { %v4471_v56 = vrot.slane %v5837_v0, 5  ;;  %3122 = vrot.lane.b32.xlu0 %v5657_v22, %s6341_s11  ;;  %v4078_v17 = vor.u32 %v4077_v37, %v4074_v63  ;;  %v4087_v62 = vrot.slane %v4085_v50, 4  ;;  %v4093_v36 = vrot.slane %v4091_v11, 5  ;;  %v5783_v27 = vld [vmem:[#allocation2 + $0xbc] sm:$0x1]  ;;  %1798 = vst.msk [vmem:[#allocation3 + $0x60] sm:$0xff] %vm1785_vm10, %v1762_v9  ;;  %v4244_v8 = vpop.permute.xlu1 %4243 }
 0x198   : > { %v4060_v48 = vsel %vm6499_vm12, %v4055_v44, %v4059_v16  ;;  %v4065_v28 = vrot.slane %v4064_v38, 4  ;;  %v4474_v19 = vrot.slane %v5838_v39, 5  ;;  %v5865_v33 = vrot.slane %v5839_v25, 9  ;;  %v5842_v21 = vld [vmem:[#allocation2 + $0xa8] sm:$0xe]  ;;  %4289 = vst.msk [vmem:[#allocation3 + $0x10] sm:$0xff] %vm1785_vm10, %v4244_v8 }
 0x199   : > { %v7825_v42 = vsel %vm6461_vm5, %v5864_v52, %v4471_v56  ;;  %v4473_v14 = vrot.slane %v4471_v56, 4  ;;  %v4079_v6 = vrot.slane %v4078_v17, 4  ;;  %v4088_v58 = vor.u32 %v4087_v62, %v4083_v49  ;;  %v6292_v39 = vld [vmem:[#allocation2 + $0xa8] sm:$0xff]   ;;  %v5844_v56 = vld [vmem:[#allocation2 + $0xb0] sm:$0x1] }
 0x19a   : > { %v4478_v35 = vrot.slane %v5840_v1, 5  ;;  %v4070_v22 = vsel %vm6499_vm12, %v4065_v28, %v4069_v59  ;;  %v4481_v30 = vrot.slane %v5841_v31, 5  ;;  %v4096_v3 = vshrl.u32 %v5778_v10, 16  ;;  %v5843_v25 = vld [vmem:[#allocation2 + $0xac] sm:$0xf]  ;;  %v2086_v1 = vpop.permute.xlu0 %2085 }
 0x19b   : > { %v7831_v20 = vsel %vm6461_vm5, %v4473_v14, %v4474_v19  ;;  %4255 = vrot.lane.b32.xlu0 %v7781_v45, %s6342_s12  ;;  %v5800_v57 = vcombine.low %v4060_v48, %v4070_v22  ;;  %v4084_v18 = vsel %vm6499_vm12, %v4079_v6, %v4083_v49  ;;  %v4089_v15 = vrot.slane %v4088_v58, 4  ;;  %v5845_v31 = vld [vmem:[#allocation2 + $0xb4] sm:$0xe]  ;;  %2122 = vst.msk [vmem:[#allocation3 + $0x60] sm:$0xff] %vm2109_vm11, %v2086_v1  ;;  %v7854_v40 = vld [vmem:[#allocation3 + $0x68] sm:$0xff] }
 0x19c   : > { %v5880_v13 = vcombine.low %v7825_v42, %v7831_v20  ;;  %v4479_v60 = vsel %vm6461_vm5, %v5865_v33, %v4478_v35  ;;  %v4480_v5 = vrot.slane %v4478_v35, 4  ;;  %v4098_v26 = vrot.slane %v4096_v3, 4  ;;  %v3113_v12 = vpop.permute.xlu1 %3112  ;;  %v5846_v19 = vld [vmem:[#allocation2 + $0xb8] sm:$0xf]  ;;  %2289 = vst.msk [vmem:[#allocation3 + $0x68] sm:$0xff] %vm1237_vm9, %v6292_v39  ;;  %v6300_v1 = vld [vmem:[#allocation2 + $0x90] sm:$0xff]  }
 0x19d   : > { %v4099_v51 = vshll.u32 %v5778_v10, 16  ;;  %v4094_v45 = vsel %vm6499_vm12, %v4089_v15, %v4093_v36  ;;  %v4105_v61 = vshll.u32 %v5779_v24, 16  ;;  %v4109_v47 = vshrl.u32 %v5779_v24, 16  ;;  %v5847_v46 = vld [vmem:[#allocation2 + $0xbc] sm:$0x1] }
 0x19e   : > { %v4115_v16 = vshll.u32 %v5780_v43, 16  ;;  %v5801_v0 = vcombine.low %v4084_v18, %v4094_v45  ;;  %v4482_v23 = vsel %vm6461_vm5, %v4480_v5, %v4481_v30  ;;  %v4120_v63 = vshrl.u32 %v5781_v4, 16  ;;  %v2793_v3 = vpop.permute.xlu0 %2792  ;;  %v6291_v18 = vld [vmem:[#allocation2 + $0x9c] sm:$0xff]   ;;  %v5787_v39 = vld [vmem:[#allocation2 + $0xcc] sm:$0xf] }
 0x19f   : > { %v4101_v59 = vrot.slane %v4099_v51, 5  ;;  %4575 = vrot.lane.b32.xlu0 %v5878_v34, %s6341_s11  ;;  %v5881_v44 = vcombine.low %v4479_v60, %v4482_v23  ;;  %v4107_v37 = vrot.slane %v4105_v61, 5  ;;  %v4111_v50 = vrot.slane %v4109_v47, 4  ;;  %v5784_v5 = vld [vmem:[#allocation2 + $0xc0] sm:$0xf]  ;;  %2830 = vst.msk [vmem:[#allocation3 + $0x50] sm:$0xff] %vm1785_vm10, %v2793_v3 }
 0x1a0   : > { %v4117_v11 = vrot.slane %v4115_v16, 5  ;;  %4261 = vrot.lane.b32.xlu1 %v5801_v0, %s6342_s12  ;;  %v4122_v38 = vrot.slane %v4120_v63, 4  ;;  %v4123_v49 = vshll.u32 %v5781_v4, 16  ;;  %v4129_v52 = vshll.u32 %v5782_v53, 16  ;;  %v4564_v51 = vpop.permute.xlu1 %4563  ;;  %v5786_v47 = vld [vmem:[#allocation2 + $0xc8] sm:$0x1] }
 0x1a1   : > { %v4102_v29 = vor.u32 %v4101_v59, %v4098_v26  ;;  %v4112_v48 = vor.u32 %v4111_v50, %v4107_v37  ;;  %v4133_v17 = vshrl.u32 %v5782_v53, 16  ;;  %v4139_v62 = vshll.u32 %v5783_v27, 16  ;;  %v5785_v26 = vld [vmem:[#allocation2 + $0xc4] sm:$0xf]  ;;  %3150 = vst.msk [vmem:[#allocation3 + $0x50] sm:$0xff] %vm2109_vm11, %v3113_v12  ;;  %4609 = vst.msk [vmem:[#allocation3 + $0x10] sm:$0xff] %vm2109_vm11, %v4564_v51 }
 0x1a2   : > { %v5866_v36 = vrot.slane %v5842_v21, 9  ;;  %v4125_v10 = vrot.slane %v4123_v49, 5  ;;  %v4131_v28 = vrot.slane %v4129_v52, 5  ;;  %v4485_v14 = vrot.slane %v5843_v25, 5  ;;  %v5789_v25 = vld [vmem:[#allocation2 + $0xd4] sm:$0x1] }
 0x1a3   : > { %v4103_v34 = vrot.slane %v4102_v29, 4  ;;  %4259 = vrot.lane.b32.xlu0 %v5800_v57, %s6342_s12  ;;  %v4113_v6 = vrot.slane %v4112_v48, 4  ;;  %v4135_v58 = vrot.slane %v4133_v17, 4  ;;  %v4141_v33 = vrot.slane %v4139_v62, 5 }
 0x1a4   : > { %v4488_v35 = vrot.slane %v5844_v56, 5  ;;  %4581 = vrot.lane.b32.xlu1 %v5881_v44, %s6341_s11  ;;  %v4126_v30 = vor.u32 %v4125_v10, %v4122_v38  ;;  %v7863_v24 = vsel %vm6461_vm5, %v5866_v36, %v4485_v14  ;;  %v4487_v43 = vrot.slane %v4485_v14, 4  ;;  %v2795_v44 = vpop.permute.xlu0 %2794  ;;  %v5848_v56 = vld [vmem:[#allocation2 + $0xc0] sm:$0xe] }
 0x1a5   : > { %v4108_v22 = vsel %vm6499_vm12, %v4103_v34, %v4107_v37  ;;  %v4118_v57 = vsel %vm6499_vm12, %v4113_v6, %v4117_v11  ;;  %v4136_v15 = vor.u32 %v4135_v58, %v4131_v28  ;;  %v5867_v4 = vrot.slane %v5845_v31, 9  ;;  %v7881_v37 = vld [vmem:[#allocation3 + $0x60] sm:$0xff]  ;;  %v5788_v11 = vld [vmem:[#allocation2 + $0xd0] sm:$0xf]  ;;  %2831 = vst.msk [vmem:[#allocation3 + $0x58] sm:$0xff] %vm1785_vm10, %v2795_v44 }
 0x1a6   : > { %v4492_v60 = vrot.slane %v5846_v19, 5  ;;  %v5802_v53 = vcombine.low %v4108_v22, %v4118_v57  ;;  %v4127_v9 = vrot.slane %v4126_v30, 4  ;;  %v4489_v45 = vsel %vm6461_vm5, %v4487_v43, %v4488_v35  ;;  %2288 = vst.msk [vmem:[#allocation3 + $0x60] sm:$0xff] %vm1237_vm9, %v6291_v18  ;;  %v5849_v31 = vld [vmem:[#allocation2 + $0xc4] sm:$0xf]  ;;  %v4566_v12 = vpop.permute.xlu1 %4565 }
 0x1a7   : > { %v4495_v61 = vrot.slane %v5847_v46, 5  ;;  %4579 = vrot.lane.b32.xlu0 %v5880_v13, %s6341_s11  ;;  %v4137_v16 = vrot.slane %v4136_v15, 4  ;;  %v5882_v27 = vcombine.low %v7863_v24, %v4489_v45  ;;  %v4144_v59 = vshrl.u32 %v5784_v5, 16  ;;  %v5850_v19 = vld [vmem:[#allocation2 + $0xc8] sm:$0x1] }
 0x1a8   : > { %v4493_v8 = vsel %vm6461_vm5, %v5867_v4, %v4492_v60  ;;  %v4494_v0 = vrot.slane %v4492_v60, 4  ;;  %v4132_v23 = vsel %vm6499_vm12, %v4127_v9, %v4131_v28  ;;  %v4147_v63 = vshll.u32 %v5784_v5, 16  ;;  %v4246_v6 = vpop.permute.xlu0 %4245  ;;  %v5851_v22 = vld [vmem:[#allocation2 + $0xcc] sm:$0xe]  ;;  %v5852_v57 = vld [vmem:[#allocation2 + $0xd0] sm:$0xf] }
 0x1a9   : > { %v4153_v21 = vshll.u32 %v5785_v26, 16  ;;  %v4142_v42 = vsel %vm6499_vm12, %v4137_v16, %v4141_v33  ;;  %v4157_v13 = vshrl.u32 %v5785_v26, 16  ;;  %v4163_v50 = vshll.u32 %v5786_v47, 16  ;;  %4290 = vst.msk [vmem:[#allocation3 + $0x18] sm:$0xff] %vm1785_vm10, %v4246_v6  ;;  %v3166_v30 = vld [vmem:[#allocation3 + $0x50] sm:$0xff] }
 0x1aa   : > { %v4496_v20 = vsel %vm6461_vm5, %v4494_v0, %v4495_v61  ;;  %v5803_v29 = vcombine.low %v4132_v23, %v4142_v42  ;;  %v4146_v49 = vrot.slane %v4144_v59, 4  ;;  %v4149_v52 = vrot.slane %v4147_v63, 5  ;;  %4610 = vst.msk [vmem:[#allocation3 + $0x18] sm:$0xff] %vm2109_vm11, %v4566_v12  ;;  %6078 = vmatprep.mubr.msk.bf16.mxu1 %vm3180_vm4, %v3166_v30  ;;  %v5853_v26 = vld [vmem:[#allocation2 + $0xd4] sm:$0x1] }
 0x1ab   : > { %v5883_v38 = vcombine.low %v4493_v8, %v4496_v20  ;;  %4263 = vrot.lane.b32.xlu0 %v5802_v53, %s6342_s12  ;;  %v4155_v48 = vrot.slane %v4153_v21, 5  ;;  %v4159_v17 = vrot.slane %v4157_v13, 4  ;;  %v4165_v62 = vrot.slane %v4163_v50, 5  ;;  %3753 = vst.msk [vmem:[#allocation3 + $0x50] sm:$0xff] %vm1237_vm9, %v6300_v1  ;;  %v6315_v42 = vld [vmem:[%s8182_s4 + $0x10] sm:$0x3f]  }
 0x1ac   : > { %v4168_v36 = vshrl.u32 %v5787_v39, 16  ;;  %4265 = vrot.lane.b32.xlu1 %v5803_v29, %s6342_s12  ;;  %v4150_v34 = vor.u32 %v4149_v52, %v4146_v49  ;;  %v4171_v10 = vshll.u32 %v5787_v39, 16  ;;  %v4177_v28 = vshll.u32 %v5788_v11, 16  ;;  %v3115_v61 = vpop.permute.xlu0 %3114  ;;  %v4625_v49 = vld [vmem:[#allocation3 + $0x10] sm:$0xff]  ;;  %v6301_v52 = vld [vmem:[#allocation2 + $0x9c] sm:$0xff]  }
 0x1ad   : > { %v4181_v14 = vshrl.u32 %v5788_v11, 16  ;;  %v4160_v58 = vor.u32 %v4159_v17, %v4155_v48  ;;  %v4187_v35 = vshll.u32 %v5789_v25, 16  ;;  %v5868_v46 = vrot.slane %v5848_v56, 9  ;;  %3151 = vst.msk [vmem:[#allocation3 + $0x58] sm:$0xff] %vm2109_vm11, %v3115_v61  ;;  %v4624_v25 = vld [vmem:[#allocation3 + $0x8] sm:$0xff] }
 0x1ae   : > { %v4170_v33 = vrot.slane %v4168_v36, 4  ;;  %v4151_v24 = vrot.slane %v4150_v34, 4  ;;  %v4173_v43 = vrot.slane %v4171_v10, 5  ;;  %v4179_v3 = vrot.slane %v4177_v28, 5  ;;  %v6295_v28 = vld [vmem:[#allocation2 + $0xb4] sm:$0xff]  }
 0x1af   : > { %v4183_v18 = vrot.slane %v4181_v14, 4  ;;  %4583 = vrot.lane.b32.xlu0 %v5882_v27, %s6341_s11  ;;  %v4161_v15 = vrot.slane %v4160_v58, 4  ;;  %v4189_v4 = vrot.slane %v4187_v35, 5  ;;  %v4499_v60 = vrot.slane %v5849_v31, 5  ;;  %v6296_v31 = vld [vmem:[#allocation2 + $0xc0] sm:$0xff]   ;;  %v6302_v58 = vld [vmem:[#allocation2 + $0xa8] sm:$0xff]  }
 0x1b0   : > { %v4502_v5 = vrot.slane %v5850_v19, 5  ;;  %4585 = vrot.lane.b32.xlu1 %v5883_v38, %s6341_s11  ;;  %v4156_v51 = vsel %vm6499_vm12, %v4151_v24, %v4155_v48  ;;  %v4174_v53 = vor.u32 %v4173_v43, %v4170_v33  ;;  %v5869_v45 = vrot.slane %v5851_v22, 9 }
 0x1b1   : > { %v4184_v9 = vor.u32 %v4183_v18, %v4179_v3  ;;  %v4166_v47 = vsel %vm6499_vm12, %v4161_v15, %v4165_v62  ;;  %v4500_v16 = vsel %vm6461_vm5, %v5868_v46, %v4499_v60  ;;  %v4501_v27 = vrot.slane %v4499_v60, 4  ;;  %v4626_v2 = vld [vmem:[#allocation3 + $0x18] sm:$0xff]  ;;  %v6304_v60 = vld [vmem:[#allocation2 + $0xc0] sm:$0xff]  }
 0x1b2   : > { %v4506_v8 = vrot.slane %v5852_v57, 5  ;;  %v5804_v0 = vcombine.low %v4156_v51, %v4166_v47  ;;  %v4175_v23 = vrot.slane %v4174_v53, 4  ;;  %v4509_v63 = vrot.slane %v5853_v26, 5 }
 0x1b3   : > { %v4185_v59 = vrot.slane %v4184_v9, 4  ;;  %v4503_v21 = vsel %vm6461_vm5, %v4501_v27, %v4502_v5  ;;  %v4696_v20 = vsel %vm3229_vm8, %v6315_v42, 0 }
 0x1b4   : > { %v4507_v39 = vsel %vm6461_vm5, %v5869_v45, %v4506_v8  ;;  %v4508_v44 = vrot.slane %v4506_v8, 4  ;;  %4267 = vrot.lane.b32.xlu0 %v5804_v0, %s6342_s12  ;;  %v4180_v13 = vsel %vm6499_vm12, %v4175_v23, %v4179_v3  ;;  %v5884_v11 = vcombine.low %v4500_v16, %v4503_v21  ;;  %6125 = vmatpush3.bf16.msra.mxu0 %v4696_v20  ;;  %v3167_v41 = vld [vmem:[#allocation3 + $0x58] sm:$0xff] }
 0x1b5   : > { %v4190_v50 = vsel %vm6499_vm12, %v4185_v59, %v4189_v4  ;;  %6079 = vmatmul.mubr.msk.bf16.gmra.mrb[20].mxu1 %vm3180_vm4, %v3167_v41  ;;  %3754 = vst.msk [vmem:[#allocation3 + $0x58] sm:$0xff] %vm1237_vm9, %v6301_v52  ;;  %v6303_v3 = vld [vmem:[#allocation2 + $0xb4] sm:$0xff]   ;;  %v6305_v8 = vld [vmem:[#allocation2 + $0xcc] sm:$0xff]  }
 0x1b6   : > { %v5805_v29 = vcombine.low %v4180_v13, %v4190_v50  ;;  %v4510_v38 = vsel %vm6461_vm5, %v4508_v44, %v4509_v63 }
 0x1b7   : > { %v5885_v56 = vcombine.low %v4507_v39, %v4510_v38  ;;  %6127 = vmatmul.mubr.msk.bf16.vlgmr.msra.gmra.mrb[0].mxu0 %vm3180_vm4, %v4624_v25 }
 0x1b8   : > { %4269 = vrot.lane.b32.xlu1 %v5805_v29, %s6342_s12  ;;  %4587 = vrot.lane.b32.xlu0 %v5884_v11, %s6341_s11 }
 0x1b9   : > { %6130 = vmatprep.mubr.msk.bf16.mxu0 %vm3180_vm4, %v4625_v49 }
 0x1bc   : > { %4589 = vrot.lane.b32.xlu1 %v5885_v56, %s6341_s11  ;;  %s5940_s11 = sshll.u32 %s8222_s21, 7 }
 0x1bd   : > { %s8025_s26 = scalar_lea.vmem %s8183_s5, %s5940_s11 }
 0x1bf   : > { %6131 = vmatmul.mubr.msk.bf16.gmra.mrb[4].mxu0 %vm3180_vm4, %v4626_v2 }
 0x1c7   : > { %v1768_v1 = vpop.permute.xlu1 %1767 }
 0x1c8   : > { %1801 = vst.msk [vmem:[#allocation3 + $0x78] sm:$0xff] %vm1785_vm10, %v1768_v1 }
 0x1cb   : > { %v2092_v48 = vpop.permute.xlu1 %2091 }
 0x1cc   : > { %v1766_v17 = vpop.permute.xlu0 %1765  ;;  %2125 = vst.msk [vmem:[#allocation3 + $0x78] sm:$0xff] %vm2109_vm11, %v2092_v48 }
 0x1cd   : > { %1800 = vst.msk [vmem:[#allocation3 + $0x70] sm:$0xff] %vm1785_vm10, %v1766_v17 }
 0x1cf   : > { %v4248_v62 = vpop.permute.xlu1 %4247 }
 0x1d0   : > { %v2090_v36 = vpop.permute.xlu0 %2089  ;;  %4291 = vst.msk [vmem:[#allocation3 + $0x20] sm:$0xff] %vm1785_vm10, %v4248_v62 }
 0x1d1   : > { %2124 = vst.msk [vmem:[#allocation3 + $0x70] sm:$0xff] %vm2109_vm11, %v2090_v36 }
 0x1d3   : > { %v3117_v12 = vpop.permute.xlu1 %3116  ;;  %v7932_v34 = vld [vmem:[#allocation3 + $0x78] sm:$0xff] }
 0x1d4   : > { %v2797_v10 = vpop.permute.xlu0 %2796  ;;  %2291 = vst.msk [vmem:[#allocation3 + $0x78] sm:$0xff] %vm1237_vm9, %v6296_v31 }
 0x1d5   : > { %2832 = vst.msk [vmem:[#allocation3 + $0x60] sm:$0xff] %vm1785_vm10, %v2797_v10 }
 0x1d6   : > { %3152 = vst.msk [vmem:[#allocation3 + $0x60] sm:$0xff] %vm2109_vm11, %v3117_v12 }
 0x1d7   : > { %v4568_v14 = vpop.permute.xlu1 %4567 }
 0x1d8   : > { %v2799_v19 = vpop.permute.xlu0 %2798  ;;  %4611 = vst.msk [vmem:[#allocation3 + $0x20] sm:$0xff] %vm2109_vm11, %v4568_v14  ;;  %v7938_v6 = vld [vmem:[#allocation3 + $0x70] sm:$0xff] }
 0x1d9   : > { %2833 = vst.msk [vmem:[#allocation3 + $0x68] sm:$0xff] %vm1785_vm10, %v2799_v19 }
 0x1da   : > { %2290 = vst.msk [vmem:[#allocation3 + $0x70] sm:$0xff] %vm1237_vm9, %v6295_v28 }
 0x1db   : > { %v4570_v33 = vpop.permute.xlu1 %4569 }
 0x1dc   : > { %v4250_v35 = vpop.permute.xlu0 %4249 }
 0x1dd   : > { %4292 = vst.msk [vmem:[#allocation3 + $0x28] sm:$0xff] %vm1785_vm10, %v4250_v35  ;;  %v3168_v46 = vld [vmem:[#allocation3 + $0x60] sm:$0xff] }
 0x1de   : > { %4612 = vst.msk [vmem:[#allocation3 + $0x28] sm:$0xff] %vm2109_vm11, %v4570_v33  ;;  %6082 = vmatprep.mubr.msk.bf16.mxu1 %vm3180_vm4, %v3168_v46 }
 0x1df   : > { %3755 = vst.msk [vmem:[#allocation3 + $0x60] sm:$0xff] %vm1237_vm9, %v6302_v58  ;;  %v4627_v22 = vld [vmem:[#allocation3 + $0x20] sm:$0xff] }
 0x1e0   : > { %v3119_v30 = vpop.permute.xlu0 %3118  ;;  %6134 = vmatprep.mubr.msk.bf16.mxu0 %vm3180_vm4, %v4627_v22 }
 0x1e1   : > { %3153 = vst.msk [vmem:[#allocation3 + $0x68] sm:$0xff] %vm2109_vm11, %v3119_v30 }
 0x1e4   : > { %v4252_v24 = vpop.permute.xlu1 %4251 }
 0x1e5   : > { %v4628_v43 = vld [vmem:[#allocation3 + $0x28] sm:$0xff]  ;;  %4293 = vst.msk [vmem:[#allocation3 + $0x30] sm:$0xff] %vm1785_vm10, %v4252_v24 }
 0x1e6   : > { %6135 = vmatmul.mubr.msk.bf16.gmra.mrb[8].mxu0 %vm3180_vm4, %v4628_v43  ;;  %v2801_v18 = vpop.permute.xlu0 %2800 }
 0x1e7   : > { %2834 = vst.msk [vmem:[#allocation3 + $0x70] sm:$0xff] %vm1785_vm10, %v2801_v18 }
 0x1e8   : > { %v3169_v57 = vld [vmem:[#allocation3 + $0x68] sm:$0xff]  ;;  %v3121_v15 = vpop.permute.xlu1 %3120 }
 0x1e9   : > { %6083 = vmatmul.mubr.msk.bf16.gmra.mrb[24].mxu1 %vm3180_vm4, %v3169_v57  ;;  %3756 = vst.msk [vmem:[#allocation3 + $0x68] sm:$0xff] %vm1237_vm9, %v6303_v3 }
 0x1ea   : > { %3154 = vst.msk [vmem:[#allocation3 + $0x70] sm:$0xff] %vm2109_vm11, %v3121_v15 }
 0x1ec   : > { %v4572_v4 = vpop.permute.xlu1 %4571 }
 0x1ed   : > { %4613 = vst.msk [vmem:[#allocation3 + $0x30] sm:$0xff] %vm2109_vm11, %v4572_v4 }
 0x1f1   : > { %v3170_v5 = vld [vmem:[#allocation3 + $0x70] sm:$0xff] }
 0x1f2   : > { %6086 = vmatprep.mubr.msk.bf16.mxu1 %vm3180_vm4, %v3170_v5  ;;  %3757 = vst.msk [vmem:[#allocation3 + $0x70] sm:$0xff] %vm1237_vm9, %v6304_v60 }
 0x1f4   : > { %v4629_v26 = vld [vmem:[#allocation3 + $0x30] sm:$0xff]  ;;  %v4574_v51 = vpop.permute.xlu1 %4573 }
 0x1f5   : > { %6138 = vmatprep.mubr.msk.bf16.mxu0 %vm3180_vm4, %v4629_v26 }
 0x201   : > { %v2803_v53 = vpop.permute.xlu0 %2802 }
 0x202   : > { %2835 = vst.msk [vmem:[#allocation3 + $0x78] sm:$0xff] %vm1785_vm10, %v2803_v53 }
 0x204   : > { %v4258_v9 = vpop.permute.xlu1 %4257 }
 0x205   : > { %v4254_v45 = vpop.permute.xlu0 %4253  ;;  %4296 = vst.msk [vmem:[#allocation3 + $0x48] sm:$0xff] %vm1785_vm10, %v4258_v9 }
 0x206   : > { %4294 = vst.msk [vmem:[#allocation3 + $0x38] sm:$0xff] %vm1785_vm10, %v4254_v45 }
 0x207   : > { %4614 = vst.msk [vmem:[#allocation3 + $0x38] sm:$0xff] %vm2109_vm11, %v4574_v51 }
 0x208   : > { %v4578_v61 = vpop.permute.xlu1 %4577 }
 0x209   : > { %v3123_v47 = vpop.permute.xlu0 %3122  ;;  %4616 = vst.msk [vmem:[#allocation3 + $0x48] sm:$0xff] %vm2109_vm11, %v4578_v61 }
 0x20a   : > { %3155 = vst.msk [vmem:[#allocation3 + $0x78] sm:$0xff] %vm2109_vm11, %v3123_v47 }
 0x20d   : > { %v4256_v16 = vpop.permute.xlu0 %4255 }
 0x20e   : > { %4295 = vst.msk [vmem:[#allocation3 + $0x40] sm:$0xff] %vm1785_vm10, %v4256_v16  ;;  %v4630_v27 = vld [vmem:[#allocation3 + $0x38] sm:$0xff] }
 0x20f   : > { %6139 = vmatmul.mubr.msk.bf16.gmra.mrb[12].mxu0 %vm3180_vm4, %v4630_v27 }
 0x210   : > { %v4632_v39 = vld [vmem:[#allocation3 + $0x48] sm:$0xff] }
 0x211   : > { %v4576_v0 = vpop.permute.xlu0 %4575  ;;  %v3171_v23 = vld [vmem:[#allocation3 + $0x78] sm:$0xff] }
 0x212   : > { %4615 = vst.msk [vmem:[#allocation3 + $0x40] sm:$0xff] %vm2109_vm11, %v4576_v0  ;;  %6087 = vmatmul.mubr.msk.bf16.gmra.mrb[28].mxu1 %vm3180_vm4, %v3171_v23  ;;  %v4262_v59 = vpop.permute.xlu1 %4261 }
 0x213   : > { %3758 = vst.msk [vmem:[#allocation3 + $0x78] sm:$0xff] %vm1237_vm9, %v6305_v8  ;;  %6108 = vmatprep.mubr.msk.bf16.mxu1 %vm3180_vm4, %v7549_v32 }
 0x214   : > { %4298 = vst.msk [vmem:[#allocation3 + $0x58] sm:$0xff] %vm1785_vm10, %v4262_v59 }
 0x215   : > { %v4260_v63 = vpop.permute.xlu0 %4259 }
 0x216   : > { %4297 = vst.msk [vmem:[#allocation3 + $0x50] sm:$0xff] %vm1785_vm10, %v4260_v63  ;;  %v4582_v21 = vpop.permute.xlu1 %4581 }
 0x217   : > { %4618 = vst.msk [vmem:[#allocation3 + $0x58] sm:$0xff] %vm2109_vm11, %v4582_v21 }
 0x219   : > { %v4580_v44 = vpop.permute.xlu0 %4579  ;;  %v4631_v42 = vld [vmem:[#allocation3 + $0x40] sm:$0xff] }
 0x21a   : > { %4617 = vst.msk [vmem:[#allocation3 + $0x50] sm:$0xff] %vm2109_vm11, %v4580_v44  ;;  %6109 = vmatmul.mubr.msk.bf16.vlgmr.msra.gmra.mrb[16].mxu1 %vm3180_vm4, %v7541_v7  ;;  %6142 = vmatprep.mubr.msk.bf16.mxu0 %vm3180_vm4, %v4631_v42 }
 0x21b   : > { %6112 = vmatprep.mubr.msk.bf16.mxu1 %vm3180_vm4, %v7712_v55  ;;  %6143 = vmatmul.mubr.msk.bf16.gmra.mrb[16].mxu0 %vm3180_vm4, %v4632_v39 }
 0x21d   : > { %v4264_v32 = vpop.permute.xlu0 %4263 }
 0x21e   : > { %4299 = vst.msk [vmem:[#allocation3 + $0x60] sm:$0xff] %vm1785_vm10, %v4264_v32  ;;  %v4266_v20 = vpop.permute.xlu1 %4265  ;;  %v4634_v13 = vld [vmem:[#allocation3 + $0x58] sm:$0xff] }
 0x21f   : > { %4300 = vst.msk [vmem:[#allocation3 + $0x68] sm:$0xff] %vm1785_vm10, %v4266_v20 }
 0x221   : > { %v4584_v50 = vpop.permute.xlu0 %4583  ;;  %v4633_v11 = vld [vmem:[#allocation3 + $0x50] sm:$0xff] }
 0x222   : > { %4619 = vst.msk [vmem:[#allocation3 + $0x60] sm:$0xff] %vm2109_vm11, %v4584_v50  ;;  %v4586_v25 = vpop.permute.xlu1 %4585  ;;  %6113 = vmatmul.mubr.msk.bf16.gmra.mrb[20].mxu1 %vm3180_vm4, %v7676_v54  ;;  %6146 = vmatprep.mubr.msk.bf16.mxu0 %vm3180_vm4, %v4633_v11 }
 0x223   : > { %4620 = vst.msk [vmem:[#allocation3 + $0x68] sm:$0xff] %vm2109_vm11, %v4586_v25  ;;  %6116 = vmatprep.mubr.msk.bf16.mxu1 %vm3180_vm4, %v7881_v37  ;;  %6147 = vmatmul.mubr.msk.bf16.gmra.mrb[20].mxu0 %vm3180_vm4, %v4634_v13 }
 0x226   : > { %v4268_v7 = vpop.permute.xlu0 %4267 }
 0x227   : > { %4301 = vst.msk [vmem:[#allocation3 + $0x70] sm:$0xff] %vm1785_vm10, %v4268_v7 }
 0x229   : > { %v4635_v29 = vld [vmem:[#allocation3 + $0x60] sm:$0xff] }
 0x22a   : > { %v4270_v55 = vpop.permute.xlu1 %4269  ;;  %v4588_v38 = vpop.permute.xlu0 %4587  ;;  %6117 = vmatmul.mubr.msk.bf16.gmra.mrb[24].mxu1 %vm3180_vm4, %v7854_v40  ;;  %6150 = vmatprep.mubr.msk.bf16.mxu0 %vm3180_vm4, %v4635_v29  ;;  %v4636_v54 = vld [vmem:[#allocation3 + $0x68] sm:$0xff] }
 0x22b   : > { %4302 = vst.msk [vmem:[#allocation3 + $0x78] sm:$0xff] %vm1785_vm10, %v4270_v55  ;;  %6120 = vmatprep.mubr.msk.bf16.mxu1 %vm3180_vm4, %v7938_v6  ;;  %6151 = vmatmul.mubr.msk.bf16.gmra.mrb[24].mxu0 %vm3180_vm4, %v4636_v54 }
 0x22c   : > { %4621 = vst.msk [vmem:[#allocation3 + $0x70] sm:$0xff] %vm2109_vm11, %v4588_v38 }
 0x22e   : > { %v4590_v37 = vpop.permute.xlu1 %4589 }
 0x22f   : > { %4622 = vst.msk [vmem:[#allocation3 + $0x78] sm:$0xff] %vm2109_vm11, %v4590_v37 }
 0x232   : > { %6121 = vmatmul.mubr.msk.bf16.gmra.mrb[28].mxu1 %vm3180_vm4, %v7932_v34 }
 0x233   : > { %v4637_v49 = vld [vmem:[#allocation3 + $0x70] sm:$0xff] }
 0x234   : > { %6154 = vmatprep.mubr.msk.bf16.mxu0 %vm3180_vm4, %v4637_v49 }
 0x236   : > { %v4638_v40 = vld [vmem:[#allocation3 + $0x78] sm:$0xff] }
 0x237   : > { %6155 = vmatmul.mubr.msk.bf16.gmra.mrb[28].mxu0 %vm3180_vm4, %v4638_v40 }
 0x248   : > { %v6060_v52 = vpop.f32.mrb[0].mxu1 }
 0x249   : > { %v3267_v56 = vpop.f32.mrb[1].mxu1 }
 0x24a   : > { %v6061_v41 = vpop.f32.mrb[2].mxu1 }
 0x24b   : > { %v3270_v2 = vpop.f32.mrb[3].mxu1 }
 0x250   : > { %v6064_v1 = vpop.f32.mrb[4].mxu1 }
 0x251   : > { %v3283_v48 = vpop.f32.mrb[5].mxu1 }
 0x252   : > { %v6065_v17 = vpop.f32.mrb[6].mxu1 }
 0x253   : > { %v3286_v62 = vpop.f32.mrb[7].mxu1 }
 0x258   : > { %v8005_v36 = vpop.f32.mrb[8].mxu1 }
 0x259   : > { %v8007_v31 = vpop.f32.mrb[9].mxu1 }
 0x25a   : > { %v8009_v12 = vpop.f32.mrb[10].mxu1 }
 0x25b   : > { %v8011_v34 = vpop.f32.mrb[11].mxu1 }
 0x260   : > { %v8013_v10 = vpop.f32.mrb[12].mxu1 }
 0x261   : > { %v8015_v28 = vpop.f32.mrb[13].mxu1 }
 0x262   : > { %v8017_v14 = vpop.f32.mrb[14].mxu1 }
 0x263   : > { %v8019_v19 = vpop.f32.mrb[15].mxu1 }
 0x28a   : > { %v6128_v6 = vpop.f32.mrb[0].mxu0 }
 0x28b   : > { %v6160_v58 = vadd.f32 %v6128_v6, %v6060_v52  ;;  %v4732_v33 = vpop.f32.mrb[1].mxu0 }
 0x28c   : > { %v6161_v35 = vadd.f32 %v4732_v33, %v3267_v56  ;;  %v6129_v46 = vpop.f32.mrb[2].mxu0 }
 0x28d   : > { %v5975_v22 = vpack.c.bf16 %v6160_v58, %v6160_v58  ;;  %v6162_v30 = vadd.f32 %v6129_v46, %v6061_v41  ;;  %v4735_v24 = vpop.f32.mrb[3].mxu0  ;;  %v5125_v57 = vmul.f32 %v6160_v58, %v6160_v58  ;;  %v5055_v9 = vsel %vm1237_vm9, %v6160_v58, 0.0 }
 0x28e   : > { %v5973_v43 = vpack.c.bf16 %v6161_v35, %v6161_v35  ;;  %v5123_v3 = vmul.f32 %v6161_v35, %v6161_v35  ;;  %v6163_v18 = vadd.f32 %v4735_v24, %v3270_v2  ;;  %v5052_v4 = vsel %vm1237_vm9, %v6161_v35, 0.0 }
 0x28f   : > { %5022 = vst.msk [vmem:[%s8025_s26 + $0x8] sm:$0xf] %vm299_vm0, %v5975_v22  ;;  %v5976_v15 = vpack.c.bf16 %v6162_v30, %v6162_v30  ;;  %v5126_v51 = vmul.f32 %v6162_v30, %v6162_v30  ;;  %v5158_v23 = vsel %vm1237_vm9, %v5125_v57, 0.0  ;;  %v5057_v21 = vsel %vm1237_vm9, %v6162_v30, 0.0 }
 0x290   : > { %5020 = vst.msk [vmem:[%s8025_s26] sm:$0xf] %vm299_vm0, %v5973_v43  ;;  %v5974_v60 = vpack.c.bf16 %v6163_v18, %v6163_v18  ;;  %v5053_v5 = vsel %vm1237_vm9, %v6163_v18, 0.0  ;;  %v5124_v26 = vmul.f32 %v6163_v18, %v6163_v18  ;;  %v5155_v45 = vsel %vm1237_vm9, %v5123_v3, 0.0 }
 0x291   : > { %5023 = vst.msk [vmem:[%s8025_s26 + $0xc] sm:$0xf] %vm299_vm0, %v5976_v15  ;;  %v5054_v53 = vadd.f32 %v5053_v5, %v5052_v4  ;;  %v5160_v39 = vsel %vm1237_vm9, %v5126_v51, 0.0 }
 0x292   : > { %5021 = vst.msk [vmem:[%s8025_s26 + $0x4] sm:$0xf] %vm299_vm0, %v5974_v60  ;;  %v5156_v61 = vsel %vm1237_vm9, %v5124_v26, 0.0  ;;  %v6132_v47 = vpop.f32.mrb[4].mxu0 }
 0x293   : > { %v5056_v16 = vadd.f32 %v5055_v9, %v5054_v53  ;;  %v5157_v27 = vadd.f32 %v5156_v61, %v5155_v45  ;;  %v6164_v8 = vadd.f32 %v6132_v47, %v6064_v1  ;;  %v4748_v0 = vpop.f32.mrb[5].mxu0 }
 0x294   : > { %v6165_v59 = vadd.f32 %v4748_v0, %v3283_v48  ;;  %v6133_v63 = vpop.f32.mrb[6].mxu0 }
 0x295   : > { %v5159_v44 = vadd.f32 %v5158_v23, %v5157_v27  ;;  %v5979_v42 = vpack.c.bf16 %v6164_v8, %v6164_v8  ;;  %v4751_v32 = vpop.f32.mrb[7].mxu0  ;;  %v5058_v13 = vadd.f32 %v5057_v21, %v5056_v16  ;;  %v6166_v7 = vadd.f32 %v6133_v63, %v6065_v17 }
 0x296   : > { %v5977_v20 = vpack.c.bf16 %v6165_v59, %v6165_v59  ;;  %v5059_v50 = vsel %vm1237_vm9, %v6165_v59, 0.0  ;;  %v5127_v11 = vmul.f32 %v6165_v59, %v6165_v59  ;;  %v6167_v55 = vadd.f32 %v4751_v32, %v3286_v62 }
 0x297   : > { %5026 = vst.msk [vmem:[%s8025_s26 + $0x18] sm:$0xf] %vm299_vm0, %v5979_v42  ;;  %v5161_v25 = vadd.f32 %v5160_v39, %v5159_v44  ;;  %v5060_v29 = vadd.f32 %v5059_v50, %v5058_v13  ;;  %v5980_v37 = vpack.c.bf16 %v6166_v7, %v6166_v7  ;;  %v5129_v49 = vmul.f32 %v6164_v8, %v6164_v8 }
 0x298   : > { %5024 = vst.msk [vmem:[%s8025_s26 + $0x10] sm:$0xf] %vm299_vm0, %v5977_v20  ;;  %v5162_v38 = vsel %vm1237_vm9, %v5127_v11, 0.0  ;;  %v5978_v40 = vpack.c.bf16 %v6167_v55, %v6167_v55  ;;  %v5061_v52 = vsel %vm1237_vm9, %v6167_v55, 0.0  ;;  %v5128_v56 = vmul.f32 %v6167_v55, %v6167_v55 }
 0x299   : > { %v5163_v54 = vadd.f32 %v5162_v38, %v5161_v25  ;;  %5027 = vst.msk [vmem:[%s8025_s26 + $0x1c] sm:$0xf] %vm299_vm0, %v5980_v37  ;;  %v5062_v41 = vadd.f32 %v5061_v52, %v5060_v29  ;;  %v5063_v2 = vsel %vm1237_vm9, %v6164_v8, 0.0  ;;  %v5130_v1 = vmul.f32 %v6166_v7, %v6166_v7 }
 0x29a   : > { %5025 = vst.msk [vmem:[%s8025_s26 + $0x14] sm:$0xf] %vm299_vm0, %v5978_v40  ;;  %v5164_v48 = vsel %vm1237_vm9, %v5128_v56, 0.0  ;;  %v5166_v6 = vsel %vm1237_vm9, %v5129_v49, 0.0  ;;  %v5065_v58 = vsel %vm1237_vm9, %v6166_v7, 0.0 }
 0x29b   : > { %v5064_v17 = vadd.f32 %v5063_v2, %v5062_v41  ;;  %v5165_v62 = vadd.f32 %v5164_v48, %v5163_v54  ;;  %v5168_v46 = vsel %vm1237_vm9, %v5130_v1, 0.0 }
 0x29d   : > { %v5167_v33 = vadd.f32 %v5166_v6, %v5165_v62  ;;  %v5066_v35 = vadd.f32 %v5065_v58, %v5064_v17 }
 0x29f   : > { %v5169_v22 = vadd.f32 %v5168_v46, %v5167_v33 }
 0x2b9   : > { %v6136_v30 = vpop.f32.mrb[8].mxu0 }
 0x2ba   : > { %v6168_v24 = vadd.f32 %v6136_v30, %v8005_v36  ;;  %v4764_v43 = vpop.f32.mrb[9].mxu0 }
 0x2bb   : > { %v6169_v3 = vadd.f32 %v4764_v43, %v8007_v31  ;;  %v6137_v18 = vpop.f32.mrb[10].mxu0 }
 0x2bc   : > { %v5983_v57 = vpack.c.bf16 %v6168_v24, %v6168_v24  ;;  %v6170_v15 = vadd.f32 %v6137_v18, %v8009_v12  ;;  %v4767_v4 = vpop.f32.mrb[11].mxu0  ;;  %v5133_v12 = vmul.f32 %v6168_v24, %v6168_v24  ;;  %v5071_v27 = vsel %vm1237_vm9, %v6168_v24, 0.0 }
 0x2bd   : > { %v5981_v60 = vpack.c.bf16 %v6169_v3, %v6169_v3  ;;  %v5067_v5 = vsel %vm1237_vm9, %v6169_v3, 0.0  ;;  %v5131_v26 = vmul.f32 %v6169_v3, %v6169_v3  ;;  %v6171_v51 = vadd.f32 %v4767_v4, %v8011_v34 }
 0x2be   : > { %5030 = vst.msk [vmem:[%s8025_s26 + $0x28] sm:$0xf] %vm299_vm0, %v5983_v57  ;;  %v5068_v53 = vadd.f32 %v5067_v5, %v5066_v35  ;;  %v5984_v36 = vpack.c.bf16 %v6170_v15, %v6170_v15  ;;  %v5134_v34 = vmul.f32 %v6170_v15, %v6170_v15  ;;  %v5073_v23 = vsel %vm1237_vm9, %v6170_v15, 0.0 }
 0x2bf   : > { %5028 = vst.msk [vmem:[%s8025_s26 + $0x20] sm:$0xf] %vm299_vm0, %v5981_v60  ;;  %v5170_v31 = vsel %vm1237_vm9, %v5131_v26, 0.0  ;;  %v5982_v9 = vpack.c.bf16 %v6171_v51, %v6171_v51  ;;  %v5069_v45 = vsel %vm1237_vm9, %v6171_v51, 0.0  ;;  %v5132_v16 = vmul.f32 %v6171_v51, %v6171_v51 }
 0x2c0   : > { %v5171_v61 = vadd.f32 %v5170_v31, %v5169_v22  ;;  %5031 = vst.msk [vmem:[%s8025_s26 + $0x2c] sm:$0xf] %vm299_vm0, %v5984_v36  ;;  %v5070_v47 = vadd.f32 %v5069_v45, %v5068_v53  ;;  %v5174_v63 = vsel %vm1237_vm9, %v5133_v12, 0.0  ;;  %v5176_v44 = vsel %vm1237_vm9, %v5134_v34, 0.0 }
 0x2c1   : > { %5029 = vst.msk [vmem:[%s8025_s26 + $0x24] sm:$0xf] %vm299_vm0, %v5982_v9  ;;  %v5172_v0 = vsel %vm1237_vm9, %v5132_v16, 0.0 }
 0x2c2   : > { %v5072_v8 = vadd.f32 %v5071_v27, %v5070_v47  ;;  %v5173_v59 = vadd.f32 %v5172_v0, %v5171_v61 }
 0x2c4   : > { %v5074_v21 = vadd.f32 %v5073_v23, %v5072_v8  ;;  %v5175_v39 = vadd.f32 %v5174_v63, %v5173_v59 }
 0x2c6   : > { %v5177_v42 = vadd.f32 %v5176_v44, %v5175_v39 }
 0x2e2   : > { %v6140_v32 = vpop.f32.mrb[12].mxu0 }
 0x2e3   : > { %v6172_v20 = vadd.f32 %v6140_v32, %v8013_v10  ;;  %v4780_v13 = vpop.f32.mrb[13].mxu0 }
 0x2e4   : > { %v6173_v50 = vadd.f32 %v4780_v13, %v8015_v28  ;;  %v6141_v11 = vpop.f32.mrb[14].mxu0 }
 0x2e5   : > { %v5987_v25 = vpack.c.bf16 %v6172_v20, %v6172_v20  ;;  %v6174_v7 = vadd.f32 %v6141_v11, %v8017_v14  ;;  %v4783_v55 = vpop.f32.mrb[15].mxu0  ;;  %v5137_v14 = vmul.f32 %v6172_v20, %v6172_v20  ;;  %v5079_v1 = vsel %vm1237_vm9, %v6172_v20, 0.0 }
 0x2e6   : > { %v5985_v29 = vpack.c.bf16 %v6173_v50, %v6173_v50  ;;  %v5075_v38 = vsel %vm1237_vm9, %v6173_v50, 0.0  ;;  %v5135_v54 = vmul.f32 %v6173_v50, %v6173_v50  ;;  %v6175_v37 = vadd.f32 %v4783_v55, %v8019_v19 }
 0x2e7   : > { %5034 = vst.msk [vmem:[%s8025_s26 + $0x38] sm:$0xf] %vm299_vm0, %v5987_v25  ;;  %v5076_v49 = vadd.f32 %v5075_v38, %v5074_v21  ;;  %v5988_v10 = vpack.c.bf16 %v6174_v7, %v6174_v7  ;;  %v5138_v19 = vmul.f32 %v6174_v7, %v6174_v7  ;;  %v5081_v62 = vsel %vm1237_vm9, %v6174_v7, 0.0 }
 0x2e8   : > { %5032 = vst.msk [vmem:[%s8025_s26 + $0x30] sm:$0xf] %vm299_vm0, %v5985_v29  ;;  %v5178_v28 = vsel %vm1237_vm9, %v5135_v54, 0.0  ;;  %v5986_v40 = vpack.c.bf16 %v6175_v37, %v6175_v37  ;;  %v5077_v52 = vsel %vm1237_vm9, %v6175_v37, 0.0  ;;  %v5136_v2 = vmul.f32 %v6175_v37, %v6175_v37 }
 0x2e9   : > { %v5179_v56 = vadd.f32 %v5178_v28, %v5177_v42  ;;  %5035 = vst.msk [vmem:[%s8025_s26 + $0x3c] sm:$0xf] %vm299_vm0, %v5988_v10  ;;  %v5078_v41 = vadd.f32 %v5077_v52, %v5076_v49  ;;  %v5182_v58 = vsel %vm1237_vm9, %v5137_v14, 0.0  ;;  %v5184_v24 = vsel %vm1237_vm9, %v5138_v19, 0.0 }
 0x2ea   : > { %5033 = vst.msk [vmem:[%s8025_s26 + $0x34] sm:$0xf] %vm299_vm0, %v5986_v40  ;;  %v5180_v17 = vsel %vm1237_vm9, %v5136_v2, 0.0 }
 0x2eb   : > { %v5080_v48 = vadd.f32 %v5079_v1, %v5078_v41  ;;  %v5181_v6 = vadd.f32 %v5180_v17, %v5179_v56 }
 0x2ed   : > { %v6110_v33 = vpop.f32.mrb[16].mxu1  ;;  %v5082_v35 = vadd.f32 %v5081_v62, %v5080_v48  ;;  %v5183_v46 = vadd.f32 %v5182_v58, %v5181_v6 }
 0x2ee   : > { %v3548_v22 = vpop.f32.mrb[17].mxu1  ;;  %v6144_v30 = vpop.f32.mrb[16].mxu0 }
 0x2ef   : > { %v6176_v43 = vadd.f32 %v6144_v30, %v6110_v33  ;;  %v6111_v3 = vpop.f32.mrb[18].mxu1  ;;  %v4796_v18 = vpop.f32.mrb[17].mxu0  ;;  %v5185_v15 = vadd.f32 %v5184_v24, %v5183_v46 }
 0x2f0   : > { %v6177_v57 = vadd.f32 %v4796_v18, %v3548_v22  ;;  %v3551_v4 = vpop.f32.mrb[19].mxu1  ;;  %v6145_v60 = vpop.f32.mrb[18].mxu0 }
 0x2f1   : > { %v5991_v5 = vpack.c.bf16 %v6176_v43, %v6176_v43  ;;  %v6178_v26 = vadd.f32 %v6145_v60, %v6111_v3  ;;  %v4799_v51 = vpop.f32.mrb[19].mxu0  ;;  %v5141_v27 = vmul.f32 %v6176_v43, %v6176_v43  ;;  %v5087_v59 = vsel %vm1237_vm9, %v6176_v43, 0.0 }
 0x2f2   : > { %v5989_v53 = vpack.c.bf16 %v6177_v57, %v6177_v57  ;;  %v5083_v36 = vsel %vm1237_vm9, %v6177_v57, 0.0  ;;  %v5139_v31 = vmul.f32 %v6177_v57, %v6177_v57  ;;  %v6179_v9 = vadd.f32 %v4799_v51, %v3551_v4 }
 0x2f3   : > { %5038 = vst.msk [vmem:[%s8025_s26 + $0x48] sm:$0xf] %vm299_vm0, %v5991_v5  ;;  %v5084_v45 = vadd.f32 %v5083_v36, %v5082_v35  ;;  %v5992_v12 = vpack.c.bf16 %v6178_v26, %v6178_v26  ;;  %v5142_v39 = vmul.f32 %v6178_v26, %v6178_v26  ;;  %v5089_v50 = vsel %vm1237_vm9, %v6178_v26, 0.0 }
 0x2f4   : > { %5036 = vst.msk [vmem:[%s8025_s26 + $0x40] sm:$0xf] %vm299_vm0, %v5989_v53  ;;  %v5186_v61 = vsel %vm1237_vm9, %v5139_v31, 0.0  ;;  %v5990_v47 = vpack.c.bf16 %v6179_v9, %v6179_v9  ;;  %v5085_v16 = vsel %vm1237_vm9, %v6179_v9, 0.0  ;;  %v5140_v0 = vmul.f32 %v6179_v9, %v6179_v9 }
 0x2f5   : > { %v5187_v34 = vadd.f32 %v5186_v61, %v5185_v15  ;;  %5039 = vst.msk [vmem:[%s8025_s26 + $0x4c] sm:$0xf] %vm299_vm0, %v5992_v12  ;;  %v5086_v8 = vadd.f32 %v5085_v16, %v5084_v45  ;;  %v6114_v23 = vpop.f32.mrb[20].mxu1  ;;  %v5190_v29 = vsel %vm1237_vm9, %v5141_v27, 0.0  ;;  %v5192_v52 = vsel %vm1237_vm9, %v5142_v39, 0.0 }
 0x2f6   : > { %5037 = vst.msk [vmem:[%s8025_s26 + $0x44] sm:$0xf] %vm299_vm0, %v5990_v47  ;;  %v3564_v63 = vpop.f32.mrb[21].mxu1  ;;  %v6148_v21 = vpop.f32.mrb[20].mxu0  ;;  %v5188_v42 = vsel %vm1237_vm9, %v5140_v0, 0.0 }
 0x2f7   : > { %v5088_v44 = vadd.f32 %v5087_v59, %v5086_v8  ;;  %v6180_v32 = vadd.f32 %v6148_v21, %v6114_v23  ;;  %v6115_v20 = vpop.f32.mrb[22].mxu1  ;;  %v4812_v13 = vpop.f32.mrb[21].mxu0  ;;  %v5189_v11 = vadd.f32 %v5188_v42, %v5187_v34 }
 0x2f8   : > { %v6181_v25 = vadd.f32 %v4812_v13, %v3564_v63  ;;  %v3567_v7 = vpop.f32.mrb[23].mxu1  ;;  %v6149_v55 = vpop.f32.mrb[22].mxu0 }
 0x2f9   : > { %v5995_v38 = vpack.c.bf16 %v6180_v32, %v6180_v32  ;;  %v5090_v54 = vadd.f32 %v5089_v50, %v5088_v44  ;;  %v4815_v37 = vpop.f32.mrb[23].mxu0  ;;  %v5191_v49 = vadd.f32 %v5190_v29, %v5189_v11  ;;  %v6182_v56 = vadd.f32 %v6149_v55, %v6115_v20 }
 0x2fa   : > { %v5993_v10 = vpack.c.bf16 %v6181_v25, %v6181_v25  ;;  %v5091_v28 = vsel %vm1237_vm9, %v6181_v25, 0.0  ;;  %v5143_v40 = vmul.f32 %v6181_v25, %v6181_v25  ;;  %v6183_v41 = vadd.f32 %v4815_v37, %v3567_v7 }
 0x2fb   : > { %5042 = vst.msk [vmem:[%s8025_s26 + $0x58] sm:$0xf] %vm299_vm0, %v5995_v38  ;;  %v5092_v14 = vadd.f32 %v5091_v28, %v5090_v54  ;;  %v5193_v2 = vadd.f32 %v5192_v52, %v5191_v49  ;;  %v5145_v19 = vmul.f32 %v6180_v32, %v6180_v32  ;;  %v5996_v48 = vpack.c.bf16 %v6182_v56, %v6182_v56 }
 0x2fc   : > { %5040 = vst.msk [vmem:[%s8025_s26 + $0x50] sm:$0xf] %vm299_vm0, %v5993_v10  ;;  %v5194_v1 = vsel %vm1237_vm9, %v5143_v40, 0.0  ;;  %v5994_v17 = vpack.c.bf16 %v6183_v41, %v6183_v41  ;;  %v5093_v58 = vsel %vm1237_vm9, %v6183_v41, 0.0  ;;  %v5144_v33 = vmul.f32 %v6183_v41, %v6183_v41 }
 0x2fd   : > { %v6118_v62 = vpop.f32.mrb[24].mxu1  ;;  %v5195_v6 = vadd.f32 %v5194_v1, %v5193_v2  ;;  %5043 = vst.msk [vmem:[%s8025_s26 + $0x5c] sm:$0xf] %vm299_vm0, %v5996_v48  ;;  %v5094_v22 = vadd.f32 %v5093_v58, %v5092_v14  ;;  %v5095_v3 = vsel %vm1237_vm9, %v6180_v32, 0.0  ;;  %v5146_v18 = vmul.f32 %v6182_v56, %v6182_v56 }
 0x2fe   : > { %v3580_v35 = vpop.f32.mrb[25].mxu1  ;;  %v6152_v46 = vpop.f32.mrb[24].mxu0  ;;  %5041 = vst.msk [vmem:[%s8025_s26 + $0x54] sm:$0xf] %vm299_vm0, %v5994_v17  ;;  %v5196_v57 = vsel %vm1237_vm9, %v5144_v33, 0.0  ;;  %v5198_v5 = vsel %vm1237_vm9, %v5145_v19, 0.0 }
 0x2ff   : > { %v6184_v30 = vadd.f32 %v6152_v46, %v6118_v62  ;;  %v6119_v24 = vpop.f32.mrb[26].mxu1  ;;  %v4828_v43 = vpop.f32.mrb[25].mxu0  ;;  %v5096_v26 = vadd.f32 %v5095_v3, %v5094_v22  ;;  %v5197_v51 = vadd.f32 %v5196_v57, %v5195_v6  ;;  %v5097_v31 = vsel %vm1237_vm9, %v6182_v56, 0.0 }
 0x300   : > { %v6185_v15 = vadd.f32 %v4828_v43, %v3580_v35  ;;  %v3583_v4 = vpop.f32.mrb[27].mxu1  ;;  %v6153_v60 = vpop.f32.mrb[26].mxu0  ;;  %v5200_v34 = vsel %vm1237_vm9, %v5146_v18, 0.0 }
 0x301   : > { %v5999_v53 = vpack.c.bf16 %v6184_v30, %v6184_v30  ;;  %v4831_v36 = vpop.f32.mrb[27].mxu0  ;;  %v5199_v61 = vadd.f32 %v5198_v5, %v5197_v51  ;;  %v5098_v47 = vadd.f32 %v5097_v31, %v5096_v26  ;;  %v6186_v16 = vadd.f32 %v6153_v60, %v6119_v24 }
 0x302   : > { %v5997_v9 = vpack.c.bf16 %v6185_v15, %v6185_v15  ;;  %v5099_v45 = vsel %vm1237_vm9, %v6185_v15, 0.0  ;;  %v5147_v12 = vmul.f32 %v6185_v15, %v6185_v15  ;;  %v6187_v27 = vadd.f32 %v4831_v36, %v3583_v4 }
 0x303   : > { %5046 = vst.msk [vmem:[%s8025_s26 + $0x68] sm:$0xf] %vm299_vm0, %v5999_v53  ;;  %v5100_v0 = vadd.f32 %v5099_v45, %v5098_v47  ;;  %v5201_v23 = vadd.f32 %v5200_v34, %v5199_v61  ;;  %v6000_v59 = vpack.c.bf16 %v6186_v16, %v6186_v16  ;;  %v5149_v21 = vmul.f32 %v6184_v30, %v6184_v30 }
 0x304   : > { %5044 = vst.msk [vmem:[%s8025_s26 + $0x60] sm:$0xf] %vm299_vm0, %v5997_v9  ;;  %v5202_v8 = vsel %vm1237_vm9, %v5147_v12, 0.0  ;;  %v5998_v39 = vpack.c.bf16 %v6187_v27, %v6187_v27  ;;  %v5101_v44 = vsel %vm1237_vm9, %v6187_v27, 0.0  ;;  %v5148_v42 = vmul.f32 %v6187_v27, %v6187_v27 }
 0x305   : > { %v6122_v63 = vpop.f32.mrb[28].mxu1  ;;  %v5203_v20 = vadd.f32 %v5202_v8, %v5201_v23  ;;  %5047 = vst.msk [vmem:[%s8025_s26 + $0x6c] sm:$0xf] %vm299_vm0, %v6000_v59  ;;  %v5102_v13 = vadd.f32 %v5101_v44, %v5100_v0  ;;  %v5103_v11 = vsel %vm1237_vm9, %v6184_v30, 0.0  ;;  %v5150_v25 = vmul.f32 %v6186_v16, %v6186_v16 }
 0x306   : > { %v3596_v32 = vpop.f32.mrb[29].mxu1  ;;  %5045 = vst.msk [vmem:[%s8025_s26 + $0x64] sm:$0xf] %vm299_vm0, %v5998_v39  ;;  %v5204_v7 = vsel %vm1237_vm9, %v5148_v42, 0.0  ;;  %v5206_v37 = vsel %vm1237_vm9, %v5149_v21, 0.0  ;;  %v5105_v49 = vsel %vm1237_vm9, %v6186_v16, 0.0 }
 0x307   : > { %v6123_v50 = vpop.f32.mrb[30].mxu1  ;;  %v5104_v29 = vadd.f32 %v5103_v11, %v5102_v13  ;;  %v5205_v38 = vadd.f32 %v5204_v7, %v5203_v20  ;;  %v5208_v41 = vsel %vm1237_vm9, %v5150_v25, 0.0 }
 0x308   : > { %v3599_v55 = vpop.f32.mrb[31].mxu1 }
 0x309   : > { %v5207_v40 = vadd.f32 %v5206_v37, %v5205_v38  ;;  %v5106_v14 = vadd.f32 %v5105_v49, %v5104_v29 }
 0x30a   : > { %v6156_v54 = vpop.f32.mrb[28].mxu0 }
 0x30b   : > { %v6188_v10 = vadd.f32 %v6156_v54, %v6122_v63  ;;  %v4844_v28 = vpop.f32.mrb[29].mxu0  ;;  %v5209_v6 = vadd.f32 %v5208_v41, %v5207_v40 }
 0x30c   : > { %v6189_v52 = vadd.f32 %v4844_v28, %v3596_v32  ;;  %v6157_v56 = vpop.f32.mrb[30].mxu0 }
 0x30d   : > { %v6003_v2 = vpack.c.bf16 %v6188_v10, %v6188_v10  ;;  %v6190_v1 = vadd.f32 %v6157_v56, %v6123_v50  ;;  %v4847_v19 = vpop.f32.mrb[31].mxu0  ;;  %v5153_v30 = vmul.f32 %v6188_v10, %v6188_v10  ;;  %v5111_v57 = vsel %vm1237_vm9, %v6188_v10, 0.0 }
 0x30e   : > { %v6001_v48 = vpack.c.bf16 %v6189_v52, %v6189_v52  ;;  %v5107_v17 = vsel %vm1237_vm9, %v6189_v52, 0.0  ;;  %v5151_v62 = vmul.f32 %v6189_v52, %v6189_v52  ;;  %v6191_v46 = vadd.f32 %v4847_v19, %v3599_v55 }
 0x30f   : > { %5050 = vst.msk [vmem:[%s8025_s26 + $0x78] sm:$0xf] %vm299_vm0, %v6003_v2  ;;  %v5108_v58 = vadd.f32 %v5107_v17, %v5106_v14  ;;  %v6004_v33 = vpack.c.bf16 %v6190_v1, %v6190_v1  ;;  %v5154_v15 = vmul.f32 %v6190_v1, %v6190_v1  ;;  %v5214_v26 = vsel %vm1237_vm9, %v5153_v30, 0.0 }
 0x310   : > { %5048 = vst.msk [vmem:[%s8025_s26 + $0x70] sm:$0xf] %vm299_vm0, %v6001_v48  ;;  %v5210_v35 = vsel %vm1237_vm9, %v5151_v62, 0.0  ;;  %v6002_v24 = vpack.c.bf16 %v6191_v46, %v6191_v46  ;;  %v5109_v43 = vsel %vm1237_vm9, %v6191_v46, 0.0  ;;  %v5152_v3 = vmul.f32 %v6191_v46, %v6191_v46 }
 0x311   : > { %v5211_v22 = vadd.f32 %v5210_v35, %v5209_v6  ;;  %5051 = vst.msk [vmem:[%s8025_s26 + $0x7c] sm:$0xf] %vm299_vm0, %v6004_v33  ;;  %v5110_v18 = vadd.f32 %v5109_v43, %v5108_v58  ;;  %v5113_v51 = vsel %vm1237_vm9, %v6190_v1, 0.0  ;;  %v5216_v31 = vsel %vm1237_vm9, %v5154_v15, 0.0 }
 0x312   : > { %5049 = vst.msk [vmem:[%s8025_s26 + $0x74] sm:$0xf] %vm299_vm0, %v6002_v24  ;;  %v5212_v4 = vsel %vm1237_vm9, %v5152_v3, 0.0 }
 0x313   : > { %v5112_v60 = vadd.f32 %v5111_v57, %v5110_v18  ;;  %v5213_v5 = vadd.f32 %v5212_v4, %v5211_v22 }
 0x315   : > { %v5114_v53 = vadd.f32 %v5113_v51, %v5112_v60  ;;  %v5215_v36 = vadd.f32 %v5214_v26, %v5213_v5 }
 0x317   : > { %v5115_v9 = vrot.slane %v5114_v53, 4  ;;  %v5217_v45 = vadd.f32 %v5216_v31, %v5215_v36 }
 0x319   : > { %v5116_v12 = vadd.f32 %v5115_v9, %v5114_v53  ;;  %v5218_v61 = vrot.slane %v5217_v45, 4 }
 0x31b   : > { %v5117_v47 = vrot.slane %v5116_v12, 2  ;;  %v5219_v16 = vadd.f32 %v5218_v61, %v5217_v45 }
 0x31d   : > { %v5118_v27 = vadd.f32 %v5117_v47, %v5116_v12  ;;  %v5220_v34 = vrot.slane %v5219_v16, 2 }
 0x31f   : > { %v5119_v8 = vrot.slane %v5118_v27, 1  ;;  %v5221_v0 = vadd.f32 %v5220_v34, %v5219_v16 }
 0x321   : > { %v5120_v23 = vadd.f32 %v5119_v8, %v5118_v27  ;;  %v5222_v59 = vrot.slane %v5221_v0, 1 }
 0x323   : > { %5122 = vst.msk [vmem:[%s293_s30] sm:$0x1] %vm302_vm1, %v5120_v23  ;;  %v5223_v63 = vadd.f32 %v5222_v59, %v5221_v0 }
 0x325   : > { %5224 = vst.msk [vmem:[%s293_s30 + $0x1] sm:$0x1] %vm302_vm1, %v5223_v63 }
 0x326 PF: > { %s17_s23 = sadd.s32 1, %s6338_s23   ;;  %s8217_s21 = smov %s6334_s22 }
 0x327   : > { %p14_p5 = scmp.ge.s32.totalorder %s17_s23, 4   ;;  %s8218_s22 = smov %s8220_s24 }
 0x329   :  { %16 = sbr.rel (!%p14_p5) target bundleno = 2 (0x2), region = 92 }

// kernel: residual_block_forward.4
= control target key start
LH: loop header
LB: loop body
LE: loop exit
PB: predicated region body
PF: predicated region fallthrough
CT: control target
= control target key end

     0   :  { %s6486_s21 = smov 0   ;;  %s6488_s22 = smov 0   ;;  %s8286_s0 = inlined_call_operand.vmem [shape: bf16[2,16,16,4], index: 0, kind: input, shape index: {}]   ;;  %s8287_s1 = inlined_call_operand.vmem [shape: f32[1,4], index: 1, kind: input, shape index: {}]   ;;  %s8288_s2 = inlined_call_operand.vmem [shape: f32[1,4], index: 2, kind: input, shape index: {}]   ;;  %s8289_s3 = inlined_call_operand.vmem [shape: f32[1,4], index: 3, kind: input, shape index: {}]   ;;  %s8290_s4 = inlined_call_operand.vmem [shape: bf16[3,12,4], index: 4, kind: input, shape index: {}]   ;;  %s8291_s5 = inlined_call_operand.vmem [shape: bf16[2,256,4], index: 5, kind: output, shape index: {0}]   ;;  %s8292_s6 = inlined_call_operand.vmem [shape: f32[2,1,2,4], index: 6, kind: output, shape index: {1}]  }
   0x1   :  { %s6490_s23 = smov 0  }
   0x2 LB: > { %s29_s24 = sadd.s32 1, %s6442_s22  ;;  %p5393_p0 = scmp.ge.s32.totalorder %s6446_s23, 1  ;;  %s6446_s23 = sphi %s6490_s23, %s17_s23   ;;  %s6442_s22 = sphi %s6488_s22, %s8322_s22   ;;  %s6438_s21 = sphi %s6486_s21, %s8321_s21  }
   0x3   : > { %p31_p1 = scmp.ge.s32.totalorder %s29_s24, 2  ;;  %p231_p2 = scmp.lt.s32.totalorder %s6446_s23, 3 }
   0x5   : > { %s8324_s24 = smov (%p31_p1, %s29_s24), 0  ;;  %p232_p3 = pnand %p5393_p0, %p231_p2 }
   0x7   : > { %235 = sbr.rel (%p232_p3) target bundleno = 810 (0x32a), region = 40 }
   0xe   : > { %vm299_vm0 = vcmask 27648   ;;  %vm302_vm1 = vcmask 24576   ;;  %v6448_v0 = vmov 0   ;;  %p272_p4 = scmp.lt.s32.totalorder %s6438_s21, 1  ;;  %vm1930_vm2 = vcmask 1042432   ;;  %s6449_s11 = smov 8  }
   0xf   : > { %300 = vst.msk [vmem:[#allocation2] sm:$0xf] %vm299_vm0, %v6448_v0  ;;  %301 = vst.msk [vmem:[#allocation2 + $0x4] sm:$0xf] %vm299_vm0, %v6448_v0  ;;  %vm1931_vm3 = vcmask 1046532   ;;  %s6450_s12 = smov 4  }
  0x10   : > { %303 = vst.msk [vmem:[#allocation2 + $0x8] sm:$0x1] %vm302_vm1, %v6448_v0  ;;  %306 = vst.msk [vmem:[#allocation2 + $0x14] sm:$0x1] %vm302_vm1, %v6448_v0  ;;  %s8326_s21 = smov (!%p272_p4, %s6438_s21), 1 }
  0x11   : > { %304 = vst.msk [vmem:[#allocation2 + $0xc] sm:$0xf] %vm299_vm0, %v6448_v0  ;;  %305 = vst.msk [vmem:[#allocation2 + $0x10] sm:$0xf] %vm299_vm0, %v6448_v0  ;;  %vm1334_vm4 = vsmask.f32 3328 }
  0x12   : > { %307 = vst.msk [vmem:[#allocation2 + $0x18] sm:$0xf] %vm299_vm0, %v6448_v0  ;;  %308 = vst.msk [vmem:[#allocation2 + $0x1c] sm:$0xf] %vm299_vm0, %v6448_v0  ;;  %s5971_s25 = sshll.u32 %s8326_s21, 7 }
  0x13   : > { %309 = vst.msk [vmem:[#allocation2 + $0x20] sm:$0x1] %vm302_vm1, %v6448_v0  ;;  %312 = vst.msk [vmem:[#allocation2 + $0x2c] sm:$0x1] %vm302_vm1, %v6448_v0  ;;  %s6574_s28 = scalar_lea.vmem %s8286_s0, %s5971_s25  ;;  %v6579_v2 = vld [vmem:[%s8287_s1] ss:$0 sm:$0xff]  ;;  %s8133_s16 = scalar_lea.vmem %s8291_s5, %s5971_s25 }
  0x14   : > { %310 = vst.msk [vmem:[#allocation2 + $0x24] sm:$0xf] %vm299_vm0, %v6448_v0  ;;  %311 = vst.msk [vmem:[#allocation2 + $0x28] sm:$0xf] %vm299_vm0, %v6448_v0  ;;  %vm1335_vm6 = vsmask.f32 7440 }
  0x15   : > { %313 = vst.msk [vmem:[#allocation2 + $0x30] sm:$0xf] %vm299_vm0, %v6448_v0  ;;  %314 = vst.msk [vmem:[#allocation2 + $0x34] sm:$0xf] %vm299_vm0, %v6448_v0  ;;  %v6101_v3 = vld [vmem:[%s6574_s28 + $0x8] sm:$0xff]   ;;  %v6038_v5 = vld [vmem:[%s6574_s28] sm:$0xff]  }
  0x16   : > { %315 = vst.msk [vmem:[#allocation2 + $0x38] sm:$0x1] %vm302_vm1, %v6448_v0  ;;  %318 = vst.msk [vmem:[#allocation2 + $0x44] sm:$0x1] %vm302_vm1, %v6448_v0  ;;  %v6585_v4 = vld [vmem:[%s8288_s2] ss:$0 sm:$0xff]  ;;  %v6043_v10 = vunpack.c.l.bf16 %v6101_v3  ;;  %v6044_v11 = vunpack.c.h.bf16 %v6101_v3  ;;  %v6039_v12 = vunpack.c.l.bf16 %v6038_v5  ;;  %v6040_v13 = vunpack.c.h.bf16 %v6038_v5 }
  0x17   : > { %316 = vst.msk [vmem:[#allocation2 + $0x3c] sm:$0xf] %vm299_vm0, %v6448_v0  ;;  %317 = vst.msk [vmem:[#allocation2 + $0x40] sm:$0xf] %vm299_vm0, %v6448_v0  ;;  %v6102_v6 = vld [vmem:[%s6574_s28 + $0x10] sm:$0xff]   ;;  %v6103_v3 = vld [vmem:[%s6574_s28 + $0x18] sm:$0xff]  }
  0x18   : > { %319 = vst.msk [vmem:[#allocation2 + $0x48] sm:$0xf] %vm299_vm0, %v6448_v0  ;;  %320 = vst.msk [vmem:[#allocation2 + $0x4c] sm:$0xf] %vm299_vm0, %v6448_v0  ;;  %v1834_v7 = vld [vmem:[#allocation2] sm:$0xe]  ;;  %v6047_v18 = vunpack.c.l.bf16 %v6102_v6  ;;  %v428_v23 = vmul.f32 %v6043_v10, %v6579_v2  ;;  %v429_v24 = vmul.f32 %v6044_v11, %v6579_v2  ;;  %v426_v46 = vmul.f32 %v6039_v12, %v6579_v2 }
  0x19   : > { %321 = vst.msk [vmem:[#allocation2 + $0x50] sm:$0x1] %vm302_vm1, %v6448_v0  ;;  %324 = vst.msk [vmem:[#allocation2 + $0x5c] sm:$0x1] %vm302_vm1, %v6448_v0  ;;  %v1835_v8 = vld [vmem:[#allocation2 + $0x4] sm:$0xf]  ;;  %v427_v47 = vmul.f32 %v6040_v13, %v6579_v2  ;;  %v6048_v48 = vunpack.c.h.bf16 %v6102_v6 }
  0x1a   : > { %322 = vst.msk [vmem:[#allocation2 + $0x54] sm:$0xf] %vm299_vm0, %v6448_v0  ;;  %323 = vst.msk [vmem:[#allocation2 + $0x58] sm:$0xf] %vm299_vm0, %v6448_v0  ;;  %v1836_v9 = vld [vmem:[#allocation2 + $0x8] sm:$0x1]  ;;  %v467_v32 = vadd.f32 %v6585_v4, %v428_v23  ;;  %v468_v37 = vadd.f32 %v6585_v4, %v429_v24  ;;  %v430_v52 = vmul.f32 %v6047_v18, %v6579_v2  ;;  %v6051_v18 = vunpack.c.l.bf16 %v6103_v3 }
  0x1b   : > { %325 = vst.msk [vmem:[#allocation2 + $0x60] sm:$0xf] %vm299_vm0, %v6448_v0  ;;  %326 = vst.msk [vmem:[#allocation2 + $0x64] sm:$0xf] %vm299_vm0, %v6448_v0  ;;  %v5466_v14 = vrot.slane %v1834_v7, 9  ;;  %v1935_v15 = vrot.slane %v1835_v8, 5  ;;  %v465_v56 = vadd.f32 %v6585_v4, %v426_v46  ;;  %v466_v58 = vadd.f32 %v6585_v4, %v427_v47 }
  0x1c   : > { %327 = vst.msk [vmem:[#allocation2 + $0x68] sm:$0x1] %vm302_vm1, %v6448_v0  ;;  %330 = vst.msk [vmem:[#allocation2 + $0x74] sm:$0x1] %vm302_vm1, %v6448_v0  ;;  %v1938_v16 = vrot.slane %v1836_v9, 5  ;;  %vm499_vm10 = vcmp.ge.f32.partialorder %v467_v32, 0.0  ;;  %v431_v59 = vmul.f32 %v6048_v48, %v6579_v2  ;;  %v469_v60 = vadd.f32 %v6585_v4, %v430_v52 }
  0x1d   : > { %328 = vst.msk [vmem:[#allocation2 + $0x6c] sm:$0xf] %vm299_vm0, %v6448_v0  ;;  %329 = vst.msk [vmem:[#allocation2 + $0x70] sm:$0xf] %vm299_vm0, %v6448_v0  ;;  %v1286_v17 = vld [vmem:[#allocation2] sm:$0xf] }
  0x1e   : > { %331 = vst.msk [vmem:[#allocation2 + $0x78] sm:$0xf] %vm299_vm0, %v6448_v0  ;;  %332 = vst.msk [vmem:[#allocation2 + $0x7c] sm:$0xf] %vm299_vm0, %v6448_v0  ;;  %v1287_v19 = vld [vmem:[#allocation2 + $0x4] sm:$0xf]  ;;  %v470_v12 = vadd.f32 %v6585_v4, %v431_v59 }
  0x1f   : > { %333 = vst.msk [vmem:[#allocation2 + $0x80] sm:$0x1] %vm302_vm1, %v6448_v0  ;;  %336 = vst.msk [vmem:[#allocation2 + $0x8c] sm:$0x1] %vm302_vm1, %v6448_v0  ;;  %v1288_v20 = vld [vmem:[#allocation2 + $0x8] sm:$0x1] }
  0x20   : > { %334 = vst.msk [vmem:[#allocation2 + $0x84] sm:$0xf] %vm299_vm0, %v6448_v0  ;;  %335 = vst.msk [vmem:[#allocation2 + $0x88] sm:$0xf] %vm299_vm0, %v6448_v0  ;;  %v1338_v21 = vshrl.u32 %v1286_v17, 16  ;;  %v1341_v22 = vshll.u32 %v1286_v17, 16 }
  0x21   : > { %337 = vst.msk [vmem:[#allocation2 + $0x90] sm:$0xf] %vm299_vm0, %v6448_v0  ;;  %338 = vst.msk [vmem:[#allocation2 + $0x94] sm:$0xf] %vm299_vm0, %v6448_v0  ;;  %vm696_vm7 = vsmask.f32 256 }
  0x22   : > { %339 = vst.msk [vmem:[#allocation2 + $0x98] sm:$0x1] %vm302_vm1, %v6448_v0  ;;  %342 = vst.msk [vmem:[#allocation2 + $0xa4] sm:$0x1] %vm302_vm1, %v6448_v0  ;;  %vm697_vm8 = vsmask.f32 4368 }
  0x23   : > { %340 = vst.msk [vmem:[#allocation2 + $0x9c] sm:$0xf] %vm299_vm0, %v6448_v0  ;;  %341 = vst.msk [vmem:[#allocation2 + $0xa0] sm:$0xf] %vm299_vm0, %v6448_v0  ;;  %v1937_v26 = vrot.slane %v1935_v15, 4  ;;  %v1347_v27 = vshll.u32 %v1287_v19, 16 }
  0x24   : > { %343 = vst.msk [vmem:[#allocation2 + $0xa8] sm:$0xf] %vm299_vm0, %v6448_v0  ;;  %344 = vst.msk [vmem:[#allocation2 + $0xac] sm:$0xf] %vm299_vm0, %v6448_v0  ;;  %v1351_v28 = vshrl.u32 %v1287_v19, 16  ;;  %v1340_v29 = vrot.slane %v1338_v21, 4 }
  0x25   : > { %345 = vst.msk [vmem:[#allocation2 + $0xb0] sm:$0x1] %vm302_vm1, %v6448_v0  ;;  %348 = vst.msk [vmem:[#allocation2 + $0xbc] sm:$0x1] %vm302_vm1, %v6448_v0  ;;  %vm1021_vm9 = vsmask.f32 7938 }
  0x26   : > { %346 = vst.msk [vmem:[#allocation2 + $0xb4] sm:$0xf] %vm299_vm0, %v6448_v0  ;;  %347 = vst.msk [vmem:[#allocation2 + $0xb8] sm:$0xf] %vm299_vm0, %v6448_v0  ;;  %v1343_v30 = vrot.slane %v1341_v22, 5  ;;  %v1357_v31 = vshll.u32 %v1288_v20, 16 }
  0x27   : > { %349 = vst.msk [vmem:[#allocation2 + $0xc0] sm:$0xf] %vm299_vm0, %v6448_v0  ;;  %350 = vst.msk [vmem:[#allocation2 + $0xc4] sm:$0xf] %vm299_vm0, %v6448_v0  ;;  %v6597_v33 = vld [vmem:[%s8289_s3] ss:$0 sm:$0xff] }
  0x28   : > { %351 = vst.msk [vmem:[#allocation2 + $0xc8] sm:$0x1] %vm302_vm1, %v6448_v0  ;;  %354 = vst.msk [vmem:[#allocation2 + $0xd4] sm:$0x1] %vm302_vm1, %v6448_v0  ;;  %v1349_v35 = vrot.slane %v1347_v27, 5  ;;  %v1353_v36 = vrot.slane %v1351_v28, 4  ;;  %v1344_v39 = vor.u32 %v1343_v30, %v1340_v29  ;;  %v538_v43 = vmul.f32 %v6597_v33, %v467_v32 }
  0x29   : > { %352 = vst.msk [vmem:[#allocation2 + $0xcc] sm:$0xf] %vm299_vm0, %v6448_v0  ;;  %353 = vst.msk [vmem:[#allocation2 + $0xd0] sm:$0xf] %vm299_vm0, %v6448_v0  ;;  %v1359_v40 = vrot.slane %v1357_v31, 5  ;;  %vm500_vm12 = vcmp.ge.f32.partialorder %v468_v37, 0.0  ;;  %v539_v44 = vmul.f32 %v6597_v33, %v468_v37  ;;  %v536_v7 = vmul.f32 %v6597_v33, %v465_v56 }
  0x2a   : > { %vm6564_vm5 = vmor %vm1930_vm2, %vm1931_vm3  ;;  %v1354_v42 = vor.u32 %v1353_v36, %v1349_v35  ;;  %v1345_v45 = vrot.slane %v1344_v39, 4  ;;  %v570_v50 = vsel %vm499_vm10, %v467_v32, %v538_v43  ;;  %v8303_v5 = vmov 0  ;;  %v6655_v30 = vld [vmem:[%s6574_s28 + $0x20] sm:$0xff]   ;;  %v1023_v46 = vld [vmem:[#allocation2 + $0xc] sm:$0xf]  ;;  %s5398_s25 = sshll.u32 %s8326_s21, 1 }
  0x2b   : > { %v1936_v25 = vsel %vm6564_vm5, %v5466_v14, %v1935_v15  ;;  %v1939_v34 = vsel %vm6564_vm5, %v1937_v26, %v1938_v16  ;;  %vm6604_vm11 = vmor %vm1334_vm4, %vm1335_vm6  ;;  %v571_v51 = vsel %vm500_vm12, %v468_v37, %v539_v44  ;;  %v5975_v54 = vpack.c.bf16 %v570_v50, %v570_v50  ;;  %v1032_v14 = vld [vmem:[#allocation2 + $0x18] sm:$0xf]  ;;  %v1036_v15 = vld [vmem:[#allocation2 + $0x20] sm:$0x1]  ;;  %s293_s19 = scalar_lea.vmem %s8292_s6, %s5398_s25 }
  0x2c   : > { %v5482_v38 = vcombine.low %v1936_v25, %v1939_v34  ;;  %v1355_v49 = vrot.slane %v1354_v42, 4  ;;  %v1350_v53 = vsel %vm6604_vm11, %v1345_v45, %v1349_v35  ;;  %v5976_v55 = vpack.c.bf16 %v571_v51, %v571_v51  ;;  %vm6625_vm13 = vmor %vm696_vm7, %vm697_vm8  ;;  %v1029_v52 = vld [vmem:[#allocation2 + $0x14] sm:$0x1] }
  0x2d   : > { %v717_v62 = vshrl.u32 %v5975_v54, 16  ;;  %v720_v63 = vshll.u32 %v5975_v54, 16  ;;  %v8304_v5 = vsel %vm6625_vm13, 4294967295, %v8303_v5  ;;  %vm497_vm14 = vcmp.ge.f32.partialorder %v465_v56, 0.0  ;;  %vm6633_vm2 = vmand %vm299_vm0, %vm1021_vm9 }
  0x2e   : > { %2093 = vrot.lane.b32.xlu1 %v5482_v38, %s6449_s11  ;;  %v1360_v57 = vsel %vm6604_vm11, %v1355_v49, %v1359_v40  ;;  %v725_v0 = vshrl.u32 %v5976_v55, 16  ;;  %8305 = vst [vmem:[#allocation4_spill] sm:$0xff] %v8304_v5  ;;  %v728_v6 = vshll.u32 %v5976_v55, 16  ;;  %vm498_vm15 = vcmp.ge.f32.partialorder %v466_v58, 0.0  ;;  %vm6641_vm3 = vmand %vm302_vm1, %vm696_vm7 }
  0x2f   : > { %v5450_v61 = vcombine.low %v1350_v53, %v1360_v57  ;;  %v719_v8 = vrot.slane %v717_v62, 7  ;;  %v8306_v10 = vmov 0  ;;  %v537_v11 = vmul.f32 %v6597_v33, %v466_v58 }
  0x30   : > { %v727_v9 = vrot.slane %v725_v0, 7  ;;  %v8307_v10 = vsel %vm6633_vm2, 4294967295, %v8306_v10  ;;  %v8309_v13 = vmov 0  ;;  %v568_v16 = vsel %vm497_vm14, %v465_v56, %v536_v7 }
  0x31   : > { %1769 = vrot.lane.b32.xlu0 %v5450_v61, %s6450_s12  ;;  %8308 = vst [vmem:[#allocation5_spill] sm:$0xff] %v8307_v10  ;;  %v8310_v13 = vsel %vm6641_vm3, 4294967295, %v8309_v13  ;;  %vm501_vm4 = vcmp.ge.f32.partialorder %v469_v60, 0.0  ;;  %v540_v17 = vmul.f32 %v6597_v33, %v469_v60  ;;  %v722_v19 = vor.u32 %v720_v63, %v719_v8  ;;  %v1043_v61 = vld [vmem:[#allocation2 + $0x2c] sm:$0x1] }
  0x32   : > { %8311 = vst [vmem:[#allocation6_spill] sm:$0xff] %v8310_v13  ;;  %v723_v20 = vrot.slane %v719_v8, 4  ;;  %v730_v21 = vor.u32 %v728_v6, %v727_v9  ;;  %v732_v22 = vrot.slane %v727_v9, 4  ;;  %v569_v23 = vsel %vm498_vm15, %v466_v58, %v537_v11 }
  0x33   : > { %v5973_v24 = vpack.c.bf16 %v568_v16, %v568_v16  ;;  %vm502_vm6 = vcmp.ge.f32.partialorder %v470_v12, 0.0  ;;  %v541_v25 = vmul.f32 %v6597_v33, %v470_v12  ;;  %v1033_v27 = vsel %vm6633_vm2, %v722_v19, %v1032_v14 }
  0x34   : > { %v731_v26 = vsel %vm6625_vm13, %v723_v20, %v730_v21  ;;  %v1037_v28 = vsel %vm6641_vm3, %v732_v22, %v1036_v15  ;;  %v5974_v29 = vpack.c.bf16 %v569_v23, %v569_v23  ;;  %1034 = vst [vmem:[#allocation2 + $0x18] sm:$0xf] %v1033_v27  ;;  %v572_v34 = vsel %vm501_vm4, %v469_v60, %v540_v17  ;;  %v1039_v60 = vld [vmem:[#allocation2 + $0x24] sm:$0xf] }
  0x35   : > { %1035 = vst.msk [vmem:[#allocation2 + $0x1c] sm:$0xf] %vm299_vm0, %v731_v26  ;;  %1038 = vst [vmem:[#allocation2 + $0x20] sm:$0x1] %v1037_v28  ;;  %v700_v31 = vshrl.u32 %v5973_v24, 16  ;;  %v703_v32 = vshll.u32 %v5973_v24, 16  ;;  %v573_v35 = vsel %vm502_vm6, %v470_v12, %v541_v25  ;;  %v5977_v38 = vpack.c.bf16 %v572_v34, %v572_v34 }
  0x36   : > { %v708_v36 = vshrl.u32 %v5974_v29, 16  ;;  %v711_v37 = vshll.u32 %v5974_v29, 16  ;;  %v5978_v39 = vpack.c.bf16 %v573_v35, %v573_v35  ;;  %v6052_v42 = vunpack.c.h.bf16 %v6103_v3 }
  0x37   : > { %v702_v40 = vrot.slane %v700_v31, 7  ;;  %v432_v43 = vmul.f32 %v6051_v18, %v6579_v2  ;;  %v6055_v44 = vunpack.c.l.bf16 %v6655_v30  ;;  %v734_v47 = vshrl.u32 %v5977_v38, 16 }
  0x38   : > { %v710_v45 = vrot.slane %v708_v36, 7  ;;  %v737_v48 = vshll.u32 %v5977_v38, 16  ;;  %v742_v49 = vshrl.u32 %v5978_v39, 16  ;;  %v745_v53 = vshll.u32 %v5978_v39, 16  ;;  %v6688_v36 = vld [vmem:[%s6574_s28 + $0x28] sm:$0xff]  }
  0x39   : > { %v705_v50 = vor.u32 %v703_v32, %v702_v40  ;;  %v706_v51 = vrot.slane %v702_v40, 4  ;;  %v433_v54 = vmul.f32 %v6052_v42, %v6579_v2  ;;  %v736_v57 = vrot.slane %v734_v47, 7 }
  0x3a   : > { %v713_v55 = vor.u32 %v711_v37, %v710_v45  ;;  %v715_v56 = vrot.slane %v710_v45, 4  ;;  %v744_v58 = vrot.slane %v742_v49, 7  ;;  %v471_v62 = vadd.f32 %v6585_v4, %v432_v43 }
  0x3b   : > { %v1024_v59 = vsel %vm6633_vm2, %v705_v50, %v1023_v46  ;;  %v472_v63 = vadd.f32 %v6585_v4, %v433_v54  ;;  %v6056_v0 = vunpack.c.h.bf16 %v6655_v30  ;;  %v1840_v3 = vld [vmem:[#allocation2 + $0x18] sm:$0xe]  ;;  %v739_v11 = vor.u32 %v737_v48, %v736_v57 }
  0x3c   : > { %v1841_v6 = vld [vmem:[#allocation2 + $0x1c] sm:$0xf]  ;;  %v1842_v7 = vld [vmem:[#allocation2 + $0x20] sm:$0x1]  ;;  %v714_v8 = vsel %vm6625_vm13, %v706_v51, %v713_v55  ;;  %1025 = vst [vmem:[#allocation2 + $0xc] sm:$0xf] %v1024_v59  ;;  %v1030_v9 = vsel %vm6641_vm3, %v715_v56, %v1029_v52  ;;  %v747_v12 = vor.u32 %v745_v53, %v744_v58  ;;  %v542_v25 = vmul.f32 %v6597_v33, %v471_v62 }
  0x3d   : > { %v5468_v14 = vrot.slane %v1840_v3, 9  ;;  %v1949_v15 = vrot.slane %v1841_v6, 5  ;;  %v1952_v16 = vrot.slane %v1842_v7, 5  ;;  %1026 = vst.msk [vmem:[#allocation2 + $0x10] sm:$0xf] %vm299_vm0, %v714_v8  ;;  %v740_v17 = vrot.slane %v736_v57, 4 }
  0x3e   : > { %1031 = vst [vmem:[#allocation2 + $0x14] sm:$0x1] %v1030_v9  ;;  %v5613_v18 = vld [vmem:[#allocation2 + $0x18] sm:$0xe]  ;;  %v749_v19 = vrot.slane %v744_v58, 4  ;;  %v1040_v20 = vsel %vm6633_vm2, %v739_v11, %v1039_v60  ;;  %vm503_vm7 = vcmp.ge.f32.partialorder %v471_v62, 0.0  ;;  %v543_v28 = vmul.f32 %v6597_v33, %v472_v63 }
  0x3f   : > { %vm504_vm8 = vcmp.ge.f32.partialorder %v472_v63, 0.0  ;;  %v5614_v21 = vld [vmem:[#allocation2 + $0x1c] sm:$0xf]  ;;  %v1950_v22 = vsel %vm6564_vm5, %v5468_v14, %v1949_v15  ;;  %v1951_v23 = vrot.slane %v1949_v15, 4  ;;  %v748_v24 = vsel %vm6625_vm13, %v740_v17, %v747_v12  ;;  %1041 = vst [vmem:[#allocation2 + $0x24] sm:$0xf] %v1040_v20 }
  0x40   : > { %v5615_v26 = vld [vmem:[#allocation2 + $0x20] sm:$0x1]  ;;  %1042 = vst.msk [vmem:[#allocation2 + $0x28] sm:$0xf] %vm299_vm0, %v748_v24  ;;  %v1044_v27 = vsel %vm6641_vm3, %v749_v19, %v1043_v61  ;;  %v5659_v29 = vrot.slane %v5613_v18, 9  ;;  %v2973_v30 = vrot.slane %v5614_v21, 5  ;;  %v574_v32 = vsel %vm503_vm7, %v471_v62, %v542_v25 }
  0x41   : > { %v1953_v31 = vsel %vm6564_vm5, %v1951_v23, %v1952_v16  ;;  %1045 = vst [vmem:[#allocation2 + $0x2c] sm:$0x1] %v1044_v27  ;;  %v2976_v34 = vrot.slane %v5615_v26, 5  ;;  %v434_v35 = vmul.f32 %v6055_v44, %v6579_v2  ;;  %v575_v38 = vsel %vm504_vm8, %v472_v63, %v543_v28  ;;  %v1046_v26 = vld [vmem:[#allocation2 + $0x30] sm:$0xf] }
  0x42   : > { %v5484_v37 = vcombine.low %v1950_v22, %v1953_v31  ;;  %v5979_v39 = vpack.c.bf16 %v574_v32, %v574_v32  ;;  %v6693_v40 = vsel %vm6564_vm5, %v5659_v29, %v2973_v30  ;;  %v5980_v45 = vpack.c.bf16 %v575_v38, %v575_v38  ;;  %v1050_v32 = vld [vmem:[#allocation2 + $0x38] sm:$0x1] }
  0x43   : > { %v1837_v42 = vld [vmem:[#allocation2 + $0xc] sm:$0xe]  ;;  %v2975_v46 = vrot.slane %v2973_v30, 4  ;;  %v435_v47 = vmul.f32 %v6056_v0, %v6579_v2  ;;  %v6697_v48 = vadd.f32 %v6585_v4, %v434_v35  ;;  %v6059_v52 = vunpack.c.l.bf16 %v6688_v36 }
  0x44   : > { %v5610_v43 = vld [vmem:[#allocation2 + $0xc] sm:$0xe]  ;;  %2097 = vrot.lane.b32.xlu0 %v5484_v37, %s6449_s11  ;;  %v1838_v44 = vld [vmem:[#allocation2 + $0x10] sm:$0xf]  ;;  %v5467_v50 = vrot.slane %v1837_v42, 9  ;;  %v6060_v53 = vunpack.c.h.bf16 %v6688_v36  ;;  %v751_v63 = vshrl.u32 %v5979_v39, 16 }
  0x45   : > { %v1839_v49 = vld [vmem:[#allocation2 + $0x14] sm:$0x1]  ;;  %v5658_v51 = vrot.slane %v5610_v43, 9  ;;  %v1942_v54 = vrot.slane %v1838_v44, 5  ;;  %v5611_v56 = vld [vmem:[#allocation2 + $0x10] sm:$0xf]  ;;  %v6704_v58 = vsel %vm6564_vm5, %v2975_v46, %v2976_v34  ;;  %v6707_v59 = vadd.f32 %v6585_v4, %v435_v47 }
  0x46   : > { %v1945_v55 = vrot.slane %v1839_v49, 5  ;;  %v5612_v57 = vld [vmem:[#allocation2 + $0x14] sm:$0x1]  ;;  %v2966_v60 = vrot.slane %v5611_v56, 5  ;;  %v1843_v62 = vld [vmem:[#allocation2 + $0x24] sm:$0xe]  ;;  %v5675_v38 = vcombine.low %v6693_v40, %v6704_v58  ;;  %v436_v56 = vmul.f32 %v6059_v52, %v6579_v2 }
  0x47   : > { %v2969_v61 = vrot.slane %v5612_v57, 5  ;;  %v754_v0 = vshll.u32 %v5979_v39, 16  ;;  %v1943_v3 = vsel %vm6564_vm5, %v5467_v50, %v1942_v54  ;;  %v1944_v6 = vrot.slane %v1942_v54, 4  ;;  %v1844_v7 = vld [vmem:[#allocation2 + $0x28] sm:$0xf]  ;;  %v6106_v47 = vld [vmem:[%s6574_s28 + $0x30] sm:$0xff]  }
  0x48   : > { %v5469_v8 = vrot.slane %v1843_v62, 9  ;;  %v759_v9 = vshrl.u32 %v5980_v45, 16  ;;  %v2967_v11 = vsel %vm6564_vm5, %v5658_v51, %v2966_v60  ;;  %v2968_v12 = vrot.slane %v2966_v60, 4  ;;  %v1845_v14 = vld [vmem:[#allocation2 + $0x2c] sm:$0x1] }
  0x49   : > { %v1956_v15 = vrot.slane %v1844_v7, 5  ;;  %v753_v16 = vrot.slane %v751_v63, 7  ;;  %v1946_v17 = vsel %vm6564_vm5, %v1944_v6, %v1945_v55  ;;  %v1959_v18 = vrot.slane %v1845_v14, 5  ;;  %v5616_v21 = vld [vmem:[#allocation2 + $0x24] sm:$0xe] }
  0x4a   : > { %v761_v19 = vrot.slane %v759_v9, 7  ;;  %v762_v20 = vshll.u32 %v5980_v45, 16  ;;  %v5483_v22 = vcombine.low %v1943_v3, %v1946_v17  ;;  %v2970_v23 = vsel %vm6564_vm5, %v2968_v12, %v2969_v61  ;;  %v5617_v27 = vld [vmem:[#allocation2 + $0x28] sm:$0xf]  ;;  %v5618_v34 = vld [vmem:[#allocation2 + $0x2c] sm:$0x1] }
  0x4b   : > { %v1957_v24 = vsel %vm6564_vm5, %v5469_v8, %v1956_v15  ;;  %v1958_v25 = vrot.slane %v1956_v15, 4  ;;  %v5674_v28 = vcombine.low %v2967_v11, %v2970_v23  ;;  %v756_v29 = vor.u32 %v754_v0, %v753_v16  ;;  %v6735_v40 = vld [vmem:[#allocation2 + $0xc] sm:$0xf] }
  0x4c   : > { %v757_v30 = vrot.slane %v753_v16, 4  ;;  %v764_v31 = vor.u32 %v762_v20, %v761_v19  ;;  %2095 = vrot.lane.b32.xlu1 %v5483_v22, %s6449_s11  ;;  %v766_v37 = vrot.slane %v761_v19, 4  ;;  %v5660_v39 = vrot.slane %v5616_v21, 9  ;;  %v1053_v16 = vld [vmem:[#allocation2 + $0x3c] sm:$0xf] }
  0x4d   : > { %v1960_v35 = vsel %vm6564_vm5, %v1958_v25, %v1959_v18  ;;  %3124 = vrot.lane.b32.xlu0 %v5674_v28, %s6449_s11  ;;  %v1047_v45 = vsel %vm6633_vm2, %v756_v29, %v1046_v26  ;;  %v2980_v46 = vrot.slane %v5617_v27, 5  ;;  %v2983_v49 = vrot.slane %v5618_v34, 5 }
  0x4e   : > { %v5485_v42 = vcombine.low %v1957_v24, %v1960_v35  ;;  %v765_v43 = vsel %vm6625_vm13, %v757_v30, %v764_v31  ;;  %1048 = vst [vmem:[#allocation2 + $0x30] sm:$0xf] %v1047_v45  ;;  %v1051_v44 = vsel %vm6641_vm3, %v766_v37, %v1050_v32  ;;  %vm505_vm9 = vcmp.ge.f32.partialorder %v6697_v48, 0.0  ;;  %v1057_v35 = vld [vmem:[#allocation2 + $0x44] sm:$0x1] }
  0x4f   : > { %1049 = vst.msk [vmem:[#allocation2 + $0x34] sm:$0xf] %vm299_vm0, %v765_v43  ;;  %vm506_vm10 = vcmp.ge.f32.partialorder %v6707_v59, 0.0  ;;  %1052 = vst [vmem:[#allocation2 + $0x38] sm:$0x1] %v1051_v44  ;;  %v6739_v50 = vsel %vm6564_vm5, %v5660_v39, %v2980_v46  ;;  %v2982_v51 = vrot.slane %v2980_v46, 4  ;;  %v544_v54 = vmul.f32 %v6597_v33, %v6697_v48 }
  0x50   : > { %v545_v55 = vmul.f32 %v6597_v33, %v6707_v59  ;;  %2099 = vrot.lane.b32.xlu1 %v5485_v42, %s6449_s11  ;;  %v437_v57 = vmul.f32 %v6060_v53, %v6579_v2  ;;  %v6063_v58 = vunpack.c.l.bf16 %v6106_v47  ;;  %v6064_v60 = vunpack.c.h.bf16 %v6106_v47 }
  0x51   : > { %v6754_v61 = vsel %vm6564_vm5, %v2982_v51, %v2983_v49  ;;  %v576_v62 = vsel %vm505_vm9, %v6697_v48, %v544_v54  ;;  %v1362_v0 = vshrl.u32 %v6735_v40, 16  ;;  %v475_v36 = vadd.f32 %v6585_v4, %v436_v56 }
  0x52   : > { %v577_v63 = vsel %vm506_vm10, %v6707_v59, %v545_v55  ;;  %v5676_v3 = vcombine.low %v6739_v50, %v6754_v61  ;;  %v5981_v52 = vpack.c.bf16 %v576_v62, %v576_v62  ;;  %v476_v53 = vadd.f32 %v6585_v4, %v437_v57 }
  0x53   : > { %v5982_v6 = vpack.c.bf16 %v577_v63, %v577_v63  ;;  %v438_v7 = vmul.f32 %v6063_v58, %v6579_v2  ;;  %v439_v8 = vmul.f32 %v6064_v60, %v6579_v2  ;;  %v6765_v9 = vrot.slane %v1362_v0, 4  ;;  %v1060_v60 = vld [vmem:[#allocation2 + $0x48] sm:$0xf]  ;;  %v1064_v0 = vld [vmem:[#allocation2 + $0x50] sm:$0x1] }
  0x54   : > { %3126 = vrot.lane.b32.xlu1 %v5675_v38, %s6449_s11  ;;  %v768_v48 = vshrl.u32 %v5981_v52, 16  ;;  %v771_v59 = vshll.u32 %v5981_v52, 16  ;;  %vm507_vm12 = vcmp.ge.f32.partialorder %v475_v36, 0.0  ;;  %vm508_vm14 = vcmp.ge.f32.partialorder %v476_v53, 0.0 }
  0x55   : > { %v776_v11 = vshrl.u32 %v5982_v6, 16  ;;  %v779_v12 = vshll.u32 %v5982_v6, 16  ;;  %v1846_v14 = vld [vmem:[#allocation2 + $0x30] sm:$0xe]  ;;  %v546_v17 = vmul.f32 %v6597_v33, %v475_v36  ;;  %v547_v18 = vmul.f32 %v6597_v33, %v476_v53 }
  0x56   : > { %v1847_v15 = vld [vmem:[#allocation2 + $0x34] sm:$0xf]  ;;  %v1848_v19 = vld [vmem:[#allocation2 + $0x38] sm:$0x1]  ;;  %v5470_v20 = vrot.slane %v1846_v14, 9  ;;  %v770_v22 = vrot.slane %v768_v48, 7  ;;  %v477_v29 = vadd.f32 %v6585_v4, %v438_v7 }
  0x57   : > { %v1963_v21 = vrot.slane %v1847_v15, 5  ;;  %v778_v23 = vrot.slane %v776_v11, 7  ;;  %v1966_v24 = vrot.slane %v1848_v19, 5  ;;  %v578_v25 = vsel %vm507_vm12, %v475_v36, %v546_v17  ;;  %v5619_v27 = vld [vmem:[#allocation2 + $0x30] sm:$0xe] }
  0x58   : > { %v579_v26 = vsel %vm508_vm14, %v476_v53, %v547_v18  ;;  %v5620_v28 = vld [vmem:[#allocation2 + $0x34] sm:$0xf]  ;;  %v773_v32 = vor.u32 %v771_v59, %v770_v22  ;;  %v774_v34 = vrot.slane %v770_v22, 4  ;;  %v5983_v39 = vpack.c.bf16 %v578_v25, %v578_v25  ;;  %v5621_v46 = vld [vmem:[#allocation2 + $0x38] sm:$0x1] }
  0x59   : > { %v1964_v30 = vsel %vm6564_vm5, %v5470_v20, %v1963_v21  ;;  %v1965_v31 = vrot.slane %v1963_v21, 4  ;;  %v781_v37 = vor.u32 %v779_v12, %v778_v23  ;;  %v783_v38 = vrot.slane %v778_v23, 4  ;;  %v1290_v53 = vld [vmem:[#allocation2 + $0x10] sm:$0xf] }
  0x5a   : > { %v5984_v42 = vpack.c.bf16 %v579_v26, %v579_v26  ;;  %v1054_v45 = vsel %vm6633_vm2, %v773_v32, %v1053_v16  ;;  %v5661_v47 = vrot.slane %v5619_v27, 9  ;;  %v2987_v44 = vrot.slane %v5620_v28, 5  ;;  %v1295_v32 = vld [vmem:[#allocation2 + $0x24] sm:$0xf] }
  0x5b   : > { %v1967_v43 = vsel %vm6564_vm5, %v1965_v31, %v1966_v24  ;;  %v782_v51 = vsel %vm6625_vm13, %v774_v34, %v781_v37  ;;  %1055 = vst [vmem:[#allocation2 + $0x3c] sm:$0xf] %v1054_v45  ;;  %v1058_v54 = vsel %vm6641_vm3, %v783_v38, %v1057_v35  ;;  %v785_v55 = vshrl.u32 %v5983_v39, 16  ;;  %v1291_v24 = vld [vmem:[#allocation2 + $0x14] sm:$0x1] }
  0x5c   : > { %v5486_v49 = vcombine.low %v1964_v30, %v1967_v43  ;;  %1056 = vst.msk [vmem:[#allocation2 + $0x40] sm:$0xf] %vm299_vm0, %v782_v51  ;;  %1059 = vst [vmem:[#allocation2 + $0x44] sm:$0x1] %v1058_v54  ;;  %v788_v56 = vshll.u32 %v5983_v39, 16  ;;  %v793_v57 = vshrl.u32 %v5984_v42, 16  ;;  %v6784_v62 = vsel %vm6564_vm5, %v5661_v47, %v2987_v44 }
  0x5d   : > { %v796_v58 = vshll.u32 %v5984_v42, 16  ;;  %v787_v63 = vrot.slane %v785_v55, 7  ;;  %v2989_v52 = vrot.slane %v2987_v44, 4  ;;  %v2990_v6 = vrot.slane %v5621_v46, 5  ;;  %v1067_v45 = vld [vmem:[#allocation2 + $0x54] sm:$0xf] }
  0x5e   : > { %2101 = vrot.lane.b32.xlu0 %v5486_v49, %s6449_s11  ;;  %v478_v36 = vadd.f32 %v6585_v4, %v439_v8  ;;  %v795_v7 = vrot.slane %v793_v57, 7  ;;  %vm509_vm15 = vcmp.ge.f32.partialorder %v477_v29, 0.0  ;;  %v548_v48 = vmul.f32 %v6597_v33, %v477_v29  ;;  %v1071_v47 = vld [vmem:[#allocation2 + $0x5c] sm:$0x1]  ;;  %v6817_v54 = vld [vmem:[%s6574_s28 + $0x40] sm:$0xff]  }
  0x5f   : > { %v1365_v59 = vshll.u32 %v6735_v40, 16  ;;  %v790_v11 = vor.u32 %v788_v56, %v787_v63  ;;  %v791_v12 = vrot.slane %v787_v63, 4  ;;  %v6792_v14 = vsel %vm6564_vm5, %v2989_v52, %v2990_v6  ;;  %v1292_v63 = vld [vmem:[#allocation2 + $0x18] sm:$0xf] }
  0x60   : > { %vm510_vm4 = vcmp.ge.f32.partialorder %v478_v36, 0.0  ;;  %v798_v15 = vor.u32 %v796_v58, %v795_v7  ;;  %v800_v16 = vrot.slane %v795_v7, 4  ;;  %v5677_v17 = vcombine.low %v6784_v62, %v6792_v14  ;;  %v1297_v7 = vld [vmem:[#allocation2 + $0x2c] sm:$0x1] }
  0x61   : > { %v549_v4 = vmul.f32 %v6597_v33, %v478_v36  ;;  %v1061_v40 = vsel %vm6633_vm2, %v790_v11, %v1060_v60  ;;  %v580_v8 = vsel %vm509_vm15, %v477_v29, %v548_v48  ;;  %v1367_v18 = vrot.slane %v1365_v59, 5  ;;  %v1296_v60 = vld [vmem:[#allocation2 + $0x28] sm:$0xf] }
  0x62   : > { %3128 = vrot.lane.b32.xlu0 %v5676_v3, %s6449_s11  ;;  %v1371_v19 = vshll.u32 %v1290_v53, 16  ;;  %v1849_v20 = vld [vmem:[#allocation2 + $0x3c] sm:$0xe]  ;;  %v799_v21 = vsel %vm6625_vm13, %v791_v12, %v798_v15  ;;  %1062 = vst [vmem:[#allocation2 + $0x48] sm:$0xf] %v1061_v40  ;;  %v1065_v22 = vsel %vm6641_vm3, %v800_v16, %v1064_v0  ;;  %v5985_v23 = vpack.c.bf16 %v580_v8, %v580_v8 }
  0x63   : > { %v581_v33 = vsel %vm510_vm4, %v478_v36, %v549_v4  ;;  %v1850_v25 = vld [vmem:[#allocation2 + $0x40] sm:$0xf]  ;;  %v1851_v50 = vld [vmem:[#allocation2 + $0x44] sm:$0x1]  ;;  %v5471_v61 = vrot.slane %v1849_v20, 9  ;;  %v1368_v26 = vor.u32 %v1367_v18, %v6765_v9  ;;  %v1375_v38 = vshrl.u32 %v1290_v53, 16 }
  0x64   : > { %1063 = vst.msk [vmem:[#allocation2 + $0x4c] sm:$0xf] %vm299_vm0, %v799_v21  ;;  %1066 = vst [vmem:[#allocation2 + $0x50] sm:$0x1] %v1065_v22  ;;  %v5986_v3 = vpack.c.bf16 %v581_v33, %v581_v33  ;;  %v6809_v27 = vrot.slane %v1371_v19, 5  ;;  %v1970_v28 = vrot.slane %v1850_v25, 5  ;;  %v6071_v16 = vunpack.c.l.bf16 %v6817_v54 }
  0x65   : > { %v1973_v29 = vrot.slane %v1851_v50, 5  ;;  %v802_v30 = vshrl.u32 %v5985_v23, 16  ;;  %v805_v31 = vshll.u32 %v5985_v23, 16  ;;  %v1369_v37 = vrot.slane %v1368_v26, 4  ;;  %v1293_v33 = vld [vmem:[#allocation2 + $0x1c] sm:$0xf] }
  0x66   : > { %v810_v34 = vshrl.u32 %v5986_v3, 16  ;;  %v813_v35 = vshll.u32 %v5986_v3, 16  ;;  %v1971_v39 = vsel %vm6564_vm5, %v5471_v61, %v1970_v28  ;;  %v1972_v42 = vrot.slane %v1970_v28, 4  ;;  %v1294_v50 = vld [vmem:[#allocation2 + $0x20] sm:$0x1] }
  0x67   : > { %v804_v43 = vrot.slane %v802_v30, 7  ;;  %v1381_v46 = vshll.u32 %v1291_v24, 16  ;;  %v1374_v44 = vsel %vm6604_vm11, %v1369_v37, %v6809_v27  ;;  %v1377_v49 = vrot.slane %v1375_v38, 4 }
  0x68   : > { %v812_v9 = vrot.slane %v810_v34, 7  ;;  %v1410_v51 = vshrl.u32 %v1295_v32, 16  ;;  %v1974_v55 = vsel %vm6564_vm5, %v1972_v42, %v1973_v29  ;;  %v1413_v20 = vshll.u32 %v1295_v32, 16  ;;  %v5549_v29 = vld [vmem:[#allocation2 + $0x18] sm:$0xf] }
  0x69   : > { %v807_v56 = vor.u32 %v805_v31, %v804_v43  ;;  %v808_v57 = vrot.slane %v804_v43, 4  ;;  %v1383_v58 = vrot.slane %v1381_v46, 5  ;;  %v5487_v0 = vcombine.low %v1971_v39, %v1974_v55  ;;  %v1852_v52 = vld [vmem:[#allocation2 + $0x48] sm:$0xe] }
  0x6a   : > { %v815_v6 = vor.u32 %v813_v35, %v812_v9  ;;  %v817_v36 = vrot.slane %v812_v9, 4  ;;  %v1378_v53 = vor.u32 %v1377_v49, %v6809_v27  ;;  %v5472_v11 = vrot.slane %v1852_v52, 9  ;;  %v5550_v52 = vld [vmem:[#allocation2 + $0x1c] sm:$0xf] }
  0x6b   : > { %v1853_v48 = vld [vmem:[#allocation2 + $0x4c] sm:$0xf]  ;;  %v1854_v59 = vld [vmem:[#allocation2 + $0x50] sm:$0x1]  ;;  %v1068_v12 = vsel %vm6633_vm2, %v807_v56, %v1067_v45  ;;  %v1412_v15 = vrot.slane %v1410_v51, 4  ;;  %2103 = vrot.lane.b32.xlu1 %v5487_v0, %s6449_s11  ;;  %v1419_v21 = vshll.u32 %v1296_v60, 16  ;;  %v6072_v56 = vunpack.c.h.bf16 %v6817_v54 }
  0x6c   : > { %v1977_v4 = vrot.slane %v1853_v48, 5  ;;  %v1980_v40 = vrot.slane %v1854_v59, 5  ;;  %v816_v8 = vsel %vm6625_vm13, %v808_v57, %v815_v6  ;;  %1069 = vst [vmem:[#allocation2 + $0x54] sm:$0xf] %v1068_v12  ;;  %v1072_v18 = vsel %vm6641_vm3, %v817_v36, %v1071_v47  ;;  %v5551_v48 = vld [vmem:[#allocation2 + $0x20] sm:$0x1] }
  0x6d   : > { %1070 = vst.msk [vmem:[#allocation2 + $0x58] sm:$0xf] %vm299_vm0, %v816_v8  ;;  %1073 = vst [vmem:[#allocation2 + $0x5c] sm:$0x1] %v1072_v18  ;;  %v1379_v19 = vrot.slane %v1378_v53, 4  ;;  %v1423_v22 = vshrl.u32 %v1296_v60, 16  ;;  %v6844_v57 = vmul.f32 %v6071_v16, %v6579_v2 }
  0x6e   : > { %v1978_v23 = vsel %vm6564_vm5, %v5472_v11, %v1977_v4  ;;  %v1979_v24 = vrot.slane %v1977_v4, 4  ;;  %v1429_v25 = vshll.u32 %v1297_v7, 16  ;;  %v1386_v61 = vshrl.u32 %v1292_v63, 16  ;;  %v5546_v59 = vld [vmem:[#allocation2 + $0xc] sm:$0xf] }
  0x6f   : > { %v1384_v3 = vsel %vm6604_vm11, %v1379_v19, %v1383_v58  ;;  %v1415_v26 = vrot.slane %v1413_v20, 5  ;;  %v1421_v27 = vrot.slane %v1419_v21, 5  ;;  %v1425_v28 = vrot.slane %v1423_v22, 4  ;;  %3130 = vrot.lane.b32.xlu1 %v5677_v17, %s6449_s11  ;;  %v5547_v21 = vld [vmem:[#allocation2 + $0x10] sm:$0xf] }
  0x70   : > { %v1981_v30 = vsel %vm6564_vm5, %v1979_v24, %v1980_v40  ;;  %v5451_v31 = vcombine.low %v1374_v44, %v1384_v3  ;;  %v1431_v32 = vrot.slane %v1429_v25, 5  ;;  %v1388_v34 = vrot.slane %v1386_v61, 4 }
  0x71   : > { %v5488_v35 = vcombine.low %v1978_v23, %v1981_v30  ;;  %v1416_v37 = vor.u32 %v1415_v26, %v1412_v15  ;;  %v1426_v38 = vor.u32 %v1425_v28, %v1421_v27  ;;  %v1389_v39 = vshll.u32 %v1292_v63, 16  ;;  %v1301_v28 = vld [vmem:[#allocation2 + $0x3c] sm:$0xf] }
  0x72   : > { %v1395_v42 = vshll.u32 %v1293_v33, 16  ;;  %v1399_v43 = vshrl.u32 %v1293_v33, 16  ;;  %v1405_v45 = vshll.u32 %v1294_v50, 16  ;;  %v2397_v46 = vshrl.u32 %v5549_v29, 16  ;;  %v5548_v50 = vld [vmem:[#allocation2 + $0x14] sm:$0x1] }
  0x73   : > { %2105 = vrot.lane.b32.xlu0 %v5488_v35, %s6449_s11  ;;  %v1855_v9 = vld [vmem:[#allocation2 + $0x54] sm:$0xe]  ;;  %v1417_v47 = vrot.slane %v1416_v37, 4  ;;  %v1427_v49 = vrot.slane %v1426_v38, 4  ;;  %v1391_v51 = vrot.slane %v1389_v39, 5  ;;  %v2400_v55 = vshll.u32 %v5549_v29, 16 }
  0x74   : > { %v1856_v62 = vld [vmem:[#allocation2 + $0x58] sm:$0xf]  ;;  %v1857_v14 = vld [vmem:[#allocation2 + $0x5c] sm:$0x1]  ;;  %v5473_v17 = vrot.slane %v1855_v9, 9  ;;  %v1397_v44 = vrot.slane %v1395_v42, 5 }
  0x75   : > { %v1984_v58 = vrot.slane %v1856_v62, 5  ;;  %v1987_v60 = vrot.slane %v1857_v14, 5  ;;  %v1422_v63 = vsel %vm6604_vm11, %v1417_v47, %v1421_v27  ;;  %v1432_v0 = vsel %vm6604_vm11, %v1427_v49, %v1431_v32 }
  0x76   : > { %v5453_v6 = vcombine.low %v1422_v63, %v1432_v0  ;;  %v1392_v36 = vor.u32 %v1391_v51, %v1388_v34  ;;  %v1401_v53 = vrot.slane %v1399_v43, 4  ;;  %v1407_v7 = vrot.slane %v1405_v45, 5  ;;  %v1302_v34 = vld [vmem:[#allocation2 + $0x40] sm:$0xf] }
  0x77   : > { %v1985_v11 = vsel %vm6564_vm5, %v5473_v17, %v1984_v58  ;;  %v1986_v2 = vrot.slane %v1984_v58, 4  ;;  %1771 = vrot.lane.b32.xlu0 %v5451_v31, %s6450_s12  ;;  %v2399_v12 = vrot.slane %v2397_v46, 4  ;;  %v2402_v15 = vrot.slane %v2400_v55, 5  ;;  %v1303_v46 = vld [vmem:[#allocation2 + $0x44] sm:$0x1] }
  0x78   : > { %v1393_v16 = vrot.slane %v1392_v36, 4  ;;  %v1402_v4 = vor.u32 %v1401_v53, %v1397_v44  ;;  %v2406_v40 = vshll.u32 %v5550_v52, 16  ;;  %v2410_v8 = vshrl.u32 %v5550_v52, 16  ;;  %v1298_v58 = vld [vmem:[#allocation2 + $0x30] sm:$0xf] }
  0x79   : > { %v1988_v18 = vsel %vm6564_vm5, %v1986_v2, %v1987_v60  ;;  %v2403_v19 = vor.u32 %v2402_v15, %v2399_v12  ;;  %v2416_v20 = vshll.u32 %v5551_v48, 16  ;;  %v2373_v22 = vshrl.u32 %v5546_v59, 16  ;;  %v1299_v60 = vld [vmem:[#allocation2 + $0x34] sm:$0xf]  ;;  %v1300_v53 = vld [vmem:[#allocation2 + $0x38] sm:$0x1] }
  0x7a   : > { %v5489_v33 = vcombine.low %v1985_v11, %v1988_v18  ;;  %v1398_v23 = vsel %vm6604_vm11, %v1393_v16, %v1397_v44  ;;  %v1403_v24 = vrot.slane %v1402_v4, 4  ;;  %v2408_v25 = vrot.slane %v2406_v40, 5  ;;  %v5555_v2 = vld [vmem:[#allocation2 + $0x30] sm:$0xf]  ;;  %v5556_v4 = vld [vmem:[#allocation2 + $0x34] sm:$0xf] }
  0x7b   : > { %v2404_v61 = vrot.slane %v2403_v19, 4  ;;  %v2412_v3 = vrot.slane %v2410_v8, 4  ;;  %v2418_v26 = vrot.slane %v2416_v20, 5  ;;  %v2375_v27 = vrot.slane %v2373_v22, 4 }
  0x7c   : > { %2107 = vrot.lane.b32.xlu1 %v5489_v33, %s6449_s11  ;;  %v1408_v29 = vsel %vm6604_vm11, %v1403_v24, %v1407_v7  ;;  %v2376_v30 = vshll.u32 %v5546_v59, 16  ;;  %v2382_v31 = vshll.u32 %v5547_v21, 16  ;;  %v2386_v32 = vshrl.u32 %v5547_v21, 16 }
  0x7d   : > { %v5452_v35 = vcombine.low %v1398_v23, %v1408_v29  ;;  %v2409_v37 = vsel %vm6604_vm11, %v2404_v61, %v2408_v25  ;;  %v2413_v38 = vor.u32 %v2412_v3, %v2408_v25  ;;  %v2392_v39 = vshll.u32 %v5548_v50, 16  ;;  %v5557_v23 = vld [vmem:[#allocation2 + $0x38] sm:$0x1]  ;;  %v5552_v3 = vld [vmem:[#allocation2 + $0x24] sm:$0xf] }
  0x7e   : > { %v2378_v42 = vrot.slane %v2376_v30, 5  ;;  %v2384_v43 = vrot.slane %v2382_v31, 5  ;;  %v2388_v45 = vrot.slane %v2386_v32, 4  ;;  %v1458_v9 = vshrl.u32 %v1301_v28, 16  ;;  %v5553_v30 = vld [vmem:[#allocation2 + $0x28] sm:$0xf] }
  0x7f   : > { %1773 = vrot.lane.b32.xlu0 %v5452_v35, %s6450_s12  ;;  %v2414_v47 = vrot.slane %v2413_v38, 4  ;;  %v2394_v49 = vrot.slane %v2392_v39, 5  ;;  %v1461_v51 = vshll.u32 %v1301_v28, 16  ;;  %v1467_v55 = vshll.u32 %v1302_v34, 16 }
  0x80   : > { %1775 = vrot.lane.b32.xlu1 %v5453_v6, %s6450_s12  ;;  %v2379_v62 = vor.u32 %v2378_v42, %v2375_v27  ;;  %v2389_v14 = vor.u32 %v2388_v45, %v2384_v43  ;;  %v1460_v17 = vrot.slane %v1458_v9, 4  ;;  %v1471_v44 = vshrl.u32 %v1302_v34, 16 }
  0x81   : > { %v2419_v63 = vsel %vm6604_vm11, %v2414_v47, %v2418_v26  ;;  %v1463_v0 = vrot.slane %v1461_v51, 5  ;;  %v1469_v52 = vrot.slane %v1467_v55, 5  ;;  %v1477_v36 = vshll.u32 %v1303_v46, 16  ;;  %v5554_v47 = vld [vmem:[#allocation2 + $0x2c] sm:$0x1] }
  0x82   : > { %v5595_v7 = vcombine.low %v2409_v37, %v2419_v63  ;;  %v2380_v48 = vrot.slane %v2379_v62, 4  ;;  %v2390_v59 = vrot.slane %v2389_v14, 4  ;;  %v1473_v11 = vrot.slane %v1471_v44, 4  ;;  %v1307_v14 = vld [vmem:[#allocation2 + $0x54] sm:$0xf] }
  0x83   : > { %v1464_v12 = vor.u32 %v1463_v0, %v1460_v17  ;;  %v1479_v6 = vrot.slane %v1477_v36, 5  ;;  %v1434_v15 = vshrl.u32 %v1298_v58, 16  ;;  %v1437_v16 = vshll.u32 %v1298_v58, 16  ;;  %v1308_v63 = vld [vmem:[#allocation2 + $0x58] sm:$0xf] }
  0x84   : > { %2806 = vrot.lane.b32.xlu1 %v5595_v7, %s6450_s12  ;;  %v2385_v40 = vsel %vm6604_vm11, %v2380_v48, %v2384_v43  ;;  %v2395_v8 = vsel %vm6604_vm11, %v2390_v59, %v2394_v49  ;;  %v1474_v18 = vor.u32 %v1473_v11, %v1469_v52  ;;  %v1443_v19 = vshll.u32 %v1299_v60, 16 }
  0x85   : > { %v5594_v20 = vcombine.low %v2385_v40, %v2395_v8  ;;  %v1465_v21 = vrot.slane %v1464_v12, 4  ;;  %v1436_v22 = vrot.slane %v1434_v15, 4  ;;  %v1439_v33 = vrot.slane %v1437_v16, 5 }
  0x86   : > { %v1475_v24 = vrot.slane %v1474_v18, 4  ;;  %v1445_v25 = vrot.slane %v1443_v19, 5  ;;  %v1447_v50 = vshrl.u32 %v1299_v60, 16  ;;  %v1453_v61 = vshll.u32 %v1300_v53, 16 }
  0x87   : > { %2804 = vrot.lane.b32.xlu0 %v5594_v20, %s6450_s12  ;;  %v1470_v26 = vsel %vm6604_vm11, %v1465_v21, %v1469_v52  ;;  %v1440_v27 = vor.u32 %v1439_v33, %v1436_v22  ;;  %v2445_v28 = vshrl.u32 %v5555_v2, 16  ;;  %v2448_v29 = vshll.u32 %v5555_v2, 16  ;;  %v1309_v2 = vld [vmem:[#allocation2 + $0x5c] sm:$0x1]  ;;  %v1305_v20 = vld [vmem:[#allocation2 + $0x4c] sm:$0xf] }
  0x88   : > { %v1480_v31 = vsel %vm6604_vm11, %v1475_v24, %v1479_v6  ;;  %v1449_v32 = vrot.slane %v1447_v50, 4  ;;  %v1455_v34 = vrot.slane %v1453_v61, 5  ;;  %v2454_v35 = vshll.u32 %v5556_v4, 16 }
  0x89   : > { %v5455_v37 = vcombine.low %v1470_v26, %v1480_v31  ;;  %v1441_v38 = vrot.slane %v1440_v27, 4  ;;  %v2447_v39 = vrot.slane %v2445_v28, 4  ;;  %v2450_v42 = vrot.slane %v2448_v29, 5 }
  0x8a   : > { %v1450_v43 = vor.u32 %v1449_v32, %v1445_v25  ;;  %v2456_v45 = vrot.slane %v2454_v35, 5  ;;  %v2458_v46 = vshrl.u32 %v5556_v4, 16  ;;  %v2464_v9 = vshll.u32 %v5557_v23, 16  ;;  %v1304_v4 = vld [vmem:[#allocation2 + $0x48] sm:$0xf] }
  0x8b   : > { %1779 = vrot.lane.b32.xlu1 %v5455_v37, %s6450_s12  ;;  %v1446_v49 = vsel %vm6604_vm11, %v1441_v38, %v1445_v25  ;;  %v2451_v51 = vor.u32 %v2450_v42, %v2447_v39  ;;  %v2421_v55 = vshrl.u32 %v5552_v3, 16  ;;  %v2424_v62 = vshll.u32 %v5552_v3, 16  ;;  %v1306_v3 = vld [vmem:[#allocation2 + $0x50] sm:$0x1]  ;;  %v5562_v37 = vld [vmem:[#allocation2 + $0x4c] sm:$0xf] }
  0x8c   : > { %v1451_v17 = vrot.slane %v1450_v43, 4  ;;  %v2460_v44 = vrot.slane %v2458_v46, 4  ;;  %v2466_v58 = vrot.slane %v2464_v9, 5  ;;  %v2430_v60 = vshll.u32 %v5553_v30, 16 }
  0x8d   : > { %v2452_v0 = vrot.slane %v2451_v51, 4  ;;  %v2423_v52 = vrot.slane %v2421_v55, 4  ;;  %v2426_v36 = vrot.slane %v2424_v62, 5  ;;  %v2434_v53 = vshrl.u32 %v5553_v30, 16  ;;  %v5561_v30 = vld [vmem:[#allocation2 + $0x48] sm:$0xf] }
  0x8e   : > { %v1456_v7 = vsel %vm6604_vm11, %v1451_v17, %v1455_v34  ;;  %v2461_v48 = vor.u32 %v2460_v44, %v2456_v45  ;;  %v2432_v59 = vrot.slane %v2430_v60, 5  ;;  %v2440_v11 = vshll.u32 %v5554_v47, 16 }
  0x8f   : > { %v5454_v12 = vcombine.low %v1446_v49, %v1456_v7  ;;  %v2457_v6 = vsel %vm6604_vm11, %v2452_v0, %v2456_v45  ;;  %v2427_v15 = vor.u32 %v2426_v36, %v2423_v52  ;;  %v2436_v16 = vrot.slane %v2434_v53, 4  ;;  %v5563_v52 = vld [vmem:[#allocation2 + $0x50] sm:$0x1]  ;;  %v5558_v53 = vld [vmem:[#allocation2 + $0x3c] sm:$0xf] }
  0x90   : > { %v2462_v40 = vrot.slane %v2461_v48, 4  ;;  %v2442_v8 = vrot.slane %v2440_v11, 5  ;;  %v1506_v18 = vshrl.u32 %v1307_v14, 16  ;;  %v1509_v19 = vshll.u32 %v1307_v14, 16 }
  0x91   : > { %1777 = vrot.lane.b32.xlu0 %v5454_v12, %s6450_s12  ;;  %v2428_v21 = vrot.slane %v2427_v15, 4  ;;  %v2437_v22 = vor.u32 %v2436_v16, %v2432_v59  ;;  %v1515_v33 = vshll.u32 %v1308_v63, 16  ;;  %v1519_v23 = vshrl.u32 %v1308_v63, 16 }
  0x92   : > { %v2467_v24 = vsel %vm6604_vm11, %v2462_v40, %v2466_v58  ;;  %v1508_v25 = vrot.slane %v1506_v18, 4  ;;  %v1511_v50 = vrot.slane %v1509_v19, 5  ;;  %v1525_v61 = vshll.u32 %v1309_v2, 16  ;;  %v5559_v2 = vld [vmem:[#allocation2 + $0x40] sm:$0xf] }
  0x93   : > { %v5597_v26 = vcombine.low %v2457_v6, %v2467_v24  ;;  %v2433_v27 = vsel %vm6604_vm11, %v2428_v21, %v2432_v59  ;;  %v2438_v28 = vrot.slane %v2437_v22, 4  ;;  %v1517_v29 = vrot.slane %v1515_v33, 5  ;;  %v5560_v18 = vld [vmem:[#allocation2 + $0x44] sm:$0x1]  ;;  %v5622_v24 = vld [vmem:[#allocation2 + $0x3c] sm:$0xe] }
  0x94   : > { %v1512_v31 = vor.u32 %v1511_v50, %v1508_v25  ;;  %v1521_v32 = vrot.slane %v1519_v23, 4  ;;  %v1527_v34 = vrot.slane %v1525_v61, 5  ;;  %v1482_v35 = vshrl.u32 %v1304_v4, 16  ;;  %v5625_v23 = vld [vmem:[#allocation2 + $0x48] sm:$0xe] }
  0x95   : > { %2810 = vrot.lane.b32.xlu1 %v5597_v26, %s6450_s12  ;;  %v2443_v38 = vsel %vm6604_vm11, %v2438_v28, %v2442_v8  ;;  %v1485_v39 = vshll.u32 %v1304_v4, 16  ;;  %v1491_v42 = vshll.u32 %v1305_v20, 16  ;;  %v1495_v43 = vshrl.u32 %v1305_v20, 16  ;;  %v5626_v26 = vld [vmem:[#allocation2 + $0x4c] sm:$0xf] }
  0x96   : > { %v5596_v45 = vcombine.low %v2433_v27, %v2443_v38  ;;  %v1513_v46 = vrot.slane %v1512_v31, 4  ;;  %v1522_v9 = vor.u32 %v1521_v32, %v1517_v29  ;;  %v1484_v47 = vrot.slane %v1482_v35, 4  ;;  %v5627_v27 = vld [vmem:[#allocation2 + $0x50] sm:$0x1]  ;;  %v5623_v32 = vld [vmem:[#allocation2 + $0x40] sm:$0xf] }
  0x97   : > { %v1487_v49 = vrot.slane %v1485_v39, 5  ;;  %v1493_v51 = vrot.slane %v1491_v42, 5  ;;  %v1497_v55 = vrot.slane %v1495_v43, 4  ;;  %v1501_v62 = vshll.u32 %v1306_v3, 16 }
  0x98   : > { %2808 = vrot.lane.b32.xlu0 %v5596_v45, %s6450_s12  ;;  %v1518_v14 = vsel %vm6604_vm11, %v1513_v46, %v1517_v29  ;;  %v1523_v17 = vrot.slane %v1522_v9, 4  ;;  %v2493_v44 = vshrl.u32 %v5561_v30, 16  ;;  %v2496_v58 = vshll.u32 %v5561_v30, 16  ;;  %v5624_v46 = vld [vmem:[#allocation2 + $0x44] sm:$0x1] }
  0x99   : > { %v1488_v60 = vor.u32 %v1487_v49, %v1484_v47  ;;  %v1498_v63 = vor.u32 %v1497_v55, %v1493_v51  ;;  %v1503_v0 = vrot.slane %v1501_v62, 5  ;;  %v2502_v36 = vshll.u32 %v5562_v37, 16 }
  0x9a   : > { %v1528_v7 = vsel %vm6604_vm11, %v1523_v17, %v1527_v34  ;;  %v2495_v48 = vrot.slane %v2493_v44, 4  ;;  %v2498_v59 = vrot.slane %v2496_v58, 5  ;;  %v2506_v11 = vshrl.u32 %v5562_v37, 16  ;;  %v6107_v44 = vld [vmem:[%s6574_s28 + $0x38] sm:$0xff]  }
  0x9b   : > { %v5457_v12 = vcombine.low %v1518_v14, %v1528_v7  ;;  %v1489_v6 = vrot.slane %v1488_v60, 4  ;;  %v1499_v15 = vrot.slane %v1498_v63, 4  ;;  %v2504_v16 = vrot.slane %v2502_v36, 5 }
  0x9c   : > { %v2499_v4 = vor.u32 %v2498_v59, %v2495_v48  ;;  %v2508_v40 = vrot.slane %v2506_v11, 4  ;;  %v2512_v8 = vshll.u32 %v5563_v52, 16  ;;  %v2469_v19 = vshrl.u32 %v5558_v53, 16  ;;  %v6925_v48 = vld [vmem:[%s8288_s2] ss:$0 sm:$0xff] }
  0x9d   : > { %1783 = vrot.lane.b32.xlu1 %v5457_v12, %s6450_s12  ;;  %v1494_v20 = vsel %vm6604_vm11, %v1489_v6, %v1493_v51  ;;  %v1504_v21 = vsel %vm6604_vm11, %v1499_v15, %v1503_v0  ;;  %v2472_v22 = vshll.u32 %v5558_v53, 16  ;;  %v2478_v33 = vshll.u32 %v5559_v2, 16  ;;  %v6917_v53 = vld [vmem:[%s8287_s1] ss:$0 sm:$0xff]  ;;  %v5564_v15 = vld [vmem:[#allocation2 + $0x54] sm:$0xf] }
  0x9e   : > { %v5456_v25 = vcombine.low %v1494_v20, %v1504_v21  ;;  %v2500_v50 = vrot.slane %v2499_v4, 4  ;;  %v2509_v61 = vor.u32 %v2508_v40, %v2504_v16  ;;  %v2514_v3 = vrot.slane %v2512_v8, 5  ;;  %v5565_v40 = vld [vmem:[#allocation2 + $0x58] sm:$0xf] }
  0x9f   : > { %v2471_v28 = vrot.slane %v2469_v19, 4  ;;  %v2474_v29 = vrot.slane %v2472_v22, 5  ;;  %v2480_v30 = vrot.slane %v2478_v33, 5  ;;  %v2482_v31 = vshrl.u32 %v5559_v2, 16 }
  0xa0   : > { %1781 = vrot.lane.b32.xlu0 %v5456_v25, %s6450_s12  ;;  %v2505_v34 = vsel %vm6604_vm11, %v2500_v50, %v2504_v16  ;;  %v2510_v35 = vrot.slane %v2509_v61, 4  ;;  %v2488_v37 = vshll.u32 %v5560_v18, 16  ;;  %v5663_v38 = vrot.slane %v5625_v23, 9 }
  0xa1   : > { %v2475_v39 = vor.u32 %v2474_v29, %v2471_v28  ;;  %v2484_v42 = vrot.slane %v2482_v31, 4  ;;  %v3001_v43 = vrot.slane %v5626_v26, 5  ;;  %v3004_v45 = vrot.slane %v5627_v27, 5 }
  0xa2   : > { %v2515_v9 = vsel %vm6604_vm11, %v2510_v35, %v2514_v3  ;;  %v2490_v47 = vrot.slane %v2488_v37, 5  ;;  %v5662_v49 = vrot.slane %v5622_v24, 9  ;;  %v2994_v51 = vrot.slane %v5623_v32, 5 }
  0xa3   : > { %v5599_v55 = vcombine.low %v2505_v34, %v2515_v9  ;;  %v2476_v62 = vrot.slane %v2475_v39, 4  ;;  %v2485_v14 = vor.u32 %v2484_v42, %v2480_v30  ;;  %v3002_v17 = vsel %vm6564_vm5, %v5663_v38, %v3001_v43  ;;  %v1081_v42 = vld [vmem:[#allocation2 + $0x6c] sm:$0xf] }
  0xa4   : > { %v3003_v58 = vrot.slane %v3001_v43, 4  ;;  %v2995_v60 = vsel %vm6564_vm5, %v5662_v49, %v2994_v51  ;;  %v2996_v63 = vrot.slane %v2994_v51, 4  ;;  %v2997_v0 = vrot.slane %v5624_v46, 5 }
  0xa5   : > { %2814 = vrot.lane.b32.xlu1 %v5599_v55, %s6450_s12  ;;  %v2481_v52 = vsel %vm6604_vm11, %v2476_v62, %v2480_v30  ;;  %v2486_v36 = vrot.slane %v2485_v14, 4  ;;  %v443_v7 = vmul.f32 %v6917_v53, %v6072_v56  ;;  %v481_v59 = vadd.f32 %v6925_v48, %v6844_v57  ;;  %v6939_v57 = vld [vmem:[%s8289_s3] ss:$0 sm:$0xff] }
  0xa6   : > { %v3005_v11 = vsel %vm6564_vm5, %v3003_v58, %v3004_v45  ;;  %v2998_v2 = vsel %vm6564_vm5, %v2996_v63, %v2997_v0  ;;  %v6067_v12 = vunpack.c.l.bf16 %v6107_v44  ;;  %v6068_v6 = vunpack.c.h.bf16 %v6107_v44  ;;  %v5566_v58 = vld [vmem:[#allocation2 + $0x5c] sm:$0x1] }
  0xa7   : > { %v2491_v54 = vsel %vm6604_vm11, %v2486_v36, %v2490_v47  ;;  %v5679_v56 = vcombine.low %v3002_v17, %v3005_v11  ;;  %v5678_v16 = vcombine.low %v2995_v60, %v2998_v2  ;;  %v482_v4 = vadd.f32 %v6925_v48, %v443_v7  ;;  %v1085_v47 = vld [vmem:[#allocation2 + $0x74] sm:$0x1]  ;;  %v5628_v36 = vld [vmem:[#allocation2 + $0x54] sm:$0xe] }
  0xa8   : > { %v5598_v8 = vcombine.low %v2481_v52, %v2491_v54  ;;  %vm513_vm6 = vcmp.ge.f32.partialorder %v481_v59, 0.0  ;;  %v552_v18 = vmul.f32 %v6939_v57, %v481_v59  ;;  %v440_v19 = vmul.f32 %v6917_v53, %v6067_v12  ;;  %v5629_v12 = vld [vmem:[#allocation2 + $0x58] sm:$0xf] }
  0xa9   : > { %3134 = vrot.lane.b32.xlu1 %v5679_v56, %s6449_s11  ;;  %vm514_vm7 = vcmp.ge.f32.partialorder %v482_v4, 0.0  ;;  %v553_v20 = vmul.f32 %v6939_v57, %v482_v4  ;;  %v441_v21 = vmul.f32 %v6917_v53, %v6068_v6  ;;  %v2517_v22 = vshrl.u32 %v5564_v15, 16  ;;  %v6110_v6 = vld [vmem:[%s6574_s28 + $0x50] sm:$0xff]  }
  0xaa   : > { %2812 = vrot.lane.b32.xlu0 %v5598_v8, %s6450_s12  ;;  %v584_v33 = vsel %vm513_vm6, %v481_v59, %v552_v18  ;;  %v479_v23 = vadd.f32 %v6925_v48, %v440_v19  ;;  %v2520_v24 = vshll.u32 %v5564_v15, 16  ;;  %v2526_v25 = vshll.u32 %v5565_v40, 16  ;;  %v1078_v19 = vld [vmem:[#allocation2 + $0x68] sm:$0x1] }
  0xab   : > { %v585_v50 = vsel %vm514_vm7, %v482_v4, %v553_v20  ;;  %v5989_v61 = vpack.c.bf16 %v584_v33, %v584_v33  ;;  %v480_v3 = vadd.f32 %v6925_v48, %v441_v21  ;;  %v2519_v26 = vrot.slane %v2517_v22, 4 }
  0xac   : > { %v5990_v27 = vpack.c.bf16 %v585_v50, %v585_v50  ;;  %vm511_vm8 = vcmp.ge.f32.partialorder %v479_v23, 0.0  ;;  %v550_v28 = vmul.f32 %v6939_v57, %v479_v23  ;;  %v2522_v29 = vrot.slane %v2520_v24, 5 }
  0xad   : > { %v836_v30 = vshrl.u32 %v5989_v61, 16  ;;  %v839_v31 = vshll.u32 %v5989_v61, 16  ;;  %vm512_vm9 = vcmp.ge.f32.partialorder %v480_v3, 0.0  ;;  %v551_v32 = vmul.f32 %v6939_v57, %v480_v3 }
  0xae   : > { %3132 = vrot.lane.b32.xlu0 %v5678_v16, %s6449_s11  ;;  %v844_v34 = vshrl.u32 %v5990_v27, 16  ;;  %v847_v35 = vshll.u32 %v5990_v27, 16  ;;  %v582_v37 = vsel %vm511_vm8, %v479_v23, %v550_v28  ;;  %v2523_v38 = vor.u32 %v2522_v29, %v2519_v26  ;;  %v1074_v16 = vld [vmem:[#allocation2 + $0x60] sm:$0xf]  ;;  %v6965_v27 = vld [vmem:[#allocation2 + $0x18] sm:$0xf] }
  0xaf   : > { %v838_v39 = vrot.slane %v836_v30, 7  ;;  %v583_v43 = vsel %vm512_vm9, %v480_v3, %v551_v32  ;;  %v5987_v45 = vpack.c.bf16 %v582_v37, %v582_v37  ;;  %v2528_v46 = vrot.slane %v2526_v25, 5  ;;  %v6109_v25 = vld [vmem:[%s6574_s28 + $0x48] sm:$0xff]  }
  0xb0   : > { %v846_v9 = vrot.slane %v844_v34, 7  ;;  %v5988_v49 = vpack.c.bf16 %v583_v43, %v583_v43  ;;  %v2524_v51 = vrot.slane %v2523_v38, 4  ;;  %v2530_v55 = vshrl.u32 %v5565_v40, 16  ;;  %v5630_v40 = vld [vmem:[#allocation2 + $0x5c] sm:$0x1]  ;;  %v6980_v38 = vld [vmem:[%s6574_s28 + $0x60] sm:$0xff]  }
  0xb1   : > { %v841_v62 = vor.u32 %v839_v31, %v838_v39  ;;  %v842_v14 = vrot.slane %v838_v39, 4  ;;  %v819_v17 = vshrl.u32 %v5987_v45, 16  ;;  %v822_v44 = vshll.u32 %v5987_v45, 16 }
  0xb2   : > { %v849_v60 = vor.u32 %v847_v35, %v846_v9  ;;  %v851_v63 = vrot.slane %v846_v9, 4  ;;  %v827_v0 = vshrl.u32 %v5988_v49, 16  ;;  %v830_v52 = vshll.u32 %v5988_v49, 16 }
  0xb3   : > { %v1082_v7 = vsel %vm6633_vm2, %v841_v62, %v1081_v42  ;;  %v821_v59 = vrot.slane %v819_v17, 7  ;;  %v2529_v11 = vsel %vm6604_vm11, %v2524_v51, %v2528_v46  ;;  %v2532_v2 = vrot.slane %v2530_v55, 4 }
  0xb4   : > { %v850_v15 = vsel %vm6625_vm13, %v842_v14, %v849_v60  ;;  %1083 = vst [vmem:[#allocation2 + $0x6c] sm:$0xf] %v1082_v7  ;;  %v1086_v54 = vsel %vm6641_vm3, %v851_v63, %v1085_v47  ;;  %v829_v56 = vrot.slane %v827_v0, 7  ;;  %v2536_v4 = vshll.u32 %v5566_v58, 16 }
  0xb5   : > { %1084 = vst.msk [vmem:[#allocation2 + $0x70] sm:$0xf] %vm299_vm0, %v850_v15  ;;  %1087 = vst [vmem:[#allocation2 + $0x74] sm:$0x1] %v1086_v54  ;;  %v824_v8 = vor.u32 %v822_v44, %v821_v59  ;;  %v825_v18 = vrot.slane %v821_v59, 4  ;;  %v2533_v20 = vor.u32 %v2532_v2, %v2528_v46  ;;  %v5664_v21 = vrot.slane %v5628_v36, 9 }
  0xb6   : > { %v832_v22 = vor.u32 %v830_v52, %v829_v56  ;;  %v834_v33 = vrot.slane %v829_v56, 4  ;;  %v2538_v23 = vrot.slane %v2536_v4, 5  ;;  %v3008_v24 = vrot.slane %v5629_v12, 5 }
  0xb7   : > { %v1075_v50 = vsel %vm6633_vm2, %v824_v8, %v1074_v16  ;;  %v2534_v61 = vrot.slane %v2533_v20, 4  ;;  %v3011_v3 = vrot.slane %v5630_v40, 5  ;;  %v6079_v26 = vunpack.c.l.bf16 %v6110_v6 }
  0xb8   : > { %v833_v28 = vsel %vm6625_vm13, %v825_v18, %v832_v22  ;;  %1076 = vst [vmem:[#allocation2 + $0x60] sm:$0xf] %v1075_v50  ;;  %v1079_v29 = vsel %vm6641_vm3, %v834_v33, %v1078_v19  ;;  %v6973_v30 = vsel %vm6564_vm5, %v5664_v21, %v3008_v24  ;;  %v3010_v31 = vrot.slane %v3008_v24, 4 }
  0xb9   : > { %1077 = vst.msk [vmem:[#allocation2 + $0x64] sm:$0xf] %vm299_vm0, %v833_v28  ;;  %1080 = vst [vmem:[#allocation2 + $0x68] sm:$0x1] %v1079_v29  ;;  %v2539_v32 = vsel %vm6604_vm11, %v2534_v61, %v2538_v23  ;;  %v6080_v34 = vunpack.c.h.bf16 %v6110_v6  ;;  %v446_v35 = vmul.f32 %v6917_v53, %v6079_v26  ;;  %v6075_v37 = vunpack.c.l.bf16 %v6109_v25 }
  0xba   : > { %v6982_v39 = vcombine.low %v2529_v11, %v2539_v32  ;;  %v6986_v42 = vsel %vm6564_vm5, %v3010_v31, %v3011_v3  ;;  %v6076_v43 = vunpack.c.h.bf16 %v6109_v25  ;;  %v3840_v45 = vshrl.u32 %v6965_v27, 16 }
  0xbb   : > { %v1313_v46 = vld [vmem:[#allocation2 + $0x6c] sm:$0xf]  ;;  %v5680_v47 = vcombine.low %v6973_v30, %v6986_v42  ;;  %v447_v49 = vmul.f32 %v6917_v53, %v6080_v34  ;;  %v6993_v51 = vadd.f32 %v6925_v48, %v446_v35  ;;  %v6996_v55 = vmul.f32 %v6917_v53, %v6075_v37 }
  0xbc   : > { %v1861_v9 = vld [vmem:[#allocation2 + $0x6c] sm:$0xe]  ;;  %v1314_v62 = vld [vmem:[#allocation2 + $0x70] sm:$0xf]  ;;  %v1315_v14 = vld [vmem:[#allocation2 + $0x74] sm:$0x1]  ;;  %v6999_v58 = vmul.f32 %v6917_v53, %v6076_v43  ;;  %v6087_v60 = vunpack.c.l.bf16 %v6980_v38 }
  0xbd   : > { %v1554_v17 = vshrl.u32 %v1313_v46, 16  ;;  %v1557_v44 = vshll.u32 %v1313_v46, 16  ;;  %v1563_v63 = vshll.u32 %v1314_v62, 16  ;;  %v1567_v0 = vshrl.u32 %v1314_v62, 16  ;;  %v1862_v36 = vld [vmem:[#allocation2 + $0x70] sm:$0xf] }
  0xbe   : > { %v1573_v52 = vshll.u32 %v1315_v14, 16  ;;  %v5475_v7 = vrot.slane %v1861_v9, 9  ;;  %v1863_v2 = vld [vmem:[#allocation2 + $0x74] sm:$0x1]  ;;  %v1998_v12 = vrot.slane %v1862_v36, 5  ;;  %v7003_v6 = vadd.f32 %v6925_v48, %v447_v49 }
  0xbf   : > { %v1556_v59 = vrot.slane %v1554_v17, 4  ;;  %v1559_v11 = vrot.slane %v1557_v44, 5  ;;  %v1565_v15 = vrot.slane %v1563_v63, 5  ;;  %v1569_v54 = vrot.slane %v1567_v0, 4  ;;  %v1310_v16 = vld [vmem:[#allocation2 + $0x60] sm:$0xf] }
  0xc0   : > { %v1575_v56 = vrot.slane %v1573_v52, 5  ;;  %v2001_v4 = vrot.slane %v1863_v2, 5  ;;  %v1311_v8 = vld [vmem:[#allocation2 + $0x64] sm:$0xf]  ;;  %v1312_v18 = vld [vmem:[#allocation2 + $0x68] sm:$0x1]  ;;  %v1999_v21 = vsel %vm6564_vm5, %v5475_v7, %v1998_v12 }
  0xc1   : > { %v1560_v40 = vor.u32 %v1559_v11, %v1556_v59  ;;  %v1530_v19 = vshrl.u32 %v1310_v16, 16  ;;  %v1533_v20 = vshll.u32 %v1310_v16, 16  ;;  %v1570_v22 = vor.u32 %v1569_v54, %v1565_v15  ;;  %v1858_v25 = vld [vmem:[#allocation2 + $0x60] sm:$0xe]  ;;  %v1859_v28 = vld [vmem:[#allocation2 + $0x64] sm:$0xf] }
  0xc2   : > { %v1539_v33 = vshll.u32 %v1311_v8, 16  ;;  %v1543_v23 = vshrl.u32 %v1311_v8, 16  ;;  %v1549_v24 = vshll.u32 %v1312_v18, 16  ;;  %v2000_v26 = vrot.slane %v1998_v12, 4  ;;  %v1860_v35 = vld [vmem:[#allocation2 + $0x68] sm:$0x1] }
  0xc3   : > { %v1561_v50 = vrot.slane %v1560_v40, 4  ;;  %v1532_v61 = vrot.slane %v1530_v19, 4  ;;  %v1535_v3 = vrot.slane %v1533_v20, 5  ;;  %v1571_v29 = vrot.slane %v1570_v22, 4  ;;  %v5567_v49 = vld [vmem:[#allocation2 + $0x60] sm:$0xf] }
  0xc4   : > { %v1541_v31 = vrot.slane %v1539_v33, 5  ;;  %v1545_v32 = vrot.slane %v1543_v23, 4  ;;  %v1551_v34 = vrot.slane %v1549_v24, 5  ;;  %v2002_v46 = vsel %vm6564_vm5, %v2000_v26, %v2001_v4  ;;  %v5568_v63 = vld [vmem:[#allocation2 + $0x64] sm:$0xf] }
  0xc5   : > { %v1566_v37 = vsel %vm6604_vm11, %v1561_v50, %v1565_v15  ;;  %v1536_v43 = vor.u32 %v1535_v3, %v1532_v61  ;;  %v5474_v9 = vrot.slane %v1858_v25, 9  ;;  %v1576_v62 = vsel %vm6604_vm11, %v1571_v29, %v1575_v56  ;;  %v5569_v7 = vld [vmem:[#allocation2 + $0x68] sm:$0x1]  ;;  %v5631_v54 = vld [vmem:[#allocation2 + $0x60] sm:$0xe] }
  0xc6   : > { %v1546_v14 = vor.u32 %v1545_v32, %v1541_v31  ;;  %v5491_v17 = vcombine.low %v1999_v21, %v2002_v46  ;;  %v1991_v44 = vrot.slane %v1859_v28, 5  ;;  %v5459_v0 = vcombine.low %v1566_v37, %v1576_v62  ;;  %v5632_v8 = vld [vmem:[#allocation2 + $0x64] sm:$0xf]  ;;  %v5633_v22 = vld [vmem:[#allocation2 + $0x68] sm:$0x1] }
  0xc7   : > { %v1537_v52 = vrot.slane %v1536_v43, 4  ;;  %v1994_v36 = vrot.slane %v1860_v35, 5  ;;  %v2541_v59 = vshrl.u32 %v5567_v49, 16  ;;  %v2544_v15 = vshll.u32 %v5567_v49, 16  ;;  %v5775_v49 = vld [vmem:[#allocation2 + $0x1c] sm:$0xf] }
  0xc8   : > { %v1547_v11 = vrot.slane %v1546_v14, 4  ;;  %v1992_v2 = vsel %vm6564_vm5, %v5474_v9, %v1991_v44  ;;  %v1993_v12 = vrot.slane %v1991_v44, 4  ;;  %1787 = vrot.lane.b32.xlu1 %v5459_v0, %s6450_s12  ;;  %v2550_v4 = vshll.u32 %v5568_v63, 16 }
  0xc9   : > { %v1542_v56 = vsel %vm6604_vm11, %v1537_v52, %v1541_v31  ;;  %v2543_v16 = vrot.slane %v2541_v59, 4  ;;  %v2554_v40 = vshrl.u32 %v5568_v63, 16  ;;  %v2546_v20 = vrot.slane %v2544_v15, 5 }
  0xca   : > { %v1552_v18 = vsel %vm6604_vm11, %v1547_v11, %v1551_v34  ;;  %v1995_v19 = vsel %vm6564_vm5, %v1993_v12, %v1994_v36  ;;  %v2560_v21 = vshll.u32 %v5569_v7, 16  ;;  %v2552_v24 = vrot.slane %v2550_v4, 5 }
  0xcb   : > { %v5458_v33 = vcombine.low %v1542_v56, %v1552_v18  ;;  %v5490_v23 = vcombine.low %v1992_v2, %v1995_v19  ;;  %v2556_v25 = vrot.slane %v2554_v40, 4  ;;  %v2547_v50 = vor.u32 %v2546_v20, %v2543_v16  ;;  %v1095_v40 = vld [vmem:[#allocation2 + $0x84] sm:$0xf] }
  0xcc   : > { %v2562_v61 = vrot.slane %v2560_v21, 5  ;;  %v5665_v3 = vrot.slane %v5631_v54, 9  ;;  %v3015_v26 = vrot.slane %v5632_v8, 5  ;;  %2111 = vrot.lane.b32.xlu1 %v5491_v17, %s6449_s11  ;;  %v3018_v29 = vrot.slane %v5633_v22, 5  ;;  %v1099_v8 = vld [vmem:[#allocation2 + $0x8c] sm:$0x1] }
  0xcd   : > { %1785 = vrot.lane.b32.xlu0 %v5458_v33, %s6450_s12  ;;  %v2557_v28 = vor.u32 %v2556_v25, %v2552_v24  ;;  %vm517_vm10 = vcmp.ge.f32.partialorder %v6993_v51, 0.0  ;;  %vm518_vm12 = vcmp.ge.f32.partialorder %v7003_v6, 0.0  ;;  %v2548_v31 = vrot.slane %v2547_v50, 4  ;;  %v5776_v33 = vld [vmem:[#allocation2 + $0x20] sm:$0x1] }
  0xce   : > { %v3016_v32 = vsel %vm6564_vm5, %v5665_v3, %v3015_v26  ;;  %v3017_v34 = vrot.slane %v3015_v26, 4  ;;  %v556_v35 = vmul.f32 %v6939_v57, %v6993_v51  ;;  %v557_v43 = vmul.f32 %v6939_v57, %v7003_v6 }
  0xcf   : > { %v2558_v37 = vrot.slane %v2557_v28, 4  ;;  %v483_v46 = vadd.f32 %v6925_v48, %v6996_v55  ;;  %v484_v9 = vadd.f32 %v6925_v48, %v6999_v58  ;;  %v2553_v62 = vsel %vm6604_vm11, %v2548_v31, %v2552_v24 }
  0xd0   : > { %v3019_v14 = vsel %vm6564_vm5, %v3017_v34, %v3018_v29  ;;  %v588_v17 = vsel %vm517_vm10, %v6993_v51, %v556_v35  ;;  %v3842_v44 = vrot.slane %v3840_v45, 4  ;;  %v589_v58 = vsel %vm518_vm12, %v7003_v6, %v557_v43  ;;  %v1088_v35 = vld [vmem:[#allocation2 + $0x78] sm:$0xf]  ;;  %v5571_v43 = vld [vmem:[#allocation2 + $0x70] sm:$0xf] }
  0xd1   : > { %2109 = vrot.lane.b32.xlu0 %v5490_v23, %s6449_s11  ;;  %v2563_v55 = vsel %vm6604_vm11, %v2558_v37, %v2562_v61  ;;  %v5681_v63 = vcombine.low %v3016_v32, %v3019_v14  ;;  %v5993_v0 = vpack.c.bf16 %v588_v17, %v588_v17  ;;  %v5994_v36 = vpack.c.bf16 %v589_v58, %v589_v58  ;;  %v5570_v61 = vld [vmem:[#allocation2 + $0x6c] sm:$0xf] }
  0xd2   : > { %v5601_v52 = vcombine.low %v2553_v62, %v2563_v55  ;;  %vm515_vm14 = vcmp.ge.f32.partialorder %v483_v46, 0.0  ;;  %vm516_vm15 = vcmp.ge.f32.partialorder %v484_v9, 0.0  ;;  %v554_v59 = vmul.f32 %v6939_v57, %v483_v46  ;;  %v1092_v62 = vld [vmem:[#allocation2 + $0x80] sm:$0x1] }
  0xd3   : > { %v870_v7 = vshrl.u32 %v5993_v0, 16  ;;  %v873_v51 = vshll.u32 %v5993_v0, 16  ;;  %v555_v45 = vmul.f32 %v6939_v57, %v484_v9  ;;  %v878_v11 = vshrl.u32 %v5994_v36, 16  ;;  %v7069_v0 = vld [vmem:[#allocation2 + $0x74] sm:$0x1] }
  0xd4   : > { %2818 = vrot.lane.b32.xlu1 %v5601_v52, %s6450_s12  ;;  %v881_v2 = vshll.u32 %v5994_v36, 16  ;;  %v3843_v12 = vshll.u32 %v6965_v27, 16  ;;  %v3849_v15 = vshll.u32 %v5775_v49, 16  ;;  %v586_v54 = vsel %vm515_vm14, %v483_v46, %v554_v59  ;;  %v7073_v59 = vld [vmem:[#allocation2 + $0x6c] sm:$0xe] }
  0xd5   : > { %2816 = vrot.lane.b32.xlu0 %v6982_v39, %s6450_s12  ;;  %v872_v6 = vrot.slane %v870_v7, 7  ;;  %v587_v56 = vsel %vm516_vm15, %v484_v9, %v555_v45  ;;  %v3853_v16 = vshrl.u32 %v5775_v49, 16  ;;  %v880_v4 = vrot.slane %v878_v11, 7 }
  0xd6   : > { %v5991_v18 = vpack.c.bf16 %v586_v54, %v586_v54  ;;  %v5992_v19 = vpack.c.bf16 %v587_v56, %v587_v56  ;;  %v3845_v20 = vrot.slane %v3843_v12, 5  ;;  %v3851_v23 = vrot.slane %v3849_v15, 5  ;;  %v7082_v15 = vld [vmem:[%s6574_s28 + $0x58] sm:$0xff]  }
  0xd7   : > { %v875_v21 = vor.u32 %v873_v51, %v872_v6  ;;  %v876_v22 = vrot.slane %v872_v6, 4  ;;  %v3855_v24 = vrot.slane %v3853_v16, 4  ;;  %v883_v27 = vor.u32 %v881_v2, %v880_v4 }
  0xd8   : > { %3138 = vrot.lane.b32.xlu1 %v5681_v63, %s6449_s11  ;;  %v885_v25 = vrot.slane %v880_v4, 4  ;;  %v853_v39 = vshrl.u32 %v5991_v18, 16  ;;  %v856_v50 = vshll.u32 %v5991_v18, 16  ;;  %v861_v26 = vshrl.u32 %v5992_v19, 16 }
  0xd9   : > { %3136 = vrot.lane.b32.xlu0 %v5680_v47, %s6449_s11  ;;  %v1096_v3 = vsel %vm6633_vm2, %v875_v21, %v1095_v40  ;;  %v864_v28 = vshll.u32 %v5992_v19, 16  ;;  %v3846_v29 = vor.u32 %v3845_v20, %v3842_v44  ;;  %v884_v31 = vsel %vm6625_vm13, %v876_v22, %v883_v27 }
  0xda   : > { %1097 = vst [vmem:[#allocation2 + $0x84] sm:$0xf] %v1096_v3  ;;  %v1100_v32 = vsel %vm6641_vm3, %v885_v25, %v1099_v8  ;;  %v855_v34 = vrot.slane %v853_v39, 7  ;;  %v3856_v37 = vor.u32 %v3855_v24, %v3851_v23  ;;  %1098 = vst.msk [vmem:[#allocation2 + $0x88] sm:$0xf] %vm299_vm0, %v884_v31  ;;  %v863_v30 = vrot.slane %v861_v26, 7 }
  0xdb   : > { %1101 = vst [vmem:[#allocation2 + $0x8c] sm:$0x1] %v1100_v32  ;;  %v3847_v42 = vrot.slane %v3846_v29, 4  ;;  %v3859_v47 = vshll.u32 %v5776_v33, 16  ;;  %v2565_v46 = vshrl.u32 %v5570_v61, 16  ;;  %v2568_v17 = vshll.u32 %v5570_v61, 16 }
  0xdc   : > { %v858_v9 = vor.u32 %v856_v50, %v855_v34  ;;  %v859_v49 = vrot.slane %v855_v34, 4  ;;  %v3857_v14 = vrot.slane %v3856_v37, 4  ;;  %v866_v44 = vor.u32 %v864_v28, %v863_v30 }
  0xdd   : > { %v868_v55 = vrot.slane %v863_v30, 4  ;;  %v3852_v63 = vsel %vm6604_vm11, %v3847_v42, %v3851_v23  ;;  %v3861_v58 = vrot.slane %v3859_v47, 5  ;;  %v2567_v36 = vrot.slane %v2565_v46, 4 }
  0xde   : > { %v1089_v52 = vsel %vm6633_vm2, %v858_v9, %v1088_v35  ;;  %v2570_v7 = vrot.slane %v2568_v17, 5  ;;  %v2574_v51 = vshll.u32 %v5571_v43, 16  ;;  %v867_v45 = vsel %vm6625_vm13, %v859_v49, %v866_v44 }
  0xdf   : > { %1090 = vst [vmem:[#allocation2 + $0x78] sm:$0xf] %v1089_v52  ;;  %v1093_v11 = vsel %vm6641_vm3, %v868_v55, %v1092_v62  ;;  %v3862_v2 = vsel %vm6604_vm11, %v3857_v14, %v3861_v58  ;;  %v2578_v12 = vshrl.u32 %v5571_v43, 16  ;;  %1091 = vst.msk [vmem:[#allocation2 + $0x7c] sm:$0xf] %vm299_vm0, %v867_v45  ;;  %v2584_v16 = vshll.u32 %v7069_v0, 16  ;;  %v7115_v58 = vpop.permute.xlu0 %1769 }
  0xe0   : > { %1094 = vst [vmem:[#allocation2 + $0x80] sm:$0x1] %v1093_v11  ;;  %v7085_v6 = vcombine.low %v3852_v63, %v3862_v2  ;;  %v2571_v54 = vor.u32 %v2570_v7, %v2567_v36  ;;  %v7087_v56 = vrot.slane %v2574_v51, 5  ;;  %v5666_v18 = vrot.slane %v7073_v59, 9  ;;  %v7113_v63 = vpop.permute.xlu1 %2093 }
  0xe1   : > { %v1319_v4 = vld [vmem:[#allocation2 + $0x84] sm:$0xf]  ;;  %v7090_v8 = vrot.slane %v2578_v12, 4  ;;  %v6088_v19 = vunpack.c.h.bf16 %v6980_v38  ;;  %v7097_v20 = vmul.f32 %v6917_v53, %v6087_v60  ;;  %v1320_v21 = vld [vmem:[#allocation2 + $0x88] sm:$0xf]  ;;  %v6083_v24 = vunpack.c.l.bf16 %v7082_v15 }
  0xe2   : > { %v1867_v40 = vld [vmem:[#allocation2 + $0x84] sm:$0xe]  ;;  %v1321_v22 = vld [vmem:[#allocation2 + $0x8c] sm:$0x1]  ;;  %v1602_v33 = vshrl.u32 %v1319_v4, 16  ;;  %v1605_v23 = vshll.u32 %v1319_v4, 16  ;;  %v6084_v27 = vunpack.c.h.bf16 %v7082_v15 }
  0xe3   : > { %v1611_v25 = vshll.u32 %v1320_v21, 16  ;;  %v1615_v39 = vshrl.u32 %v1320_v21, 16  ;;  %v1621_v50 = vshll.u32 %v1321_v22, 16  ;;  %v1868_v61 = vld [vmem:[#allocation2 + $0x88] sm:$0xf]  ;;  %v5477_v3 = vrot.slane %v1867_v40, 9 }
  0xe4   : > { %v1604_v26 = vrot.slane %v1602_v33, 4  ;;  %v1607_v28 = vrot.slane %v1605_v23, 5  ;;  %v1869_v29 = vld [vmem:[#allocation2 + $0x8c] sm:$0x1]  ;;  %v2012_v31 = vrot.slane %v1868_v61, 5  ;;  %v7101_v32 = vrot.slane %v2571_v54, 4 }
  0xe5   : > { %v1613_v60 = vrot.slane %v1611_v25, 5  ;;  %v1617_v34 = vrot.slane %v1615_v39, 4  ;;  %v1623_v35 = vrot.slane %v1621_v50, 5  ;;  %v2015_v37 = vrot.slane %v1869_v29, 5  ;;  %v5635_v22 = vld [vmem:[#allocation2 + $0x70] sm:$0xf] }
  0xe6   : > { %v1608_v30 = vor.u32 %v1607_v28, %v1604_v26  ;;  %v1316_v42 = vld [vmem:[#allocation2 + $0x78] sm:$0xf]  ;;  %v7105_v47 = vsel %vm6564_vm5, %v5477_v3, %v2012_v31  ;;  %v2014_v43 = vrot.slane %v2012_v31, 4  ;;  %v2577_v9 = vsel %vm6604_vm11, %v7101_v32, %v7087_v56  ;;  %v1317_v62 = vld [vmem:[#allocation2 + $0x7c] sm:$0xf] }
  0xe7   : > { %v1864_v46 = vld [vmem:[#allocation2 + $0x78] sm:$0xe]  ;;  %v1618_v49 = vor.u32 %v1617_v34, %v1613_v60  ;;  %v1318_v14 = vld [vmem:[#allocation2 + $0x80] sm:$0x1]  ;;  %v1578_v17 = vshrl.u32 %v1316_v42, 16  ;;  %v1581_v44 = vshll.u32 %v1316_v42, 16  ;;  %v2581_v55 = vor.u32 %v7090_v8, %v7087_v56 }
  0xe8   : > { %v1609_v52 = vrot.slane %v1608_v30, 4  ;;  %v1587_v36 = vshll.u32 %v1317_v62, 16  ;;  %v1591_v7 = vshrl.u32 %v1317_v62, 16  ;;  %v1597_v51 = vshll.u32 %v1318_v14, 16  ;;  %v1865_v45 = vld [vmem:[#allocation2 + $0x7c] sm:$0xf]  ;;  %v7128_v30 = vpop.permute.xlu1 %2095 }
  0xe9   : > { %v1619_v11 = vrot.slane %v1618_v49, 4  ;;  %v1580_v2 = vrot.slane %v1578_v17, 4  ;;  %v1583_v12 = vrot.slane %v1581_v44, 5  ;;  %v2016_v54 = vsel %vm6564_vm5, %v2014_v43, %v2015_v37  ;;  %v1866_v4 = vld [vmem:[#allocation2 + $0x80] sm:$0x1]  ;;  %v7126_v37 = vpop.permute.xlu0 %2097 }
  0xea   : > { %v1614_v40 = vsel %vm6604_vm11, %v1609_v52, %v1613_v60  ;;  %v1589_v56 = vrot.slane %v1587_v36, 5  ;;  %v1593_v8 = vrot.slane %v1591_v7, 4  ;;  %v1599_v21 = vrot.slane %v1597_v51, 5  ;;  %v5636_v50 = vld [vmem:[#allocation2 + $0x74] sm:$0x1] }
  0xeb   : > { %v1624_v33 = vsel %vm6604_vm11, %v1619_v11, %v1623_v35  ;;  %v1584_v23 = vor.u32 %v1583_v12, %v1580_v2  ;;  %v5493_v25 = vcombine.low %v7105_v47, %v2016_v54  ;;  %v5476_v39 = vrot.slane %v1864_v46, 9  ;;  %v5573_v34 = vld [vmem:[#allocation2 + $0x78] sm:$0xf]  ;;  %v5574_v62 = vld [vmem:[#allocation2 + $0x7c] sm:$0xf] }
  0xec   : > { %v5461_v61 = vcombine.low %v1614_v40, %v1624_v33  ;;  %v1594_v3 = vor.u32 %v1593_v8, %v1589_v56  ;;  %v2005_v26 = vrot.slane %v1865_v45, 5  ;;  %v2008_v28 = vrot.slane %v1866_v4, 5  ;;  %v5838_v14 = vld [vmem:[#allocation2 + $0x18] sm:$0xe]  ;;  %v5575_v52 = vld [vmem:[#allocation2 + $0x80] sm:$0x1] }
  0xed   : > { %v1585_v29 = vrot.slane %v1584_v23, 4  ;;  %v2582_v31 = vrot.slane %v2581_v55, 4  ;;  %v2586_v32 = vrot.slane %v2584_v16, 5  ;;  %v3022_v60 = vrot.slane %v5635_v22, 5  ;;  %v5839_v7 = vld [vmem:[#allocation2 + $0x1c] sm:$0xf]  ;;  %v7152_v23 = vpop.permute.xlu0 %3124 }
  0xee   : > { %1791 = vrot.lane.b32.xlu1 %v5461_v61, %s6450_s12  ;;  %v1595_v35 = vrot.slane %v1594_v3, 4  ;;  %v2006_v42 = vsel %vm6564_vm5, %v5476_v39, %v2005_v26  ;;  %v2007_v47 = vrot.slane %v2005_v26, 4  ;;  %v3025_v43 = vrot.slane %v5636_v50, 5  ;;  %v5840_v11 = vld [vmem:[#allocation2 + $0x20] sm:$0x1]  ;;  %v7154_v39 = vpop.permute.xlu1 %2099 }
  0xef   : > { %v1590_v46 = vsel %vm6604_vm11, %v1585_v29, %v1589_v56  ;;  %v2587_v0 = vsel %vm6604_vm11, %v2582_v31, %v2586_v32  ;;  %v7141_v16 = vsel %vm6564_vm5, %v5666_v18, %v3022_v60  ;;  %v3024_v49 = vrot.slane %v3022_v60, 4  ;;  %v5777_v2 = vld [vmem:[#allocation2 + $0x24] sm:$0xf]  ;;  %v5778_v56 = vld [vmem:[#allocation2 + $0x28] sm:$0xf] }
  0xf0   : > { %v1600_v17 = vsel %vm6604_vm11, %v1595_v35, %v1599_v21  ;;  %v2009_v44 = vsel %vm6564_vm5, %v2007_v47, %v2008_v28  ;;  %v5602_v55 = vcombine.low %v2577_v9, %v2587_v0  ;;  %v2589_v36 = vshrl.u32 %v5573_v34, 16  ;;  %v5779_v33 = vld [vmem:[#allocation2 + $0x2c] sm:$0x1]  ;;  %v5841_v26 = vld [vmem:[#allocation2 + $0x24] sm:$0xe] }
  0xf1   : > { %v5460_v51 = vcombine.low %v1590_v46, %v1600_v17  ;;  %v5492_v45 = vcombine.low %v2006_v42, %v2009_v44  ;;  %v3026_v59 = vsel %vm6564_vm5, %v3024_v49, %v3025_v43  ;;  %v2592_v18 = vshll.u32 %v5573_v34, 16  ;;  %v5842_v60 = vld [vmem:[#allocation2 + $0x28] sm:$0xf]  ;;  %v5843_v34 = vld [vmem:[#allocation2 + $0x2c] sm:$0x1] }
  0xf2   : > { %2115 = vrot.lane.b32.xlu1 %v5493_v25, %s6449_s11  ;;  %v5682_v12 = vcombine.low %v7141_v16, %v3026_v59  ;;  %v2591_v54 = vrot.slane %v2589_v36, 4  ;;  %v2598_v4 = vshll.u32 %v5574_v62, 16  ;;  %v2602_v40 = vshrl.u32 %v5574_v62, 16  ;;  %v5637_v46 = vld [vmem:[#allocation2 + $0x78] sm:$0xe] }
  0xf3   : > { %1789 = vrot.lane.b32.xlu0 %v5460_v51, %s6450_s12  ;;  %v2594_v9 = vrot.slane %v2592_v18, 5  ;;  %v2608_v8 = vshll.u32 %v5575_v52, 16  ;;  %v5886_v21 = vrot.slane %v5838_v14, 9  ;;  %v4433_v22 = vrot.slane %v5839_v7, 5  ;;  %v5638_v0 = vld [vmem:[#allocation2 + $0x7c] sm:$0xf] }
  0xf4   : > { %v2600_v50 = vrot.slane %v2598_v4, 5  ;;  %v2604_v61 = vrot.slane %v2602_v40, 4  ;;  %v4436_v25 = vrot.slane %v5840_v11, 5  ;;  %v3864_v3 = vshrl.u32 %v5777_v2, 16  ;;  %v5639_v17 = vld [vmem:[#allocation2 + $0x80] sm:$0x1]  ;;  %v7165_v11 = vpop.permute.xlu0 %2101 }
  0xf5   : > { %v2595_v28 = vor.u32 %v2594_v9, %v2591_v54  ;;  %v2610_v29 = vrot.slane %v2608_v8, 5  ;;  %v4434_v31 = vsel %vm6564_vm5, %v5886_v21, %v4433_v22  ;;  %v4435_v32 = vrot.slane %v4433_v22, 4 }
  0xf6   : > { %4271 = vrot.lane.b32.xlu1 %v7085_v6, %s6450_s12  ;;  %v2605_v35 = vor.u32 %v2604_v61, %v2600_v50  ;;  %v3866_v42 = vrot.slane %v3864_v3, 4  ;;  %v3867_v47 = vshll.u32 %v5777_v2, 16  ;;  %v3873_v43 = vshll.u32 %v5778_v56, 16 }
  0xf7   : > { %2113 = vrot.lane.b32.xlu0 %v5492_v45, %s6449_s11  ;;  %v2596_v16 = vrot.slane %v2595_v28, 4  ;;  %v4437_v49 = vsel %vm6564_vm5, %v4435_v32, %v4436_v25  ;;  %v3877_v62 = vshrl.u32 %v5778_v56, 16  ;;  %v3883_v14 = vshll.u32 %v5779_v33, 16  ;;  %v7167_v45 = vpop.permute.xlu1 %3126 }
  0xf8   : > { %v2606_v44 = vrot.slane %v2605_v35, 4  ;;  %v5902_v52 = vcombine.low %v4434_v31, %v4437_v49  ;;  %v3869_v36 = vrot.slane %v3867_v47, 5  ;;  %v3875_v7 = vrot.slane %v3873_v43, 5  ;;  %v5781_v35 = vld [vmem:[#allocation2 + $0x34] sm:$0xf] }
  0xf9   : > { %v2601_v6 = vsel %vm6604_vm11, %v2596_v16, %v2600_v50  ;;  %v3879_v51 = vrot.slane %v3877_v62, 4  ;;  %v3885_v59 = vrot.slane %v3883_v14, 5  ;;  %v5887_v18 = vrot.slane %v5841_v26, 9 }
  0xfa   : > { %3140 = vrot.lane.b32.xlu1 %v5682_v12, %s6449_s11  ;;  %v2611_v2 = vsel %vm6604_vm11, %v2606_v44, %v2610_v29  ;;  %v3870_v54 = vor.u32 %v3869_v36, %v3866_v42  ;;  %v4440_v4 = vrot.slane %v5842_v60, 5  ;;  %v4443_v40 = vrot.slane %v5843_v34, 5  ;;  %v7196_v42 = vpop.permute.xlu0 %3128  ;;  %v7211_v36 = vld [vmem:[%s8288_s2] ss:$0 sm:$0xff] }
  0xfb   : > { %2820 = vrot.lane.b32.xlu0 %v5602_v55, %s6450_s12  ;;  %v5603_v56 = vcombine.low %v2601_v6, %v2611_v2  ;;  %v3880_v9 = vor.u32 %v3879_v51, %v3875_v7  ;;  %v5667_v8 = vrot.slane %v5637_v46, 9  ;;  %v3029_v21 = vrot.slane %v5638_v0, 5  ;;  %v5780_v55 = vld [vmem:[#allocation2 + $0x30] sm:$0xf]  ;;  %v7198_v47 = vpop.permute.xlu1 %2103 }
  0xfc   : > { %v3871_v22 = vrot.slane %v3870_v54, 4  ;;  %v4441_v33 = vsel %vm6564_vm5, %v5887_v18, %v4440_v4  ;;  %v4442_v50 = vrot.slane %v4440_v4, 4  ;;  %v3032_v61 = vrot.slane %v5639_v17, 5 }
  0xfd   : > { %v3881_v25 = vrot.slane %v3880_v9, 4  ;;  %v3030_v12 = vsel %vm6564_vm5, %v5667_v8, %v3029_v21  ;;  %v3031_v3 = vrot.slane %v3029_v21, 4  ;;  %v451_v26 = vmul.f32 %v6917_v53, %v6088_v19  ;;  %v1109_v8 = vld [vmem:[#allocation2 + $0x9c] sm:$0xf] }
  0xfe   : > { %4591 = vrot.lane.b32.xlu1 %v5902_v52, %s6449_s11  ;;  %v3876_v28 = vsel %vm6604_vm11, %v3871_v22, %v3875_v7  ;;  %v4444_v29 = vsel %vm6564_vm5, %v4442_v50, %v4443_v40  ;;  %v489_v31 = vadd.f32 %v6925_v48, %v7097_v20  ;;  %v448_v32 = vmul.f32 %v6917_v53, %v6083_v24  ;;  %v7216_v18 = vpop.permute.xlu0 %2105 }
  0xff   : > { %2822 = vrot.lane.b32.xlu0 %v5603_v56, %s6450_s12  ;;  %v3886_v38 = vsel %vm6604_vm11, %v3881_v25, %v3885_v59  ;;  %v5903_v19 = vcombine.low %v4441_v33, %v4444_v29  ;;  %v3033_v60 = vsel %vm6564_vm5, %v3031_v3, %v3032_v61  ;;  %v490_v34 = vadd.f32 %v6925_v48, %v451_v26  ;;  %v7218_v2 = vpop.permute.xlu1 %3130  ;;  %v1113_v61 = vld [vmem:[#allocation2 + $0xa4] sm:$0x1]  ;;  %v5782_v29 = vld [vmem:[#allocation2 + $0x38] sm:$0x1] }
 0x100   : > { %v5823_v20 = vcombine.low %v3876_v28, %v3886_v38  ;;  %v5683_v43 = vcombine.low %v3030_v12, %v3033_v60  ;;  %vm521_vm4 = vcmp.ge.f32.partialorder %v489_v31, 0.0  ;;  %v560_v24 = vmul.f32 %v6939_v57, %v489_v31  ;;  %8312 = vst [vmem:[#allocation7_spill] sm:$0xff] %v7218_v2  ;;  %v5576_v60 = vld [vmem:[#allocation2 + $0x84] sm:$0xf] }
 0x101   : > { %vm522_vm6 = vcmp.ge.f32.partialorder %v490_v34, 0.0  ;;  %v561_v46 = vmul.f32 %v6939_v57, %v490_v34  ;;  %v449_v0 = vmul.f32 %v6917_v53, %v6084_v27  ;;  %v487_v16 = vadd.f32 %v6925_v48, %v448_v32 }
 0x102   : > { %4593 = vrot.lane.b32.xlu1 %v5903_v19, %s6449_s11  ;;  %v592_v49 = vsel %vm521_vm4, %v489_v31, %v560_v24  ;;  %v3888_v62 = vshrl.u32 %v5780_v55, 16  ;;  %v3891_v14 = vshll.u32 %v5780_v55, 16  ;;  %v3897_v17 = vshll.u32 %v5781_v35, 16 }
 0x103   : > { %4273 = vrot.lane.b32.xlu0 %v5823_v20, %s6450_s12  ;;  %v593_v44 = vsel %vm522_vm6, %v490_v34, %v561_v46  ;;  %v5997_v52 = vpack.c.bf16 %v592_v49, %v592_v49  ;;  %v488_v15 = vadd.f32 %v7211_v36, %v449_v0  ;;  %vm519_vm7 = vcmp.ge.f32.partialorder %v487_v16, 0.0  ;;  %v7230_v46 = vpop.permute.xlu0 %1771 }
 0x104   : > { %v5998_v53 = vpack.c.bf16 %v593_v44, %v593_v44  ;;  %v558_v48 = vmul.f32 %v6939_v57, %v487_v16  ;;  %v3890_v27 = vrot.slane %v3888_v62, 4  ;;  %v3893_v7 = vrot.slane %v3891_v14, 5  ;;  %v1102_v62 = vld [vmem:[#allocation2 + $0x90] sm:$0xf] }
 0x105   : > { %v904_v6 = vshrl.u32 %v5997_v52, 16  ;;  %v907_v51 = vshll.u32 %v5997_v52, 16  ;;  %vm520_vm8 = vcmp.ge.f32.partialorder %v488_v15, 0.0  ;;  %v559_v59 = vmul.f32 %v6939_v57, %v488_v15 }
 0x106   : > { %v912_v54 = vshrl.u32 %v5998_v53, 16  ;;  %v915_v4 = vshll.u32 %v5998_v53, 16  ;;  %v590_v40 = vsel %vm519_vm7, %v487_v16, %v558_v48  ;;  %v3894_v56 = vor.u32 %v3893_v7, %v3890_v27  ;;  %v5578_v48 = vld [vmem:[#allocation2 + $0x8c] sm:$0x1] }
 0x107   : > { %3142 = vrot.lane.b32.xlu0 %v5683_v43, %s6449_s11  ;;  %v906_v9 = vrot.slane %v904_v6, 7  ;;  %v591_v21 = vsel %vm520_vm8, %v488_v15, %v559_v59  ;;  %v5995_v22 = vpack.c.bf16 %v590_v40, %v590_v40  ;;  %v7221_v33 = vrot.slane %v3897_v17, 5  ;;  %v5577_v17 = vld [vmem:[#allocation2 + $0x88] sm:$0xf]  ;;  %v1106_v15 = vld [vmem:[#allocation2 + $0x98] sm:$0x1] }
 0x108   : > { %v914_v50 = vrot.slane %v912_v54, 7  ;;  %v5996_v25 = vpack.c.bf16 %v591_v21, %v591_v21  ;;  %v3895_v57 = vrot.slane %v3894_v56, 4  ;;  %v3901_v12 = vshrl.u32 %v5781_v35, 16  ;;  %v7228_v35 = vpop.permute.xlu1 %2107  ;;  %v5640_v54 = vld [vmem:[#allocation2 + $0x84] sm:$0xe] }
 0x109   : > { %v909_v3 = vor.u32 %v907_v51, %v906_v9  ;;  %v910_v26 = vrot.slane %v906_v9, 4  ;;  %v887_v55 = vshrl.u32 %v5995_v22, 16  ;;  %v890_v28 = vshll.u32 %v5995_v22, 16 }
 0x10a   : > { %v917_v31 = vor.u32 %v915_v4, %v914_v50  ;;  %v919_v32 = vrot.slane %v914_v50, 4  ;;  %v895_v38 = vshrl.u32 %v5996_v25, 16  ;;  %v898_v19 = vshll.u32 %v5996_v25, 16  ;;  %v7249_v25 = vld [vmem:[%s6574_s28 + $0x70] sm:$0xff]  }
 0x10b   : > { %v1110_v34 = vsel %vm6633_vm2, %v909_v3, %v1109_v8  ;;  %v889_v20 = vrot.slane %v887_v55, 7  ;;  %v3900_v43 = vsel %vm6604_vm11, %v3895_v57, %v7221_v33  ;;  %v3903_v24 = vrot.slane %v3901_v12, 4  ;;  %v7240_v8 = vld [vmem:[#allocation2 + $0x88] sm:$0xf] }
 0x10c   : > { %v918_v0 = vsel %vm6625_vm13, %v910_v26, %v917_v31  ;;  %1111 = vst [vmem:[#allocation2 + $0x9c] sm:$0xf] %v1110_v34  ;;  %v1114_v16 = vsel %vm6641_vm3, %v919_v32, %v1113_v61  ;;  %v897_v49 = vrot.slane %v895_v38, 7  ;;  %v3907_v14 = vshll.u32 %v5782_v29, 16  ;;  %v7246_v61 = vld [vmem:[#allocation2 + $0x8c] sm:$0x1]  ;;  %v7256_v55 = vpop.permute.xlu1 %1775 }
 0x10d   : > { %1112 = vst.msk [vmem:[#allocation2 + $0xa0] sm:$0xf] %vm299_vm0, %v918_v0  ;;  %1115 = vst [vmem:[#allocation2 + $0xa4] sm:$0x1] %v1114_v16  ;;  %v892_v44 = vor.u32 %v890_v28, %v889_v20  ;;  %v893_v52 = vrot.slane %v889_v20, 4  ;;  %v3904_v53 = vor.u32 %v3903_v24, %v7221_v33  ;;  %v2613_v27 = vshrl.u32 %v5576_v60, 16  ;;  %v7258_v28 = vpop.permute.xlu0 %1773 }
 0x10e   : > { %v900_v7 = vor.u32 %v898_v19, %v897_v49  ;;  %v902_v6 = vrot.slane %v897_v49, 4  ;;  %v3909_v51 = vrot.slane %v3907_v14, 5  ;;  %v2616_v59 = vshll.u32 %v5576_v60, 16 }
 0x10f   : > { %v1103_v4 = vsel %vm6633_vm2, %v892_v44, %v1102_v62  ;;  %v3905_v40 = vrot.slane %v3904_v53, 4  ;;  %v2615_v56 = vrot.slane %v2613_v27, 4  ;;  %v2622_v9 = vshll.u32 %v5577_v17, 16 }
 0x110   : > { %v901_v21 = vsel %vm6625_vm13, %v893_v52, %v900_v7  ;;  %1104 = vst [vmem:[#allocation2 + $0x90] sm:$0xf] %v1103_v4  ;;  %v1107_v22 = vsel %vm6641_vm3, %v902_v6, %v1106_v15  ;;  %v2618_v33 = vrot.slane %v2616_v59, 5  ;;  %v2626_v50 = vshrl.u32 %v5577_v17, 16 }
 0x111   : > { %1105 = vst.msk [vmem:[#allocation2 + $0x94] sm:$0xf] %vm299_vm0, %v901_v21  ;;  %1108 = vst [vmem:[#allocation2 + $0x98] sm:$0x1] %v1107_v22  ;;  %v3910_v57 = vsel %vm6604_vm11, %v3905_v40, %v3909_v51  ;;  %v7254_v12 = vrot.slane %v2622_v9, 5  ;;  %v2632_v3 = vshll.u32 %v5578_v48, 16  ;;  %v7280_v21 = vpop.permute.xlu1 %2806  ;;  %v7282_v22 = vpop.permute.xlu0 %2804 }
 0x112   : > { %v5668_v26 = vrot.slane %v5640_v54, 9  ;;  %v7260_v29 = vcombine.low %v3900_v43, %v3910_v57  ;;  %v2619_v31 = vor.u32 %v2618_v33, %v2615_v56  ;;  %v7262_v32 = vrot.slane %v2626_v50, 4 }
 0x113   : > { %v3036_v38 = vrot.slane %v7240_v8, 5  ;;  %v1325_v19 = vld [vmem:[#allocation2 + $0x9c] sm:$0xf]  ;;  %v7265_v34 = vrot.slane %v2632_v3, 5  ;;  %v3039_v20 = vrot.slane %v7246_v61, 5  ;;  %vm1269_vm9 = vcmask 31744  }
 0x114   : > { %v1873_v60 = vld [vmem:[#allocation2 + $0x9c] sm:$0xe]  ;;  %v1326_v16 = vld [vmem:[#allocation2 + $0xa0] sm:$0xf]  ;;  %v1327_v49 = vld [vmem:[#allocation2 + $0xa4] sm:$0x1]  ;;  %v2629_v14 = vor.u32 %v7262_v32, %v7254_v12 }
 0x115   : > { %v1650_v62 = vshrl.u32 %v1325_v19, 16  ;;  %v1653_v43 = vshll.u32 %v1325_v19, 16  ;;  %v7276_v17 = vsel %vm6564_vm5, %v5668_v26, %v3036_v38  ;;  %v1659_v44 = vshll.u32 %v1326_v16, 16  ;;  %v1874_v53 = vld [vmem:[#allocation2 + $0xa0] sm:$0xf] }
 0x116   : > { %v1663_v52 = vshrl.u32 %v1326_v16, 16  ;;  %v1669_v15 = vshll.u32 %v1327_v49, 16  ;;  %v5479_v48 = vrot.slane %v1873_v60, 9  ;;  %v1875_v6 = vld [vmem:[#allocation2 + $0xa4] sm:$0x1]  ;;  %v2026_v51 = vrot.slane %v1874_v53, 5 }
 0x117   : > { %v1652_v27 = vrot.slane %v1650_v62, 4  ;;  %v1655_v7 = vrot.slane %v1653_v43, 5  ;;  %v7278_v59 = vrot.slane %v2619_v31, 4  ;;  %v1661_v54 = vrot.slane %v1659_v44, 5  ;;  %v1322_v56 = vld [vmem:[#allocation2 + $0x90] sm:$0xf] }
 0x118   : > { %v1665_v4 = vrot.slane %v1663_v52, 4  ;;  %v1671_v40 = vrot.slane %v1669_v15, 5  ;;  %v2029_v9 = vrot.slane %v1875_v6, 5  ;;  %v1323_v50 = vld [vmem:[#allocation2 + $0x94] sm:$0xf]  ;;  %v1626_v3 = vshrl.u32 %v1322_v56, 16 }
 0x119   : > { %v1656_v33 = vor.u32 %v1655_v7, %v1652_v27  ;;  %v1324_v57 = vld [vmem:[#allocation2 + $0x98] sm:$0x1]  ;;  %v1629_v26 = vshll.u32 %v1322_v56, 16  ;;  %v2027_v32 = vsel %vm6564_vm5, %v5479_v48, %v2026_v51  ;;  %v1635_v31 = vshll.u32 %v1323_v50, 16  ;;  %v1870_v49 = vld [vmem:[#allocation2 + $0x90] sm:$0xe] }
 0x11a   : > { %v1666_v19 = vor.u32 %v1665_v4, %v1661_v54  ;;  %v1639_v60 = vshrl.u32 %v1323_v50, 16  ;;  %v1645_v16 = vshll.u32 %v1324_v57, 16  ;;  %v1628_v43 = vrot.slane %v1626_v3, 4  ;;  %v1871_v15 = vld [vmem:[#allocation2 + $0x94] sm:$0xf] }
 0x11b   : > { %v1657_v62 = vrot.slane %v1656_v33, 4  ;;  %v1631_v44 = vrot.slane %v1629_v26, 5  ;;  %v2028_v52 = vrot.slane %v2026_v51, 4  ;;  %v1637_v6 = vrot.slane %v1635_v31, 5  ;;  %v1872_v0 = vld [vmem:[#allocation2 + $0x98] sm:$0x1]  ;;  %v7292_v26 = vpop.permute.xlu1 %1779 }
 0x11c   : > { %v1667_v53 = vrot.slane %v1666_v19, 4  ;;  %v1641_v27 = vrot.slane %v1639_v60, 4  ;;  %v1647_v7 = vrot.slane %v1645_v16, 5  ;;  %v5478_v4 = vrot.slane %v1870_v49, 9  ;;  %v5579_v3 = vld [vmem:[#allocation2 + $0x90] sm:$0xf]  ;;  %v7294_v19 = vpop.permute.xlu0 %1777 }
 0x11d   : > { %v1662_v56 = vsel %vm6604_vm11, %v1657_v62, %v1661_v54  ;;  %v1632_v24 = vor.u32 %v1631_v44, %v1628_v43  ;;  %v2030_v48 = vsel %vm6564_vm5, %v2028_v52, %v2029_v9  ;;  %v2019_v51 = vrot.slane %v1871_v15, 5  ;;  %v5580_v9 = vld [vmem:[#allocation2 + $0x94] sm:$0xf]  ;;  %v5581_v15 = vld [vmem:[#allocation2 + $0x98] sm:$0x1] }
 0x11e   : > { %v1672_v33 = vsel %vm6604_vm11, %v1667_v53, %v1671_v40  ;;  %v1642_v50 = vor.u32 %v1641_v27, %v1637_v6  ;;  %v5495_v57 = vcombine.low %v2027_v32, %v2030_v48  ;;  %v2022_v16 = vrot.slane %v1872_v0, 5  ;;  %v5845_v52 = vld [vmem:[#allocation2 + $0x34] sm:$0xf]  ;;  %v5844_v27 = vld [vmem:[#allocation2 + $0x30] sm:$0xe] }
 0x11f   : > { %v5463_v31 = vcombine.low %v1662_v56, %v1672_v33  ;;  %v1633_v60 = vrot.slane %v1632_v24, 4  ;;  %v2625_v54 = vsel %vm6604_vm11, %v7278_v59, %v7254_v12  ;;  %v2020_v40 = vsel %vm6564_vm5, %v5478_v4, %v2019_v51  ;;  %v5783_v48 = vld [vmem:[#allocation2 + $0x3c] sm:$0xf]  ;;  %v5644_v10 = vld [vmem:[#allocation2 + $0x94] sm:$0xf] }
 0x120   : > { %v1643_v49 = vrot.slane %v1642_v50, 4  ;;  %v2021_v32 = vrot.slane %v2019_v51, 4  ;;  %v2630_v62 = vrot.slane %v2629_v14, 4  ;;  %v3038_v24 = vrot.slane %v3036_v38, 4  ;;  %v5784_v51 = vld [vmem:[#allocation2 + $0x40] sm:$0xf] }
 0x121   : > { %1795 = vrot.lane.b32.xlu1 %v5463_v31, %s6450_s12  ;;  %v1638_v43 = vsel %vm6604_vm11, %v1633_v60, %v1637_v6  ;;  %v2637_v0 = vshrl.u32 %v5579_v3, 16  ;;  %v2640_v44 = vshll.u32 %v5579_v3, 16  ;;  %v2646_v53 = vshll.u32 %v5580_v9, 16  ;;  %v7326_v3 = vpop.permute.xlu1 %2810  ;;  %v7328_v31 = vpop.permute.xlu0 %2808  ;;  %v5847_v4 = vld [vmem:[#allocation2 + $0x3c] sm:$0xe] }
 0x122   : > { %v1648_v12 = vsel %vm6604_vm11, %v1643_v49, %v1647_v7  ;;  %v2023_v59 = vsel %vm6564_vm5, %v2021_v32, %v2022_v16  ;;  %v2635_v14 = vsel %vm6604_vm11, %v2630_v62, %v7265_v34  ;;  %v7320_v38 = vsel %vm6564_vm5, %v3038_v24, %v3039_v20  ;;  %v5846_v7 = vld [vmem:[#allocation2 + $0x38] sm:$0x1]  ;;  %v6367_v24 = vld [vmem:[#allocation2 + $0xc] sm:$0xff]  }
 0x123   : > { %v5462_v6 = vcombine.low %v1638_v43, %v1648_v12  ;;  %v5494_v56 = vcombine.low %v2020_v40, %v2023_v59  ;;  %v7314_v8 = vcombine.low %v2625_v54, %v2635_v14  ;;  %v2639_v33 = vrot.slane %v2637_v0, 4  ;;  %v5785_v54 = vld [vmem:[#allocation2 + $0x44] sm:$0x1]  ;;  %v6373_v12 = vld [vmem:[#allocation2 + $0x3c] sm:$0xff]   ;;  %1271 = vst.msk [vmem:[#allocation3 + $0x8] sm:$0xff] %vm1269_vm9, %v6367_v24 }
 0x124   : > { %v2642_v34 = vrot.slane %v2640_v44, 5  ;;  %v7324_v50 = vrot.slane %v2646_v53, 5  ;;  %v2650_v61 = vshrl.u32 %v5580_v9, 16  ;;  %v2656_v20 = vshll.u32 %v5581_v15, 16  ;;  %v6366_v43 = vld [vmem:[#allocation2] sm:$0xff]   ;;  %v6369_v44 = vld [vmem:[#allocation2 + $0x18] sm:$0xff]  }
 0x125   : > { %1793 = vrot.lane.b32.xlu0 %v5462_v6, %s6450_s12  ;;  %2119 = vrot.lane.b32.xlu1 %v5495_v57, %s6449_s11  ;;  %v5888_v60 = vrot.slane %v5844_v27, 9  ;;  %v4447_v16 = vrot.slane %v5845_v52, 5  ;;  %v4450_v40 = vrot.slane %v5846_v7, 5  ;;  %v3912_v32 = vshrl.u32 %v5783_v48, 16  ;;  %v6368_v0 = vld [vmem:[#allocation2 + $0x24] sm:$0xff]   ;;  %v6374_v15 = vld [vmem:[#allocation2 + $0x30] sm:$0xff]   ;;  %v1784_v5 = vpop.permute.xlu1 %1783 }
 0x126   : > { %v2643_v49 = vor.u32 %v2642_v34, %v2639_v33  ;;  %v3915_v62 = vshll.u32 %v5783_v48, 16  ;;  %v2652_v59 = vrot.slane %v2650_v61, 4  ;;  %v7332_v14 = vrot.slane %v2656_v20, 5  ;;  %v6378_v52 = vld [vmem:[#allocation2 + $0x54] sm:$0xff]   ;;  %v6379_v53 = vld [vmem:[#allocation2 + $0x48] sm:$0xff]   ;;  %v6383_v34 = vld [vmem:[#allocation2 + $0x60] sm:$0xff]  }
 0x127   : > { %v7336_v57 = vsel %vm6564_vm5, %v5888_v60, %v4447_v16  ;;  %v4449_v9 = vrot.slane %v4447_v16, 4  ;;  %v3914_v6 = vrot.slane %v3912_v32, 4  ;;  %v3921_v48 = vshll.u32 %v5784_v51, 16  ;;  %v6382_v33 = vld [vmem:[#allocation2 + $0x6c] sm:$0xff]   ;;  %1270 = vst.msk [vmem:[#allocation3] sm:$0xff] %vm1269_vm9, %v6366_v43  ;;  %1273 = vst.msk [vmem:[#allocation3 + $0x18] sm:$0xff] %vm1269_vm9, %v6368_v0 }
 0x128   : > { %v2644_v27 = vrot.slane %v2643_v49, 4  ;;  %v3917_v7 = vrot.slane %v3915_v62, 5  ;;  %v2653_v61 = vor.u32 %v2652_v59, %v7324_v50  ;;  %v3925_v60 = vshrl.u32 %v5784_v51, 16  ;;  %v5848_v49 = vld [vmem:[#allocation2 + $0x40] sm:$0xf]  ;;  %1272 = vst.msk [vmem:[#allocation3 + $0x10] sm:$0xff] %vm1269_vm9, %v6369_v44 }
 0x129   : > { %2117 = vrot.lane.b32.xlu0 %v5494_v56, %s6449_s11  ;;  %4275 = vrot.lane.b32.xlu1 %v7260_v29, %s6450_s12  ;;  %v7344_v20 = vsel %vm6564_vm5, %v4449_v9, %v4450_v40  ;;  %v3931_v16 = vshll.u32 %v5785_v54, 16  ;;  %v7351_v13 = vrot.slane %v3921_v48, 5  ;;  %v7353_v29 = vld [vmem:[#allocation2 + $0x44] sm:$0x1]  ;;  %v5643_v59 = vld [vmem:[#allocation2 + $0x90] sm:$0xe]  ;;  %v1782_v40 = vpop.permute.xlu0 %1781 }
 0x12a   : > { %v2649_v32 = vsel %vm6604_vm11, %v2644_v27, %v7324_v50  ;;  %v5904_v56 = vcombine.low %v7336_v57, %v7344_v20  ;;  %v3918_v62 = vor.u32 %v3917_v7, %v3914_v6  ;;  %v2654_v9 = vrot.slane %v2653_v61, 4  ;;  %v5645_v27 = vld [vmem:[#allocation2 + $0x98] sm:$0x1]  ;;  %1275 = vst.msk [vmem:[#allocation3 + $0x28] sm:$0xff] %vm1269_vm9, %v6373_v12  ;;  %1274 = vst.msk [vmem:[#allocation3 + $0x20] sm:$0xff] %vm1269_vm9, %v6374_v15  ;;  %v6372_v7 = vld [vmem:[#allocation2 + $0xc] sm:$0xff]  }
 0x12b   : > { %v3927_v51 = vrot.slane %v3925_v60, 4  ;;  %v7355_v54 = vrot.slane %v3931_v16, 5  ;;  %vm1817_vm10 = vcmask 64544   ;;  %vm2141_vm12 = vcmask 97344   ;;  %1277 = vst.msk [vmem:[#allocation3 + $0x38] sm:$0xff] %vm1269_vm9, %v6378_v52  ;;  %1276 = vst.msk [vmem:[#allocation3 + $0x30] sm:$0xff] %vm1269_vm9, %v6379_v53 }
 0x12c   : > { %v3919_v2 = vrot.slane %v3918_v62, 4  ;;  %v5889_v50 = vrot.slane %v5847_v4, 9  ;;  %1279 = vst.msk [vmem:[#allocation3 + $0x48] sm:$0xff] %vm1269_vm9, %v6382_v33  ;;  %1278 = vst.msk [vmem:[#allocation3 + $0x40] sm:$0xff] %vm1269_vm9, %v6383_v34  ;;  %v8313_v4 = vcombine.low %v7276_v17, %v7320_v38  ;;  %v2659_v43 = vsel %vm6604_vm11, %v2654_v9, %v7332_v14  ;;  %v6113_v17 = vld [vmem:[%s6574_s28 + $0x68] sm:$0xff]   ;;  %v6371_v6 = vld [vmem:[#allocation2 + $0x18] sm:$0xff]  }
 0x12d   : > { %2824 = vrot.lane.b32.xlu0 %v7314_v8, %s6450_s12  ;;  %v3928_v24 = vor.u32 %v3927_v51, %v7351_v13  ;;  %1818 = vst.msk [vmem:[#allocation3] sm:$0xff] %vm1817_vm10, %v7115_v58  ;;  %v4454_v0 = vrot.slane %v5848_v49, 5  ;;  %v4457_v44 = vrot.slane %v7353_v29, 5  ;;  %1819 = vst.msk [vmem:[#allocation3 + $0x8] sm:$0xff] %vm1817_vm10, %v7230_v46  ;;  %v5605_v58 = vcombine.low %v2649_v32, %v2659_v43  ;;  %v7443_v12 = vld [vmem:[#allocation2 + $0x48] sm:$0xf] }
 0x12e   : > { %3144 = vrot.lane.b32.xlu1 %v8313_v4, %s6449_s11  ;;  %1821 = vst.msk [vmem:[#allocation3 + $0x18] sm:$0xff] %vm1817_vm10, %v7256_v55  ;;  %1820 = vst.msk [vmem:[#allocation3 + $0x10] sm:$0xff] %vm1817_vm10, %v7258_v28  ;;  %v3924_v46 = vsel %vm6604_vm11, %v3919_v2, %v7351_v13  ;;  %v5669_v55 = vrot.slane %v5643_v59, 9  ;;  %v3043_v28 = vrot.slane %v5644_v10, 5  ;;  %v6091_v8 = vunpack.c.l.bf16 %v6113_v17  ;;  %v7445_v14 = vld [vmem:[#allocation2 + $0x4c] sm:$0xf] }
 0x12f   : > { %1823 = vst.msk [vmem:[#allocation3 + $0x28] sm:$0xff] %vm1817_vm10, %v7292_v26  ;;  %1822 = vst.msk [vmem:[#allocation3 + $0x20] sm:$0xff] %vm1817_vm10, %v7294_v19  ;;  %v4455_v10 = vsel %vm6564_vm5, %v5889_v50, %v4454_v0  ;;  %v4456_v13 = vrot.slane %v4454_v0, 4  ;;  %v7431_v26 = vpop.permute.xlu0 %2812  ;;  %v6092_v38 = vunpack.c.h.bf16 %v6113_v17  ;;  %v6377_v48 = vld [vmem:[#allocation2 + $0x24] sm:$0xff]   ;;  %v6376_v60 = vld [vmem:[#allocation2 + $0x30] sm:$0xff]   ;;  %vm3212_vm15 = vcmask 97280  }
 0x130   : > { %1825 = vst.msk [vmem:[#allocation3 + $0x38] sm:$0xff] %vm1817_vm10, %v1784_v5  ;;  %1824 = vst.msk [vmem:[#allocation3 + $0x30] sm:$0xff] %vm1817_vm10, %v1782_v40  ;;  %v3929_v5 = vrot.slane %v3928_v24, 4  ;;  %v6380_v16 = vld [vmem:[#allocation2 + $0x48] sm:$0xff]   ;;  %v6381_v49 = vld [vmem:[#allocation2 + $0x3c] sm:$0xff]   ;;  %v3936_v62 = vshrl.u32 %v7443_v12, 16 }
 0x131   : > { %2142 = vst.msk [vmem:[#allocation3] sm:$0xff] %vm2141_vm12, %v7113_v63  ;;  %2143 = vst.msk [vmem:[#allocation3 + $0x8] sm:$0xff] %vm2141_vm12, %v7128_v30  ;;  %v3046_v63 = vrot.slane %v5645_v27, 5  ;;  %v3045_v30 = vrot.slane %v3043_v28, 4  ;;  %2826 = vrot.lane.b32.xlu0 %v5605_v58, %s6450_s12  ;;  %v7460_v32 = vld [vmem:[%s8289_s3] ss:$0 sm:$0xff] }
 0x132   : > { %2145 = vst.msk [vmem:[#allocation3 + $0x18] sm:$0xff] %vm2141_vm12, %v7154_v39  ;;  %2144 = vst.msk [vmem:[#allocation3 + $0x10] sm:$0xff] %vm2141_vm12, %v7126_v37  ;;  %v7416_v37 = vsel %vm6564_vm5, %v5669_v55, %v3043_v28  ;;  %v7421_v39 = vld [vmem:[%s8287_s1] ss:$0 sm:$0xff]  ;;  %4595 = vrot.lane.b32.xlu1 %v5904_v56, %s6449_s11  ;;  %v3934_v19 = vsel %vm6604_vm11, %v3929_v5, %v7355_v54  ;;  %v6385_v59 = vld [vmem:[#allocation2 + $0x54] sm:$0xff]   ;;  %v7475_v24 = vrot.slane %v3936_v62, 4 }
 0x133   : > { %2147 = vst.msk [vmem:[#allocation3 + $0x28] sm:$0xff] %vm2141_vm12, %v7198_v47  ;;  %2146 = vst.msk [vmem:[#allocation3 + $0x20] sm:$0xff] %vm2141_vm12, %v7165_v11  ;;  %v8314_v11 = vunpack.c.l.bf16 %v7249_v25  ;;  %v5825_v15 = vcombine.low %v3924_v46, %v3934_v19  ;;  %v7449_v53 = vsel %vm6564_vm5, %v3045_v30, %v3046_v63  ;;  %v452_v61 = vmul.f32 %v7421_v39, %v6091_v8  ;;  %v6384_v29 = vld [vmem:[#allocation2 + $0x60] sm:$0xff]   ;;  %v6387_v40 = vld [vmem:[#allocation2 + $0x78] sm:$0xff]   ;;  %v3133_v28 = vpop.permute.xlu0 %3132 }
 0x134   : > { %2149 = vst.msk [vmem:[#allocation3 + $0x38] sm:$0xff] %vm2141_vm12, %v7228_v35  ;;  %2148 = vst.msk [vmem:[#allocation3 + $0x30] sm:$0xff] %vm2141_vm12, %v7216_v18  ;;  %v8315_v18 = vunpack.c.h.bf16 %v7249_v25  ;;  %v7429_v35 = vpop.permute.xlu1 %2814  ;;  %v4458_v25 = vsel %vm6564_vm5, %v4456_v13, %v4457_v44  ;;  %v5685_v33 = vcombine.low %v7416_v37, %v7449_v53  ;;  %v453_v20 = vmul.f32 %v7421_v39, %v6092_v38  ;;  %v6386_v30 = vld [vmem:[#allocation2 + $0x84] sm:$0xff]  }
 0x135   : > { %v454_v47 = vmul.f32 %v7421_v39, %v8314_v11  ;;  %v5905_v52 = vcombine.low %v4455_v10, %v4458_v25  ;;  %4277 = vrot.lane.b32.xlu0 %v5825_v15, %s6450_s12  ;;  %v491_v51 = vadd.f32 %v7211_v36, %v452_v61  ;;  %v3939_v0 = vshll.u32 %v7443_v12, 16  ;;  %1280 = vst.msk [vmem:[#allocation3 + $0x50] sm:$0xff] %vm1269_vm9, %v6387_v40  ;;  %v7490_v10 = vld [vmem:[#allocation2 + $0x50] sm:$0x1]  ;;  %v6392_v25 = vld [vmem:[#allocation2 + $0x9c] sm:$0xff]  }
 0x136   : > { %v455_v2 = vmul.f32 %v7421_v39, %v8315_v18  ;;  %v492_v54 = vadd.f32 %v7211_v36, %v453_v20  ;;  %v3945_v44 = vshll.u32 %v7445_v14, 16  ;;  %v8316_v18 = vld [vmem:[#allocation7_spill] sm:$0xff]  ;;  %1281 = vst.msk [vmem:[#allocation3 + $0x58] sm:$0xff] %vm1269_vm9, %v6386_v30  ;;  %1283 = vst.msk [vmem:[#allocation3 + $0x68] sm:$0xff] %vm1269_vm9, %v6392_v25  ;;  %v1127_v20 = vld [vmem:[#allocation2 + $0xbc] sm:$0x1] }
 0x137   : > { %v493_v57 = vadd.f32 %v7211_v36, %v454_v47  ;;  %4597 = vrot.lane.b32.xlu1 %v5905_v52, %s6449_s11  ;;  %vm523_vm6 = vcmp.ge.f32.partialorder %v491_v51, 0.0  ;;  %v6393_v15 = vld [vmem:[#allocation2 + $0x90] sm:$0xff]   ;;  %v1116_v40 = vld [vmem:[#allocation2 + $0xa8] sm:$0xf]  ;;  %v7566_v25 = vld [vmem:[#allocation2 + $0xa4] sm:$0x1] }
 0x138   : > { %v494_v34 = vadd.f32 %v7211_v36, %v455_v2  ;;  %v2158_v50 = vld [vmem:[#allocation3] sm:$0xff]  ;;  %v7469_v27 = vld [vmem:[#allocation3 + $0x8] sm:$0xff]  ;;  %v3135_v55 = vpop.permute.xlu1 %3134  ;;  %vm524_vm7 = vcmp.ge.f32.partialorder %v492_v54, 0.0  ;;  %v563_v47 = vmul.f32 %v7460_v32, %v492_v54  ;;  %1282 = vst.msk [vmem:[#allocation3 + $0x60] sm:$0xff] %vm1269_vm9, %v6393_v15  ;;  %vm3261_vm8 = vcmask 1045504  }
 0x139   : > { %vm525_vm14 = vcmp.ge.f32.partialorder %v493_v57, 0.0  ;;  %v564_v56 = vmul.f32 %v7460_v32, %v493_v57  ;;  %v7471_v4 = vld [vmem:[#allocation3 + $0x10] sm:$0xff]  ;;  %6203 = vmatprep.mubr.msk.bf16.mxu0 %vm3212_vm15, %v2158_v50  ;;  %2309 = vst.msk [vmem:[#allocation3 + $0x8] sm:$0xff] %vm1269_vm9, %v6371_v6  ;;  %2308 = vst.msk [vmem:[#allocation3] sm:$0xff] %vm1269_vm9, %v6372_v7  ;;  %v7481_v36 = vld [vmem:[#allocation3 + $0x18] sm:$0xff]  ;;  %3146 = vrot.lane.b32.xlu0 %v5685_v33, %s6449_s11 }
 0x13a   : > { %vm526_vm4 = vcmp.ge.f32.partialorder %v494_v34, 0.0  ;;  %v565_v9 = vmul.f32 %v7460_v32, %v494_v34  ;;  %2310 = vst.msk [vmem:[#allocation3 + $0x10] sm:$0xff] %vm1269_vm9, %v6377_v48  ;;  %v7484_v58 = vld [vmem:[#allocation3 + $0x20] sm:$0xff]  ;;  %v7486_v46 = vld [vmem:[#allocation3 + $0x28] sm:$0xff]  ;;  %2311 = vst.msk [vmem:[#allocation3 + $0x18] sm:$0xff] %vm1269_vm9, %v6376_v60  ;;  %v595_v19 = vsel %vm524_vm7, %v492_v54, %v563_v47 }
 0x13b   : > { %v596_v43 = vsel %vm525_vm14, %v493_v57, %v564_v56  ;;  %2853 = vst.msk [vmem:[#allocation3 + $0x8] sm:$0xff] %vm1817_vm10, %v7280_v21  ;;  %2852 = vst.msk [vmem:[#allocation3] sm:$0xff] %vm1817_vm10, %v7282_v22  ;;  %v7501_v13 = vld [vmem:[#allocation3 + $0x30] sm:$0xff]  ;;  %v7503_v63 = vld [vmem:[#allocation3 + $0x38] sm:$0xff]  ;;  %v562_v21 = vmul.f32 %v7460_v32, %v491_v51  ;;  %v3941_v22 = vrot.slane %v3939_v0, 5  ;;  %v6000_v12 = vpack.c.bf16 %v595_v19, %v595_v19 }
 0x13c   : > { %v597_v17 = vsel %vm526_vm4, %v494_v34, %v565_v9  ;;  %v6001_v5 = vpack.c.bf16 %v596_v43, %v596_v43  ;;  %2854 = vst.msk [vmem:[#allocation3 + $0x10] sm:$0xff] %vm1817_vm10, %v7328_v31  ;;  %2855 = vst.msk [vmem:[#allocation3 + $0x18] sm:$0xff] %vm1817_vm10, %v7326_v3  ;;  %v7525_v3 = vrot.slane %v3945_v44, 5  ;;  %v7528_v31 = vld [vmem:[#allocation2 + $0x9c] sm:$0xf]  ;;  %v3955_v57 = vshll.u32 %v7490_v10, 16  ;;  %v1788_v7 = vpop.permute.xlu1 %1787 }
 0x13d   : > { %2313 = vst.msk [vmem:[#allocation3 + $0x28] sm:$0xff] %vm1269_vm9, %v6380_v16  ;;  %2312 = vst.msk [vmem:[#allocation3 + $0x20] sm:$0xff] %vm1269_vm9, %v6381_v49  ;;  %v6002_v11 = vpack.c.bf16 %v597_v17, %v597_v17  ;;  %v2661_v6 = vshrl.u32 %v7528_v31, 16  ;;  %v6388_v48 = vld [vmem:[#allocation2 + $0x18] sm:$0xff]   ;;  %v6391_v33 = vld [vmem:[#allocation2 + $0x24] sm:$0xff]   ;;  %v2664_v15 = vshll.u32 %v7528_v31, 16 }
 0x13e   : > { %3173 = vst.msk [vmem:[#allocation3 + $0x8] sm:$0xff] %vm2141_vm12, %v7167_v45  ;;  %3172 = vst.msk [vmem:[#allocation3] sm:$0xff] %vm2141_vm12, %v7152_v23  ;;  %v938_v23 = vshrl.u32 %v6001_v5, 16  ;;  %v941_v45 = vshll.u32 %v6001_v5, 16  ;;  %v6395_v49 = vld [vmem:[#allocation2 + $0x30] sm:$0xff]   ;;  %v3957_v47 = vrot.slane %v3955_v57, 5 }
 0x13f   : > { %3174 = vst.msk [vmem:[#allocation3 + $0x10] sm:$0xff] %vm2141_vm12, %v7196_v42  ;;  %v3949_v42 = vshrl.u32 %v7445_v14, 16  ;;  %3175 = vst.msk [vmem:[#allocation3 + $0x18] sm:$0xff] %vm2141_vm12, %v8316_v18  ;;  %v946_v2 = vshrl.u32 %v6002_v11, 16  ;;  %v949_v37 = vshll.u32 %v6002_v11, 16  ;;  %v3942_v14 = vor.u32 %v3941_v22, %v7475_v24 }
 0x140   : > { %2857 = vst.msk [vmem:[#allocation3 + $0x28] sm:$0xff] %vm1817_vm10, %v7429_v35  ;;  %2856 = vst.msk [vmem:[#allocation3 + $0x20] sm:$0xff] %vm1817_vm10, %v7431_v26  ;;  %v1123_v35 = vld [vmem:[#allocation2 + $0xb4] sm:$0xf]  ;;  %v594_v26 = vsel %vm523_vm6, %v491_v51, %v562_v21  ;;  %v940_v8 = vrot.slane %v938_v23, 7  ;;  %v6398_v51 = vld [vmem:[#allocation2 + $0x3c] sm:$0xff]   ;;  %v2112_v18 = vpop.permute.xlu1 %2111 }
 0x141   : > { %2315 = vst.msk [vmem:[#allocation3 + $0x38] sm:$0xff] %vm1269_vm9, %v6384_v29  ;;  %2314 = vst.msk [vmem:[#allocation3 + $0x30] sm:$0xff] %vm1269_vm9, %v6385_v59  ;;  %v5999_v38 = vpack.c.bf16 %v594_v26, %v594_v26  ;;  %v948_v52 = vrot.slane %v946_v2, 7  ;;  %v3951_v53 = vrot.slane %v3949_v42, 4  ;;  %v929_v29 = vshrl.u32 %v6000_v12, 16  ;;  %v1786_v42 = vpop.permute.xlu0 %1785 }
 0x142   : > { %3177 = vst.msk [vmem:[#allocation3 + $0x28] sm:$0xff] %vm2141_vm12, %v3135_v55  ;;  %3176 = vst.msk [vmem:[#allocation3 + $0x20] sm:$0xff] %vm2141_vm12, %v3133_v28  ;;  %v943_v34 = vor.u32 %v941_v45, %v940_v8  ;;  %v944_v61 = vrot.slane %v940_v8, 4  ;;  %v932_v59 = vshll.u32 %v6000_v12, 16  ;;  %v5583_v9 = vld [vmem:[#allocation2 + $0xa0] sm:$0xf] }
 0x143   : > { %v921_v60 = vshrl.u32 %v5999_v38, 16  ;;  %v924_v16 = vshll.u32 %v5999_v38, 16  ;;  %1827 = vst.msk [vmem:[#allocation3 + $0x48] sm:$0xff] %vm1817_vm10, %v1788_v7  ;;  %v951_v56 = vor.u32 %v949_v37, %v948_v52  ;;  %v953_v62 = vrot.slane %v948_v52, 4  ;;  %v1120_v24 = vld [vmem:[#allocation2 + $0xb0] sm:$0x1] }
 0x144   : > { %v1124_v50 = vsel %vm6633_vm2, %v943_v34, %v1123_v35  ;;  %v3943_v0 = vrot.slane %v3942_v14, 4  ;;  %v3952_v44 = vor.u32 %v3951_v53, %v7525_v3  ;;  %v931_v21 = vrot.slane %v929_v29, 7  ;;  %v5584_v22 = vld [vmem:[#allocation2 + $0xa4] sm:$0x1]  ;;  %v5646_v23 = vld [vmem:[#allocation2 + $0x9c] sm:$0xe] }
 0x145   : > { %v923_v43 = vrot.slane %v921_v60, 7  ;;  %v3188_v55 = vld [vmem:[#allocation3] sm:$0xff]  ;;  %v7546_v28 = vld [vmem:[#allocation3 + $0x8] sm:$0xff]  ;;  %v952_v10 = vsel %vm6625_vm13, %v944_v61, %v951_v56  ;;  %1125 = vst [vmem:[#allocation2 + $0xb4] sm:$0xf] %v1124_v50  ;;  %v1128_v11 = vsel %vm6641_vm3, %v953_v62, %v1127_v20  ;;  %1826 = vst.msk [vmem:[#allocation3 + $0x40] sm:$0xff] %vm1817_vm10, %v1786_v42  ;;  %v2110_v61 = vpop.permute.xlu0 %2109 }
 0x146   : > { %v7548_v17 = vld [vmem:[#allocation3 + $0x10] sm:$0xff]  ;;  %6169 = vmatprep.mubr.msk.bf16.mxu1 %vm3212_vm15, %v3188_v55  ;;  %v7555_v45 = vld [vmem:[#allocation3 + $0x18] sm:$0xff]  ;;  %3775 = vst.msk [vmem:[#allocation3] sm:$0xff] %vm1269_vm9, %v6388_v48  ;;  %3776 = vst.msk [vmem:[#allocation3 + $0x8] sm:$0xff] %vm1269_vm9, %v6391_v33  ;;  %v3948_v35 = vsel %vm6604_vm11, %v3943_v0, %v7525_v3  ;;  %v3953_v26 = vrot.slane %v3952_v44, 4  ;;  %v934_v38 = vor.u32 %v932_v59, %v931_v21  ;;  %v936_v12 = vrot.slane %v931_v21, 4  ;;  %v2819_v0 = vpop.permute.xlu1 %2818 }
 0x147   : > { %3777 = vst.msk [vmem:[#allocation3 + $0x10] sm:$0xff] %vm1269_vm9, %v6395_v49  ;;  %1129 = vst [vmem:[#allocation2 + $0xbc] sm:$0x1] %v1128_v11  ;;  %v926_v2 = vor.u32 %v924_v16, %v923_v43  ;;  %v927_v37 = vrot.slane %v923_v43, 4  ;;  %v7564_v19 = vld [vmem:[#allocation2 + $0xa0] sm:$0xf] }
 0x148   : > { %1126 = vst.msk [vmem:[#allocation2 + $0xb8] sm:$0xf] %vm299_vm0, %v952_v10  ;;  %v7568_v8 = vld [vmem:[#allocation2 + $0x48] sm:$0xe]  ;;  %v2663_v14 = vrot.slane %v2661_v6, 4  ;;  %v3958_v53 = vsel %vm6604_vm11, %v3953_v26, %v3957_v47  ;;  %v2670_v57 = vshll.u32 %v5583_v9, 16  ;;  %v1121_v33 = vsel %vm6641_vm3, %v936_v12, %v1120_v24 }
 0x149   : > { %2151 = vst.msk [vmem:[#allocation3 + $0x48] sm:$0xff] %vm2141_vm12, %v2112_v18  ;;  %v7574_v3 = vld [vmem:[#allocation2 + $0x4c] sm:$0xf]  ;;  %v1117_v52 = vsel %vm6633_vm2, %v926_v2, %v1116_v40  ;;  %v2674_v7 = vshrl.u32 %v5583_v9, 16  ;;  %v935_v48 = vsel %vm6625_vm13, %v927_v37, %v934_v38  ;;  %v7584_v6 = vcombine.low %v3948_v35, %v3958_v53  ;;  %v7587_v34 = vld [vmem:[%s6574_s28 + $0x78] sm:$0xff]   ;;  %2150 = vst.msk [vmem:[#allocation3 + $0x40] sm:$0xff] %vm2141_vm12, %v2110_v61 }
 0x14a   : > { %3778 = vst.msk [vmem:[#allocation3 + $0x18] sm:$0xff] %vm1269_vm9, %v6398_v51  ;;  %1118 = vst [vmem:[#allocation2 + $0xa8] sm:$0xf] %v1117_v52  ;;  %v2666_v31 = vrot.slane %v2664_v15, 5  ;;  %v7590_v20 = vrot.slane %v2670_v57, 5  ;;  %v2680_v16 = vshll.u32 %v5584_v22, 16  ;;  %v6099_v24 = vunpack.c.l.bf16 %v7587_v34  ;;  %v2817_v22 = vpop.permute.xlu0 %2816 }
 0x14b   : > { %1119 = vst.msk [vmem:[#allocation2 + $0xac] sm:$0xf] %vm299_vm0, %v935_v48  ;;  %1122 = vst [vmem:[#allocation2 + $0xb0] sm:$0x1] %v1121_v33  ;;  %v7592_v60 = vrot.slane %v2674_v7, 4  ;;  %v5670_v49 = vrot.slane %v5646_v23, 9  ;;  %v3139_v33 = vpop.permute.xlu1 %3138 }
 0x14c   : > { %v2667_v56 = vor.u32 %v2666_v31, %v2663_v14  ;;  %v3050_v62 = vrot.slane %v7564_v19, 5  ;;  %v3053_v29 = vrot.slane %v7566_v25, 5  ;;  %v5890_v59 = vrot.slane %v7568_v8, 9  ;;  %v1331_v40 = vld [vmem:[#allocation2 + $0xb4] sm:$0xf]  ;;  %2859 = vst.msk [vmem:[#allocation3 + $0x38] sm:$0xff] %vm1817_vm10, %v2819_v0 }
 0x14d   : > { %v1879_v9 = vld [vmem:[#allocation2 + $0xb4] sm:$0xe]  ;;  %v2677_v51 = vor.u32 %v7592_v60, %v7590_v20  ;;  %v7600_v50 = vrot.slane %v2680_v16, 5  ;;  %v4461_v43 = vrot.slane %v7574_v3, 5  ;;  %v1698_v10 = vshrl.u32 %v1331_v40, 16  ;;  %v6389_v23 = vld [vmem:[#allocation2 + $0x6c] sm:$0xff]  }
 0x14e   : > { %v1333_v55 = vld [vmem:[#allocation2 + $0xbc] sm:$0x1]  ;;  %v1701_v11 = vshll.u32 %v1331_v40, 16  ;;  %v7608_v21 = vsel %vm6564_vm5, %v5670_v49, %v3050_v62  ;;  %v5481_v35 = vrot.slane %v1879_v9, 9  ;;  %2858 = vst.msk [vmem:[#allocation3 + $0x30] sm:$0xff] %vm1817_vm10, %v2817_v22  ;;  %v7613_v15 = vrot.slane %v2667_v56, 4  ;;  %v3137_v56 = vpop.permute.xlu0 %3136 }
 0x14f   : > { %v1332_v44 = vld [vmem:[#allocation2 + $0xb8] sm:$0xf]  ;;  %v1717_v2 = vshll.u32 %v1333_v55, 16  ;;  %v1700_v26 = vrot.slane %v1698_v10, 4  ;;  %v1881_v12 = vld [vmem:[#allocation2 + $0xbc] sm:$0x1] }
 0x150   : > { %v1707_v42 = vshll.u32 %v1332_v44, 16  ;;  %v1711_v18 = vshrl.u32 %v1332_v44, 16  ;;  %v1880_v37 = vld [vmem:[#allocation2 + $0xb8] sm:$0xf]  ;;  %v1703_v38 = vrot.slane %v1701_v11, 5  ;;  %v2043_v48 = vrot.slane %v1881_v12, 5 }
 0x151   : > { %v2040_v14 = vrot.slane %v1880_v37, 5  ;;  %v1719_v57 = vrot.slane %v1717_v2, 5  ;;  %v1328_v7 = vld [vmem:[#allocation2 + $0xa8] sm:$0xf]  ;;  %v6390_v31 = vld [vmem:[#allocation2 + $0x78] sm:$0xff]   ;;  %3179 = vst.msk [vmem:[#allocation3 + $0x38] sm:$0xff] %vm2141_vm12, %v3139_v33 }
 0x152   : > { %v1709_v52 = vrot.slane %v1707_v42, 5  ;;  %v1713_v53 = vrot.slane %v1711_v18, 4  ;;  %v1704_v61 = vor.u32 %v1703_v38, %v1700_v26  ;;  %v1329_v16 = vld [vmem:[#allocation2 + $0xac] sm:$0xf]  ;;  %v1330_v49 = vld [vmem:[#allocation2 + $0xb0] sm:$0x1] }
 0x153   : > { %v1674_v40 = vshrl.u32 %v1328_v7, 16  ;;  %v1677_v9 = vshll.u32 %v1328_v7, 16  ;;  %v7617_v0 = vsel %vm6564_vm5, %v5481_v35, %v2040_v14  ;;  %v1683_v55 = vshll.u32 %v1329_v16, 16  ;;  %v1876_v22 = vld [vmem:[#allocation2 + $0xa8] sm:$0xe]  ;;  %3178 = vst.msk [vmem:[#allocation3 + $0x30] sm:$0xff] %vm2141_vm12, %v3137_v56 }
 0x154   : > { %v1714_v44 = vor.u32 %v1713_v53, %v1709_v52  ;;  %v1687_v10 = vshrl.u32 %v1329_v16, 16  ;;  %v1693_v11 = vshll.u32 %v1330_v49, 16  ;;  %v7621_v42 = vld [vmem:[#allocation3 + $0x40] sm:$0xff]  ;;  %v1705_v18 = vrot.slane %v1704_v61, 4  ;;  %v1877_v38 = vld [vmem:[#allocation2 + $0xac] sm:$0xf] }
 0x155   : > { %v1676_v2 = vrot.slane %v1674_v40, 4  ;;  %v1679_v37 = vrot.slane %v1677_v9, 5  ;;  %v2042_v26 = vrot.slane %v2040_v14, 4  ;;  %2316 = vst.msk [vmem:[#allocation3 + $0x40] sm:$0xff] %vm1269_vm9, %v6389_v23  ;;  %v1685_v12 = vrot.slane %v1683_v55, 5  ;;  %v7628_v61 = vld [vmem:[#allocation3 + $0x48] sm:$0xff] }
 0x156   : > { %v1715_v35 = vrot.slane %v1714_v44, 4  ;;  %v1689_v7 = vrot.slane %v1687_v10, 4  ;;  %v1695_v33 = vrot.slane %v1693_v11, 5  ;;  %v1878_v53 = vld [vmem:[#allocation2 + $0xb0] sm:$0x1]  ;;  %v1710_v16 = vsel %vm6604_vm11, %v1705_v18, %v1709_v52  ;;  %2317 = vst.msk [vmem:[#allocation3 + $0x48] sm:$0xff] %vm1269_vm9, %v6390_v31 }
 0x157   : > { %v1680_v49 = vor.u32 %v1679_v37, %v1676_v2  ;;  %v2044_v56 = vsel %vm6564_vm5, %v2042_v26, %v2043_v48  ;;  %v5480_v47 = vrot.slane %v1876_v22, 9  ;;  %v2033_v9 = vrot.slane %v1877_v38, 5  ;;  %v5585_v44 = vld [vmem:[#allocation2 + $0xa8] sm:$0xf]  ;;  %v6399_v55 = vld [vmem:[#allocation2 + $0xb4] sm:$0xff]  }
 0x158   : > { %v1720_v14 = vsel %vm6604_vm11, %v1715_v35, %v1719_v57  ;;  %v1690_v40 = vor.u32 %v1689_v7, %v1685_v12  ;;  %v5497_v23 = vcombine.low %v7617_v0, %v2044_v56  ;;  %v2036_v11 = vrot.slane %v1878_v53, 5  ;;  %v5586_v22 = vld [vmem:[#allocation2 + $0xac] sm:$0xf]  ;;  %1285 = vst.msk [vmem:[#allocation3 + $0x78] sm:$0xff] %vm1269_vm9, %v6399_v55  ;;  %v5587_v60 = vld [vmem:[#allocation2 + $0xb0] sm:$0x1] }
 0x159   : > { %v5465_v10 = vcombine.low %v1710_v16, %v1720_v14  ;;  %v1681_v52 = vrot.slane %v1680_v49, 4  ;;  %v2673_v48 = vsel %vm6604_vm11, %v7613_v15, %v7590_v20  ;;  %v2034_v57 = vsel %vm6564_vm5, %v5480_v47, %v2033_v9  ;;  %v6400_v35 = vld [vmem:[#allocation2 + $0xa8] sm:$0xff]   ;;  %v5790_v14 = vld [vmem:[#allocation2 + $0x58] sm:$0xf]  ;;  %v5853_v55 = vld [vmem:[#allocation2 + $0x54] sm:$0xe] }
 0x15a   : > { %v1691_v18 = vrot.slane %v1690_v40, 4  ;;  %v2035_v2 = vrot.slane %v2033_v9, 4  ;;  %v2678_v0 = vrot.slane %v2677_v51, 4  ;;  %v3052_v15 = vrot.slane %v3050_v62, 4  ;;  %v5852_v62 = vld [vmem:[#allocation2 + $0x50] sm:$0x1] }
 0x15b   : > { %1799 = vrot.lane.b32.xlu1 %v5465_v10, %s6450_s12  ;;  %v1686_v31 = vsel %vm6604_vm11, %v1681_v52, %v1685_v12  ;;  %v2685_v37 = vshrl.u32 %v5585_v44, 16  ;;  %v2688_v26 = vshll.u32 %v5585_v44, 16  ;;  %v2694_v51 = vshll.u32 %v5586_v22, 16  ;;  %1284 = vst.msk [vmem:[#allocation3 + $0x70] sm:$0xff] %vm1269_vm9, %v6400_v35  ;;  %v6401_v40 = vld [vmem:[#allocation2 + $0x48] sm:$0xff]   ;;  %v7681_v10 = vld [vmem:[#allocation3 + $0x20] sm:$0xff] }
 0x15c   : > { %v1696_v47 = vsel %vm6604_vm11, %v1691_v18, %v1695_v33  ;;  %v2037_v38 = vsel %vm6564_vm5, %v2035_v2, %v2036_v11  ;;  %v2683_v20 = vsel %vm6604_vm11, %v2678_v0, %v7600_v50  ;;  %v7662_v19 = vsel %vm6564_vm5, %v3052_v15, %v3053_v29  ;;  %v5789_v33 = vld [vmem:[#allocation2 + $0x54] sm:$0xf]  ;;  %v5791_v44 = vld [vmem:[#allocation2 + $0x5c] sm:$0x1]  ;;  %3779 = vst.msk [vmem:[#allocation3 + $0x20] sm:$0xff] %vm1269_vm9, %v6401_v40  ;;  %v7686_v15 = vld [vmem:[#allocation3 + $0x28] sm:$0xff] }
 0x15d   : > { %v5464_v7 = vcombine.low %v1686_v31, %v1696_v47  ;;  %v5496_v12 = vcombine.low %v2034_v57, %v2037_v38  ;;  %v7656_v53 = vcombine.low %v2673_v48, %v2683_v20  ;;  %v5686_v16 = vcombine.low %v7608_v21, %v7662_v19  ;;  %v7705_v40 = vld [vmem:[%s8290_s4 + $0x8] sm:$0x3f]  }
 0x15e   : > { %v2687_v49 = vrot.slane %v2685_v37, 4  ;;  %v2690_v50 = vrot.slane %v2688_v26, 5  ;;  %v7666_v56 = vrot.slane %v2694_v51, 5  ;;  %v2698_v25 = vshrl.u32 %v5586_v22, 16  ;;  %v5854_v22 = vld [vmem:[#allocation2 + $0x58] sm:$0xf]  ;;  %6335 = vmatprep.subr.msk.bf16.mxu1 %vm3261_vm8, %v7705_v40 }
 0x15f   : > { %1797 = vrot.lane.b32.xlu0 %v5464_v7, %s6450_s12  ;;  %2123 = vrot.lane.b32.xlu1 %v5497_v23, %s6449_s11  ;;  %v2704_v29 = vshll.u32 %v5587_v60, 16  ;;  %v7677_v21 = vsel %vm6564_vm5, %v5890_v59, %v4461_v43  ;;  %v4463_v9 = vrot.slane %v4461_v43, 4  ;;  %v4464_v11 = vrot.slane %v5852_v62, 5  ;;  %v5855_v59 = vld [vmem:[#allocation2 + $0x5c] sm:$0x1]  ;;  %v6404_v37 = vld [vmem:[#allocation2 + $0x54] sm:$0xff]  }
 0x160   : > { %v2691_v52 = vor.u32 %v2690_v50, %v2687_v49  ;;  %v3960_v23 = vshrl.u32 %v5789_v33, 16  ;;  %v3963_v48 = vshll.u32 %v5789_v33, 16  ;;  %v2700_v18 = vrot.slane %v2698_v25, 4  ;;  %v5649_v60 = vld [vmem:[#allocation2 + $0xa8] sm:$0xe]  ;;  %3780 = vst.msk [vmem:[#allocation3 + $0x28] sm:$0xff] %vm1269_vm9, %v6404_v37 }
 0x161   : > { %v2706_v8 = vrot.slane %v2704_v29, 5  ;;  %v3969_v57 = vshll.u32 %v5790_v14, 16  ;;  %v3973_v2 = vshrl.u32 %v5790_v14, 16  ;;  %v4465_v3 = vsel %vm6564_vm5, %v4463_v9, %v4464_v11  ;;  %v5650_v51 = vld [vmem:[#allocation2 + $0xac] sm:$0xf] }
 0x162   : > { %v2692_v0 = vrot.slane %v2691_v52, 4  ;;  %v3962_v43 = vrot.slane %v3960_v23, 4  ;;  %v3965_v31 = vrot.slane %v3963_v48, 5  ;;  %v2701_v26 = vor.u32 %v2700_v18, %v7666_v56  ;;  %v5792_v14 = vld [vmem:[#allocation2 + $0x60] sm:$0xf]  ;;  %v7714_v18 = vld [vmem:[#allocation3 + $0x30] sm:$0xff] }
 0x163   : > { %2121 = vrot.lane.b32.xlu0 %v5496_v12, %s6449_s11  ;;  %4279 = vrot.lane.b32.xlu1 %v7584_v6, %s6450_s12  ;;  %v5906_v47 = vcombine.low %v7677_v21, %v4465_v3  ;;  %v3971_v38 = vrot.slane %v3969_v57, 5  ;;  %v3975_v20 = vrot.slane %v3973_v2, 4  ;;  %v3979_v19 = vshll.u32 %v5791_v44, 16  ;;  %v7699_v12 = vld [vmem:[%s8290_s4] sm:$0x3f]  }
 0x164   : > { %v2697_v35 = vsel %vm6604_vm11, %v2692_v0, %v7666_v56  ;;  %v3966_v7 = vor.u32 %v3965_v31, %v3962_v43  ;;  %v5891_v62 = vrot.slane %v5853_v55, 9  ;;  %v2702_v6 = vrot.slane %v2701_v26, 4  ;;  %v5651_v29 = vld [vmem:[#allocation2 + $0xb0] sm:$0x1]  ;;  %v5793_v44 = vld [vmem:[#allocation2 + $0x64] sm:$0xf]  ;;  %6336 = vmatprep.subr.msk.bf16.mxu0 %vm3261_vm8, %v7699_v12 }
 0x165   : > { %v3976_v33 = vor.u32 %v3975_v20, %v3971_v38  ;;  %v4468_v49 = vrot.slane %v5854_v22, 5  ;;  %v4471_v50 = vrot.slane %v5855_v59, 5  ;;  %v3981_v25 = vrot.slane %v3979_v19, 5  ;;  %v5794_v55 = vld [vmem:[#allocation2 + $0x68] sm:$0x1]  ;;  %v1792_v59 = vpop.permute.xlu1 %1791  ;;  %v6405_v0 = vld [vmem:[#allocation2 + $0x60] sm:$0xff]  }
 0x166   : > { %v3967_v56 = vrot.slane %v3966_v7, 4  ;;  %v5671_v21 = vrot.slane %v5649_v60, 9  ;;  %v3057_v9 = vrot.slane %v5650_v51, 5  ;;  %v2707_v52 = vsel %vm6604_vm11, %v2702_v6, %v2706_v8  ;;  %v5588_v22 = vld [vmem:[#allocation2 + $0xb4] sm:$0xf]  ;;  %1829 = vst.msk [vmem:[#allocation3 + $0x58] sm:$0xff] %vm1817_vm10, %v1792_v59 }
 0x167   : > { %2828 = vrot.lane.b32.xlu0 %v7656_v53, %s6450_s12  ;;  %3148 = vrot.lane.b32.xlu1 %v5686_v16, %s6449_s11  ;;  %v3977_v11 = vrot.slane %v3976_v33, 4  ;;  %v4469_v23 = vsel %vm6564_vm5, %v5891_v62, %v4468_v49  ;;  %v4470_v48 = vrot.slane %v4468_v49, 4  ;;  %v5607_v57 = vcombine.low %v2697_v35, %v2707_v52  ;;  %v5589_v31 = vld [vmem:[#allocation2 + $0xb8] sm:$0xf]  ;;  %v5590_v60 = vld [vmem:[#allocation2 + $0xbc] sm:$0x1]  ;;  %v1790_v52 = vpop.permute.xlu0 %1789 }
 0x168   : > { %v3972_v2 = vsel %vm6604_vm11, %v3967_v56, %v3971_v38  ;;  %v7720_v53 = vsel %vm6564_vm5, %v5671_v21, %v3057_v9  ;;  %v3059_v16 = vrot.slane %v3057_v9, 4  ;;  %v3060_v43 = vrot.slane %v5651_v29, 5  ;;  %3781 = vst.msk [vmem:[#allocation3 + $0x30] sm:$0xff] %vm1269_vm9, %v6405_v0  ;;  %v5652_v62 = vld [vmem:[#allocation2 + $0xb4] sm:$0xe] }
 0x169   : > { %v3982_v8 = vsel %vm6604_vm11, %v3977_v11, %v3981_v25  ;;  %v4472_v3 = vsel %vm6564_vm5, %v4470_v48, %v4471_v50  ;;  %v3984_v38 = vshrl.u32 %v5792_v14, 16  ;;  %v3987_v20 = vshll.u32 %v5792_v14, 16  ;;  %v7739_v6 = vld [vmem:[%s8290_s4 + $0x10] sm:$0x3f]   ;;  %v5653_v56 = vld [vmem:[#allocation2 + $0xb8] sm:$0xf]  ;;  %v2116_v25 = vpop.permute.xlu1 %2115 }
 0x16a   : > { %v5827_v37 = vcombine.low %v3972_v2, %v3982_v8  ;;  %v5907_v26 = vcombine.low %v4469_v23, %v4472_v3  ;;  %v3061_v51 = vsel %vm6564_vm5, %v3059_v16, %v3060_v43  ;;  %v3993_v35 = vshll.u32 %v5793_v44, 16  ;;  %2153 = vst.msk [vmem:[#allocation3 + $0x58] sm:$0xff] %vm2141_vm12, %v2116_v25 }
 0x16b   : > { %2830 = vrot.lane.b32.xlu0 %v5607_v57, %s6450_s12  ;;  %4599 = vrot.lane.b32.xlu1 %v5906_v47, %s6449_s11  ;;  %v3997_v7 = vshrl.u32 %v5793_v44, 16  ;;  %v4003_v19 = vshll.u32 %v5794_v55, 16  ;;  %v5687_v33 = vcombine.low %v7720_v53, %v3061_v51  ;;  %v3986_v49 = vrot.slane %v3984_v38, 4  ;;  %1828 = vst.msk [vmem:[#allocation3 + $0x50] sm:$0xff] %vm1817_vm10, %v1790_v52 }
 0x16c   : > { %v3989_v50 = vrot.slane %v3987_v20, 5  ;;  %v2709_v14 = vshrl.u32 %v5588_v22, 16  ;;  %v3995_v47 = vrot.slane %v3993_v35, 5  ;;  %v2712_v9 = vshll.u32 %v5588_v22, 16  ;;  %v5654_v22 = vld [vmem:[#allocation2 + $0xbc] sm:$0x1] }
 0x16d   : > { %v3999_v29 = vrot.slane %v3997_v7, 4  ;;  %v4005_v21 = vrot.slane %v4003_v19, 5  ;;  %v2718_v11 = vshll.u32 %v5589_v31, 16  ;;  %v2722_v23 = vshrl.u32 %v5589_v31, 16  ;;  %v4272_v3 = vpop.permute.xlu1 %4271  ;;  %v6397_v20 = vld [vmem:[#allocation2 + $0x90] sm:$0xff]  }
 0x16e   : > { %v3990_v44 = vor.u32 %v3989_v50, %v3986_v49  ;;  %v2711_v55 = vrot.slane %v2709_v14, 4  ;;  %v2714_v57 = vrot.slane %v2712_v9, 5  ;;  %v2728_v2 = vshll.u32 %v5590_v60, 16  ;;  %4319 = vst.msk [vmem:[#allocation3] sm:$0xff] %vm1817_vm10, %v4272_v3  ;;  %v5856_v19 = vld [vmem:[#allocation2 + $0x60] sm:$0xe] }
 0x16f   : > { %4281 = vrot.lane.b32.xlu0 %v5827_v37, %s6450_s12  ;;  %4601 = vrot.lane.b32.xlu1 %v5907_v26, %s6449_s11  ;;  %v4000_v48 = vor.u32 %v3999_v29, %v3995_v47  ;;  %v7748_v53 = vsel %vm3261_vm8, %v7699_v12, 0  ;;  %v2720_v59 = vrot.slane %v2718_v11, 5  ;;  %v2724_v0 = vrot.slane %v2722_v23, 4  ;;  %v2114_v26 = vpop.permute.xlu0 %2113  ;;  %v5795_v11 = vld [vmem:[#allocation2 + $0x6c] sm:$0xf] }
 0x170   : > { %v3991_v16 = vrot.slane %v3990_v44, 4  ;;  %6202 = vmatpush3.bf16.msra.mxu0 %v7748_v53  ;;  %v5672_v8 = vrot.slane %v5652_v62, 9  ;;  %v2715_v31 = vor.u32 %v2714_v57, %v2711_v55  ;;  %v2730_v37 = vrot.slane %v2728_v2, 5  ;;  %v5857_v62 = vld [vmem:[#allocation2 + $0x64] sm:$0xf]  ;;  %2152 = vst.msk [vmem:[#allocation3 + $0x50] sm:$0xff] %vm2141_vm12, %v2114_v26 }
 0x171   : > { %v4001_v43 = vrot.slane %v4000_v48, 4  ;;  %v3064_v38 = vrot.slane %v5653_v56, 5  ;;  %6338 = vmatprep.subr.msk.bf16.mxu0 %vm3261_vm8, %v7739_v6  ;;  %v2725_v51 = vor.u32 %v2724_v0, %v2720_v59  ;;  %v3067_v35 = vrot.slane %v5654_v22, 5  ;;  %v7775_v52 = vld [vmem:[#allocation3 + $0x58] sm:$0xff]  ;;  %v6396_v22 = vld [vmem:[#allocation2 + $0x84] sm:$0xff]  }
 0x172   : > { %v3996_v60 = vsel %vm6604_vm11, %v3991_v16, %v3995_v47  ;;  %v456_v7 = vmul.f32 %v7421_v39, %v6099_v24  ;;  %v2716_v50 = vrot.slane %v2715_v31, 4  ;;  %v8320_v24 = vunpack.c.h.bf16 %v7587_v34  ;;  %v5858_v34 = vld [vmem:[#allocation2 + $0x68] sm:$0x1]  ;;  %2319 = vst.msk [vmem:[#allocation3 + $0x58] sm:$0xff] %vm1269_vm9, %v6397_v20  ;;  %v5796_v2 = vld [vmem:[#allocation2 + $0x70] sm:$0xf] }
 0x173   : > { %3150 = vrot.lane.b32.xlu0 %v5687_v33, %s6449_s11  ;;  %v4006_v49 = vsel %vm6604_vm11, %v4001_v43, %v4005_v21  ;;  %v3065_v14 = vsel %vm6564_vm5, %v5672_v8, %v3064_v38  ;;  %v3066_v56 = vrot.slane %v3064_v38, 4  ;;  %6204 = vmatmul.mubr.msk.bf16.vlgmr.msra.gmra.mrb[0].mxu0 %vm3212_vm15, %v7469_v27  ;;  %v2726_v47 = vrot.slane %v2725_v51, 4  ;;  %v6423_v33 = vld [vmem:[%s8288_s2] ss:$0 sm:$0xff]  ;;  %v3141_v21 = vpop.permute.xlu1 %3140  ;;  %v2821_v23 = vpop.permute.xlu0 %2820  ;;  %v5797_v26 = vld [vmem:[#allocation2 + $0x74] sm:$0x1] }
 0x174   : > { %v5828_v25 = vcombine.low %v3996_v60, %v4006_v49  ;;  %v457_v29 = vmul.f32 %v7421_v39, %v8320_v24  ;;  %v495_v9 = vadd.f32 %v6423_v33, %v456_v7  ;;  %6207 = vmatprep.mubr.msk.bf16.mxu0 %vm3212_vm15, %v7471_v4  ;;  %v2721_v27 = vsel %vm6604_vm11, %v2716_v50, %v2720_v59  ;;  %v5860_v24 = vld [vmem:[#allocation2 + $0x70] sm:$0xf] }
 0x175   : > { %v3068_v44 = vsel %vm6564_vm5, %v3066_v56, %v3067_v35  ;;  %v5892_v55 = vrot.slane %v5856_v19, 9  ;;  %v4475_v39 = vrot.slane %v5857_v62, 5  ;;  %v2731_v4 = vsel %vm6604_vm11, %v2726_v47, %v2730_v37  ;;  %2860 = vst.msk [vmem:[#allocation3 + $0x40] sm:$0xff] %vm1817_vm10, %v2821_v23  ;;  %v5859_v47 = vld [vmem:[#allocation2 + $0x6c] sm:$0xe] }
 0x176   : > { %4283 = vrot.lane.b32.xlu1 %v5828_v25, %s6450_s12  ;;  %v5688_v48 = vcombine.low %v3065_v14, %v3068_v44  ;;  %v496_v57 = vadd.f32 %v6423_v33, %v457_v29  ;;  %vm527_vm14 = vcmp.ge.f32.partialorder %v495_v9, 0.0  ;;  %v5608_v16 = vcombine.low %v2721_v27, %v2731_v4  ;;  %3180 = vst.msk [vmem:[#allocation3 + $0x40] sm:$0xff] %vm2141_vm12, %v3141_v21  ;;  %v5798_v27 = vld [vmem:[#allocation2 + $0x78] sm:$0xf]  ;;  %v5861_v23 = vld [vmem:[#allocation2 + $0x74] sm:$0x1] }
 0x177   : > { %v566_v59 = vmul.f32 %v7460_v32, %v495_v9  ;;  %v4476_v0 = vsel %vm6564_vm5, %v5892_v55, %v4475_v39  ;;  %v4477_v8 = vrot.slane %v4475_v39, 4  ;;  %v4478_v43 = vrot.slane %v5858_v34, 5  ;;  %v4592_v37 = vpop.permute.xlu1 %4591  ;;  %v2823_v35 = vpop.permute.xlu0 %2822  ;;  %v7793_v7 = vld [vmem:[#allocation3 + $0x50] sm:$0xff] }
 0x178   : > { %vm528_vm4 = vcmp.ge.f32.partialorder %v496_v57, 0.0  ;;  %v567_v3 = vmul.f32 %v7460_v32, %v496_v57  ;;  %v4008_v31 = vshrl.u32 %v5795_v11, 16  ;;  %2832 = vrot.lane.b32.xlu0 %v5608_v16, %s6450_s12  ;;  %v4011_v20 = vshll.u32 %v5795_v11, 16  ;;  %4639 = vst.msk [vmem:[#allocation3] sm:$0xff] %vm2141_vm12, %v4592_v37 }
 0x179   : > { %v598_v38 = vsel %vm527_vm14, %v495_v9, %v566_v59  ;;  %v4017_v60 = vshll.u32 %v5796_v2, 16  ;;  %v4021_v51 = vshrl.u32 %v5796_v2, 16  ;;  %v4479_v32 = vsel %vm6564_vm5, %v4477_v8, %v4478_v43  ;;  %2861 = vst.msk [vmem:[#allocation3 + $0x48] sm:$0xff] %vm1817_vm10, %v2823_v35 }
 0x17a   : > { %3152 = vrot.lane.b32.xlu1 %v5688_v48, %s6449_s11  ;;  %v599_v19 = vsel %vm528_vm4, %v496_v57, %v567_v3  ;;  %v6003_v62 = vpack.c.bf16 %v598_v38, %v598_v38  ;;  %v4010_v49 = vrot.slane %v4008_v31, 4  ;;  %2318 = vst.msk [vmem:[#allocation3 + $0x50] sm:$0xff] %vm1269_vm9, %v6396_v22  ;;  %v5908_v14 = vcombine.low %v4476_v0, %v4479_v32  ;;  %v1130_v57 = vld [vmem:[#allocation2 + $0xc0] sm:$0xf]  ;;  %v1134_v22 = vld [vmem:[#allocation2 + $0xc8] sm:$0x1] }
 0x17b   : > { %v6004_v50 = vpack.c.bf16 %v599_v19, %v599_v19  ;;  %v4013_v56 = vrot.slane %v4011_v20, 5  ;;  %v7800_v25 = vrot.slane %v4017_v60, 5  ;;  %6208 = vmatmul.mubr.msk.bf16.gmra.mrb[4].mxu0 %vm3212_vm15, %v7481_v36  ;;  %v4023_v9 = vrot.slane %v4021_v51, 4  ;;  %v4594_v44 = vpop.permute.xlu1 %4593  ;;  %v4274_v4 = vpop.permute.xlu0 %4273  ;;  %v5799_v3 = vld [vmem:[#allocation2 + $0x7c] sm:$0xf] }
 0x17c   : > { %v955_v29 = vshrl.u32 %v6003_v62, 16  ;;  %v958_v33 = vshll.u32 %v6003_v62, 16  ;;  %v4027_v21 = vshll.u32 %v5797_v26, 16  ;;  %6211 = vmatprep.mubr.msk.bf16.mxu0 %vm3212_vm15, %v7484_v58  ;;  %v3263_v11 = vsel %vm3261_vm8, %v7705_v40, 0  ;;  %4320 = vst.msk [vmem:[#allocation3 + $0x8] sm:$0xff] %vm1817_vm10, %v4274_v4 }
 0x17d   : > { %v963_v34 = vshrl.u32 %v6004_v50, 16  ;;  %v966_v55 = vshll.u32 %v6004_v50, 16  ;;  %v4014_v39 = vor.u32 %v4013_v56, %v4010_v49  ;;  %v4024_v36 = vor.u32 %v4023_v9, %v7800_v25  ;;  %6168 = vmatpush3.bf16.msra.mxu1 %v3263_v11  ;;  %4640 = vst.msk [vmem:[#allocation3 + $0x8] sm:$0xff] %vm2141_vm12, %v4594_v44  ;;  %v5800_v20 = vld [vmem:[#allocation2 + $0x80] sm:$0x1] }
 0x17e   : > { %v957_v48 = vrot.slane %v955_v29, 7  ;;  %4603 = vrot.lane.b32.xlu1 %v5908_v14, %s6449_s11  ;;  %v5893_v2 = vrot.slane %v5859_v47, 9  ;;  %v4482_v59 = vrot.slane %v5860_v24, 5  ;;  %6337 = vmatprep.subr.msk.bf16.mxu1 %vm3261_vm8, %v7699_v12  ;;  %v4485_v8 = vrot.slane %v5861_v23, 5  ;;  %v5801_v62 = vld [vmem:[#allocation2 + $0x84] sm:$0xf] }
 0x17f   : > { %v965_v58 = vrot.slane %v963_v34, 7  ;;  %v7811_v16 = vrot.slane %v4014_v39, 4  ;;  %v4032_v43 = vshrl.u32 %v5798_v27, 16  ;;  %v4025_v38 = vrot.slane %v4024_v36, 4  ;;  %v3143_v60 = vpop.permute.xlu0 %3142  ;;  %v5802_v50 = vld [vmem:[#allocation2 + $0x88] sm:$0xf] }
 0x180   : > { %v960_v40 = vor.u32 %v958_v33, %v957_v48  ;;  %v961_v0 = vrot.slane %v957_v48, 4  ;;  %v4029_v26 = vrot.slane %v4027_v21, 5  ;;  %6170 = vmatmul.mubr.msk.bf16.vlgmr.msra.gmra.mrb[0].mxu1 %vm3212_vm15, %v7546_v28  ;;  %v4483_v35 = vsel %vm6564_vm5, %v5893_v2, %v4482_v59  ;;  %3181 = vst.msk [vmem:[#allocation3 + $0x48] sm:$0xff] %vm2141_vm12, %v3143_v60  ;;  %v5803_v56 = vld [vmem:[#allocation2 + $0x8c] sm:$0x1] }
 0x181   : > { %v968_v31 = vor.u32 %v966_v55, %v965_v58  ;;  %v970_v37 = vrot.slane %v965_v58, 4  ;;  %v4020_v12 = vsel %vm6604_vm11, %v7811_v16, %v7800_v25  ;;  %v4484_v19 = vrot.slane %v4482_v59, 4  ;;  %6173 = vmatprep.mubr.msk.bf16.mxu1 %vm3212_vm15, %v7548_v17  ;;  %6270 = vmatpush3.bf16.msra.mxu1 %v7748_v53  ;;  %v7841_v29 = vld [vmem:[#allocation2 + $0x78] sm:$0xe] }
 0x182   : > { %v1131_v51 = vsel %vm6633_vm2, %v960_v40, %v1130_v57  ;;  %v4034_v32 = vrot.slane %v4032_v43, 4  ;;  %v4035_v49 = vshll.u32 %v5798_v27, 16  ;;  %v4041_v53 = vshll.u32 %v5799_v3, 16  ;;  %v7845_v27 = vld [vmem:[#allocation2 + $0x7c] sm:$0xf] }
 0x183   : > { %v969_v54 = vsel %vm6625_vm13, %v961_v0, %v968_v31  ;;  %1132 = vst [vmem:[#allocation2 + $0xc0] sm:$0xf] %v1131_v51  ;;  %v1135_v28 = vsel %vm6641_vm3, %v970_v37, %v1134_v22  ;;  %6212 = vmatmul.mubr.msk.bf16.gmra.mrb[8].mxu0 %vm3212_vm15, %v7486_v46  ;;  %v4486_v17 = vsel %vm6564_vm5, %v4484_v19, %v4485_v8  ;;  %v4045_v14 = vshrl.u32 %v5799_v3, 16  ;;  %v4655_v58 = vld [vmem:[#allocation3] sm:$0xff] }
 0x184   : > { %1133 = vst.msk [vmem:[#allocation2 + $0xc4] sm:$0xf] %vm299_vm0, %v969_v54  ;;  %1136 = vst [vmem:[#allocation2 + $0xc8] sm:$0x1] %v1135_v28  ;;  %v4051_v5 = vshll.u32 %v5800_v20, 16  ;;  %6215 = vmatprep.mubr.msk.bf16.mxu0 %vm3212_vm15, %v7501_v13  ;;  %v5909_v30 = vcombine.low %v4483_v35, %v4486_v17  ;;  %v4037_v25 = vrot.slane %v4035_v49, 5  ;;  %v4030_v46 = vsel %vm6604_vm11, %v4025_v38, %v4029_v26 }
 0x185   : > { %v4056_v47 = vshrl.u32 %v5801_v62, 16  ;;  %v4059_v24 = vshll.u32 %v5801_v62, 16  ;;  %v4043_v33 = vrot.slane %v4041_v53, 5  ;;  %v4047_v9 = vrot.slane %v4045_v14, 4  ;;  %v5864_v35 = vld [vmem:[#allocation2 + $0x80] sm:$0x1] }
 0x186   : > { %v4065_v21 = vshll.u32 %v5802_v50, 16  ;;  %4605 = vrot.lane.b32.xlu1 %v5909_v30, %s6449_s11  ;;  %v4038_v44 = vor.u32 %v4037_v25, %v4034_v32  ;;  %v4069_v13 = vshrl.u32 %v5802_v50, 16  ;;  %v4053_v11 = vrot.slane %v4051_v5, 5  ;;  %v5866_v30 = vld [vmem:[#allocation2 + $0x88] sm:$0xf] }
 0x187   : > { %v4058_v34 = vrot.slane %v4056_v47, 4  ;;  %v4061_v55 = vrot.slane %v4059_v24, 5  ;;  %v4048_v39 = vor.u32 %v4047_v9, %v4043_v33  ;;  %v4075_v4 = vshll.u32 %v5803_v56, 16  ;;  %v5867_v25 = vld [vmem:[#allocation2 + $0x8c] sm:$0x1] }
 0x188   : > { %v7848_v23 = vrot.slane %v4065_v21, 5  ;;  %v4039_v48 = vrot.slane %v4038_v44, 4  ;;  %v4071_v57 = vrot.slane %v4069_v13, 4  ;;  %v5894_v36 = vrot.slane %v7841_v29, 9  ;;  %6174 = vmatmul.mubr.msk.bf16.gmra.mrb[4].mxu1 %vm3212_vm15, %v7555_v45  ;;  %v6408_v47 = vld [vmem:[#allocation2 + $0x6c] sm:$0xff]  }
 0x189   : > { %v4489_v2 = vrot.slane %v7845_v27, 5  ;;  %v7854_v16 = vcombine.low %v4020_v12, %v4030_v46  ;;  %v4049_v40 = vrot.slane %v4048_v39, 4  ;;  %v4062_v0 = vor.u32 %v4061_v55, %v4058_v34  ;;  %6177 = vmatprep.mubr.msk.bf16.mxu1 %vm3212_vm15, %v7681_v10  ;;  %v5804_v9 = vld [vmem:[#allocation2 + $0x90] sm:$0xf]  ;;  %v5805_v21 = vld [vmem:[#allocation2 + $0x94] sm:$0xf] }
 0x18a   : > { %v5591_v22 = vld [vmem:[#allocation2 + $0xc0] sm:$0xf]  ;;  %v4077_v8 = vrot.slane %v4075_v4, 5  ;;  %v4044_v38 = vsel %vm6604_vm11, %v4039_v48, %v4043_v33  ;;  %v4072_v45 = vor.u32 %v4071_v57, %v7848_v23  ;;  %v3195_v27 = vld [vmem:[#allocation3 + $0x38] sm:$0xff]  ;;  %v4492_v13 = vrot.slane %v5864_v35, 5 }
 0x18b   : > { %v5655_v59 = vld [vmem:[#allocation2 + $0xc0] sm:$0xe]  ;;  %v5592_v3 = vld [vmem:[#allocation2 + $0xc4] sm:$0xf]  ;;  %v5593_v43 = vld [vmem:[#allocation2 + $0xc8] sm:$0x1]  ;;  %6216 = vmatmul.mubr.msk.bf16.gmra.mrb[12].mxu0 %vm3212_vm15, %v7503_v63  ;;  %v4054_v28 = vsel %vm6604_vm11, %v4049_v40, %v4053_v11  ;;  %v7874_v33 = vsel %vm6564_vm5, %v5894_v36, %v4489_v2 }
 0x18c   : > { %v2733_v31 = vshrl.u32 %v5591_v22, 16  ;;  %v2736_v37 = vshll.u32 %v5591_v22, 16  ;;  %v2742_v26 = vshll.u32 %v5592_v3, 16  ;;  %v2746_v20 = vshrl.u32 %v5592_v3, 16  ;;  %v5656_v51 = vld [vmem:[#allocation2 + $0xc4] sm:$0xf]  ;;  %6237 = vmatprep.mubr.msk.bf16.mxu0 %vm3212_vm15, %v4655_v58 }
 0x18d   : > { %v2752_v60 = vshll.u32 %v5593_v43, 16  ;;  %v5673_v12 = vrot.slane %v5655_v59, 9  ;;  %v5657_v62 = vld [vmem:[#allocation2 + $0xc8] sm:$0x1]  ;;  %v3071_v54 = vrot.slane %v5656_v51, 5  ;;  %v7870_v56 = vcombine.low %v4044_v38, %v4054_v28  ;;  %3782 = vst.msk [vmem:[#allocation3 + $0x38] sm:$0xff] %vm1269_vm9, %v6408_v47 }
 0x18e   : > { %v2735_v10 = vrot.slane %v2733_v31, 4  ;;  %v2738_v19 = vrot.slane %v2736_v37, 5  ;;  %v2744_v32 = vrot.slane %v2742_v26, 5  ;;  %v2748_v49 = vrot.slane %v2746_v20, 4  ;;  %v5865_v63 = vld [vmem:[#allocation2 + $0x84] sm:$0xe] }
 0x18f   : > { %v2754_v50 = vrot.slane %v2752_v60, 5  ;;  %v3074_v17 = vrot.slane %v5657_v62, 5  ;;  %v7868_v14 = vsel %vm6564_vm5, %v5673_v12, %v3071_v54  ;;  %v3073_v5 = vrot.slane %v3071_v54, 4  ;;  %v5806_v39 = vld [vmem:[#allocation2 + $0x98] sm:$0x1]  ;;  %v6410_v3 = vld [vmem:[#allocation2 + $0x84] sm:$0xff]  }
 0x190   : > { %v2739_v53 = vor.u32 %v2738_v19, %v2735_v10  ;;  %v2749_v24 = vor.u32 %v2748_v49, %v2744_v32  ;;  %v4063_v29 = vrot.slane %v4062_v0, 4  ;;  %v4073_v46 = vrot.slane %v4072_v45, 4  ;;  %6178 = vmatmul.mubr.msk.bf16.gmra.mrb[8].mxu1 %vm3212_vm15, %v7686_v15  ;;  %v6409_v36 = vld [vmem:[#allocation2 + $0x78] sm:$0xff]   ;;  %v5808_v45 = vld [vmem:[#allocation2 + $0xa0] sm:$0xf] }
 0x191   : > { %v7878_v34 = vsel %vm6564_vm5, %v3073_v5, %v3074_v17  ;;  %v4491_v55 = vrot.slane %v4489_v2, 4  ;;  %6181 = vmatprep.mubr.msk.bf16.mxu1 %vm3212_vm15, %v7714_v18  ;;  %v5895_v22 = vrot.slane %v5865_v63, 9  ;;  %v3196_v59 = vld [vmem:[#allocation3 + $0x40] sm:$0xff]  ;;  %v4496_v0 = vrot.slane %v5866_v30, 5  ;;  %v7904_v26 = vld [vmem:[#allocation3 + $0x48] sm:$0xff] }
 0x192   : > { %v2740_v44 = vrot.slane %v2739_v53, 4  ;;  %v2750_v11 = vrot.slane %v2749_v24, 4  ;;  %v5689_v4 = vcombine.low %v7868_v14, %v7878_v34  ;;  %v4068_v48 = vsel %vm6604_vm11, %v4063_v29, %v7848_v23  ;;  %v5807_v18 = vld [vmem:[#allocation2 + $0x9c] sm:$0xf]  ;;  %3783 = vst.msk [vmem:[#allocation3 + $0x40] sm:$0xff] %vm1269_vm9, %v6409_v36  ;;  %3784 = vst.msk [vmem:[#allocation3 + $0x48] sm:$0xff] %vm1269_vm9, %v6410_v3 }
 0x193   : > { %v4078_v57 = vsel %vm6604_vm11, %v4073_v46, %v4077_v8  ;;  %v7896_v58 = vsel %vm6564_vm5, %v4491_v55, %v4492_v13  ;;  %v4499_v8 = vrot.slane %v5867_v25, 5  ;;  %v4080_v31 = vshrl.u32 %v5804_v9, 16  ;;  %v5809_v35 = vld [vmem:[#allocation2 + $0xa4] sm:$0x1]  ;;  %v5868_v28 = vld [vmem:[#allocation2 + $0x90] sm:$0xe] }
 0x194   : > { %v2745_v15 = vsel %vm6604_vm11, %v2740_v44, %v2744_v32  ;;  %v5831_v2 = vcombine.low %v4068_v48, %v4078_v57  ;;  %v2755_v23 = vsel %vm6604_vm11, %v2750_v11, %v2754_v50  ;;  %v5910_v40 = vcombine.low %v7874_v33, %v7896_v58  ;;  %v5869_v63 = vld [vmem:[#allocation2 + $0x94] sm:$0xf]  ;;  %v5870_v47 = vld [vmem:[#allocation2 + $0x98] sm:$0x1]  ;;  %v1796_v44 = vpop.permute.xlu1 %1795  ;;  %v5872_v48 = vld [vmem:[#allocation2 + $0xa0] sm:$0xf] }
 0x195   : > { %v5609_v43 = vcombine.low %v2745_v15, %v2755_v23  ;;  %v4083_v37 = vshll.u32 %v5804_v9, 16  ;;  %v4089_v38 = vshll.u32 %v5805_v21, 16  ;;  %v4497_v20 = vsel %vm6564_vm5, %v5895_v22, %v4496_v0  ;;  %1831 = vst.msk [vmem:[#allocation3 + $0x68] sm:$0xff] %vm1817_vm10, %v1796_v44 }
 0x196   : > { %4289 = vrot.lane.b32.xlu1 %v5831_v2, %s6450_s12  ;;  %v4498_v60 = vrot.slane %v4496_v0, 4  ;;  %v4093_v51 = vshrl.u32 %v5805_v21, 16  ;;  %v4099_v12 = vshll.u32 %v5806_v39, 16  ;;  %v4082_v10 = vrot.slane %v4080_v31, 4  ;;  %v5871_v21 = vld [vmem:[#allocation2 + $0x9c] sm:$0xe] }
 0x197   : > { %2834 = vrot.lane.b32.xlu0 %v5609_v43, %s6450_s12  ;;  %v4085_v19 = vrot.slane %v4083_v37, 5  ;;  %v4091_v62 = vrot.slane %v4089_v38, 5  ;;  %v4104_v54 = vshrl.u32 %v5807_v18, 16  ;;  %v4107_v17 = vshll.u32 %v5807_v18, 16  ;;  %v5873_v2 = vld [vmem:[#allocation2 + $0xa4] sm:$0x1]  ;;  %v1794_v37 = vpop.permute.xlu0 %1793 }
 0x198   : > { %v4500_v32 = vsel %vm6564_vm5, %v4498_v60, %v4499_v8  ;;  %v4095_v49 = vrot.slane %v4093_v51, 4  ;;  %v4101_v50 = vrot.slane %v4099_v12, 5  ;;  %v4113_v25 = vshll.u32 %v5808_v45, 16  ;;  %6182 = vmatmul.mubr.msk.bf16.gmra.mrb[12].mxu1 %vm3212_vm15, %v3195_v27  ;;  %v5810_v0 = vld [vmem:[#allocation2 + $0xa8] sm:$0xf]  ;;  %v2120_v38 = vpop.permute.xlu1 %2119  ;;  %1830 = vst.msk [vmem:[#allocation3 + $0x60] sm:$0xff] %vm1817_vm10, %v1794_v37 }
 0x199   : > { %v5911_v53 = vcombine.low %v4497_v20, %v4500_v32  ;;  %v4086_v5 = vor.u32 %v4085_v19, %v4082_v10  ;;  %v4106_v30 = vrot.slane %v4104_v54, 4  ;;  %v4109_v29 = vrot.slane %v4107_v17, 5  ;;  %6185 = vmatprep.mubr.msk.bf16.mxu1 %vm3212_vm15, %v3196_v59  ;;  %v5811_v31 = vld [vmem:[#allocation2 + $0xac] sm:$0xf]  ;;  %v5812_v12 = vld [vmem:[#allocation2 + $0xb0] sm:$0x1] }
 0x19a   : > { %v4096_v24 = vor.u32 %v4095_v49, %v4091_v62  ;;  %v4117_v46 = vshrl.u32 %v5808_v45, 16  ;;  %v4123_v9 = vshll.u32 %v5809_v35, 16  ;;  %v4115_v13 = vrot.slane %v4113_v25, 5  ;;  %2155 = vst.msk [vmem:[#allocation3 + $0x68] sm:$0xff] %vm2141_vm12, %v2120_v38  ;;  %v5878_v37 = vld [vmem:[#allocation2 + $0xb8] sm:$0xf] }
 0x19b   : > { %4285 = vrot.lane.b32.xlu0 %v7854_v16, %s6450_s12  ;;  %4609 = vrot.lane.b32.xlu1 %v5911_v53, %s6449_s11  ;;  %v4087_v55 = vrot.slane %v4086_v5, 4  ;;  %v5896_v39 = vrot.slane %v5868_v28, 9  ;;  %v4503_v11 = vrot.slane %v5869_v63, 5  ;;  %v4110_v57 = vor.u32 %v4109_v29, %v4106_v30  ;;  %v5813_v28 = vld [vmem:[#allocation2 + $0xb4] sm:$0xf]  ;;  %v2118_v53 = vpop.permute.xlu0 %2117  ;;  %v6403_v30 = vld [vmem:[#allocation2 + $0xa8] sm:$0xff]  }
 0x19c   : > { %v4097_v27 = vrot.slane %v4096_v24, 4  ;;  %v4119_v36 = vrot.slane %v4117_v46, 4  ;;  %v4125_v15 = vrot.slane %v4123_v9, 5  ;;  %v4506_v23 = vrot.slane %v5870_v47, 5  ;;  %v5814_v63 = vld [vmem:[#allocation2 + $0xb8] sm:$0xf]  ;;  %v4276_v5 = vpop.permute.xlu1 %4275 }
 0x19d   : > { %v4092_v22 = vsel %vm6604_vm11, %v4087_v55, %v4091_v62  ;;  %v7922_v16 = vsel %vm6564_vm5, %v5896_v39, %v4503_v11  ;;  %v4505_v59 = vrot.slane %v4503_v11, 4  ;;  %v4111_v18 = vrot.slane %v4110_v57, 4  ;;  %v5874_v46 = vld [vmem:[#allocation2 + $0xa8] sm:$0xe]  ;;  %2154 = vst.msk [vmem:[#allocation3 + $0x60] sm:$0xff] %vm2141_vm12, %v2118_v53  ;;  %v6402_v57 = vld [vmem:[#allocation2 + $0x9c] sm:$0xff]  }
 0x19e   : > { %v4102_v8 = vsel %vm6604_vm11, %v4097_v27, %v4101_v50  ;;  %v4120_v3 = vor.u32 %v4119_v36, %v4115_v13  ;;  %v5897_v43 = vrot.slane %v5871_v21, 9  ;;  %v4510_v60 = vrot.slane %v5872_v48, 5  ;;  %4321 = vst.msk [vmem:[#allocation3 + $0x10] sm:$0xff] %vm1817_vm10, %v4276_v5  ;;  %v5876_v27 = vld [vmem:[#allocation2 + $0xb0] sm:$0x1] }
 0x19f   : > { %3154 = vrot.lane.b32.xlu0 %v5689_v4, %s6449_s11  ;;  %v7930_v45 = vcombine.low %v4092_v22, %v4102_v8  ;;  %v7934_v20 = vsel %vm6564_vm5, %v4505_v59, %v4506_v23  ;;  %v4513_v51 = vrot.slane %v5873_v2, 5  ;;  %v4116_v35 = vsel %vm6604_vm11, %v4111_v18, %v4115_v13  ;;  %v5875_v13 = vld [vmem:[#allocation2 + $0xac] sm:$0xf]  ;;  %v5877_v59 = vld [vmem:[#allocation2 + $0xb4] sm:$0xe]  ;;  %v2825_v23 = vpop.permute.xlu0 %2824 }
 0x1a0   : > { %v4121_v10 = vrot.slane %v4120_v3, 4  ;;  %v5912_v14 = vcombine.low %v7922_v16, %v7934_v20  ;;  %v4128_v34 = vshrl.u32 %v5810_v0, 16  ;;  %v4511_v4 = vsel %vm6564_vm5, %v5897_v43, %v4510_v60  ;;  %6186 = vmatmul.mubr.msk.bf16.gmra.mrb[16].mxu1 %vm3212_vm15, %v7904_v26  ;;  %v5815_v26 = vld [vmem:[#allocation2 + $0xbc] sm:$0x1]  ;;  %2862 = vst.msk [vmem:[#allocation3 + $0x50] sm:$0xff] %vm1817_vm10, %v2825_v23 }
 0x1a1   : > { %v4512_v19 = vrot.slane %v4510_v60, 4  ;;  %v4131_v62 = vshll.u32 %v5810_v0, 16  ;;  %v4137_v54 = vshll.u32 %v5811_v31, 16  ;;  %v4141_v50 = vshrl.u32 %v5811_v31, 16  ;;  %v3145_v0 = vpop.permute.xlu1 %3144  ;;  %v7955_v8 = vld [vmem:[#allocation3 + $0x68] sm:$0xff] }
 0x1a2   : > { %v4126_v32 = vsel %vm6604_vm11, %v4121_v10, %v4125_v15  ;;  %v4130_v49 = vrot.slane %v4128_v34, 4  ;;  %v4147_v17 = vshll.u32 %v5812_v12, 16  ;;  %v4152_v55 = vshrl.u32 %v5813_v28, 16  ;;  %2321 = vst.msk [vmem:[#allocation3 + $0x68] sm:$0xff] %vm1269_vm9, %v6403_v30  ;;  %v5816_v34 = vld [vmem:[#allocation2 + $0xc0] sm:$0xf] }
 0x1a3   : > { %4287 = vrot.lane.b32.xlu0 %v7870_v56, %s6450_s12  ;;  %v5833_v25 = vcombine.low %v4116_v35, %v4126_v32  ;;  %v4514_v47 = vsel %vm6564_vm5, %v4512_v19, %v4513_v51  ;;  %v4133_v24 = vrot.slane %v4131_v62, 5  ;;  %v4139_v29 = vrot.slane %v4137_v54, 5  ;;  %v5879_v35 = vld [vmem:[#allocation2 + $0xbc] sm:$0x1]  ;;  %3182 = vst.msk [vmem:[#allocation3 + $0x50] sm:$0xff] %vm2141_vm12, %v3145_v0 }
 0x1a4   : > { %v5913_v9 = vcombine.low %v4511_v4, %v4514_v47  ;;  %v4143_v21 = vrot.slane %v4141_v50, 4  ;;  %v4149_v44 = vrot.slane %v4147_v17, 5  ;;  %v4155_v39 = vshll.u32 %v5813_v28, 16  ;;  %v2827_v28 = vpop.permute.xlu0 %2826  ;;  %v5817_v5 = vld [vmem:[#allocation2 + $0xc4] sm:$0xf] }
 0x1a5   : > { %4293 = vrot.lane.b32.xlu1 %v5833_v25, %s6450_s12  ;;  %v4134_v56 = vor.u32 %v4133_v24, %v4130_v49  ;;  %v4161_v11 = vshll.u32 %v5814_v63, 16  ;;  %v4165_v48 = vshrl.u32 %v5814_v63, 16  ;;  %v4154_v15 = vrot.slane %v4152_v55, 4  ;;  %v4596_v32 = vpop.permute.xlu1 %4595  ;;  %v7973_v49 = vld [vmem:[#allocation3 + $0x60] sm:$0xff]  ;;  %2863 = vst.msk [vmem:[#allocation3 + $0x58] sm:$0xff] %vm1817_vm10, %v2827_v28 }
 0x1a6   : > { %v4144_v36 = vor.u32 %v4143_v21, %v4139_v29  ;;  %v4171_v2 = vshll.u32 %v5815_v26, 16  ;;  %v5898_v22 = vrot.slane %v5874_v46, 9  ;;  %v4157_v3 = vrot.slane %v4155_v39, 5  ;;  %4641 = vst.msk [vmem:[#allocation3 + $0x10] sm:$0xff] %vm2141_vm12, %v4596_v32  ;;  %v5820_v55 = vld [vmem:[#allocation2 + $0xd0] sm:$0xf] }
 0x1a7   : > { %4607 = vrot.lane.b32.xlu0 %v5910_v40, %s6449_s11  ;;  %v4135_v18 = vrot.slane %v4134_v56, 4  ;;  %v4163_v43 = vrot.slane %v4161_v11, 5  ;;  %v4167_v31 = vrot.slane %v4165_v48, 4  ;;  %v4517_v51 = vrot.slane %v5875_v13, 5  ;;  %2320 = vst.msk [vmem:[#allocation3 + $0x60] sm:$0xff] %vm1269_vm9, %v6402_v57 }
 0x1a8   : > { %v4145_v38 = vrot.slane %v4144_v36, 4  ;;  %v4173_v60 = vrot.slane %v4171_v2, 5  ;;  %v4520_v12 = vrot.slane %v5876_v27, 5  ;;  %v4158_v58 = vor.u32 %v4157_v3, %v4154_v15  ;;  %v5821_v48 = vld [vmem:[#allocation2 + $0xd4] sm:$0x1]  ;;  %v4278_v27 = vpop.permute.xlu0 %4277 }
 0x1a9   : > { %4613 = vrot.lane.b32.xlu1 %v5913_v9, %s6449_s11  ;;  %v4140_v33 = vsel %vm6604_vm11, %v4135_v18, %v4139_v29  ;;  %v4168_v40 = vor.u32 %v4167_v31, %v4163_v43  ;;  %v5899_v10 = vrot.slane %v5877_v59, 9  ;;  %v7971_v19 = vsel %vm6564_vm5, %v5898_v22, %v4517_v51  ;;  %v6411_v29 = vld [vmem:[#allocation2 + $0x90] sm:$0xff]   ;;  %v4598_v57 = vpop.permute.xlu1 %4597  ;;  %v5880_v59 = vld [vmem:[#allocation2 + $0xc0] sm:$0xe]  ;;  %4322 = vst.msk [vmem:[#allocation3 + $0x18] sm:$0xff] %vm1817_vm10, %v4278_v27 }
 0x1aa   : > { %v4150_v4 = vsel %vm6604_vm11, %v4145_v38, %v4149_v44  ;;  %v4519_v62 = vrot.slane %v4517_v51, 4  ;;  %v4524_v54 = vrot.slane %v5878_v37, 5  ;;  %v4159_v17 = vrot.slane %v4158_v58, 4  ;;  %v5819_v44 = vld [vmem:[#allocation2 + $0xcc] sm:$0xf]  ;;  %4642 = vst.msk [vmem:[#allocation3 + $0x18] sm:$0xff] %vm2141_vm12, %v4598_v57 }
 0x1ab   : > { %4291 = vrot.lane.b32.xlu0 %v7930_v45, %s6450_s12  ;;  %v5834_v50 = vcombine.low %v4140_v33, %v4150_v4  ;;  %v4169_v63 = vrot.slane %v4168_v40, 4  ;;  %v4527_v53 = vrot.slane %v5879_v35, 5  ;;  %v5818_v45 = vld [vmem:[#allocation2 + $0xc8] sm:$0x1]  ;;  %v4176_v24 = vshrl.u32 %v5816_v34, 16 }
 0x1ac   : > { %v7982_v30 = vsel %vm6564_vm5, %v4519_v62, %v4520_v12  ;;  %v4525_v25 = vsel %vm6564_vm5, %v5899_v10, %v4524_v54  ;;  %v4526_v47 = vrot.slane %v4524_v54, 4  ;;  %v4164_v26 = vsel %vm6604_vm11, %v4159_v17, %v4163_v43  ;;  %v3198_v23 = vld [vmem:[#allocation3 + $0x50] sm:$0xff]  ;;  %v5881_v31 = vld [vmem:[#allocation2 + $0xc4] sm:$0xf]  ;;  %v3147_v58 = vpop.permute.xlu0 %3146  ;;  %v5885_v17 = vld [vmem:[#allocation2 + $0xd4] sm:$0x1] }
 0x1ad   : > { %v4174_v46 = vsel %vm6604_vm11, %v4169_v63, %v4173_v60  ;;  %v5914_v9 = vcombine.low %v7971_v19, %v7982_v30  ;;  %v4179_v21 = vshll.u32 %v5816_v34, 16  ;;  %v4178_v39 = vrot.slane %v4176_v24, 4  ;;  %6189 = vmatprep.mubr.msk.bf16.mxu1 %vm3212_vm15, %v3198_v23  ;;  %3785 = vst.msk [vmem:[#allocation3 + $0x50] sm:$0xff] %vm1269_vm9, %v6411_v29  ;;  %v5882_v38 = vld [vmem:[#allocation2 + $0xc8] sm:$0x1] }
 0x1ae   : > { %v5835_v13 = vcombine.low %v4164_v26, %v4174_v46  ;;  %v4528_v56 = vsel %vm6564_vm5, %v4526_v47, %v4527_v53  ;;  %v4185_v11 = vshll.u32 %v5817_v5, 16  ;;  %v4189_v2 = vshrl.u32 %v5817_v5, 16  ;;  %v5883_v33 = vld [vmem:[#allocation2 + $0xcc] sm:$0xe]  ;;  %v5884_v19 = vld [vmem:[#allocation2 + $0xd0] sm:$0xf] }
 0x1af   : > { %4611 = vrot.lane.b32.xlu0 %v5912_v14, %s6449_s11  ;;  %v5915_v36 = vcombine.low %v4525_v25, %v4528_v56  ;;  %v4181_v15 = vrot.slane %v4179_v21, 5  ;;  %v4195_v22 = vshll.u32 %v5818_v45, 16  ;;  %v4200_v18 = vshrl.u32 %v5819_v44, 16  ;;  %3183 = vst.msk [vmem:[#allocation3 + $0x58] sm:$0xff] %vm2141_vm12, %v3147_v58  ;;  %v6412_v46 = vld [vmem:[#allocation2 + $0x9c] sm:$0xff]  }
 0x1b0   : > { %4297 = vrot.lane.b32.xlu1 %v5835_v13, %s6450_s12  ;;  %v4187_v0 = vrot.slane %v4185_v11, 5  ;;  %v4203_v3 = vshll.u32 %v5819_v44, 16  ;;  %v4209_v43 = vshll.u32 %v5820_v55, 16  ;;  %v4191_v20 = vrot.slane %v4189_v2, 4  ;;  %v4657_v11 = vld [vmem:[#allocation3 + $0x10] sm:$0xff] }
 0x1b1   : > { %v4182_v16 = vor.u32 %v4181_v15, %v4178_v39  ;;  %v4197_v14 = vrot.slane %v4195_v22, 5  ;;  %v4213_v37 = vshrl.u32 %v5820_v55, 16  ;;  %v4202_v60 = vrot.slane %v4200_v18, 4  ;;  %v4658_v15 = vld [vmem:[#allocation3 + $0x18] sm:$0xff] }
 0x1b2   : > { %v4205_v51 = vrot.slane %v4203_v3, 5  ;;  %v4211_v12 = vrot.slane %v4209_v43, 5  ;;  %v4219_v35 = vshll.u32 %v5821_v48, 16  ;;  %v4192_v10 = vor.u32 %v4191_v20, %v4187_v0 }
 0x1b3   : > { %4295 = vrot.lane.b32.xlu0 %v5834_v50, %s6450_s12  ;;  %v4183_v40 = vrot.slane %v4182_v16, 4  ;;  %v4215_v34 = vrot.slane %v4213_v37, 4  ;;  %v5900_v4 = vrot.slane %v5880_v59, 9  ;;  %v4531_v28 = vrot.slane %v5881_v31, 5  ;;  %v6406_v31 = vld [vmem:[#allocation2 + $0xb4] sm:$0xff]   ;;  %v6413_v37 = vld [vmem:[#allocation2 + $0xa8] sm:$0xff]  }
 0x1b4   : > { %4617 = vrot.lane.b32.xlu1 %v5915_v36, %s6449_s11  ;;  %v4206_v62 = vor.u32 %v4205_v51, %v4202_v60  ;;  %v4221_v54 = vrot.slane %v4219_v35, 5  ;;  %v4534_v32 = vrot.slane %v5882_v38, 5  ;;  %v4193_v53 = vrot.slane %v4192_v10, 4 }
 0x1b5   : > { %v4188_v63 = vsel %vm6604_vm11, %v4183_v40, %v4187_v0  ;;  %v4216_v5 = vor.u32 %v4215_v34, %v4211_v12  ;;  %v5901_v50 = vrot.slane %v5883_v33, 9  ;;  %v4533_v25 = vrot.slane %v4531_v28, 4  ;;  %v6407_v0 = vld [vmem:[#allocation2 + $0xc0] sm:$0xff]   ;;  %v6414_v40 = vld [vmem:[#allocation2 + $0xb4] sm:$0xff]  }
 0x1b6   : > { %v4207_v30 = vrot.slane %v4206_v62, 4  ;;  %v4538_v47 = vrot.slane %v5884_v19, 5  ;;  %v4198_v45 = vsel %vm6604_vm11, %v4193_v53, %v4197_v14  ;;  %v4541_v29 = vrot.slane %v5885_v17, 5  ;;  %v3199_v27 = vld [vmem:[#allocation3 + $0x58] sm:$0xff]  ;;  %v6415_v62 = vld [vmem:[#allocation2 + $0xc0] sm:$0xff]  }
 0x1b7   : > { %4615 = vrot.lane.b32.xlu0 %v5914_v9, %s6449_s11  ;;  %v4217_v24 = vrot.slane %v4216_v5, 4  ;;  %v4728_v26 = vsel %vm3261_vm8, %v7739_v6, 0  ;;  %v5836_v21 = vcombine.low %v4188_v63, %v4198_v45  ;;  %v4532_v55 = vsel %vm6564_vm5, %v5900_v4, %v4531_v28  ;;  %v4656_v9 = vld [vmem:[#allocation3 + $0x8] sm:$0xff]  ;;  %3786 = vst.msk [vmem:[#allocation3 + $0x58] sm:$0xff] %vm1269_vm9, %v6412_v46  ;;  %6190 = vmatmul.mubr.msk.bf16.gmra.mrb[20].mxu1 %vm3212_vm15, %v3199_v27 }
 0x1b8   : > { %v4212_v44 = vsel %vm6604_vm11, %v4207_v30, %v4211_v12  ;;  %v4535_v13 = vsel %vm6564_vm5, %v4533_v25, %v4534_v32  ;;  %6236 = vmatpush3.bf16.msra.mxu0 %v4728_v26  ;;  %v4539_v39 = vsel %vm6564_vm5, %v5901_v50, %v4538_v47  ;;  %v4540_v6 = vrot.slane %v4538_v47, 4  ;;  %v6416_v47 = vld [vmem:[#allocation2 + $0xcc] sm:$0xff]  }
 0x1b9   : > { %v4222_v56 = vsel %vm6604_vm11, %v4217_v24, %v4221_v54  ;;  %v5916_v57 = vcombine.low %v4532_v55, %v4535_v13 }
 0x1ba   : > { %v5837_v48 = vcombine.low %v4212_v44, %v4222_v56  ;;  %v4542_v36 = vsel %vm6564_vm5, %v4540_v6, %v4541_v29 }
 0x1bb   : > { %4299 = vrot.lane.b32.xlu0 %v5836_v21, %s6450_s12  ;;  %6238 = vmatmul.mubr.msk.bf16.vlgmr.msra.gmra.mrb[0].mxu0 %vm3212_vm15, %v4656_v9  ;;  %v5917_v41 = vcombine.low %v4539_v39, %v4542_v36 }
 0x1bc   : > { %4301 = vrot.lane.b32.xlu1 %v5837_v48, %s6450_s12  ;;  %6241 = vmatprep.mubr.msk.bf16.mxu0 %vm3212_vm15, %v4657_v11 }
 0x1bf   : > { %4619 = vrot.lane.b32.xlu0 %v5916_v57, %s6449_s11 }
 0x1c0   : > { %4621 = vrot.lane.b32.xlu1 %v5917_v41, %s6449_s11 }
 0x1c3   : > { %6242 = vmatmul.mubr.msk.bf16.gmra.mrb[4].mxu0 %vm3212_vm15, %v4658_v15 }
 0x1cd   : > { %v1800_v1 = vpop.permute.xlu1 %1799 }
 0x1ce   : > { %1833 = vst.msk [vmem:[#allocation3 + $0x78] sm:$0xff] %vm1817_vm10, %v1800_v1 }
 0x1d1   : > { %v1798_v2 = vpop.permute.xlu0 %1797  ;;  %v2124_v22 = vpop.permute.xlu1 %2123 }
 0x1d2   : > { %1832 = vst.msk [vmem:[#allocation3 + $0x70] sm:$0xff] %vm1817_vm10, %v1798_v2 }
 0x1d3   : > { %2157 = vst.msk [vmem:[#allocation3 + $0x78] sm:$0xff] %vm2141_vm12, %v2124_v22 }
 0x1d5   : > { %v2122_v59 = vpop.permute.xlu0 %2121  ;;  %v4280_v23 = vpop.permute.xlu1 %4279 }
 0x1d6   : > { %2156 = vst.msk [vmem:[#allocation3 + $0x70] sm:$0xff] %vm2141_vm12, %v2122_v59 }
 0x1d7   : > { %4323 = vst.msk [vmem:[#allocation3 + $0x20] sm:$0xff] %vm1817_vm10, %v4280_v23 }
 0x1d9   : > { %v2829_v18 = vpop.permute.xlu0 %2828  ;;  %v3149_v3 = vpop.permute.xlu1 %3148 }
 0x1da   : > { %v8039_v43 = vld [vmem:[#allocation3 + $0x78] sm:$0xff]  ;;  %2864 = vst.msk [vmem:[#allocation3 + $0x60] sm:$0xff] %vm1817_vm10, %v2829_v18 }
 0x1db   : > { %2323 = vst.msk [vmem:[#allocation3 + $0x78] sm:$0xff] %vm1269_vm9, %v6407_v0 }
 0x1dc   : > { %3184 = vst.msk [vmem:[#allocation3 + $0x60] sm:$0xff] %vm2141_vm12, %v3149_v3 }
 0x1dd   : > { %v2831_v16 = vpop.permute.xlu0 %2830  ;;  %v4600_v20 = vpop.permute.xlu1 %4599  ;;  %v8044_v14 = vld [vmem:[#allocation3 + $0x70] sm:$0xff] }
 0x1de   : > { %2865 = vst.msk [vmem:[#allocation3 + $0x68] sm:$0xff] %vm1817_vm10, %v2831_v16 }
 0x1df   : > { %4643 = vst.msk [vmem:[#allocation3 + $0x20] sm:$0xff] %vm2141_vm12, %v4600_v20 }
 0x1e0   : > { %2322 = vst.msk [vmem:[#allocation3 + $0x70] sm:$0xff] %vm1269_vm9, %v6406_v31 }
 0x1e1   : > { %v4282_v38 = vpop.permute.xlu0 %4281  ;;  %v4602_v60 = vpop.permute.xlu1 %4601 }
 0x1e2   : > { %4324 = vst.msk [vmem:[#allocation3 + $0x28] sm:$0xff] %vm1817_vm10, %v4282_v38 }
 0x1e3   : > { %v3200_v51 = vld [vmem:[#allocation3 + $0x60] sm:$0xff]  ;;  %4644 = vst.msk [vmem:[#allocation3 + $0x28] sm:$0xff] %vm2141_vm12, %v4602_v60 }
 0x1e4   : > { %6193 = vmatprep.mubr.msk.bf16.mxu1 %vm3212_vm15, %v3200_v51  ;;  %3787 = vst.msk [vmem:[#allocation3 + $0x60] sm:$0xff] %vm1269_vm9, %v6413_v37 }
 0x1e5   : > { %v3151_v12 = vpop.permute.xlu0 %3150 }
 0x1e6   : > { %v4659_v35 = vld [vmem:[#allocation3 + $0x20] sm:$0xff]  ;;  %3185 = vst.msk [vmem:[#allocation3 + $0x68] sm:$0xff] %vm2141_vm12, %v3151_v12 }
 0x1e7   : > { %6245 = vmatprep.mubr.msk.bf16.mxu0 %vm3212_vm15, %v4659_v35 }
 0x1e8   : > { %v4284_v33 = vpop.permute.xlu1 %4283 }
 0x1e9   : > { %4325 = vst.msk [vmem:[#allocation3 + $0x30] sm:$0xff] %vm1817_vm10, %v4284_v33 }
 0x1ea   : > { %v4660_v58 = vld [vmem:[#allocation3 + $0x28] sm:$0xff]  ;;  %v2833_v10 = vpop.permute.xlu0 %2832 }
 0x1eb   : > { %6246 = vmatmul.mubr.msk.bf16.gmra.mrb[8].mxu0 %vm3212_vm15, %v4660_v58  ;;  %2866 = vst.msk [vmem:[#allocation3 + $0x70] sm:$0xff] %vm1817_vm10, %v2833_v10 }
 0x1ec   : > { %v3153_v34 = vpop.permute.xlu1 %3152 }
 0x1ed   : > { %3186 = vst.msk [vmem:[#allocation3 + $0x70] sm:$0xff] %vm2141_vm12, %v3153_v34  ;;  %v3201_v4 = vld [vmem:[#allocation3 + $0x68] sm:$0xff] }
 0x1ee   : > { %6194 = vmatmul.mubr.msk.bf16.gmra.mrb[24].mxu1 %vm3212_vm15, %v3201_v4  ;;  %3788 = vst.msk [vmem:[#allocation3 + $0x68] sm:$0xff] %vm1269_vm9, %v6414_v40 }
 0x1f0   : > { %v4604_v19 = vpop.permute.xlu1 %4603 }
 0x1f1   : > { %4645 = vst.msk [vmem:[#allocation3 + $0x30] sm:$0xff] %vm2141_vm12, %v4604_v19 }
 0x1f4   : > { %v3202_v54 = vld [vmem:[#allocation3 + $0x70] sm:$0xff] }
 0x1f5   : > { %6197 = vmatprep.mubr.msk.bf16.mxu1 %vm3212_vm15, %v3202_v54  ;;  %3789 = vst.msk [vmem:[#allocation3 + $0x70] sm:$0xff] %vm1269_vm9, %v6415_v62 }
 0x1f8   : > { %v4661_v28 = vld [vmem:[#allocation3 + $0x30] sm:$0xff]  ;;  %v4606_v32 = vpop.permute.xlu1 %4605 }
 0x1f9   : > { %6249 = vmatprep.mubr.msk.bf16.mxu0 %vm3212_vm15, %v4661_v28 }
 0x208   : > { %v4290_v17 = vpop.permute.xlu1 %4289 }
 0x209   : > { %4328 = vst.msk [vmem:[#allocation3 + $0x48] sm:$0xff] %vm1817_vm10, %v4290_v17  ;;  %v2835_v63 = vpop.permute.xlu0 %2834 }
 0x20a   : > { %2867 = vst.msk [vmem:[#allocation3 + $0x78] sm:$0xff] %vm1817_vm10, %v2835_v63 }
 0x20d   : > { %v4286_v53 = vpop.permute.xlu0 %4285  ;;  %v4610_v5 = vpop.permute.xlu1 %4609 }
 0x20e   : > { %4326 = vst.msk [vmem:[#allocation3 + $0x38] sm:$0xff] %vm1817_vm10, %v4286_v53 }
 0x20f   : > { %4648 = vst.msk [vmem:[#allocation3 + $0x48] sm:$0xff] %vm2141_vm12, %v4610_v5  ;;  %4646 = vst.msk [vmem:[#allocation3 + $0x38] sm:$0xff] %vm2141_vm12, %v4606_v32 }
 0x211   : > { %v3155_v50 = vpop.permute.xlu0 %3154 }
 0x212   : > { %3187 = vst.msk [vmem:[#allocation3 + $0x78] sm:$0xff] %vm2141_vm12, %v3155_v50 }
 0x215   : > { %v4288_v30 = vpop.permute.xlu0 %4287 }
 0x216   : > { %4327 = vst.msk [vmem:[#allocation3 + $0x40] sm:$0xff] %vm1817_vm10, %v4288_v30  ;;  %v4662_v25 = vld [vmem:[#allocation3 + $0x38] sm:$0xff]  ;;  %v4664_v21 = vld [vmem:[#allocation3 + $0x48] sm:$0xff] }
 0x217   : > { %6250 = vmatmul.mubr.msk.bf16.gmra.mrb[12].mxu0 %vm3212_vm15, %v4662_v25  ;;  %v4294_v45 = vpop.permute.xlu1 %4293 }
 0x218   : > { %4330 = vst.msk [vmem:[#allocation3 + $0x58] sm:$0xff] %vm1817_vm10, %v4294_v45 }
 0x219   : > { %v4608_v24 = vpop.permute.xlu0 %4607  ;;  %v3203_v29 = vld [vmem:[#allocation3 + $0x78] sm:$0xff] }
 0x21a   : > { %4647 = vst.msk [vmem:[#allocation3 + $0x40] sm:$0xff] %vm2141_vm12, %v4608_v24  ;;  %6198 = vmatmul.mubr.msk.bf16.gmra.mrb[28].mxu1 %vm3212_vm15, %v3203_v29 }
 0x21b   : > { %3790 = vst.msk [vmem:[#allocation3 + $0x78] sm:$0xff] %vm1269_vm9, %v6416_v47  ;;  %6219 = vmatprep.mubr.msk.bf16.mxu1 %vm3212_vm15, %v7621_v42  ;;  %v4614_v26 = vpop.permute.xlu1 %4613 }
 0x21c   : > { %4650 = vst.msk [vmem:[#allocation3 + $0x58] sm:$0xff] %vm2141_vm12, %v4614_v26 }
 0x21d   : > { %v4292_v46 = vpop.permute.xlu0 %4291 }
 0x21e   : > { %4329 = vst.msk [vmem:[#allocation3 + $0x50] sm:$0xff] %vm1817_vm10, %v4292_v46 }
 0x221   : > { %v4612_v44 = vpop.permute.xlu0 %4611  ;;  %v4663_v55 = vld [vmem:[#allocation3 + $0x40] sm:$0xff] }
 0x222   : > { %4649 = vst.msk [vmem:[#allocation3 + $0x50] sm:$0xff] %vm2141_vm12, %v4612_v44  ;;  %6220 = vmatmul.mubr.msk.bf16.vlgmr.msra.gmra.mrb[16].mxu1 %vm3212_vm15, %v7628_v61  ;;  %6253 = vmatprep.mubr.msk.bf16.mxu0 %vm3212_vm15, %v4663_v55  ;;  %v4298_v13 = vpop.permute.xlu1 %4297 }
 0x223   : > { %6223 = vmatprep.mubr.msk.bf16.mxu1 %vm3212_vm15, %v7793_v7  ;;  %6254 = vmatmul.mubr.msk.bf16.gmra.mrb[16].mxu0 %vm3212_vm15, %v4664_v21  ;;  %4332 = vst.msk [vmem:[#allocation3 + $0x68] sm:$0xff] %vm1817_vm10, %v4298_v13  ;;  %v4666_v56 = vld [vmem:[#allocation3 + $0x58] sm:$0xff] }
 0x225   : > { %v4296_v42 = vpop.permute.xlu0 %4295 }
 0x226   : > { %4331 = vst.msk [vmem:[#allocation3 + $0x60] sm:$0xff] %vm1817_vm10, %v4296_v42  ;;  %v4618_v9 = vpop.permute.xlu1 %4617 }
 0x227   : > { %4652 = vst.msk [vmem:[#allocation3 + $0x68] sm:$0xff] %vm2141_vm12, %v4618_v9 }
 0x229   : > { %v4616_v39 = vpop.permute.xlu0 %4615  ;;  %v4665_v6 = vld [vmem:[#allocation3 + $0x50] sm:$0xff] }
 0x22a   : > { %4651 = vst.msk [vmem:[#allocation3 + $0x60] sm:$0xff] %vm2141_vm12, %v4616_v39  ;;  %6224 = vmatmul.mubr.msk.bf16.gmra.mrb[20].mxu1 %vm3212_vm15, %v7775_v52  ;;  %6257 = vmatprep.mubr.msk.bf16.mxu0 %vm3212_vm15, %v4665_v6 }
 0x22b   : > { %6227 = vmatprep.mubr.msk.bf16.mxu1 %vm3212_vm15, %v7973_v49  ;;  %6258 = vmatmul.mubr.msk.bf16.gmra.mrb[20].mxu0 %vm3212_vm15, %v4666_v56 }
 0x22d   : > { %v4300_v61 = vpop.permute.xlu0 %4299 }
 0x22e   : > { %4333 = vst.msk [vmem:[#allocation3 + $0x70] sm:$0xff] %vm1817_vm10, %v4300_v61  ;;  %v4302_v7 = vpop.permute.xlu1 %4301  ;;  %v4668_v11 = vld [vmem:[#allocation3 + $0x68] sm:$0xff] }
 0x22f   : > { %4334 = vst.msk [vmem:[#allocation3 + $0x78] sm:$0xff] %vm1817_vm10, %v4302_v7 }
 0x231   : > { %v4620_v48 = vpop.permute.xlu0 %4619  ;;  %v4667_v27 = vld [vmem:[#allocation3 + $0x60] sm:$0xff] }
 0x232   : > { %4653 = vst.msk [vmem:[#allocation3 + $0x70] sm:$0xff] %vm2141_vm12, %v4620_v48  ;;  %v4622_v57 = vpop.permute.xlu1 %4621  ;;  %6228 = vmatmul.mubr.msk.bf16.gmra.mrb[24].mxu1 %vm3212_vm15, %v7955_v8  ;;  %6261 = vmatprep.mubr.msk.bf16.mxu0 %vm3212_vm15, %v4667_v27 }
 0x233   : > { %4654 = vst.msk [vmem:[#allocation3 + $0x78] sm:$0xff] %vm2141_vm12, %v4622_v57  ;;  %6231 = vmatprep.mubr.msk.bf16.mxu1 %vm3212_vm15, %v8044_v14  ;;  %6262 = vmatmul.mubr.msk.bf16.gmra.mrb[24].mxu0 %vm3212_vm15, %v4668_v11 }
 0x239   : > { %v4669_v52 = vld [vmem:[#allocation3 + $0x70] sm:$0xff] }
 0x23a   : > { %6232 = vmatmul.mubr.msk.bf16.gmra.mrb[28].mxu1 %vm3212_vm15, %v8039_v43  ;;  %6265 = vmatprep.mubr.msk.bf16.mxu0 %vm3212_vm15, %v4669_v52  ;;  %v4670_v49 = vld [vmem:[#allocation3 + $0x78] sm:$0xff] }
 0x23b   : > { %6266 = vmatmul.mubr.msk.bf16.gmra.mrb[28].mxu0 %vm3212_vm15, %v4670_v49 }
 0x253   : > { %v6171_v36 = vpop.f32.mrb[0].mxu1 }
 0x254   : > { %v3299_v8 = vpop.f32.mrb[1].mxu1 }
 0x255   : > { %v6172_v41 = vpop.f32.mrb[2].mxu1 }
 0x256   : > { %v3302_v15 = vpop.f32.mrb[3].mxu1 }
 0x25b   : > { %v6175_v1 = vpop.f32.mrb[4].mxu1 }
 0x25c   : > { %v3315_v2 = vpop.f32.mrb[5].mxu1 }
 0x25d   : > { %v6176_v22 = vpop.f32.mrb[6].mxu1 }
 0x25e   : > { %v3318_v59 = vpop.f32.mrb[7].mxu1 }
 0x263   : > { %v8112_v23 = vpop.f32.mrb[8].mxu1 }
 0x264   : > { %v8114_v0 = vpop.f32.mrb[9].mxu1 }
 0x265   : > { %v8116_v18 = vpop.f32.mrb[10].mxu1 }
 0x266   : > { %v8118_v3 = vpop.f32.mrb[11].mxu1 }
 0x26b   : > { %v8120_v43 = vpop.f32.mrb[12].mxu1 }
 0x26c   : > { %v8122_v31 = vpop.f32.mrb[13].mxu1 }
 0x26d   : > { %v8124_v16 = vpop.f32.mrb[14].mxu1 }
 0x26e   : > { %v8126_v20 = vpop.f32.mrb[15].mxu1 }
 0x28e   : > { %v6239_v14 = vpop.f32.mrb[0].mxu0 }
 0x28f   : > { %v6271_v37 = vadd.f32 %v6239_v14, %v6171_v36  ;;  %v4764_v38 = vpop.f32.mrb[1].mxu0 }
 0x290   : > { %v6272_v60 = vadd.f32 %v4764_v38, %v3299_v8  ;;  %v6240_v51 = vpop.f32.mrb[2].mxu0 }
 0x291   : > { %v6007_v12 = vpack.c.bf16 %v6271_v37, %v6271_v37  ;;  %v6273_v35 = vadd.f32 %v6240_v51, %v6172_v41  ;;  %v4767_v33 = vpop.f32.mrb[3].mxu0  ;;  %v5157_v34 = vmul.f32 %v6271_v37, %v6271_v37  ;;  %v5087_v63 = vsel %vm1269_vm9, %v6271_v37, 0.0 }
 0x292   : > { %v6005_v58 = vpack.c.bf16 %v6272_v60, %v6272_v60  ;;  %v5155_v40 = vmul.f32 %v6272_v60, %v6272_v60  ;;  %v6274_v10 = vadd.f32 %v4767_v33, %v3302_v15  ;;  %v5084_v19 = vsel %vm1269_vm9, %v6272_v60, 0.0 }
 0x293   : > { %5054 = vst.msk [vmem:[%s8133_s16 + $0x8] sm:$0xf] %vm299_vm0, %v6007_v12  ;;  %v6008_v4 = vpack.c.bf16 %v6273_v35, %v6273_v35  ;;  %v5158_v32 = vmul.f32 %v6273_v35, %v6273_v35  ;;  %v5190_v24 = vsel %vm1269_vm9, %v5157_v34, 0.0  ;;  %v5089_v46 = vsel %vm1269_vm9, %v6273_v35, 0.0 }
 0x294   : > { %5052 = vst.msk [vmem:[%s8133_s16] sm:$0xf] %vm299_vm0, %v6005_v58  ;;  %v6006_v62 = vpack.c.bf16 %v6274_v10, %v6274_v10  ;;  %v5085_v54 = vsel %vm1269_vm9, %v6274_v10, 0.0  ;;  %v5156_v28 = vmul.f32 %v6274_v10, %v6274_v10  ;;  %v5187_v53 = vsel %vm1269_vm9, %v5155_v40, 0.0 }
 0x295   : > { %5055 = vst.msk [vmem:[%s8133_s16 + $0xc] sm:$0xf] %vm299_vm0, %v6008_v4  ;;  %v5086_v17 = vadd.f32 %v5085_v54, %v5084_v19  ;;  %v5192_v21 = vsel %vm1269_vm9, %v5158_v32, 0.0 }
 0x296   : > { %5053 = vst.msk [vmem:[%s8133_s16 + $0x4] sm:$0xf] %vm299_vm0, %v6006_v62  ;;  %v5188_v5 = vsel %vm1269_vm9, %v5156_v28, 0.0  ;;  %v6243_v50 = vpop.f32.mrb[4].mxu0 }
 0x297   : > { %v5088_v30 = vadd.f32 %v5087_v63, %v5086_v17  ;;  %v5189_v25 = vadd.f32 %v5188_v5, %v5187_v53  ;;  %v6275_v47 = vadd.f32 %v6243_v50, %v6175_v1  ;;  %v4780_v45 = vpop.f32.mrb[5].mxu0 }
 0x298   : > { %v6276_v29 = vadd.f32 %v4780_v45, %v3315_v2  ;;  %v6244_v26 = vpop.f32.mrb[6].mxu0 }
 0x299   : > { %v5191_v44 = vadd.f32 %v5190_v24, %v5189_v25  ;;  %v6011_v55 = vpack.c.bf16 %v6275_v47, %v6275_v47  ;;  %v4783_v13 = vpop.f32.mrb[7].mxu0  ;;  %v5090_v9 = vadd.f32 %v5089_v46, %v5088_v30  ;;  %v6277_v61 = vadd.f32 %v6244_v26, %v6176_v22 }
 0x29a   : > { %v6009_v42 = vpack.c.bf16 %v6276_v29, %v6276_v29  ;;  %v5091_v56 = vsel %vm1269_vm9, %v6276_v29, 0.0  ;;  %v5159_v39 = vmul.f32 %v6276_v29, %v6276_v29  ;;  %v6278_v7 = vadd.f32 %v4783_v13, %v3318_v59 }
 0x29b   : > { %5058 = vst.msk [vmem:[%s8133_s16 + $0x18] sm:$0xf] %vm299_vm0, %v6011_v55  ;;  %v5193_v6 = vadd.f32 %v5192_v21, %v5191_v44  ;;  %v5092_v11 = vadd.f32 %v5091_v56, %v5090_v9  ;;  %v6012_v57 = vpack.c.bf16 %v6277_v61, %v6277_v61  ;;  %v5161_v52 = vmul.f32 %v6275_v47, %v6275_v47 }
 0x29c   : > { %5056 = vst.msk [vmem:[%s8133_s16 + $0x10] sm:$0xf] %vm299_vm0, %v6009_v42  ;;  %v5194_v48 = vsel %vm1269_vm9, %v5159_v39, 0.0  ;;  %v6010_v49 = vpack.c.bf16 %v6278_v7, %v6278_v7  ;;  %v5093_v36 = vsel %vm1269_vm9, %v6278_v7, 0.0  ;;  %v5160_v8 = vmul.f32 %v6278_v7, %v6278_v7 }
 0x29d   : > { %v5195_v27 = vadd.f32 %v5194_v48, %v5193_v6  ;;  %5059 = vst.msk [vmem:[%s8133_s16 + $0x1c] sm:$0xf] %vm299_vm0, %v6012_v57  ;;  %v5094_v41 = vadd.f32 %v5093_v36, %v5092_v11  ;;  %v5095_v15 = vsel %vm1269_vm9, %v6275_v47, 0.0  ;;  %v5162_v1 = vmul.f32 %v6277_v61, %v6277_v61 }
 0x29e   : > { %5057 = vst.msk [vmem:[%s8133_s16 + $0x14] sm:$0xf] %vm299_vm0, %v6010_v49  ;;  %v5196_v2 = vsel %vm1269_vm9, %v5160_v8, 0.0  ;;  %v5198_v14 = vsel %vm1269_vm9, %v5161_v52, 0.0  ;;  %v5097_v37 = vsel %vm1269_vm9, %v6277_v61, 0.0 }
 0x29f   : > { %v5096_v22 = vadd.f32 %v5095_v15, %v5094_v41  ;;  %v5197_v59 = vadd.f32 %v5196_v2, %v5195_v27  ;;  %v5200_v51 = vsel %vm1269_vm9, %v5162_v1, 0.0 }
 0x2a1   : > { %v5199_v38 = vadd.f32 %v5198_v14, %v5197_v59  ;;  %v5098_v60 = vadd.f32 %v5097_v37, %v5096_v22 }
 0x2a3   : > { %v5201_v12 = vadd.f32 %v5200_v51, %v5199_v38 }
 0x2be   : > { %v6247_v35 = vpop.f32.mrb[8].mxu0 }
 0x2bf   : > { %v6279_v33 = vadd.f32 %v6247_v35, %v8112_v23  ;;  %v4796_v58 = vpop.f32.mrb[9].mxu0 }
 0x2c0   : > { %v6280_v40 = vadd.f32 %v4796_v58, %v8114_v0  ;;  %v6248_v10 = vpop.f32.mrb[10].mxu0 }
 0x2c1   : > { %v6015_v34 = vpack.c.bf16 %v6279_v33, %v6279_v33  ;;  %v6281_v4 = vadd.f32 %v6248_v10, %v8116_v18  ;;  %v4799_v19 = vpop.f32.mrb[11].mxu0  ;;  %v5165_v18 = vmul.f32 %v6279_v33, %v6279_v33  ;;  %v5103_v25 = vsel %vm1269_vm9, %v6279_v33, 0.0 }
 0x2c2   : > { %v6013_v62 = vpack.c.bf16 %v6280_v40, %v6280_v40  ;;  %v5099_v54 = vsel %vm1269_vm9, %v6280_v40, 0.0  ;;  %v5163_v28 = vmul.f32 %v6280_v40, %v6280_v40  ;;  %v6282_v32 = vadd.f32 %v4799_v19, %v8118_v3 }
 0x2c3   : > { %5062 = vst.msk [vmem:[%s8133_s16 + $0x28] sm:$0xf] %vm299_vm0, %v6015_v34  ;;  %v5100_v17 = vadd.f32 %v5099_v54, %v5098_v60  ;;  %v6016_v23 = vpack.c.bf16 %v6281_v4, %v6281_v4  ;;  %v5166_v3 = vmul.f32 %v6281_v4, %v6281_v4  ;;  %v5105_v24 = vsel %vm1269_vm9, %v6281_v4, 0.0 }
 0x2c4   : > { %5060 = vst.msk [vmem:[%s8133_s16 + $0x20] sm:$0xf] %vm299_vm0, %v6013_v62  ;;  %v5202_v0 = vsel %vm1269_vm9, %v5163_v28, 0.0  ;;  %v6014_v63 = vpack.c.bf16 %v6282_v32, %v6282_v32  ;;  %v5101_v53 = vsel %vm1269_vm9, %v6282_v32, 0.0  ;;  %v5164_v30 = vmul.f32 %v6282_v32, %v6282_v32 }
 0x2c5   : > { %v5203_v5 = vadd.f32 %v5202_v0, %v5201_v12  ;;  %5063 = vst.msk [vmem:[%s8133_s16 + $0x2c] sm:$0xf] %vm299_vm0, %v6016_v23  ;;  %v5102_v50 = vadd.f32 %v5101_v53, %v5100_v17  ;;  %v5206_v26 = vsel %vm1269_vm9, %v5165_v18, 0.0  ;;  %v5208_v44 = vsel %vm1269_vm9, %v5166_v3, 0.0 }
 0x2c6   : > { %5061 = vst.msk [vmem:[%s8133_s16 + $0x24] sm:$0xf] %vm299_vm0, %v6014_v63  ;;  %v5204_v45 = vsel %vm1269_vm9, %v5164_v30, 0.0 }
 0x2c7   : > { %v5104_v47 = vadd.f32 %v5103_v25, %v5102_v50  ;;  %v5205_v29 = vadd.f32 %v5204_v45, %v5203_v5 }
 0x2c9   : > { %v5106_v46 = vadd.f32 %v5105_v24, %v5104_v47  ;;  %v5207_v21 = vadd.f32 %v5206_v26, %v5205_v29 }
 0x2cb   : > { %v5209_v55 = vadd.f32 %v5208_v44, %v5207_v21 }
 0x2ea   : > { %v6251_v13 = vpop.f32.mrb[12].mxu0 }
 0x2eb   : > { %v6283_v42 = vadd.f32 %v6251_v13, %v8120_v43  ;;  %v4812_v9 = vpop.f32.mrb[13].mxu0 }
 0x2ec   : > { %v6284_v56 = vadd.f32 %v4812_v9, %v8122_v31  ;;  %v6252_v39 = vpop.f32.mrb[14].mxu0 }
 0x2ed   : > { %v6019_v6 = vpack.c.bf16 %v6283_v42, %v6283_v42  ;;  %v6285_v61 = vadd.f32 %v6252_v39, %v8124_v16  ;;  %v4815_v7 = vpop.f32.mrb[15].mxu0  ;;  %v5169_v16 = vmul.f32 %v6283_v42, %v6283_v42  ;;  %v5111_v1 = vsel %vm1269_vm9, %v6283_v42, 0.0 }
 0x2ee   : > { %v6017_v11 = vpack.c.bf16 %v6284_v56, %v6284_v56  ;;  %v5107_v48 = vsel %vm1269_vm9, %v6284_v56, 0.0  ;;  %v5167_v27 = vmul.f32 %v6284_v56, %v6284_v56  ;;  %v6286_v57 = vadd.f32 %v4815_v7, %v8126_v20 }
 0x2ef   : > { %5066 = vst.msk [vmem:[%s8133_s16 + $0x38] sm:$0xf] %vm299_vm0, %v6019_v6  ;;  %v5108_v52 = vadd.f32 %v5107_v48, %v5106_v46  ;;  %v6020_v43 = vpack.c.bf16 %v6285_v61, %v6285_v61  ;;  %v5170_v20 = vmul.f32 %v6285_v61, %v6285_v61  ;;  %v5113_v59 = vsel %vm1269_vm9, %v6285_v61, 0.0 }
 0x2f0   : > { %5064 = vst.msk [vmem:[%s8133_s16 + $0x30] sm:$0xf] %vm299_vm0, %v6017_v11  ;;  %v5210_v31 = vsel %vm1269_vm9, %v5167_v27, 0.0  ;;  %v6018_v49 = vpack.c.bf16 %v6286_v57, %v6286_v57  ;;  %v5109_v36 = vsel %vm1269_vm9, %v6286_v57, 0.0  ;;  %v5168_v15 = vmul.f32 %v6286_v57, %v6286_v57 }
 0x2f1   : > { %v5211_v8 = vadd.f32 %v5210_v31, %v5209_v55  ;;  %5067 = vst.msk [vmem:[%s8133_s16 + $0x3c] sm:$0xf] %vm299_vm0, %v6020_v43  ;;  %v5110_v41 = vadd.f32 %v5109_v36, %v5108_v52  ;;  %v5214_v37 = vsel %vm1269_vm9, %v5169_v16, 0.0  ;;  %v5216_v33 = vsel %vm1269_vm9, %v5170_v20, 0.0 }
 0x2f2   : > { %5065 = vst.msk [vmem:[%s8133_s16 + $0x34] sm:$0xf] %vm299_vm0, %v6018_v49  ;;  %v5212_v22 = vsel %vm1269_vm9, %v5168_v15, 0.0 }
 0x2f3   : > { %v5112_v2 = vadd.f32 %v5111_v1, %v5110_v41  ;;  %v5213_v14 = vadd.f32 %v5212_v22, %v5211_v8 }
 0x2f5   : > { %v6221_v38 = vpop.f32.mrb[16].mxu1  ;;  %v5114_v60 = vadd.f32 %v5113_v59, %v5112_v2  ;;  %v5215_v51 = vadd.f32 %v5214_v37, %v5213_v14 }
 0x2f6   : > { %v3580_v12 = vpop.f32.mrb[17].mxu1  ;;  %v6255_v35 = vpop.f32.mrb[16].mxu0 }
 0x2f7   : > { %v6287_v58 = vadd.f32 %v6255_v35, %v6221_v38  ;;  %v6222_v40 = vpop.f32.mrb[18].mxu1  ;;  %v4828_v10 = vpop.f32.mrb[17].mxu0  ;;  %v5217_v4 = vadd.f32 %v5216_v33, %v5215_v51 }
 0x2f8   : > { %v6288_v34 = vadd.f32 %v4828_v10, %v3580_v12  ;;  %v3583_v19 = vpop.f32.mrb[19].mxu1  ;;  %v6256_v62 = vpop.f32.mrb[18].mxu0 }
 0x2f9   : > { %v6023_v54 = vpack.c.bf16 %v6287_v58, %v6287_v58  ;;  %v6289_v28 = vadd.f32 %v6256_v62, %v6222_v40  ;;  %v4831_v32 = vpop.f32.mrb[19].mxu0  ;;  %v5173_v25 = vmul.f32 %v6287_v58, %v6287_v58  ;;  %v5119_v29 = vsel %vm1269_vm9, %v6287_v58, 0.0 }
 0x2fa   : > { %v6021_v17 = vpack.c.bf16 %v6288_v34, %v6288_v34  ;;  %v5115_v23 = vsel %vm1269_vm9, %v6288_v34, 0.0  ;;  %v5171_v0 = vmul.f32 %v6288_v34, %v6288_v34  ;;  %v6290_v63 = vadd.f32 %v4831_v32, %v3583_v19 }
 0x2fb   : > { %5070 = vst.msk [vmem:[%s8133_s16 + $0x48] sm:$0xf] %vm299_vm0, %v6023_v54  ;;  %v5116_v53 = vadd.f32 %v5115_v23, %v5114_v60  ;;  %v6024_v18 = vpack.c.bf16 %v6289_v28, %v6289_v28  ;;  %v5174_v21 = vmul.f32 %v6289_v28, %v6289_v28  ;;  %v5121_v56 = vsel %vm1269_vm9, %v6289_v28, 0.0 }
 0x2fc   : > { %5068 = vst.msk [vmem:[%s8133_s16 + $0x40] sm:$0xf] %vm299_vm0, %v6021_v17  ;;  %v5218_v5 = vsel %vm1269_vm9, %v5171_v0, 0.0  ;;  %v6022_v50 = vpack.c.bf16 %v6290_v63, %v6290_v63  ;;  %v5117_v30 = vsel %vm1269_vm9, %v6290_v63, 0.0  ;;  %v5172_v45 = vmul.f32 %v6290_v63, %v6290_v63 }
 0x2fd   : > { %v5219_v3 = vadd.f32 %v5218_v5, %v5217_v4  ;;  %5071 = vst.msk [vmem:[%s8133_s16 + $0x4c] sm:$0xf] %vm299_vm0, %v6024_v18  ;;  %v5118_v47 = vadd.f32 %v5117_v30, %v5116_v53  ;;  %v6225_v24 = vpop.f32.mrb[20].mxu1  ;;  %v5222_v11 = vsel %vm1269_vm9, %v5173_v25, 0.0  ;;  %v5224_v36 = vsel %vm1269_vm9, %v5174_v21, 0.0 }
 0x2fe   : > { %5069 = vst.msk [vmem:[%s8133_s16 + $0x44] sm:$0xf] %vm299_vm0, %v6022_v50  ;;  %v3596_v26 = vpop.f32.mrb[21].mxu1  ;;  %v6259_v46 = vpop.f32.mrb[20].mxu0  ;;  %v5220_v55 = vsel %vm1269_vm9, %v5172_v45, 0.0 }
 0x2ff   : > { %v5120_v44 = vadd.f32 %v5119_v29, %v5118_v47  ;;  %v6291_v13 = vadd.f32 %v6259_v46, %v6225_v24  ;;  %v6226_v42 = vpop.f32.mrb[22].mxu1  ;;  %v4844_v9 = vpop.f32.mrb[21].mxu0  ;;  %v5221_v39 = vadd.f32 %v5220_v55, %v5219_v3 }
 0x300   : > { %v6292_v6 = vadd.f32 %v4844_v9, %v3596_v26  ;;  %v3599_v61 = vpop.f32.mrb[23].mxu1  ;;  %v6260_v7 = vpop.f32.mrb[22].mxu0 }
 0x301   : > { %v6027_v48 = vpack.c.bf16 %v6291_v13, %v6291_v13  ;;  %v5122_v27 = vadd.f32 %v5121_v56, %v5120_v44  ;;  %v4847_v57 = vpop.f32.mrb[23].mxu0  ;;  %v5223_v52 = vadd.f32 %v5222_v11, %v5221_v39  ;;  %v6293_v8 = vadd.f32 %v6260_v7, %v6226_v42 }
 0x302   : > { %v6025_v43 = vpack.c.bf16 %v6292_v6, %v6292_v6  ;;  %v5123_v31 = vsel %vm1269_vm9, %v6292_v6, 0.0  ;;  %v5175_v49 = vmul.f32 %v6292_v6, %v6292_v6  ;;  %v6294_v41 = vadd.f32 %v4847_v57, %v3599_v61 }
 0x303   : > { %5074 = vst.msk [vmem:[%s8133_s16 + $0x58] sm:$0xf] %vm299_vm0, %v6027_v48  ;;  %v5124_v16 = vadd.f32 %v5123_v31, %v5122_v27  ;;  %v5225_v15 = vadd.f32 %v5224_v36, %v5223_v52  ;;  %v5177_v20 = vmul.f32 %v6291_v13, %v6291_v13  ;;  %v6028_v2 = vpack.c.bf16 %v6293_v8, %v6293_v8 }
 0x304   : > { %5072 = vst.msk [vmem:[%s8133_s16 + $0x50] sm:$0xf] %vm299_vm0, %v6025_v43  ;;  %v5226_v1 = vsel %vm1269_vm9, %v5175_v49, 0.0  ;;  %v6026_v22 = vpack.c.bf16 %v6294_v41, %v6294_v41  ;;  %v5125_v37 = vsel %vm1269_vm9, %v6294_v41, 0.0  ;;  %v5176_v38 = vmul.f32 %v6294_v41, %v6294_v41 }
 0x305   : > { %v6229_v59 = vpop.f32.mrb[24].mxu1  ;;  %v5227_v14 = vadd.f32 %v5226_v1, %v5225_v15  ;;  %5075 = vst.msk [vmem:[%s8133_s16 + $0x5c] sm:$0xf] %vm299_vm0, %v6028_v2  ;;  %v5126_v12 = vadd.f32 %v5125_v37, %v5124_v16  ;;  %v5127_v40 = vsel %vm1269_vm9, %v6291_v13, 0.0  ;;  %v5178_v10 = vmul.f32 %v6293_v8, %v6293_v8 }
 0x306   : > { %v3612_v60 = vpop.f32.mrb[25].mxu1  ;;  %v6263_v51 = vpop.f32.mrb[24].mxu0  ;;  %5073 = vst.msk [vmem:[%s8133_s16 + $0x54] sm:$0xf] %vm299_vm0, %v6026_v22  ;;  %v5228_v34 = vsel %vm1269_vm9, %v5176_v38, 0.0  ;;  %v5230_v54 = vsel %vm1269_vm9, %v5177_v20, 0.0 }
 0x307   : > { %v6295_v35 = vadd.f32 %v6263_v51, %v6229_v59  ;;  %v6230_v33 = vpop.f32.mrb[26].mxu1  ;;  %v4860_v58 = vpop.f32.mrb[25].mxu0  ;;  %v5128_v28 = vadd.f32 %v5127_v40, %v5126_v12  ;;  %v5229_v32 = vadd.f32 %v5228_v34, %v5227_v14  ;;  %v5129_v0 = vsel %vm1269_vm9, %v6293_v8, 0.0 }
 0x308   : > { %v6296_v4 = vadd.f32 %v4860_v58, %v3612_v60  ;;  %v3615_v19 = vpop.f32.mrb[27].mxu1  ;;  %v6264_v62 = vpop.f32.mrb[26].mxu0  ;;  %v5232_v3 = vsel %vm1269_vm9, %v5178_v10, 0.0 }
 0x309   : > { %v6031_v17 = vpack.c.bf16 %v6295_v35, %v6295_v35  ;;  %v4863_v23 = vpop.f32.mrb[27].mxu0  ;;  %v5231_v5 = vadd.f32 %v5230_v54, %v5229_v32  ;;  %v5130_v50 = vadd.f32 %v5129_v0, %v5128_v28  ;;  %v6297_v30 = vadd.f32 %v6264_v62, %v6230_v33 }
 0x30a   : > { %v6029_v63 = vpack.c.bf16 %v6296_v4, %v6296_v4  ;;  %v5131_v53 = vsel %vm1269_vm9, %v6296_v4, 0.0  ;;  %v5179_v18 = vmul.f32 %v6296_v4, %v6296_v4  ;;  %v6298_v25 = vadd.f32 %v4863_v23, %v3615_v19 }
 0x30b   : > { %5078 = vst.msk [vmem:[%s8133_s16 + $0x68] sm:$0xf] %vm299_vm0, %v6031_v17  ;;  %v5181_v45 = vmul.f32 %v6295_v35, %v6295_v35  ;;  %v5132_v24 = vadd.f32 %v5131_v53, %v5130_v50  ;;  %v5233_v29 = vadd.f32 %v5232_v3, %v5231_v5  ;;  %v6032_v26 = vpack.c.bf16 %v6297_v30, %v6297_v30 }
 0x30c   : > { %5076 = vst.msk [vmem:[%s8133_s16 + $0x60] sm:$0xf] %vm299_vm0, %v6029_v63  ;;  %v5234_v47 = vsel %vm1269_vm9, %v5179_v18, 0.0  ;;  %v6030_v21 = vpack.c.bf16 %v6298_v25, %v6298_v25  ;;  %v5133_v44 = vsel %vm1269_vm9, %v6298_v25, 0.0  ;;  %v5180_v55 = vmul.f32 %v6298_v25, %v6298_v25 }
 0x30d   : > { %v6233_v46 = vpop.f32.mrb[28].mxu1  ;;  %v5235_v9 = vadd.f32 %v5234_v47, %v5233_v29  ;;  %5079 = vst.msk [vmem:[%s8133_s16 + $0x6c] sm:$0xf] %vm299_vm0, %v6032_v26  ;;  %v5134_v56 = vadd.f32 %v5133_v44, %v5132_v24  ;;  %v5135_v7 = vsel %vm1269_vm9, %v6295_v35, 0.0  ;;  %v5182_v11 = vmul.f32 %v6297_v30, %v6297_v30 }
 0x30e   : > { %v3628_v13 = vpop.f32.mrb[29].mxu1  ;;  %v6267_v42 = vpop.f32.mrb[28].mxu0  ;;  %5077 = vst.msk [vmem:[%s8133_s16 + $0x64] sm:$0xf] %vm299_vm0, %v6030_v21  ;;  %v5236_v48 = vsel %vm1269_vm9, %v5180_v55, 0.0  ;;  %v5238_v43 = vsel %vm1269_vm9, %v5181_v45, 0.0 }
 0x30f   : > { %v6299_v39 = vadd.f32 %v6267_v42, %v6233_v46  ;;  %v6234_v6 = vpop.f32.mrb[30].mxu1  ;;  %v4876_v61 = vpop.f32.mrb[29].mxu0  ;;  %v5136_v31 = vadd.f32 %v5135_v7, %v5134_v56  ;;  %v5237_v49 = vadd.f32 %v5236_v48, %v5235_v9  ;;  %v5137_v8 = vsel %vm1269_vm9, %v6297_v30, 0.0 }
 0x310   : > { %v6300_v27 = vadd.f32 %v4876_v61, %v3628_v13  ;;  %v3631_v57 = vpop.f32.mrb[31].mxu1  ;;  %v6268_v52 = vpop.f32.mrb[30].mxu0  ;;  %v5240_v14 = vsel %vm1269_vm9, %v5182_v11, 0.0 }
 0x311   : > { %v6035_v36 = vpack.c.bf16 %v6299_v39, %v6299_v39  ;;  %v4879_v16 = vpop.f32.mrb[31].mxu0  ;;  %v5239_v20 = vadd.f32 %v5238_v43, %v5237_v49  ;;  %v5138_v2 = vadd.f32 %v5137_v8, %v5136_v31  ;;  %v6301_v22 = vadd.f32 %v6268_v52, %v6234_v6 }
 0x312   : > { %v6033_v41 = vpack.c.bf16 %v6300_v27, %v6300_v27  ;;  %v5139_v15 = vsel %vm1269_vm9, %v6300_v27, 0.0  ;;  %v5183_v1 = vmul.f32 %v6300_v27, %v6300_v27  ;;  %v6302_v59 = vadd.f32 %v4879_v16, %v3631_v57 }
 0x313   : > { %5082 = vst.msk [vmem:[%s8133_s16 + $0x78] sm:$0xf] %vm299_vm0, %v6035_v36  ;;  %v5140_v38 = vadd.f32 %v5139_v15, %v5138_v2  ;;  %v5241_v60 = vadd.f32 %v5240_v14, %v5239_v20  ;;  %v6036_v51 = vpack.c.bf16 %v6301_v22, %v6301_v22  ;;  %v5185_v12 = vmul.f32 %v6299_v39, %v6299_v39 }
 0x314   : > { %5080 = vst.msk [vmem:[%s8133_s16 + $0x70] sm:$0xf] %vm299_vm0, %v6033_v41  ;;  %v5242_v37 = vsel %vm1269_vm9, %v5183_v1, 0.0  ;;  %v6034_v35 = vpack.c.bf16 %v6302_v59, %v6302_v59  ;;  %v5141_v33 = vsel %vm1269_vm9, %v6302_v59, 0.0  ;;  %v5184_v58 = vmul.f32 %v6302_v59, %v6302_v59 }
 0x315   : > { %v5243_v40 = vadd.f32 %v5242_v37, %v5241_v60  ;;  %5083 = vst.msk [vmem:[%s8133_s16 + $0x7c] sm:$0xf] %vm299_vm0, %v6036_v51  ;;  %v5142_v10 = vadd.f32 %v5141_v33, %v5140_v38  ;;  %v5143_v34 = vsel %vm1269_vm9, %v6299_v39, 0.0  ;;  %v5186_v4 = vmul.f32 %v6301_v22, %v6301_v22 }
 0x316   : > { %5081 = vst.msk [vmem:[%s8133_s16 + $0x74] sm:$0xf] %vm299_vm0, %v6034_v35  ;;  %v5244_v19 = vsel %vm1269_vm9, %v5184_v58, 0.0  ;;  %v5246_v28 = vsel %vm1269_vm9, %v5185_v12, 0.0  ;;  %v5145_v32 = vsel %vm1269_vm9, %v6301_v22, 0.0 }
 0x317   : > { %v5144_v62 = vadd.f32 %v5143_v34, %v5142_v10  ;;  %v5245_v54 = vadd.f32 %v5244_v19, %v5243_v40  ;;  %v5248_v0 = vsel %vm1269_vm9, %v5186_v4, 0.0 }
 0x319   : > { %v5146_v17 = vadd.f32 %v5145_v32, %v5144_v62  ;;  %v5247_v23 = vadd.f32 %v5246_v28, %v5245_v54 }
 0x31b   : > { %v5147_v63 = vrot.slane %v5146_v17, 4  ;;  %v5249_v53 = vadd.f32 %v5248_v0, %v5247_v23 }
 0x31d   : > { %v5148_v18 = vadd.f32 %v5147_v63, %v5146_v17  ;;  %v5250_v5 = vrot.slane %v5249_v53, 4 }
 0x31f   : > { %v5149_v50 = vrot.slane %v5148_v18, 2  ;;  %v5251_v30 = vadd.f32 %v5250_v5, %v5249_v53 }
 0x321   : > { %v5150_v25 = vadd.f32 %v5149_v50, %v5148_v18  ;;  %v5252_v3 = vrot.slane %v5251_v30, 2 }
 0x323   : > { %v5151_v47 = vrot.slane %v5150_v25, 1  ;;  %v5253_v45 = vadd.f32 %v5252_v3, %v5251_v30 }
 0x325   : > { %v5152_v24 = vadd.f32 %v5151_v47, %v5150_v25  ;;  %v5254_v29 = vrot.slane %v5253_v45, 1 }
 0x327   : > { %5154 = vst.msk [vmem:[%s293_s19] sm:$0x1] %vm302_vm1, %v5152_v24  ;;  %v5255_v26 = vadd.f32 %v5254_v29, %v5253_v45 }
 0x329   : > { %5256 = vst.msk [vmem:[%s293_s19 + $0x1] sm:$0x1] %vm302_vm1, %v5255_v26 }
 0x32a PF: > { %s17_s23 = sadd.s32 1, %s6446_s23   ;;  %s8321_s21 = smov %s6442_s22 }
 0x32b   : > { %p14_p5 = scmp.ge.s32.totalorder %s17_s23, 4   ;;  %s8322_s22 = smov %s8324_s24 }
 0x32d   :  { %16 = sbr.rel (!%p14_p5) target bundleno = 2 (0x2), region = 92 }

</bundles_post_ra>
